<compile_context>
chip_gen: v6e
topology: v6e:2x2x1
jax: 0.10.0
libtpu: 0.0.40
codegen_flags: <defaults>
</compile_context>

<pallas_src>
import functools
import math

import jax
import jax.numpy as jnp
from jax.experimental import pallas as pl
from jax.experimental.pallas import tpu as pltpu

EPS = 1e-5
BN_SCALE = 1.0 / math.sqrt(1.0 + EPS)
EXPANSION = 4  # Bottleneck.expansion
NUM_CLASSES = 32

# (planes, num_blocks, stride) for layer1..layer4
LAYER_CFG = [(64, 1, 1), (128, 1, 2), (256, 1, 2), (512, 1, 2)]


def _round_up(x, m):
    return (x + m - 1) // m * m


# ----------------------------- Pallas kernel -------------------------------

def _mm_kernel(*refs, relu, has_res, has_bias):
    """Fused matmul: out = maybe_relu(acc [+ bias] [+ residual])."""
    it = iter(refs)
    x_ref = next(it)
    w_ref = next(it)
    res_ref = next(it) if has_res else None
    bias_ref = next(it) if has_bias else None
    o_ref = next(it)
    acc_ref = next(it)

    k = pl.program_id(2)

    @pl.when(k == 0)
    def _():
        acc_ref[...] = jnp.zeros_like(acc_ref)

    acc_ref[...] += jnp.dot(x_ref[...], w_ref[...],
                            preferred_element_type=jnp.float32)

    @pl.when(k == pl.num_programs(2) - 1)
    def _():
        y = acc_ref[...]
        if has_bias:
            y = y + bias_ref[...]
        if has_res:
            y = y + res_ref[...].astype(jnp.float32)
        if relu:
            y = jnp.maximum(y, 0.0)
        o_ref[...] = y.astype(o_ref.dtype)


def matmul_fused(x, w, *, bias=None, residual=None, relu=False,
                 out_dtype=jnp.bfloat16):
    """out = maybe_relu(x @ w [+ bias] [+ residual]).

    x:(M,K), w:(K,N) -> cast to bf16 operands, f32 MXU accumulation.
    bias:(N,) f32.  residual:(M,N) (any float dtype), added in f32 epilogue.
    """
    M, K = x.shape
    K2, N = w.shape
    assert K == K2

    # Adaptive tiles: don't pad tiny M (layers 3/4, fc) up to 128; keep lane
    # dims 128/256-aligned for dense MXU fill and unmasked vector stores.
    tm = min(256, _round_up(M, 16))
    tn = min(256, _round_up(N, 128))
    Kp = _round_up(K, 128)
    tk = 256 if Kp % 256 == 0 else 128
    Mp, Np = _round_up(M, tm), _round_up(N, tn)

    xp = jnp.pad(x.astype(jnp.bfloat16), ((0, Mp - M), (0, Kp - K)))
    wp = jnp.pad(w.astype(jnp.bfloat16), ((0, Kp - K), (0, Np - N)))

    in_arrays = [xp, wp]
    in_specs = [
        pl.BlockSpec((tm, tk), lambda i, j, k: (i, k)),
        pl.BlockSpec((tk, tn), lambda i, j, k: (k, j)),
    ]
    has_res = residual is not None
    has_bias = bias is not None
    if has_res:
        rp = jnp.pad(residual, ((0, Mp - M), (0, Np - N)))
        in_arrays.append(rp)
        # Block index is constant across k, so it is only DMA'd once per (i,j).
        in_specs.append(pl.BlockSpec((tm, tn), lambda i, j, k: (i, j)))
    if has_bias:
        bp = jnp.pad(bias.astype(jnp.float32), (0, Np - N)).reshape(1, Np)
        in_arrays.append(bp)
        in_specs.append(pl.BlockSpec((1, tn), lambda i, j, k: (0, j)))

    out = pl.pallas_call(
        functools.partial(_mm_kernel, relu=relu, has_res=has_res,
                          has_bias=has_bias),
        out_shape=jax.ShapeDtypeStruct((Mp, Np), out_dtype),
        grid_spec=pltpu.PrefetchScalarGridSpec(
            num_scalar_prefetch=0,
            grid=(Mp // tm, Np // tn, Kp // tk),
            in_specs=in_specs,
            out_specs=pl.BlockSpec((tm, tn), lambda i, j, k: (i, j)),
            scratch_shapes=[pltpu.VMEM((tm, tn), jnp.float32)],
        ),
        compiler_params=pltpu.CompilerParams(
            dimension_semantics=("parallel", "parallel", "arbitrary")),
    )(*in_arrays)
    if Mp != M or Np != N:
        out = out[:M, :N]
    return out


# ------------------------------- Conv glue ---------------------------------

def _im2col3d(x, ksize, stride, pad):
    """x: (N,D,H,W,C) -> cols (N*Do*Ho*Wo, kd*kh*kw*C), column order (kd,kh,kw,cin)."""
    N, D, H, W, C = x.shape
    kd, kh, kw = ksize
    sd, sh, sw = stride
    pd, ph, pw = pad
    xp = jnp.pad(x, ((0, 0), (pd, pd), (ph, ph), (pw, pw), (0, 0)))
    Do = (D + 2 * pd - kd) // sd + 1
    Ho = (H + 2 * ph - kh) // sh + 1
    Wo = (W + 2 * pw - kw) // sw + 1
    patches = []
    for a in range(kd):
        for b in range(kh):
            for c in range(kw):
                patches.append(
                    xp[:, a:a + Do * sd:sd, b:b + Ho * sh:sh, c:c + Wo * sw:sw, :])
    cols = jnp.concatenate(patches, axis=-1).reshape(
        N * Do * Ho * Wo, kd * kh * kw * C)
    return cols, (N, Do, Ho, Wo)


def conv_bn_relu(x, w_mat, ksize, stride, pad, relu, residual=None,
                 out_dtype=jnp.bfloat16):
    """Conv3d(bias=False) + folded BatchNorm3d(eval) + optional ReLU
    [+ fused residual add] via the fused Pallas matmul."""
    cout = w_mat.shape[1]
    if ksize == (1, 1, 1):
        sd, sh, sw = stride
        if (sd, sh, sw) != (1, 1, 1):
            x = x[:, ::sd, ::sh, ::sw, :]
        N, D, H, W, C = x.shape
        cols = x.reshape(N * D * H * W, C)
        out_sp = (N, D, H, W)
    else:
        cols, out_sp = _im2col3d(x, ksize, stride, pad)
    res2d = None
    if residual is not None:
        res2d = residual.reshape(-1, cout)
    y = matmul_fused(cols, w_mat, residual=res2d, relu=relu,
                     out_dtype=out_dtype)
    return y.reshape(out_sp + (cout,))


# ------------------------------ Parameters ---------------------------------

def _make_conv_w(key, cin, cout, ksize):
    """Kaiming-normal (fan_out, relu) conv weight with eval-BN scale folded in,
    stored bf16 as (kd*kh*kw*cin, cout)."""
    kd, kh, kw = ksize
    fan_out = cout * kd * kh * kw
    std = math.sqrt(2.0 / fan_out)
    w = std * jax.random.normal(key, (kd, kh, kw, cin, cout), jnp.float32)
    w = w * BN_SCALE  # fold BN (gamma=1,beta=0,mean=0,var=1): y = conv(x)/sqrt(1+eps)
    return w.reshape(kd * kh * kw * cin, cout).astype(jnp.bfloat16)


def init_params(key, num_classes=NUM_CLASSES):
    keys = iter(jax.random.split(key, 64))
    params = {}
    # BasicStem: Conv3d(3, 64, (3,7,7), stride (1,2,2), pad (1,3,3)) + BN + ReLU
    params['stem_w'] = _make_conv_w(next(keys), 3, 64, (3, 7, 7))
    inplanes = 64
    layers = []
    for planes, blocks, stride in LAYER_CFG:
        block_ps = []
        for b in range(blocks):
            s = stride if b == 0 else 1
            p = {}
            p['w1'] = _make_conv_w(next(keys), inplanes, planes, (1, 1, 1))
            p['w2'] = _make_conv_w(next(keys), planes, planes, (3, 3, 3))
            p['w3'] = _make_conv_w(next(keys), planes, planes * EXPANSION, (1, 1, 1))
            if b == 0 and (s != 1 or inplanes != planes * EXPANSION):
                p['wd'] = _make_conv_w(next(keys), inplanes,
                                       planes * EXPANSION, (1, 1, 1))
            block_ps.append(p)
            inplanes = planes * EXPANSION
        layers.append(block_ps)
    params['layers'] = layers
    params['fc_w'] = (0.01 * jax.random.normal(
        next(keys), (512 * EXPANSION, num_classes), jnp.float32)
    ).astype(jnp.bfloat16)
    params['fc_b'] = jnp.zeros((num_classes,), jnp.float32)
    return params


# -------------------------------- Forward ----------------------------------

def bottleneck_forward(x, p, stride):
    s = stride
    if 'wd' in p:
        # Downsample branch (1x1, stride s). Kept in f32 for the residual add.
        res = conv_bn_relu(x, p['wd'], (1, 1, 1), (s, s, s), (0, 0, 0),
                           relu=False, out_dtype=jnp.float32)
    else:
        res = x
    h = conv_bn_relu(x, p['w1'], (1, 1, 1), (1, 1, 1), (0, 0, 0), relu=True)
    h = conv_bn_relu(h, p['w2'], (3, 3, 3), (s, s, s), (1, 1, 1), relu=True)
    # Residual add + final ReLU fused into the w3 matmul epilogue.
    out = conv_bn_relu(h, p['w3'], (1, 1, 1), (1, 1, 1), (0, 0, 0), relu=True,
                       residual=res)
    return out


@jax.jit
def video_resnet_forward(x_ncdhw, params):
    # PyTorch layout is NCDHW; convert to NDHWC (channels-last, bf16) once.
    x = jnp.transpose(x_ncdhw, (0, 2, 3, 4, 1)).astype(jnp.bfloat16)
    # stem
    x = conv_bn_relu(x, params['stem_w'], (3, 7, 7), (1, 2, 2), (1, 3, 3),
                     relu=True)
    # layer1..layer4 (strides are static, derived from LAYER_CFG)
    for li, block_ps in enumerate(params['layers']):
        layer_stride = LAYER_CFG[li][2]
        for bi, p in enumerate(block_ps):
            s = layer_stride if bi == 0 else 1
            x = bottleneck_forward(x, p, s)
    # AdaptiveAvgPool3d((1,1,1)) + flatten(1)  (tiny reduction; kept as JAX glue)
    feat = jnp.mean(x.astype(jnp.float32), axis=(1, 2, 3))  # (N, 512*expansion)
    # fc: feat @ W + b via the same fused matmul kernel (bias epilogue, f32 out)
    logits = matmul_fused(feat, params['fc_w'], bias=params['fc_b'],
                          relu=False, out_dtype=jnp.float32)
    return logits


# ---------------------------------- Main ------------------------------------

if __name__ == "__main__":
    key = jax.random.PRNGKey(0)
    k_x, k_p = jax.random.split(key)
    # Small video input: batch=2, channels=3, frames=8, spatial 16x16 (NCDHW).
    x = jax.random.normal(k_x, (2, 3, 8, 16, 16), jnp.float32)
    params = init_params(k_p, num_classes=NUM_CLASSES)

    out = video_resnet_forward(x, params)
    out = jax.block_until_ready(out)
    assert out.shape == (2, NUM_CLASSES), out.shape
    assert bool(jnp.all(jnp.isfinite(out)))
    print("KERNEL_OK")
</pallas_src>

<mosaic_0001>
module attributes {stable_mosaic.version = 11 : i64} {
  func.func @_mm_kernel(%arg0: i32, %arg1: i32, %arg2: i32, %arg3: memref<256x256xbf16, #tpu.memory_space<vmem>>, %arg4: memref<256x128xbf16, #tpu.memory_space<vmem>>, %arg5: memref<256x128xbf16, #tpu.memory_space<vmem>>, %arg6: memref<256x128xf32, #tpu.memory_space<vmem>>) attributes {dimension_semantics = [#tpu.dimension_semantics<parallel>, #tpu.dimension_semantics<parallel>, #tpu.dimension_semantics<arbitrary>], iteration_bounds = array<i64: 4, 1, 2>, scalar_prefetch = 0 : i64, scratch_operands = 1 : i64, tpu.core_type = #tpu.core_type<tc>, window_params = [{transform_indices = @transform_0, window_bounds = array<i64: 256, 256>}, {transform_indices = @transform_1, window_bounds = array<i64: 256, 128>}, {transform_indices = @transform_2, window_bounds = array<i64: 256, 128>}]} {
    %c0_i32 = arith.constant 0 : i32
    %0 = arith.cmpi eq, %arg2, %c0_i32 : i32
    %1 = arith.extui %0 : i1 to i32
    %c0_i32_0 = arith.constant 0 : i32
    %2 = arith.cmpi ne, %1, %c0_i32_0 : i32
    scf.if %2 {
      %cst_9 = arith.constant 0.000000e+00 : f32
      %12 = vector.broadcast %cst_9 : f32 to vector<256x128xf32>
      %c0_10 = arith.constant 0 : index
      %c0_11 = arith.constant 0 : index
      %13 = vector.load %arg6[%c0_10, %c0_11] : memref<256x128xf32, #tpu.memory_space<vmem>>, vector<256x128xf32>
      tpu.vector_store %arg6[%c0_10, %c0_11], %12 {strides = array<i32>} : memref<256x128xf32, #tpu.memory_space<vmem>>, vector<256x128xf32>,
    } else {
    }
    %c0 = arith.constant 0 : index
    %c0_1 = arith.constant 0 : index
    %3 = vector.load %arg6[%c0, %c0_1] : memref<256x128xf32, #tpu.memory_space<vmem>>, vector<256x128xf32>
    %c0_2 = arith.constant 0 : index
    %c0_3 = arith.constant 0 : index
    %4 = vector.load %arg3[%c0_2, %c0_3] : memref<256x256xbf16, #tpu.memory_space<vmem>>, vector<256x256xbf16>
    %c0_4 = arith.constant 0 : index
    %c0_5 = arith.constant 0 : index
    %5 = vector.load %arg4[%c0_4, %c0_5] : memref<256x128xbf16, #tpu.memory_space<vmem>>, vector<256x128xbf16>
    %cst = arith.constant dense<0.000000e+00> : vector<256x128xf32>
    %6 = tpu.matmul %4, %5, %cst {dimension_numbers = #tpu.dot_dimension_numbers<[1], [0], [0], [1], [0, 0, 1, 1], [], []>} : vector<256x256xbf16>, vector<256x128xbf16>, vector<256x128xf32> -> vector<256x128xf32>
    %7 = arith.addf %3, %6 : vector<256x128xf32>
    %c0_6 = arith.constant 0 : index
    %c0_7 = arith.constant 0 : index
    %8 = vector.load %arg6[%c0_6, %c0_7] : memref<256x128xf32, #tpu.memory_space<vmem>>, vector<256x128xf32>
    tpu.vector_store %arg6[%c0_6, %c0_7], %7 {strides = array<i32>} : memref<256x128xf32, #tpu.memory_space<vmem>>, vector<256x128xf32>,
    %c1_i32 = arith.constant 1 : i32
    %9 = arith.cmpi eq, %arg2, %c1_i32 : i32
    %10 = arith.extui %9 : i1 to i32
    %c0_i32_8 = arith.constant 0 : i32
    %11 = arith.cmpi ne, %10, %c0_i32_8 : i32
    scf.if %11 {
      %c0_9 = arith.constant 0 : index
      %c0_10 = arith.constant 0 : index
      %12 = vector.load %arg6[%c0_9, %c0_10] : memref<256x128xf32, #tpu.memory_space<vmem>>, vector<256x128xf32>
      %cst_11 = arith.constant 0.000000e+00 : f32
      %13 = vector.broadcast %cst_11 : f32 to vector<256x128xf32>
      %14 = arith.maximumf %12, %13 : vector<256x128xf32>
      %15 = arith.truncf %14 : vector<256x128xf32> to vector<256x128xbf16>
      %c0_12 = arith.constant 0 : index
      %c0_13 = arith.constant 0 : index
      %16 = vector.load %arg5[%c0_12, %c0_13] : memref<256x128xbf16, #tpu.memory_space<vmem>>, vector<256x128xbf16>
      tpu.vector_store %arg5[%c0_12, %c0_13], %15 {strides = array<i32>} : memref<256x128xbf16, #tpu.memory_space<vmem>>, vector<256x128xbf16>,
    } else {
    }
    return
  }
  func.func @transform_0(%arg0: i32, %arg1: i32, %arg2: i32) -> (i32, i32) {
    %c0_i32 = arith.constant 0 : i32
    return %arg0, %arg2 : i32, i32
  }
  func.func @transform_1(%arg0: i32, %arg1: i32, %arg2: i32) -> (i32, i32) {
    %c0_i32 = arith.constant 0 : i32
    return %arg2, %arg1 : i32, i32
  }
  func.func @transform_2(%arg0: i32, %arg1: i32, %arg2: i32) -> (i32, i32) {
    %c0_i32 = arith.constant 0 : i32
    return %arg0, %arg1 : i32, i32
  }
}

module attributes {stable_mosaic.version = 11 : i64} {
  func.func @_mm_kernel(%arg0: i32, %arg1: i32, %arg2: i32, %arg3: memref<256x128xbf16, #tpu.memory_space<vmem>>, %arg4: memref<128x128xbf16, #tpu.memory_space<vmem>>, %arg5: memref<256x128xbf16, #tpu.memory_space<vmem>>, %arg6: memref<256x128xf32, #tpu.memory_space<vmem>>) attributes {dimension_semantics = [#tpu.dimension_semantics<parallel>, #tpu.dimension_semantics<parallel>, #tpu.dimension_semantics<arbitrary>], iteration_bounds = array<i64: 4, 1, 1>, scalar_prefetch = 0 : i64, scratch_operands = 1 : i64, tpu.core_type = #tpu.core_type<tc>, window_params = [{transform_indices = @transform_0, window_bounds = array<i64: 256, 128>}, {transform_indices = @transform_1, window_bounds = array<i64: 128, 128>}, {transform_indices = @transform_2, window_bounds = array<i64: 256, 128>}]} {
    %c0_i32 = arith.constant 0 : i32
    %0 = arith.cmpi eq, %arg2, %c0_i32 : i32
    %1 = arith.extui %0 : i1 to i32
    %c0_i32_0 = arith.constant 0 : i32
    %2 = arith.cmpi ne, %1, %c0_i32_0 : i32
    scf.if %2 {
      %cst_10 = arith.constant 0.000000e+00 : f32
      %12 = vector.broadcast %cst_10 : f32 to vector<256x128xf32>
      %c0_11 = arith.constant 0 : index
      %c0_12 = arith.constant 0 : index
      %13 = vector.load %arg6[%c0_11, %c0_12] : memref<256x128xf32, #tpu.memory_space<vmem>>, vector<256x128xf32>
      tpu.vector_store %arg6[%c0_11, %c0_12], %12 {strides = array<i32>} : memref<256x128xf32, #tpu.memory_space<vmem>>, vector<256x128xf32>,
    } else {
    }
    %c0 = arith.constant 0 : index
    %c0_1 = arith.constant 0 : index
    %3 = vector.load %arg6[%c0, %c0_1] : memref<256x128xf32, #tpu.memory_space<vmem>>, vector<256x128xf32>
    %c0_2 = arith.constant 0 : index
    %c0_3 = arith.constant 0 : index
    %4 = vector.load %arg3[%c0_2, %c0_3] : memref<256x128xbf16, #tpu.memory_space<vmem>>, vector<256x128xbf16>
    %c0_4 = arith.constant 0 : index
    %c0_5 = arith.constant 0 : index
    %5 = vector.load %arg4[%c0_4, %c0_5] : memref<128x128xbf16, #tpu.memory_space<vmem>>, vector<128x128xbf16>
    %cst = arith.constant dense<0.000000e+00> : vector<256x128xf32>
    %6 = tpu.matmul %4, %5, %cst {dimension_numbers = #tpu.dot_dimension_numbers<[1], [0], [0], [1], [0, 0, 1, 1], [], []>} : vector<256x128xbf16>, vector<128x128xbf16>, vector<256x128xf32> -> vector<256x128xf32>
    %7 = arith.addf %3, %6 : vector<256x128xf32>
    %c0_6 = arith.constant 0 : index
    %c0_7 = arith.constant 0 : index
    %8 = vector.load %arg6[%c0_6, %c0_7] : memref<256x128xf32, #tpu.memory_space<vmem>>, vector<256x128xf32>
    tpu.vector_store %arg6[%c0_6, %c0_7], %7 {strides = array<i32>} : memref<256x128xf32, #tpu.memory_space<vmem>>, vector<256x128xf32>,
    %c0_i32_8 = arith.constant 0 : i32
    %9 = arith.cmpi eq, %arg2, %c0_i32_8 : i32
    %10 = arith.extui %9 : i1 to i32
    %c0_i32_9 = arith.constant 0 : i32
    %11 = arith.cmpi ne, %10, %c0_i32_9 : i32
    scf.if %11 {
      %c0_10 = arith.constant 0 : index
      %c0_11 = arith.constant 0 : index
      %12 = vector.load %arg6[%c0_10, %c0_11] : memref<256x128xf32, #tpu.memory_space<vmem>>, vector<256x128xf32>
      %cst_12 = arith.constant 0.000000e+00 : f32
      %13 = vector.broadcast %cst_12 : f32 to vector<256x128xf32>
      %14 = arith.maximumf %12, %13 : vector<256x128xf32>
      %15 = arith.truncf %14 : vector<256x128xf32> to vector<256x128xbf16>
      %c0_13 = arith.constant 0 : index
      %c0_14 = arith.constant 0 : index
      %16 = vector.load %arg5[%c0_13, %c0_14] : memref<256x128xbf16, #tpu.memory_space<vmem>>, vector<256x128xbf16>
      tpu.vector_store %arg5[%c0_13, %c0_14], %15 {strides = array<i32>} : memref<256x128xbf16, #tpu.memory_space<vmem>>, vector<256x128xbf16>,
    } else {
    }
    return
  }
  func.func @transform_0(%arg0: i32, %arg1: i32, %arg2: i32) -> (i32, i32) {
    %c0_i32 = arith.constant 0 : i32
    return %arg0, %arg2 : i32, i32
  }
  func.func @transform_1(%arg0: i32, %arg1: i32, %arg2: i32) -> (i32, i32) {
    %c0_i32 = arith.constant 0 : i32
    return %arg2, %arg1 : i32, i32
  }
  func.func @transform_2(%arg0: i32, %arg1: i32, %arg2: i32) -> (i32, i32) {
    %c0_i32 = arith.constant 0 : i32
    return %arg0, %arg1 : i32, i32
  }
}

module attributes {stable_mosaic.version = 11 : i64} {
  func.func @_mm_kernel(%arg0: i32, %arg1: i32, %arg2: i32, %arg3: memref<256x256xbf16, #tpu.memory_space<vmem>>, %arg4: memref<256x128xbf16, #tpu.memory_space<vmem>>, %arg5: memref<256x128xbf16, #tpu.memory_space<vmem>>, %arg6: memref<256x128xf32, #tpu.memory_space<vmem>>) attributes {dimension_semantics = [#tpu.dimension_semantics<parallel>, #tpu.dimension_semantics<parallel>, #tpu.dimension_semantics<arbitrary>], iteration_bounds = array<i64: 4, 1, 7>, scalar_prefetch = 0 : i64, scratch_operands = 1 : i64, tpu.core_type = #tpu.core_type<tc>, window_params = [{transform_indices = @transform_0, window_bounds = array<i64: 256, 256>}, {transform_indices = @transform_1, window_bounds = array<i64: 256, 128>}, {transform_indices = @transform_2, window_bounds = array<i64: 256, 128>}]} {
    %c0_i32 = arith.constant 0 : i32
    %0 = arith.cmpi eq, %arg2, %c0_i32 : i32
    %1 = arith.extui %0 : i1 to i32
    %c0_i32_0 = arith.constant 0 : i32
    %2 = arith.cmpi ne, %1, %c0_i32_0 : i32
    scf.if %2 {
      %cst_9 = arith.constant 0.000000e+00 : f32
      %12 = vector.broadcast %cst_9 : f32 to vector<256x128xf32>
      %c0_10 = arith.constant 0 : index
      %c0_11 = arith.constant 0 : index
      %13 = vector.load %arg6[%c0_10, %c0_11] : memref<256x128xf32, #tpu.memory_space<vmem>>, vector<256x128xf32>
      tpu.vector_store %arg6[%c0_10, %c0_11], %12 {strides = array<i32>} : memref<256x128xf32, #tpu.memory_space<vmem>>, vector<256x128xf32>,
    } else {
    }
    %c0 = arith.constant 0 : index
    %c0_1 = arith.constant 0 : index
    %3 = vector.load %arg6[%c0, %c0_1] : memref<256x128xf32, #tpu.memory_space<vmem>>, vector<256x128xf32>
    %c0_2 = arith.constant 0 : index
    %c0_3 = arith.constant 0 : index
    %4 = vector.load %arg3[%c0_2, %c0_3] : memref<256x256xbf16, #tpu.memory_space<vmem>>, vector<256x256xbf16>
    %c0_4 = arith.constant 0 : index
    %c0_5 = arith.constant 0 : index
    %5 = vector.load %arg4[%c0_4, %c0_5] : memref<256x128xbf16, #tpu.memory_space<vmem>>, vector<256x128xbf16>
    %cst = arith.constant dense<0.000000e+00> : vector<256x128xf32>
    %6 = tpu.matmul %4, %5, %cst {dimension_numbers = #tpu.dot_dimension_numbers<[1], [0], [0], [1], [0, 0, 1, 1], [], []>} : vector<256x256xbf16>, vector<256x128xbf16>, vector<256x128xf32> -> vector<256x128xf32>
    %7 = arith.addf %3, %6 : vector<256x128xf32>
    %c0_6 = arith.constant 0 : index
    %c0_7 = arith.constant 0 : index
    %8 = vector.load %arg6[%c0_6, %c0_7] : memref<256x128xf32, #tpu.memory_space<vmem>>, vector<256x128xf32>
    tpu.vector_store %arg6[%c0_6, %c0_7], %7 {strides = array<i32>} : memref<256x128xf32, #tpu.memory_space<vmem>>, vector<256x128xf32>,
    %c6_i32 = arith.constant 6 : i32
    %9 = arith.cmpi eq, %arg2, %c6_i32 : i32
    %10 = arith.extui %9 : i1 to i32
    %c0_i32_8 = arith.constant 0 : i32
    %11 = arith.cmpi ne, %10, %c0_i32_8 : i32
    scf.if %11 {
      %c0_9 = arith.constant 0 : index
      %c0_10 = arith.constant 0 : index
      %12 = vector.load %arg6[%c0_9, %c0_10] : memref<256x128xf32, #tpu.memory_space<vmem>>, vector<256x128xf32>
      %cst_11 = arith.constant 0.000000e+00 : f32
      %13 = vector.broadcast %cst_11 : f32 to vector<256x128xf32>
      %14 = arith.maximumf %12, %13 : vector<256x128xf32>
      %15 = arith.truncf %14 : vector<256x128xf32> to vector<256x128xbf16>
      %c0_12 = arith.constant 0 : index
      %c0_13 = arith.constant 0 : index
      %16 = vector.load %arg5[%c0_12, %c0_13] : memref<256x128xbf16, #tpu.memory_space<vmem>>, vector<256x128xbf16>
      tpu.vector_store %arg5[%c0_12, %c0_13], %15 {strides = array<i32>} : memref<256x128xbf16, #tpu.memory_space<vmem>>, vector<256x128xbf16>,
    } else {
    }
    return
  }
  func.func @transform_0(%arg0: i32, %arg1: i32, %arg2: i32) -> (i32, i32) {
    %c0_i32 = arith.constant 0 : i32
    return %arg0, %arg2 : i32, i32
  }
  func.func @transform_1(%arg0: i32, %arg1: i32, %arg2: i32) -> (i32, i32) {
    %c0_i32 = arith.constant 0 : i32
    return %arg2, %arg1 : i32, i32
  }
  func.func @transform_2(%arg0: i32, %arg1: i32, %arg2: i32) -> (i32, i32) {
    %c0_i32 = arith.constant 0 : i32
    return %arg0, %arg1 : i32, i32
  }
}

module attributes {stable_mosaic.version = 11 : i64} {
  func.func @_mm_kernel(%arg0: i32, %arg1: i32, %arg2: i32, %arg3: memref<256x128xbf16, #tpu.memory_space<vmem>>, %arg4: memref<128x256xbf16, #tpu.memory_space<vmem>>, %arg5: memref<256x256xf32, #tpu.memory_space<vmem>>, %arg6: memref<256x256xf32, #tpu.memory_space<vmem>>) attributes {dimension_semantics = [#tpu.dimension_semantics<parallel>, #tpu.dimension_semantics<parallel>, #tpu.dimension_semantics<arbitrary>], iteration_bounds = array<i64: 4, 1, 1>, scalar_prefetch = 0 : i64, scratch_operands = 1 : i64, tpu.core_type = #tpu.core_type<tc>, window_params = [{transform_indices = @transform_0, window_bounds = array<i64: 256, 128>}, {transform_indices = @transform_1, window_bounds = array<i64: 128, 256>}, {transform_indices = @transform_2, window_bounds = array<i64: 256, 256>}]} {
    %c0_i32 = arith.constant 0 : i32
    %0 = arith.cmpi eq, %arg2, %c0_i32 : i32
    %1 = arith.extui %0 : i1 to i32
    %c0_i32_0 = arith.constant 0 : i32
    %2 = arith.cmpi ne, %1, %c0_i32_0 : i32
    scf.if %2 {
      %cst_10 = arith.constant 0.000000e+00 : f32
      %12 = vector.broadcast %cst_10 : f32 to vector<256x256xf32>
      %c0_11 = arith.constant 0 : index
      %c0_12 = arith.constant 0 : index
      %13 = vector.load %arg6[%c0_11, %c0_12] : memref<256x256xf32, #tpu.memory_space<vmem>>, vector<256x256xf32>
      tpu.vector_store %arg6[%c0_11, %c0_12], %12 {strides = array<i32>} : memref<256x256xf32, #tpu.memory_space<vmem>>, vector<256x256xf32>,
    } else {
    }
    %c0 = arith.constant 0 : index
    %c0_1 = arith.constant 0 : index
    %3 = vector.load %arg6[%c0, %c0_1] : memref<256x256xf32, #tpu.memory_space<vmem>>, vector<256x256xf32>
    %c0_2 = arith.constant 0 : index
    %c0_3 = arith.constant 0 : index
    %4 = vector.load %arg3[%c0_2, %c0_3] : memref<256x128xbf16, #tpu.memory_space<vmem>>, vector<256x128xbf16>
    %c0_4 = arith.constant 0 : index
    %c0_5 = arith.constant 0 : index
    %5 = vector.load %arg4[%c0_4, %c0_5] : memref<128x256xbf16, #tpu.memory_space<vmem>>, vector<128x256xbf16>
    %cst = arith.constant dense<0.000000e+00> : vector<256x256xf32>
    %6 = tpu.matmul %4, %5, %cst {dimension_numbers = #tpu.dot_dimension_numbers<[1], [0], [0], [1], [0, 0, 1, 1], [], []>} : vector<256x128xbf16>, vector<128x256xbf16>, vector<256x256xf32> -> vector<256x256xf32>
    %7 = arith.addf %3, %6 : vector<256x256xf32>
    %c0_6 = arith.constant 0 : index
    %c0_7 = arith.constant 0 : index
    %8 = vector.load %arg6[%c0_6, %c0_7] : memref<256x256xf32, #tpu.memory_space<vmem>>, vector<256x256xf32>
    tpu.vector_store %arg6[%c0_6, %c0_7], %7 {strides = array<i32>} : memref<256x256xf32, #tpu.memory_space<vmem>>, vector<256x256xf32>,
    %c0_i32_8 = arith.constant 0 : i32
    %9 = arith.cmpi eq, %arg2, %c0_i32_8 : i32
    %10 = arith.extui %9 : i1 to i32
    %c0_i32_9 = arith.constant 0 : i32
    %11 = arith.cmpi ne, %10, %c0_i32_9 : i32
    scf.if %11 {
      %c0_10 = arith.constant 0 : index
      %c0_11 = arith.constant 0 : index
      %12 = vector.load %arg6[%c0_10, %c0_11] : memref<256x256xf32, #tpu.memory_space<vmem>>, vector<256x256xf32>
      %c0_12 = arith.constant 0 : index
      %c0_13 = arith.constant 0 : index
      %13 = vector.load %arg5[%c0_12, %c0_13] : memref<256x256xf32, #tpu.memory_space<vmem>>, vector<256x256xf32>
      tpu.vector_store %arg5[%c0_12, %c0_13], %12 {strides = array<i32>} : memref<256x256xf32, #tpu.memory_space<vmem>>, vector<256x256xf32>,
    } else {
    }
    return
  }
  func.func @transform_0(%arg0: i32, %arg1: i32, %arg2: i32) -> (i32, i32) {
    %c0_i32 = arith.constant 0 : i32
    return %arg0, %arg2 : i32, i32
  }
  func.func @transform_1(%arg0: i32, %arg1: i32, %arg2: i32) -> (i32, i32) {
    %c0_i32 = arith.constant 0 : i32
    return %arg2, %arg1 : i32, i32
  }
  func.func @transform_2(%arg0: i32, %arg1: i32, %arg2: i32) -> (i32, i32) {
    %c0_i32 = arith.constant 0 : i32
    return %arg0, %arg1 : i32, i32
  }
}

module attributes {stable_mosaic.version = 11 : i64} {
  func.func @_mm_kernel(%arg0: i32, %arg1: i32, %arg2: i32, %arg3: memref<256x256xbf16, #tpu.memory_space<vmem>>, %arg4: memref<256x128xbf16, #tpu.memory_space<vmem>>, %arg5: memref<256x128xbf16, #tpu.memory_space<vmem>>, %arg6: memref<256x128xf32, #tpu.memory_space<vmem>>) attributes {dimension_semantics = [#tpu.dimension_semantics<parallel>, #tpu.dimension_semantics<parallel>, #tpu.dimension_semantics<arbitrary>], iteration_bounds = array<i64: 4, 1, 1>, scalar_prefetch = 0 : i64, scratch_operands = 1 : i64, tpu.core_type = #tpu.core_type<tc>, window_params = [{transform_indices = @transform_0, window_bounds = array<i64: 256, 256>}, {transform_indices = @transform_1, window_bounds = array<i64: 256, 128>}, {transform_indices = @transform_2, window_bounds = array<i64: 256, 128>}]} {
    %c0_i32 = arith.constant 0 : i32
    %0 = arith.cmpi eq, %arg2, %c0_i32 : i32
    %1 = arith.extui %0 : i1 to i32
    %c0_i32_0 = arith.constant 0 : i32
    %2 = arith.cmpi ne, %1, %c0_i32_0 : i32
    scf.if %2 {
      %cst_10 = arith.constant 0.000000e+00 : f32
      %12 = vector.broadcast %cst_10 : f32 to vector<256x128xf32>
      %c0_11 = arith.constant 0 : index
      %c0_12 = arith.constant 0 : index
      %13 = vector.load %arg6[%c0_11, %c0_12] : memref<256x128xf32, #tpu.memory_space<vmem>>, vector<256x128xf32>
      tpu.vector_store %arg6[%c0_11, %c0_12], %12 {strides = array<i32>} : memref<256x128xf32, #tpu.memory_space<vmem>>, vector<256x128xf32>,
    } else {
    }
    %c0 = arith.constant 0 : index
    %c0_1 = arith.constant 0 : index
    %3 = vector.load %arg6[%c0, %c0_1] : memref<256x128xf32, #tpu.memory_space<vmem>>, vector<256x128xf32>
    %c0_2 = arith.constant 0 : index
    %c0_3 = arith.constant 0 : index
    %4 = vector.load %arg3[%c0_2, %c0_3] : memref<256x256xbf16, #tpu.memory_space<vmem>>, vector<256x256xbf16>
    %c0_4 = arith.constant 0 : index
    %c0_5 = arith.constant 0 : index
    %5 = vector.load %arg4[%c0_4, %c0_5] : memref<256x128xbf16, #tpu.memory_space<vmem>>, vector<256x128xbf16>
    %cst = arith.constant dense<0.000000e+00> : vector<256x128xf32>
    %6 = tpu.matmul %4, %5, %cst {dimension_numbers = #tpu.dot_dimension_numbers<[1], [0], [0], [1], [0, 0, 1, 1], [], []>} : vector<256x256xbf16>, vector<256x128xbf16>, vector<256x128xf32> -> vector<256x128xf32>
    %7 = arith.addf %3, %6 : vector<256x128xf32>
    %c0_6 = arith.constant 0 : index
    %c0_7 = arith.constant 0 : index
    %8 = vector.load %arg6[%c0_6, %c0_7] : memref<256x128xf32, #tpu.memory_space<vmem>>, vector<256x128xf32>
    tpu.vector_store %arg6[%c0_6, %c0_7], %7 {strides = array<i32>} : memref<256x128xf32, #tpu.memory_space<vmem>>, vector<256x128xf32>,
    %c0_i32_8 = arith.constant 0 : i32
    %9 = arith.cmpi eq, %arg2, %c0_i32_8 : i32
    %10 = arith.extui %9 : i1 to i32
    %c0_i32_9 = arith.constant 0 : i32
    %11 = arith.cmpi ne, %10, %c0_i32_9 : i32
    scf.if %11 {
      %c0_10 = arith.constant 0 : index
      %c0_11 = arith.constant 0 : index
      %12 = vector.load %arg6[%c0_10, %c0_11] : memref<256x128xf32, #tpu.memory_space<vmem>>, vector<256x128xf32>
      %cst_12 = arith.constant 0.000000e+00 : f32
      %13 = vector.broadcast %cst_12 : f32 to vector<256x128xf32>
      %14 = arith.maximumf %12, %13 : vector<256x128xf32>
      %15 = arith.truncf %14 : vector<256x128xf32> to vector<256x128xbf16>
      %c0_13 = arith.constant 0 : index
      %c0_14 = arith.constant 0 : index
      %16 = vector.load %arg5[%c0_13, %c0_14] : memref<256x128xbf16, #tpu.memory_space<vmem>>, vector<256x128xbf16>
      tpu.vector_store %arg5[%c0_13, %c0_14], %15 {strides = array<i32>} : memref<256x128xbf16, #tpu.memory_space<vmem>>, vector<256x128xbf16>,
    } else {
    }
    return
  }
  func.func @transform_0(%arg0: i32, %arg1: i32, %arg2: i32) -> (i32, i32) {
    %c0_i32 = arith.constant 0 : i32
    return %arg0, %arg2 : i32, i32
  }
  func.func @transform_1(%arg0: i32, %arg1: i32, %arg2: i32) -> (i32, i32) {
    %c0_i32 = arith.constant 0 : i32
    return %arg2, %arg1 : i32, i32
  }
  func.func @transform_2(%arg0: i32, %arg1: i32, %arg2: i32) -> (i32, i32) {
    %c0_i32 = arith.constant 0 : i32
    return %arg0, %arg1 : i32, i32
  }
}

module attributes {stable_mosaic.version = 11 : i64} {
  func.func @_mm_kernel(%arg0: i32, %arg1: i32, %arg2: i32, %arg3: memref<256x128xbf16, #tpu.memory_space<vmem>>, %arg4: memref<128x256xbf16, #tpu.memory_space<vmem>>, %arg5: memref<256x256xf32, #tpu.memory_space<vmem>>, %arg6: memref<256x256xbf16, #tpu.memory_space<vmem>>, %arg7: memref<256x256xf32, #tpu.memory_space<vmem>>) attributes {dimension_semantics = [#tpu.dimension_semantics<parallel>, #tpu.dimension_semantics<parallel>, #tpu.dimension_semantics<arbitrary>], iteration_bounds = array<i64: 4, 1, 1>, scalar_prefetch = 0 : i64, scratch_operands = 1 : i64, tpu.core_type = #tpu.core_type<tc>, window_params = [{transform_indices = @transform_0, window_bounds = array<i64: 256, 128>}, {transform_indices = @transform_1, window_bounds = array<i64: 128, 256>}, {transform_indices = @transform_2, window_bounds = array<i64: 256, 256>}, {transform_indices = @transform_3, window_bounds = array<i64: 256, 256>}]} {
    %c0_i32 = arith.constant 0 : i32
    %0 = arith.cmpi eq, %arg2, %c0_i32 : i32
    %1 = arith.extui %0 : i1 to i32
    %c0_i32_0 = arith.constant 0 : i32
    %2 = arith.cmpi ne, %1, %c0_i32_0 : i32
    scf.if %2 {
      %cst_10 = arith.constant 0.000000e+00 : f32
      %12 = vector.broadcast %cst_10 : f32 to vector<256x256xf32>
      %c0_11 = arith.constant 0 : index
      %c0_12 = arith.constant 0 : index
      %13 = vector.load %arg7[%c0_11, %c0_12] : memref<256x256xf32, #tpu.memory_space<vmem>>, vector<256x256xf32>
      tpu.vector_store %arg7[%c0_11, %c0_12], %12 {strides = array<i32>} : memref<256x256xf32, #tpu.memory_space<vmem>>, vector<256x256xf32>,
    } else {
    }
    %c0 = arith.constant 0 : index
    %c0_1 = arith.constant 0 : index
    %3 = vector.load %arg7[%c0, %c0_1] : memref<256x256xf32, #tpu.memory_space<vmem>>, vector<256x256xf32>
    %c0_2 = arith.constant 0 : index
    %c0_3 = arith.constant 0 : index
    %4 = vector.load %arg3[%c0_2, %c0_3] : memref<256x128xbf16, #tpu.memory_space<vmem>>, vector<256x128xbf16>
    %c0_4 = arith.constant 0 : index
    %c0_5 = arith.constant 0 : index
    %5 = vector.load %arg4[%c0_4, %c0_5] : memref<128x256xbf16, #tpu.memory_space<vmem>>, vector<128x256xbf16>
    %cst = arith.constant dense<0.000000e+00> : vector<256x256xf32>
    %6 = tpu.matmul %4, %5, %cst {dimension_numbers = #tpu.dot_dimension_numbers<[1], [0], [0], [1], [0, 0, 1, 1], [], []>} : vector<256x128xbf16>, vector<128x256xbf16>, vector<256x256xf32> -> vector<256x256xf32>
    %7 = arith.addf %3, %6 : vector<256x256xf32>
    %c0_6 = arith.constant 0 : index
    %c0_7 = arith.constant 0 : index
    %8 = vector.load %arg7[%c0_6, %c0_7] : memref<256x256xf32, #tpu.memory_space<vmem>>, vector<256x256xf32>
    tpu.vector_store %arg7[%c0_6, %c0_7], %7 {strides = array<i32>} : memref<256x256xf32, #tpu.memory_space<vmem>>, vector<256x256xf32>,
    %c0_i32_8 = arith.constant 0 : i32
    %9 = arith.cmpi eq, %arg2, %c0_i32_8 : i32
    %10 = arith.extui %9 : i1 to i32
    %c0_i32_9 = arith.constant 0 : i32
    %11 = arith.cmpi ne, %10, %c0_i32_9 : i32
    scf.if %11 {
      %c0_10 = arith.constant 0 : index
      %c0_11 = arith.constant 0 : index
      %12 = vector.load %arg7[%c0_10, %c0_11] : memref<256x256xf32, #tpu.memory_space<vmem>>, vector<256x256xf32>
      %c0_12 = arith.constant 0 : index
      %c0_13 = arith.constant 0 : index
      %13 = vector.load %arg5[%c0_12, %c0_13] : memref<256x256xf32, #tpu.memory_space<vmem>>, vector<256x256xf32>
      %14 = arith.addf %12, %13 : vector<256x256xf32>
      %cst_14 = arith.constant 0.000000e+00 : f32
      %15 = vector.broadcast %cst_14 : f32 to vector<256x256xf32>
      %16 = arith.maximumf %14, %15 : vector<256x256xf32>
      %17 = arith.truncf %16 : vector<256x256xf32> to vector<256x256xbf16>
      %c0_15 = arith.constant 0 : index
      %c0_16 = arith.constant 0 : index
      %18 = vector.load %arg6[%c0_15, %c0_16] : memref<256x256xbf16, #tpu.memory_space<vmem>>, vector<256x256xbf16>
      tpu.vector_store %arg6[%c0_15, %c0_16], %17 {strides = array<i32>} : memref<256x256xbf16, #tpu.memory_space<vmem>>, vector<256x256xbf16>,
    } else {
    }
    return
  }
  func.func @transform_0(%arg0: i32, %arg1: i32, %arg2: i32) -> (i32, i32) {
    %c0_i32 = arith.constant 0 : i32
    return %arg0, %arg2 : i32, i32
  }
  func.func @transform_1(%arg0: i32, %arg1: i32, %arg2: i32) -> (i32, i32) {
    %c0_i32 = arith.constant 0 : i32
    return %arg2, %arg1 : i32, i32
  }
  func.func @transform_2(%arg0: i32, %arg1: i32, %arg2: i32) -> (i32, i32) {
    %c0_i32 = arith.constant 0 : i32
    return %arg0, %arg1 : i32, i32
  }
  func.func @transform_3(%arg0: i32, %arg1: i32, %arg2: i32) -> (i32, i32) {
    %c0_i32 = arith.constant 0 : i32
    return %arg0, %arg1 : i32, i32
  }
}

module attributes {stable_mosaic.version = 11 : i64} {
  func.func @_mm_kernel(%arg0: i32, %arg1: i32, %arg2: i32, %arg3: memref<128x256xbf16, #tpu.memory_space<vmem>>, %arg4: memref<256x256xbf16, #tpu.memory_space<vmem>>, %arg5: memref<128x256xf32, #tpu.memory_space<vmem>>, %arg6: memref<128x256xf32, #tpu.memory_space<vmem>>) attributes {dimension_semantics = [#tpu.dimension_semantics<parallel>, #tpu.dimension_semantics<parallel>, #tpu.dimension_semantics<arbitrary>], iteration_bounds = array<i64: 1, 2, 1>, scalar_prefetch = 0 : i64, scratch_operands = 1 : i64, tpu.core_type = #tpu.core_type<tc>, window_params = [{transform_indices = @transform_0, window_bounds = array<i64: 128, 256>}, {transform_indices = @transform_1, window_bounds = array<i64: 256, 256>}, {transform_indices = @transform_2, window_bounds = array<i64: 128, 256>}]} {
    %c0_i32 = arith.constant 0 : i32
    %0 = arith.cmpi eq, %arg2, %c0_i32 : i32
    %1 = arith.extui %0 : i1 to i32
    %c0_i32_0 = arith.constant 0 : i32
    %2 = arith.cmpi ne, %1, %c0_i32_0 : i32
    scf.if %2 {
      %cst_10 = arith.constant 0.000000e+00 : f32
      %12 = vector.broadcast %cst_10 : f32 to vector<128x256xf32>
      %c0_11 = arith.constant 0 : index
      %c0_12 = arith.constant 0 : index
      %13 = vector.load %arg6[%c0_11, %c0_12] : memref<128x256xf32, #tpu.memory_space<vmem>>, vector<128x256xf32>
      tpu.vector_store %arg6[%c0_11, %c0_12], %12 {strides = array<i32>} : memref<128x256xf32, #tpu.memory_space<vmem>>, vector<128x256xf32>,
    } else {
    }
    %c0 = arith.constant 0 : index
    %c0_1 = arith.constant 0 : index
    %3 = vector.load %arg6[%c0, %c0_1] : memref<128x256xf32, #tpu.memory_space<vmem>>, vector<128x256xf32>
    %c0_2 = arith.constant 0 : index
    %c0_3 = arith.constant 0 : index
    %4 = vector.load %arg3[%c0_2, %c0_3] : memref<128x256xbf16, #tpu.memory_space<vmem>>, vector<128x256xbf16>
    %c0_4 = arith.constant 0 : index
    %c0_5 = arith.constant 0 : index
    %5 = vector.load %arg4[%c0_4, %c0_5] : memref<256x256xbf16, #tpu.memory_space<vmem>>, vector<256x256xbf16>
    %cst = arith.constant dense<0.000000e+00> : vector<128x256xf32>
    %6 = tpu.matmul %4, %5, %cst {dimension_numbers = #tpu.dot_dimension_numbers<[1], [0], [0], [1], [0, 0, 1, 1], [], []>} : vector<128x256xbf16>, vector<256x256xbf16>, vector<128x256xf32> -> vector<128x256xf32>
    %7 = arith.addf %3, %6 : vector<128x256xf32>
    %c0_6 = arith.constant 0 : index
    %c0_7 = arith.constant 0 : index
    %8 = vector.load %arg6[%c0_6, %c0_7] : memref<128x256xf32, #tpu.memory_space<vmem>>, vector<128x256xf32>
    tpu.vector_store %arg6[%c0_6, %c0_7], %7 {strides = array<i32>} : memref<128x256xf32, #tpu.memory_space<vmem>>, vector<128x256xf32>,
    %c0_i32_8 = arith.constant 0 : i32
    %9 = arith.cmpi eq, %arg2, %c0_i32_8 : i32
    %10 = arith.extui %9 : i1 to i32
    %c0_i32_9 = arith.constant 0 : i32
    %11 = arith.cmpi ne, %10, %c0_i32_9 : i32
    scf.if %11 {
      %c0_10 = arith.constant 0 : index
      %c0_11 = arith.constant 0 : index
      %12 = vector.load %arg6[%c0_10, %c0_11] : memref<128x256xf32, #tpu.memory_space<vmem>>, vector<128x256xf32>
      %c0_12 = arith.constant 0 : index
      %c0_13 = arith.constant 0 : index
      %13 = vector.load %arg5[%c0_12, %c0_13] : memref<128x256xf32, #tpu.memory_space<vmem>>, vector<128x256xf32>
      tpu.vector_store %arg5[%c0_12, %c0_13], %12 {strides = array<i32>} : memref<128x256xf32, #tpu.memory_space<vmem>>, vector<128x256xf32>,
    } else {
    }
    return
  }
  func.func @transform_0(%arg0: i32, %arg1: i32, %arg2: i32) -> (i32, i32) {
    %c0_i32 = arith.constant 0 : i32
    return %arg0, %arg2 : i32, i32
  }
  func.func @transform_1(%arg0: i32, %arg1: i32, %arg2: i32) -> (i32, i32) {
    %c0_i32 = arith.constant 0 : i32
    return %arg2, %arg1 : i32, i32
  }
  func.func @transform_2(%arg0: i32, %arg1: i32, %arg2: i32) -> (i32, i32) {
    %c0_i32 = arith.constant 0 : i32
    return %arg0, %arg1 : i32, i32
  }
}

module attributes {stable_mosaic.version = 11 : i64} {
  func.func @_mm_kernel(%arg0: i32, %arg1: i32, %arg2: i32, %arg3: memref<128x128xbf16, #tpu.memory_space<vmem>>, %arg4: memref<128x128xbf16, #tpu.memory_space<vmem>>, %arg5: memref<128x128xbf16, #tpu.memory_space<vmem>>, %arg6: memref<128x128xf32, #tpu.memory_space<vmem>>) attributes {dimension_semantics = [#tpu.dimension_semantics<parallel>, #tpu.dimension_semantics<parallel>, #tpu.dimension_semantics<arbitrary>], iteration_bounds = array<i64: 1, 1, 27>, scalar_prefetch = 0 : i64, scratch_operands = 1 : i64, tpu.core_type = #tpu.core_type<tc>, window_params = [{transform_indices = @transform_0, window_bounds = array<i64: 128, 128>}, {transform_indices = @transform_1, window_bounds = array<i64: 128, 128>}, {transform_indices = @transform_2, window_bounds = array<i64: 128, 128>}]} {
    %c0_i32 = arith.constant 0 : i32
    %0 = arith.cmpi eq, %arg2, %c0_i32 : i32
    %1 = arith.extui %0 : i1 to i32
    %c0_i32_0 = arith.constant 0 : i32
    %2 = arith.cmpi ne, %1, %c0_i32_0 : i32
    scf.if %2 {
      %cst_9 = arith.constant 0.000000e+00 : f32
      %12 = vector.broadcast %cst_9 : f32 to vector<128x128xf32>
      %c0_10 = arith.constant 0 : index
      %c0_11 = arith.constant 0 : index
      %13 = vector.load %arg6[%c0_10, %c0_11] : memref<128x128xf32, #tpu.memory_space<vmem>>, vector<128x128xf32>
      tpu.vector_store %arg6[%c0_10, %c0_11], %12 {strides = array<i32>} : memref<128x128xf32, #tpu.memory_space<vmem>>, vector<128x128xf32>,
    } else {
    }
    %c0 = arith.constant 0 : index
    %c0_1 = arith.constant 0 : index
    %3 = vector.load %arg6[%c0, %c0_1] : memref<128x128xf32, #tpu.memory_space<vmem>>, vector<128x128xf32>
    %c0_2 = arith.constant 0 : index
    %c0_3 = arith.constant 0 : index
    %4 = vector.load %arg3[%c0_2, %c0_3] : memref<128x128xbf16, #tpu.memory_space<vmem>>, vector<128x128xbf16>
    %c0_4 = arith.constant 0 : index
    %c0_5 = arith.constant 0 : index
    %5 = vector.load %arg4[%c0_4, %c0_5] : memref<128x128xbf16, #tpu.memory_space<vmem>>, vector<128x128xbf16>
    %cst = arith.constant dense<0.000000e+00> : vector<128x128xf32>
    %6 = tpu.matmul %4, %5, %cst {dimension_numbers = #tpu.dot_dimension_numbers<[1], [0], [0], [1], [0, 0, 1, 1], [], []>} : vector<128x128xbf16>, vector<128x128xbf16>, vector<128x128xf32> -> vector<128x128xf32>
    %7 = arith.addf %3, %6 : vector<128x128xf32>
    %c0_6 = arith.constant 0 : index
    %c0_7 = arith.constant 0 : index
    %8 = vector.load %arg6[%c0_6, %c0_7] : memref<128x128xf32, #tpu.memory_space<vmem>>, vector<128x128xf32>
    tpu.vector_store %arg6[%c0_6, %c0_7], %7 {strides = array<i32>} : memref<128x128xf32, #tpu.memory_space<vmem>>, vector<128x128xf32>,
    %c26_i32 = arith.constant 26 : i32
    %9 = arith.cmpi eq, %arg2, %c26_i32 : i32
    %10 = arith.extui %9 : i1 to i32
    %c0_i32_8 = arith.constant 0 : i32
    %11 = arith.cmpi ne, %10, %c0_i32_8 : i32
    scf.if %11 {
      %c0_9 = arith.constant 0 : index
      %c0_10 = arith.constant 0 : index
      %12 = vector.load %arg6[%c0_9, %c0_10] : memref<128x128xf32, #tpu.memory_space<vmem>>, vector<128x128xf32>
      %cst_11 = arith.constant 0.000000e+00 : f32
      %13 = vector.broadcast %cst_11 : f32 to vector<128x128xf32>
      %14 = arith.maximumf %12, %13 : vector<128x128xf32>
      %15 = arith.truncf %14 : vector<128x128xf32> to vector<128x128xbf16>
      %c0_12 = arith.constant 0 : index
      %c0_13 = arith.constant 0 : index
      %16 = vector.load %arg5[%c0_12, %c0_13] : memref<128x128xbf16, #tpu.memory_space<vmem>>, vector<128x128xbf16>
      tpu.vector_store %arg5[%c0_12, %c0_13], %15 {strides = array<i32>} : memref<128x128xbf16, #tpu.memory_space<vmem>>, vector<128x128xbf16>,
    } else {
    }
    return
  }
  func.func @transform_0(%arg0: i32, %arg1: i32, %arg2: i32) -> (i32, i32) {
    %c0_i32 = arith.constant 0 : i32
    return %arg0, %arg2 : i32, i32
  }
  func.func @transform_1(%arg0: i32, %arg1: i32, %arg2: i32) -> (i32, i32) {
    %c0_i32 = arith.constant 0 : i32
    return %arg2, %arg1 : i32, i32
  }
  func.func @transform_2(%arg0: i32, %arg1: i32, %arg2: i32) -> (i32, i32) {
    %c0_i32 = arith.constant 0 : i32
    return %arg0, %arg1 : i32, i32
  }
}

module attributes {stable_mosaic.version = 11 : i64} {
  func.func @_mm_kernel(%arg0: i32, %arg1: i32, %arg2: i32, %arg3: memref<128x128xbf16, #tpu.memory_space<vmem>>, %arg4: memref<128x256xbf16, #tpu.memory_space<vmem>>, %arg5: memref<128x256xf32, #tpu.memory_space<vmem>>, %arg6: memref<128x256xbf16, #tpu.memory_space<vmem>>, %arg7: memref<128x256xf32, #tpu.memory_space<vmem>>) attributes {dimension_semantics = [#tpu.dimension_semantics<parallel>, #tpu.dimension_semantics<parallel>, #tpu.dimension_semantics<arbitrary>], iteration_bounds = array<i64: 1, 2, 1>, scalar_prefetch = 0 : i64, scratch_operands = 1 : i64, tpu.core_type = #tpu.core_type<tc>, window_params = [{transform_indices = @transform_0, window_bounds = array<i64: 128, 128>}, {transform_indices = @transform_1, window_bounds = array<i64: 128, 256>}, {transform_indices = @transform_2, window_bounds = array<i64: 128, 256>}, {transform_indices = @transform_3, window_bounds = array<i64: 128, 256>}]} {
    %c0_i32 = arith.constant 0 : i32
    %0 = arith.cmpi eq, %arg2, %c0_i32 : i32
    %1 = arith.extui %0 : i1 to i32
    %c0_i32_0 = arith.constant 0 : i32
    %2 = arith.cmpi ne, %1, %c0_i32_0 : i32
    scf.if %2 {
      %cst_10 = arith.constant 0.000000e+00 : f32
      %12 = vector.broadcast %cst_10 : f32 to vector<128x256xf32>
      %c0_11 = arith.constant 0 : index
      %c0_12 = arith.constant 0 : index
      %13 = vector.load %arg7[%c0_11, %c0_12] : memref<128x256xf32, #tpu.memory_space<vmem>>, vector<128x256xf32>
      tpu.vector_store %arg7[%c0_11, %c0_12], %12 {strides = array<i32>} : memref<128x256xf32, #tpu.memory_space<vmem>>, vector<128x256xf32>,
    } else {
    }
    %c0 = arith.constant 0 : index
    %c0_1 = arith.constant 0 : index
    %3 = vector.load %arg7[%c0, %c0_1] : memref<128x256xf32, #tpu.memory_space<vmem>>, vector<128x256xf32>
    %c0_2 = arith.constant 0 : index
    %c0_3 = arith.constant 0 : index
    %4 = vector.load %arg3[%c0_2, %c0_3] : memref<128x128xbf16, #tpu.memory_space<vmem>>, vector<128x128xbf16>
    %c0_4 = arith.constant 0 : index
    %c0_5 = arith.constant 0 : index
    %5 = vector.load %arg4[%c0_4, %c0_5] : memref<128x256xbf16, #tpu.memory_space<vmem>>, vector<128x256xbf16>
    %cst = arith.constant dense<0.000000e+00> : vector<128x256xf32>
    %6 = tpu.matmul %4, %5, %cst {dimension_numbers = #tpu.dot_dimension_numbers<[1], [0], [0], [1], [0, 0, 1, 1], [], []>} : vector<128x128xbf16>, vector<128x256xbf16>, vector<128x256xf32> -> vector<128x256xf32>
    %7 = arith.addf %3, %6 : vector<128x256xf32>
    %c0_6 = arith.constant 0 : index
    %c0_7 = arith.constant 0 : index
    %8 = vector.load %arg7[%c0_6, %c0_7] : memref<128x256xf32, #tpu.memory_space<vmem>>, vector<128x256xf32>
    tpu.vector_store %arg7[%c0_6, %c0_7], %7 {strides = array<i32>} : memref<128x256xf32, #tpu.memory_space<vmem>>, vector<128x256xf32>,
    %c0_i32_8 = arith.constant 0 : i32
    %9 = arith.cmpi eq, %arg2, %c0_i32_8 : i32
    %10 = arith.extui %9 : i1 to i32
    %c0_i32_9 = arith.constant 0 : i32
    %11 = arith.cmpi ne, %10, %c0_i32_9 : i32
    scf.if %11 {
      %c0_10 = arith.constant 0 : index
      %c0_11 = arith.constant 0 : index
      %12 = vector.load %arg7[%c0_10, %c0_11] : memref<128x256xf32, #tpu.memory_space<vmem>>, vector<128x256xf32>
      %c0_12 = arith.constant 0 : index
      %c0_13 = arith.constant 0 : index
      %13 = vector.load %arg5[%c0_12, %c0_13] : memref<128x256xf32, #tpu.memory_space<vmem>>, vector<128x256xf32>
      %14 = arith.addf %12, %13 : vector<128x256xf32>
      %cst_14 = arith.constant 0.000000e+00 : f32
      %15 = vector.broadcast %cst_14 : f32 to vector<128x256xf32>
      %16 = arith.maximumf %14, %15 : vector<128x256xf32>
      %17 = arith.truncf %16 : vector<128x256xf32> to vector<128x256xbf16>
      %c0_15 = arith.constant 0 : index
      %c0_16 = arith.constant 0 : index
      %18 = vector.load %arg6[%c0_15, %c0_16] : memref<128x256xbf16, #tpu.memory_space<vmem>>, vector<128x256xbf16>
      tpu.vector_store %arg6[%c0_15, %c0_16], %17 {strides = array<i32>} : memref<128x256xbf16, #tpu.memory_space<vmem>>, vector<128x256xbf16>,
    } else {
    }
    return
  }
  func.func @transform_0(%arg0: i32, %arg1: i32, %arg2: i32) -> (i32, i32) {
    %c0_i32 = arith.constant 0 : i32
    return %arg0, %arg2 : i32, i32
  }
  func.func @transform_1(%arg0: i32, %arg1: i32, %arg2: i32) -> (i32, i32) {
    %c0_i32 = arith.constant 0 : i32
    return %arg2, %arg1 : i32, i32
  }
  func.func @transform_2(%arg0: i32, %arg1: i32, %arg2: i32) -> (i32, i32) {
    %c0_i32 = arith.constant 0 : i32
    return %arg0, %arg1 : i32, i32
  }
  func.func @transform_3(%arg0: i32, %arg1: i32, %arg2: i32) -> (i32, i32) {
    %c0_i32 = arith.constant 0 : i32
    return %arg0, %arg1 : i32, i32
  }
}

module attributes {stable_mosaic.version = 11 : i64} {
  func.func @_mm_kernel(%arg0: i32, %arg1: i32, %arg2: i32, %arg3: memref<128x256xbf16, #tpu.memory_space<vmem>>, %arg4: memref<256x256xbf16, #tpu.memory_space<vmem>>, %arg5: memref<128x256xbf16, #tpu.memory_space<vmem>>, %arg6: memref<128x256xf32, #tpu.memory_space<vmem>>) attributes {dimension_semantics = [#tpu.dimension_semantics<parallel>, #tpu.dimension_semantics<parallel>, #tpu.dimension_semantics<arbitrary>], iteration_bounds = array<i64: 1, 1, 2>, scalar_prefetch = 0 : i64, scratch_operands = 1 : i64, tpu.core_type = #tpu.core_type<tc>, window_params = [{transform_indices = @transform_0, window_bounds = array<i64: 128, 256>}, {transform_indices = @transform_1, window_bounds = array<i64: 256, 256>}, {transform_indices = @transform_2, window_bounds = array<i64: 128, 256>}]} {
    %c0_i32 = arith.constant 0 : i32
    %0 = arith.cmpi eq, %arg2, %c0_i32 : i32
    %1 = arith.extui %0 : i1 to i32
    %c0_i32_0 = arith.constant 0 : i32
    %2 = arith.cmpi ne, %1, %c0_i32_0 : i32
    scf.if %2 {
      %cst_9 = arith.constant 0.000000e+00 : f32
      %12 = vector.broadcast %cst_9 : f32 to vector<128x256xf32>
      %c0_10 = arith.constant 0 : index
      %c0_11 = arith.constant 0 : index
      %13 = vector.load %arg6[%c0_10, %c0_11] : memref<128x256xf32, #tpu.memory_space<vmem>>, vector<128x256xf32>
      tpu.vector_store %arg6[%c0_10, %c0_11], %12 {strides = array<i32>} : memref<128x256xf32, #tpu.memory_space<vmem>>, vector<128x256xf32>,
    } else {
    }
    %c0 = arith.constant 0 : index
    %c0_1 = arith.constant 0 : index
    %3 = vector.load %arg6[%c0, %c0_1] : memref<128x256xf32, #tpu.memory_space<vmem>>, vector<128x256xf32>
    %c0_2 = arith.constant 0 : index
    %c0_3 = arith.constant 0 : index
    %4 = vector.load %arg3[%c0_2, %c0_3] : memref<128x256xbf16, #tpu.memory_space<vmem>>, vector<128x256xbf16>
    %c0_4 = arith.constant 0 : index
    %c0_5 = arith.constant 0 : index
    %5 = vector.load %arg4[%c0_4, %c0_5] : memref<256x256xbf16, #tpu.memory_space<vmem>>, vector<256x256xbf16>
    %cst = arith.constant dense<0.000000e+00> : vector<128x256xf32>
    %6 = tpu.matmul %4, %5, %cst {dimension_numbers = #tpu.dot_dimension_numbers<[1], [0], [0], [1], [0, 0, 1, 1], [], []>} : vector<128x256xbf16>, vector<256x256xbf16>, vector<128x256xf32> -> vector<128x256xf32>
    %7 = arith.addf %3, %6 : vector<128x256xf32>
    %c0_6 = arith.constant 0 : index
    %c0_7 = arith.constant 0 : index
    %8 = vector.load %arg6[%c0_6, %c0_7] : memref<128x256xf32, #tpu.memory_space<vmem>>, vector<128x256xf32>
    tpu.vector_store %arg6[%c0_6, %c0_7], %7 {strides = array<i32>} : memref<128x256xf32, #tpu.memory_space<vmem>>, vector<128x256xf32>,
    %c1_i32 = arith.constant 1 : i32
    %9 = arith.cmpi eq, %arg2, %c1_i32 : i32
    %10 = arith.extui %9 : i1 to i32
    %c0_i32_8 = arith.constant 0 : i32
    %11 = arith.cmpi ne, %10, %c0_i32_8 : i32
    scf.if %11 {
      %c0_9 = arith.constant 0 : index
      %c0_10 = arith.constant 0 : index
      %12 = vector.load %arg6[%c0_9, %c0_10] : memref<128x256xf32, #tpu.memory_space<vmem>>, vector<128x256xf32>
      %cst_11 = arith.constant 0.000000e+00 : f32
      %13 = vector.broadcast %cst_11 : f32 to vector<128x256xf32>
      %14 = arith.maximumf %12, %13 : vector<128x256xf32>
      %15 = arith.truncf %14 : vector<128x256xf32> to vector<128x256xbf16>
      %c0_12 = arith.constant 0 : index
      %c0_13 = arith.constant 0 : index
      %16 = vector.load %arg5[%c0_12, %c0_13] : memref<128x256xbf16, #tpu.memory_space<vmem>>, vector<128x256xbf16>
      tpu.vector_store %arg5[%c0_12, %c0_13], %15 {strides = array<i32>} : memref<128x256xbf16, #tpu.memory_space<vmem>>, vector<128x256xbf16>,
    } else {
    }
    return
  }
  func.func @transform_0(%arg0: i32, %arg1: i32, %arg2: i32) -> (i32, i32) {
    %c0_i32 = arith.constant 0 : i32
    return %arg0, %arg2 : i32, i32
  }
  func.func @transform_1(%arg0: i32, %arg1: i32, %arg2: i32) -> (i32, i32) {
    %c0_i32 = arith.constant 0 : i32
    return %arg2, %arg1 : i32, i32
  }
  func.func @transform_2(%arg0: i32, %arg1: i32, %arg2: i32) -> (i32, i32) {
    %c0_i32 = arith.constant 0 : i32
    return %arg0, %arg1 : i32, i32
  }
}

module attributes {stable_mosaic.version = 11 : i64} {
  func.func @_mm_kernel(%arg0: i32, %arg1: i32, %arg2: i32, %arg3: memref<16x256xbf16, #tpu.memory_space<vmem>>, %arg4: memref<256x256xbf16, #tpu.memory_space<vmem>>, %arg5: memref<16x256xbf16, #tpu.memory_space<vmem>>, %arg6: memref<16x256xf32, #tpu.memory_space<vmem>>) attributes {dimension_semantics = [#tpu.dimension_semantics<parallel>, #tpu.dimension_semantics<parallel>, #tpu.dimension_semantics<arbitrary>], iteration_bounds = array<i64: 1, 1, 27>, scalar_prefetch = 0 : i64, scratch_operands = 1 : i64, tpu.core_type = #tpu.core_type<tc>, window_params = [{transform_indices = @transform_0, window_bounds = array<i64: 16, 256>}, {transform_indices = @transform_1, window_bounds = array<i64: 256, 256>}, {transform_indices = @transform_2, window_bounds = array<i64: 16, 256>}]} {
    %c0_i32 = arith.constant 0 : i32
    %0 = arith.cmpi eq, %arg2, %c0_i32 : i32
    %1 = arith.extui %0 : i1 to i32
    %c0_i32_0 = arith.constant 0 : i32
    %2 = arith.cmpi ne, %1, %c0_i32_0 : i32
    scf.if %2 {
      %cst_9 = arith.constant 0.000000e+00 : f32
      %12 = vector.broadcast %cst_9 : f32 to vector<16x256xf32>
      %c0_10 = arith.constant 0 : index
      %c0_11 = arith.constant 0 : index
      %13 = vector.load %arg6[%c0_10, %c0_11] : memref<16x256xf32, #tpu.memory_space<vmem>>, vector<16x256xf32>
      tpu.vector_store %arg6[%c0_10, %c0_11], %12 {strides = array<i32>} : memref<16x256xf32, #tpu.memory_space<vmem>>, vector<16x256xf32>,
    } else {
    }
    %c0 = arith.constant 0 : index
    %c0_1 = arith.constant 0 : index
    %3 = vector.load %arg6[%c0, %c0_1] : memref<16x256xf32, #tpu.memory_space<vmem>>, vector<16x256xf32>
    %c0_2 = arith.constant 0 : index
    %c0_3 = arith.constant 0 : index
    %4 = vector.load %arg3[%c0_2, %c0_3] : memref<16x256xbf16, #tpu.memory_space<vmem>>, vector<16x256xbf16>
    %c0_4 = arith.constant 0 : index
    %c0_5 = arith.constant 0 : index
    %5 = vector.load %arg4[%c0_4, %c0_5] : memref<256x256xbf16, #tpu.memory_space<vmem>>, vector<256x256xbf16>
    %cst = arith.constant dense<0.000000e+00> : vector<16x256xf32>
    %6 = tpu.matmul %4, %5, %cst {dimension_numbers = #tpu.dot_dimension_numbers<[1], [0], [0], [1], [0, 0, 1, 1], [], []>} : vector<16x256xbf16>, vector<256x256xbf16>, vector<16x256xf32> -> vector<16x256xf32>
    %7 = arith.addf %3, %6 : vector<16x256xf32>
    %c0_6 = arith.constant 0 : index
    %c0_7 = arith.constant 0 : index
    %8 = vector.load %arg6[%c0_6, %c0_7] : memref<16x256xf32, #tpu.memory_space<vmem>>, vector<16x256xf32>
    tpu.vector_store %arg6[%c0_6, %c0_7], %7 {strides = array<i32>} : memref<16x256xf32, #tpu.memory_space<vmem>>, vector<16x256xf32>,
    %c26_i32 = arith.constant 26 : i32
    %9 = arith.cmpi eq, %arg2, %c26_i32 : i32
    %10 = arith.extui %9 : i1 to i32
    %c0_i32_8 = arith.constant 0 : i32
    %11 = arith.cmpi ne, %10, %c0_i32_8 : i32
    scf.if %11 {
      %c0_9 = arith.constant 0 : index
      %c0_10 = arith.constant 0 : index
      %12 = vector.load %arg6[%c0_9, %c0_10] : memref<16x256xf32, #tpu.memory_space<vmem>>, vector<16x256xf32>
      %cst_11 = arith.constant 0.000000e+00 : f32
      %13 = vector.broadcast %cst_11 : f32 to vector<16x256xf32>
      %14 = arith.maximumf %12, %13 : vector<16x256xf32>
      %15 = arith.truncf %14 : vector<16x256xf32> to vector<16x256xbf16>
      %c0_12 = arith.constant 0 : index
      %c0_13 = arith.constant 0 : index
      %16 = vector.load %arg5[%c0_12, %c0_13] : memref<16x256xbf16, #tpu.memory_space<vmem>>, vector<16x256xbf16>
      tpu.vector_store %arg5[%c0_12, %c0_13], %15 {strides = array<i32>} : memref<16x256xbf16, #tpu.memory_space<vmem>>, vector<16x256xbf16>,
    } else {
    }
    return
  }
  func.func @transform_0(%arg0: i32, %arg1: i32, %arg2: i32) -> (i32, i32) {
    %c0_i32 = arith.constant 0 : i32
    return %arg0, %arg2 : i32, i32
  }
  func.func @transform_1(%arg0: i32, %arg1: i32, %arg2: i32) -> (i32, i32) {
    %c0_i32 = arith.constant 0 : i32
    return %arg2, %arg1 : i32, i32
  }
  func.func @transform_2(%arg0: i32, %arg1: i32, %arg2: i32) -> (i32, i32) {
    %c0_i32 = arith.constant 0 : i32
    return %arg0, %arg1 : i32, i32
  }
}

module attributes {stable_mosaic.version = 11 : i64} {
  func.func @_mm_kernel(%arg0: i32, %arg1: i32, %arg2: i32, %arg3: memref<16x256xbf16, #tpu.memory_space<vmem>>, %arg4: memref<256x256xbf16, #tpu.memory_space<vmem>>, %arg5: memref<16x256xf32, #tpu.memory_space<vmem>>, %arg6: memref<16x256xf32, #tpu.memory_space<vmem>>) attributes {dimension_semantics = [#tpu.dimension_semantics<parallel>, #tpu.dimension_semantics<parallel>, #tpu.dimension_semantics<arbitrary>], iteration_bounds = array<i64: 1, 4, 2>, scalar_prefetch = 0 : i64, scratch_operands = 1 : i64, tpu.core_type = #tpu.core_type<tc>, window_params = [{transform_indices = @transform_0, window_bounds = array<i64: 16, 256>}, {transform_indices = @transform_1, window_bounds = array<i64: 256, 256>}, {transform_indices = @transform_2, window_bounds = array<i64: 16, 256>}]} {
    %c0_i32 = arith.constant 0 : i32
    %0 = arith.cmpi eq, %arg2, %c0_i32 : i32
    %1 = arith.extui %0 : i1 to i32
    %c0_i32_0 = arith.constant 0 : i32
    %2 = arith.cmpi ne, %1, %c0_i32_0 : i32
    scf.if %2 {
      %cst_9 = arith.constant 0.000000e+00 : f32
      %12 = vector.broadcast %cst_9 : f32 to vector<16x256xf32>
      %c0_10 = arith.constant 0 : index
      %c0_11 = arith.constant 0 : index
      %13 = vector.load %arg6[%c0_10, %c0_11] : memref<16x256xf32, #tpu.memory_space<vmem>>, vector<16x256xf32>
      tpu.vector_store %arg6[%c0_10, %c0_11], %12 {strides = array<i32>} : memref<16x256xf32, #tpu.memory_space<vmem>>, vector<16x256xf32>,
    } else {
    }
    %c0 = arith.constant 0 : index
    %c0_1 = arith.constant 0 : index
    %3 = vector.load %arg6[%c0, %c0_1] : memref<16x256xf32, #tpu.memory_space<vmem>>, vector<16x256xf32>
    %c0_2 = arith.constant 0 : index
    %c0_3 = arith.constant 0 : index
    %4 = vector.load %arg3[%c0_2, %c0_3] : memref<16x256xbf16, #tpu.memory_space<vmem>>, vector<16x256xbf16>
    %c0_4 = arith.constant 0 : index
    %c0_5 = arith.constant 0 : index
    %5 = vector.load %arg4[%c0_4, %c0_5] : memref<256x256xbf16, #tpu.memory_space<vmem>>, vector<256x256xbf16>
    %cst = arith.constant dense<0.000000e+00> : vector<16x256xf32>
    %6 = tpu.matmul %4, %5, %cst {dimension_numbers = #tpu.dot_dimension_numbers<[1], [0], [0], [1], [0, 0, 1, 1], [], []>} : vector<16x256xbf16>, vector<256x256xbf16>, vector<16x256xf32> -> vector<16x256xf32>
    %7 = arith.addf %3, %6 : vector<16x256xf32>
    %c0_6 = arith.constant 0 : index
    %c0_7 = arith.constant 0 : index
    %8 = vector.load %arg6[%c0_6, %c0_7] : memref<16x256xf32, #tpu.memory_space<vmem>>, vector<16x256xf32>
    tpu.vector_store %arg6[%c0_6, %c0_7], %7 {strides = array<i32>} : memref<16x256xf32, #tpu.memory_space<vmem>>, vector<16x256xf32>,
    %c1_i32 = arith.constant 1 : i32
    %9 = arith.cmpi eq, %arg2, %c1_i32 : i32
    %10 = arith.extui %9 : i1 to i32
    %c0_i32_8 = arith.constant 0 : i32
    %11 = arith.cmpi ne, %10, %c0_i32_8 : i32
    scf.if %11 {
      %c0_9 = arith.constant 0 : index
      %c0_10 = arith.constant 0 : index
      %12 = vector.load %arg6[%c0_9, %c0_10] : memref<16x256xf32, #tpu.memory_space<vmem>>, vector<16x256xf32>
      %c0_11 = arith.constant 0 : index
      %c0_12 = arith.constant 0 : index
      %13 = vector.load %arg5[%c0_11, %c0_12] : memref<16x256xf32, #tpu.memory_space<vmem>>, vector<16x256xf32>
      tpu.vector_store %arg5[%c0_11, %c0_12], %12 {strides = array<i32>} : memref<16x256xf32, #tpu.memory_space<vmem>>, vector<16x256xf32>,
    } else {
    }
    return
  }
  func.func @transform_0(%arg0: i32, %arg1: i32, %arg2: i32) -> (i32, i32) {
    %c0_i32 = arith.constant 0 : i32
    return %arg0, %arg2 : i32, i32
  }
  func.func @transform_1(%arg0: i32, %arg1: i32, %arg2: i32) -> (i32, i32) {
    %c0_i32 = arith.constant 0 : i32
    return %arg2, %arg1 : i32, i32
  }
  func.func @transform_2(%arg0: i32, %arg1: i32, %arg2: i32) -> (i32, i32) {
    %c0_i32 = arith.constant 0 : i32
    return %arg0, %arg1 : i32, i32
  }
}

module attributes {stable_mosaic.version = 11 : i64} {
  func.func @_mm_kernel(%arg0: i32, %arg1: i32, %arg2: i32, %arg3: memref<16x256xbf16, #tpu.memory_space<vmem>>, %arg4: memref<256x256xbf16, #tpu.memory_space<vmem>>, %arg5: memref<16x256xbf16, #tpu.memory_space<vmem>>, %arg6: memref<16x256xf32, #tpu.memory_space<vmem>>) attributes {dimension_semantics = [#tpu.dimension_semantics<parallel>, #tpu.dimension_semantics<parallel>, #tpu.dimension_semantics<arbitrary>], iteration_bounds = array<i64: 1, 2, 4>, scalar_prefetch = 0 : i64, scratch_operands = 1 : i64, tpu.core_type = #tpu.core_type<tc>, window_params = [{transform_indices = @transform_0, window_bounds = array<i64: 16, 256>}, {transform_indices = @transform_1, window_bounds = array<i64: 256, 256>}, {transform_indices = @transform_2, window_bounds = array<i64: 16, 256>}]} {
    %c0_i32 = arith.constant 0 : i32
    %0 = arith.cmpi eq, %arg2, %c0_i32 : i32
    %1 = arith.extui %0 : i1 to i32
    %c0_i32_0 = arith.constant 0 : i32
    %2 = arith.cmpi ne, %1, %c0_i32_0 : i32
    scf.if %2 {
      %cst_9 = arith.constant 0.000000e+00 : f32
      %12 = vector.broadcast %cst_9 : f32 to vector<16x256xf32>
      %c0_10 = arith.constant 0 : index
      %c0_11 = arith.constant 0 : index
      %13 = vector.load %arg6[%c0_10, %c0_11] : memref<16x256xf32, #tpu.memory_space<vmem>>, vector<16x256xf32>
      tpu.vector_store %arg6[%c0_10, %c0_11], %12 {strides = array<i32>} : memref<16x256xf32, #tpu.memory_space<vmem>>, vector<16x256xf32>,
    } else {
    }
    %c0 = arith.constant 0 : index
    %c0_1 = arith.constant 0 : index
    %3 = vector.load %arg6[%c0, %c0_1] : memref<16x256xf32, #tpu.memory_space<vmem>>, vector<16x256xf32>
    %c0_2 = arith.constant 0 : index
    %c0_3 = arith.constant 0 : index
    %4 = vector.load %arg3[%c0_2, %c0_3] : memref<16x256xbf16, #tpu.memory_space<vmem>>, vector<16x256xbf16>
    %c0_4 = arith.constant 0 : index
    %c0_5 = arith.constant 0 : index
    %5 = vector.load %arg4[%c0_4, %c0_5] : memref<256x256xbf16, #tpu.memory_space<vmem>>, vector<256x256xbf16>
    %cst = arith.constant dense<0.000000e+00> : vector<16x256xf32>
    %6 = tpu.matmul %4, %5, %cst {dimension_numbers = #tpu.dot_dimension_numbers<[1], [0], [0], [1], [0, 0, 1, 1], [], []>} : vector<16x256xbf16>, vector<256x256xbf16>, vector<16x256xf32> -> vector<16x256xf32>
    %7 = arith.addf %3, %6 : vector<16x256xf32>
    %c0_6 = arith.constant 0 : index
    %c0_7 = arith.constant 0 : index
    %8 = vector.load %arg6[%c0_6, %c0_7] : memref<16x256xf32, #tpu.memory_space<vmem>>, vector<16x256xf32>
    tpu.vector_store %arg6[%c0_6, %c0_7], %7 {strides = array<i32>} : memref<16x256xf32, #tpu.memory_space<vmem>>, vector<16x256xf32>,
    %c3_i32 = arith.constant 3 : i32
    %9 = arith.cmpi eq, %arg2, %c3_i32 : i32
    %10 = arith.extui %9 : i1 to i32
    %c0_i32_8 = arith.constant 0 : i32
    %11 = arith.cmpi ne, %10, %c0_i32_8 : i32
    scf.if %11 {
      %c0_9 = arith.constant 0 : index
      %c0_10 = arith.constant 0 : index
      %12 = vector.load %arg6[%c0_9, %c0_10] : memref<16x256xf32, #tpu.memory_space<vmem>>, vector<16x256xf32>
      %cst_11 = arith.constant 0.000000e+00 : f32
      %13 = vector.broadcast %cst_11 : f32 to vector<16x256xf32>
      %14 = arith.maximumf %12, %13 : vector<16x256xf32>
      %15 = arith.truncf %14 : vector<16x256xf32> to vector<16x256xbf16>
      %c0_12 = arith.constant 0 : index
      %c0_13 = arith.constant 0 : index
      %16 = vector.load %arg5[%c0_12, %c0_13] : memref<16x256xbf16, #tpu.memory_space<vmem>>, vector<16x256xbf16>
      tpu.vector_store %arg5[%c0_12, %c0_13], %15 {strides = array<i32>} : memref<16x256xbf16, #tpu.memory_space<vmem>>, vector<16x256xbf16>,
    } else {
    }
    return
  }
  func.func @transform_0(%arg0: i32, %arg1: i32, %arg2: i32) -> (i32, i32) {
    %c0_i32 = arith.constant 0 : i32
    return %arg0, %arg2 : i32, i32
  }
  func.func @transform_1(%arg0: i32, %arg1: i32, %arg2: i32) -> (i32, i32) {
    %c0_i32 = arith.constant 0 : i32
    return %arg2, %arg1 : i32, i32
  }
  func.func @transform_2(%arg0: i32, %arg1: i32, %arg2: i32) -> (i32, i32) {
    %c0_i32 = arith.constant 0 : i32
    return %arg0, %arg1 : i32, i32
  }
}

module attributes {stable_mosaic.version = 11 : i64} {
  func.func @_mm_kernel(%arg0: i32, %arg1: i32, %arg2: i32, %arg3: memref<16x256xbf16, #tpu.memory_space<vmem>>, %arg4: memref<256x256xbf16, #tpu.memory_space<vmem>>, %arg5: memref<16x256xf32, #tpu.memory_space<vmem>>, %arg6: memref<16x256xbf16, #tpu.memory_space<vmem>>, %arg7: memref<16x256xf32, #tpu.memory_space<vmem>>) attributes {dimension_semantics = [#tpu.dimension_semantics<parallel>, #tpu.dimension_semantics<parallel>, #tpu.dimension_semantics<arbitrary>], iteration_bounds = array<i64: 1, 4, 1>, scalar_prefetch = 0 : i64, scratch_operands = 1 : i64, tpu.core_type = #tpu.core_type<tc>, window_params = [{transform_indices = @transform_0, window_bounds = array<i64: 16, 256>}, {transform_indices = @transform_1, window_bounds = array<i64: 256, 256>}, {transform_indices = @transform_2, window_bounds = array<i64: 16, 256>}, {transform_indices = @transform_3, window_bounds = array<i64: 16, 256>}]} {
    %c0_i32 = arith.constant 0 : i32
    %0 = arith.cmpi eq, %arg2, %c0_i32 : i32
    %1 = arith.extui %0 : i1 to i32
    %c0_i32_0 = arith.constant 0 : i32
    %2 = arith.cmpi ne, %1, %c0_i32_0 : i32
    scf.if %2 {
      %cst_10 = arith.constant 0.000000e+00 : f32
      %12 = vector.broadcast %cst_10 : f32 to vector<16x256xf32>
      %c0_11 = arith.constant 0 : index
      %c0_12 = arith.constant 0 : index
      %13 = vector.load %arg7[%c0_11, %c0_12] : memref<16x256xf32, #tpu.memory_space<vmem>>, vector<16x256xf32>
      tpu.vector_store %arg7[%c0_11, %c0_12], %12 {strides = array<i32>} : memref<16x256xf32, #tpu.memory_space<vmem>>, vector<16x256xf32>,
    } else {
    }
    %c0 = arith.constant 0 : index
    %c0_1 = arith.constant 0 : index
    %3 = vector.load %arg7[%c0, %c0_1] : memref<16x256xf32, #tpu.memory_space<vmem>>, vector<16x256xf32>
    %c0_2 = arith.constant 0 : index
    %c0_3 = arith.constant 0 : index
    %4 = vector.load %arg3[%c0_2, %c0_3] : memref<16x256xbf16, #tpu.memory_space<vmem>>, vector<16x256xbf16>
    %c0_4 = arith.constant 0 : index
    %c0_5 = arith.constant 0 : index
    %5 = vector.load %arg4[%c0_4, %c0_5] : memref<256x256xbf16, #tpu.memory_space<vmem>>, vector<256x256xbf16>
    %cst = arith.constant dense<0.000000e+00> : vector<16x256xf32>
    %6 = tpu.matmul %4, %5, %cst {dimension_numbers = #tpu.dot_dimension_numbers<[1], [0], [0], [1], [0, 0, 1, 1], [], []>} : vector<16x256xbf16>, vector<256x256xbf16>, vector<16x256xf32> -> vector<16x256xf32>
    %7 = arith.addf %3, %6 : vector<16x256xf32>
    %c0_6 = arith.constant 0 : index
    %c0_7 = arith.constant 0 : index
    %8 = vector.load %arg7[%c0_6, %c0_7] : memref<16x256xf32, #tpu.memory_space<vmem>>, vector<16x256xf32>
    tpu.vector_store %arg7[%c0_6, %c0_7], %7 {strides = array<i32>} : memref<16x256xf32, #tpu.memory_space<vmem>>, vector<16x256xf32>,
    %c0_i32_8 = arith.constant 0 : i32
    %9 = arith.cmpi eq, %arg2, %c0_i32_8 : i32
    %10 = arith.extui %9 : i1 to i32
    %c0_i32_9 = arith.constant 0 : i32
    %11 = arith.cmpi ne, %10, %c0_i32_9 : i32
    scf.if %11 {
      %c0_10 = arith.constant 0 : index
      %c0_11 = arith.constant 0 : index
      %12 = vector.load %arg7[%c0_10, %c0_11] : memref<16x256xf32, #tpu.memory_space<vmem>>, vector<16x256xf32>
      %c0_12 = arith.constant 0 : index
      %c0_13 = arith.constant 0 : index
      %13 = vector.load %arg5[%c0_12, %c0_13] : memref<16x256xf32, #tpu.memory_space<vmem>>, vector<16x256xf32>
      %14 = arith.addf %12, %13 : vector<16x256xf32>
      %cst_14 = arith.constant 0.000000e+00 : f32
      %15 = vector.broadcast %cst_14 : f32 to vector<16x256xf32>
      %16 = arith.maximumf %14, %15 : vector<16x256xf32>
      %17 = arith.truncf %16 : vector<16x256xf32> to vector<16x256xbf16>
      %c0_15 = arith.constant 0 : index
      %c0_16 = arith.constant 0 : index
      %18 = vector.load %arg6[%c0_15, %c0_16] : memref<16x256xbf16, #tpu.memory_space<vmem>>, vector<16x256xbf16>
      tpu.vector_store %arg6[%c0_15, %c0_16], %17 {strides = array<i32>} : memref<16x256xbf16, #tpu.memory_space<vmem>>, vector<16x256xbf16>,
    } else {
    }
    return
  }
  func.func @transform_0(%arg0: i32, %arg1: i32, %arg2: i32) -> (i32, i32) {
    %c0_i32 = arith.constant 0 : i32
    return %arg0, %arg2 : i32, i32
  }
  func.func @transform_1(%arg0: i32, %arg1: i32, %arg2: i32) -> (i32, i32) {
    %c0_i32 = arith.constant 0 : i32
    return %arg2, %arg1 : i32, i32
  }
  func.func @transform_2(%arg0: i32, %arg1: i32, %arg2: i32) -> (i32, i32) {
    %c0_i32 = arith.constant 0 : i32
    return %arg0, %arg1 : i32, i32
  }
  func.func @transform_3(%arg0: i32, %arg1: i32, %arg2: i32) -> (i32, i32) {
    %c0_i32 = arith.constant 0 : i32
    return %arg0, %arg1 : i32, i32
  }
}

module attributes {stable_mosaic.version = 11 : i64} {
  func.func @_mm_kernel(%arg0: i32, %arg1: i32, %arg2: i32, %arg3: memref<16x256xbf16, #tpu.memory_space<vmem>>, %arg4: memref<256x256xbf16, #tpu.memory_space<vmem>>, %arg5: memref<16x256xbf16, #tpu.memory_space<vmem>>, %arg6: memref<16x256xf32, #tpu.memory_space<vmem>>) attributes {dimension_semantics = [#tpu.dimension_semantics<parallel>, #tpu.dimension_semantics<parallel>, #tpu.dimension_semantics<arbitrary>], iteration_bounds = array<i64: 1, 2, 54>, scalar_prefetch = 0 : i64, scratch_operands = 1 : i64, tpu.core_type = #tpu.core_type<tc>, window_params = [{transform_indices = @transform_0, window_bounds = array<i64: 16, 256>}, {transform_indices = @transform_1, window_bounds = array<i64: 256, 256>}, {transform_indices = @transform_2, window_bounds = array<i64: 16, 256>}]} {
    %c0_i32 = arith.constant 0 : i32
    %0 = arith.cmpi eq, %arg2, %c0_i32 : i32
    %1 = arith.extui %0 : i1 to i32
    %c0_i32_0 = arith.constant 0 : i32
    %2 = arith.cmpi ne, %1, %c0_i32_0 : i32
    scf.if %2 {
      %cst_9 = arith.constant 0.000000e+00 : f32
      %12 = vector.broadcast %cst_9 : f32 to vector<16x256xf32>
      %c0_10 = arith.constant 0 : index
      %c0_11 = arith.constant 0 : index
      %13 = vector.load %arg6[%c0_10, %c0_11] : memref<16x256xf32, #tpu.memory_space<vmem>>, vector<16x256xf32>
      tpu.vector_store %arg6[%c0_10, %c0_11], %12 {strides = array<i32>} : memref<16x256xf32, #tpu.memory_space<vmem>>, vector<16x256xf32>,
    } else {
    }
    %c0 = arith.constant 0 : index
    %c0_1 = arith.constant 0 : index
    %3 = vector.load %arg6[%c0, %c0_1] : memref<16x256xf32, #tpu.memory_space<vmem>>, vector<16x256xf32>
    %c0_2 = arith.constant 0 : index
    %c0_3 = arith.constant 0 : index
    %4 = vector.load %arg3[%c0_2, %c0_3] : memref<16x256xbf16, #tpu.memory_space<vmem>>, vector<16x256xbf16>
    %c0_4 = arith.constant 0 : index
    %c0_5 = arith.constant 0 : index
    %5 = vector.load %arg4[%c0_4, %c0_5] : memref<256x256xbf16, #tpu.memory_space<vmem>>, vector<256x256xbf16>
    %cst = arith.constant dense<0.000000e+00> : vector<16x256xf32>
    %6 = tpu.matmul %4, %5, %cst {dimension_numbers = #tpu.dot_dimension_numbers<[1], [0], [0], [1], [0, 0, 1, 1], [], []>} : vector<16x256xbf16>, vector<256x256xbf16>, vector<16x256xf32> -> vector<16x256xf32>
    %7 = arith.addf %3, %6 : vector<16x256xf32>
    %c0_6 = arith.constant 0 : index
    %c0_7 = arith.constant 0 : index
    %8 = vector.load %arg6[%c0_6, %c0_7] : memref<16x256xf32, #tpu.memory_space<vmem>>, vector<16x256xf32>
    tpu.vector_store %arg6[%c0_6, %c0_7], %7 {strides = array<i32>} : memref<16x256xf32, #tpu.memory_space<vmem>>, vector<16x256xf32>,
    %c53_i32 = arith.constant 53 : i32
    %9 = arith.cmpi eq, %arg2, %c53_i32 : i32
    %10 = arith.extui %9 : i1 to i32
    %c0_i32_8 = arith.constant 0 : i32
    %11 = arith.cmpi ne, %10, %c0_i32_8 : i32
    scf.if %11 {
      %c0_9 = arith.constant 0 : index
      %c0_10 = arith.constant 0 : index
      %12 = vector.load %arg6[%c0_9, %c0_10] : memref<16x256xf32, #tpu.memory_space<vmem>>, vector<16x256xf32>
      %cst_11 = arith.constant 0.000000e+00 : f32
      %13 = vector.broadcast %cst_11 : f32 to vector<16x256xf32>
      %14 = arith.maximumf %12, %13 : vector<16x256xf32>
      %15 = arith.truncf %14 : vector<16x256xf32> to vector<16x256xbf16>
      %c0_12 = arith.constant 0 : index
      %c0_13 = arith.constant 0 : index
      %16 = vector.load %arg5[%c0_12, %c0_13] : memref<16x256xbf16, #tpu.memory_space<vmem>>, vector<16x256xbf16>
      tpu.vector_store %arg5[%c0_12, %c0_13], %15 {strides = array<i32>} : memref<16x256xbf16, #tpu.memory_space<vmem>>, vector<16x256xbf16>,
    } else {
    }
    return
  }
  func.func @transform_0(%arg0: i32, %arg1: i32, %arg2: i32) -> (i32, i32) {
    %c0_i32 = arith.constant 0 : i32
    return %arg0, %arg2 : i32, i32
  }
  func.func @transform_1(%arg0: i32, %arg1: i32, %arg2: i32) -> (i32, i32) {
    %c0_i32 = arith.constant 0 : i32
    return %arg2, %arg1 : i32, i32
  }
  func.func @transform_2(%arg0: i32, %arg1: i32, %arg2: i32) -> (i32, i32) {
    %c0_i32 = arith.constant 0 : i32
    return %arg0, %arg1 : i32, i32
  }
}

module attributes {stable_mosaic.version = 11 : i64} {
  func.func @_mm_kernel(%arg0: i32, %arg1: i32, %arg2: i32, %arg3: memref<16x256xbf16, #tpu.memory_space<vmem>>, %arg4: memref<256x256xbf16, #tpu.memory_space<vmem>>, %arg5: memref<16x256xf32, #tpu.memory_space<vmem>>, %arg6: memref<16x256xbf16, #tpu.memory_space<vmem>>, %arg7: memref<16x256xf32, #tpu.memory_space<vmem>>) attributes {dimension_semantics = [#tpu.dimension_semantics<parallel>, #tpu.dimension_semantics<parallel>, #tpu.dimension_semantics<arbitrary>], iteration_bounds = array<i64: 1, 8, 2>, scalar_prefetch = 0 : i64, scratch_operands = 1 : i64, tpu.core_type = #tpu.core_type<tc>, window_params = [{transform_indices = @transform_0, window_bounds = array<i64: 16, 256>}, {transform_indices = @transform_1, window_bounds = array<i64: 256, 256>}, {transform_indices = @transform_2, window_bounds = array<i64: 16, 256>}, {transform_indices = @transform_3, window_bounds = array<i64: 16, 256>}]} {
    %c0_i32 = arith.constant 0 : i32
    %0 = arith.cmpi eq, %arg2, %c0_i32 : i32
    %1 = arith.extui %0 : i1 to i32
    %c0_i32_0 = arith.constant 0 : i32
    %2 = arith.cmpi ne, %1, %c0_i32_0 : i32
    scf.if %2 {
      %cst_9 = arith.constant 0.000000e+00 : f32
      %12 = vector.broadcast %cst_9 : f32 to vector<16x256xf32>
      %c0_10 = arith.constant 0 : index
      %c0_11 = arith.constant 0 : index
      %13 = vector.load %arg7[%c0_10, %c0_11] : memref<16x256xf32, #tpu.memory_space<vmem>>, vector<16x256xf32>
      tpu.vector_store %arg7[%c0_10, %c0_11], %12 {strides = array<i32>} : memref<16x256xf32, #tpu.memory_space<vmem>>, vector<16x256xf32>,
    } else {
    }
    %c0 = arith.constant 0 : index
    %c0_1 = arith.constant 0 : index
    %3 = vector.load %arg7[%c0, %c0_1] : memref<16x256xf32, #tpu.memory_space<vmem>>, vector<16x256xf32>
    %c0_2 = arith.constant 0 : index
    %c0_3 = arith.constant 0 : index
    %4 = vector.load %arg3[%c0_2, %c0_3] : memref<16x256xbf16, #tpu.memory_space<vmem>>, vector<16x256xbf16>
    %c0_4 = arith.constant 0 : index
    %c0_5 = arith.constant 0 : index
    %5 = vector.load %arg4[%c0_4, %c0_5] : memref<256x256xbf16, #tpu.memory_space<vmem>>, vector<256x256xbf16>
    %cst = arith.constant dense<0.000000e+00> : vector<16x256xf32>
    %6 = tpu.matmul %4, %5, %cst {dimension_numbers = #tpu.dot_dimension_numbers<[1], [0], [0], [1], [0, 0, 1, 1], [], []>} : vector<16x256xbf16>, vector<256x256xbf16>, vector<16x256xf32> -> vector<16x256xf32>
    %7 = arith.addf %3, %6 : vector<16x256xf32>
    %c0_6 = arith.constant 0 : index
    %c0_7 = arith.constant 0 : index
    %8 = vector.load %arg7[%c0_6, %c0_7] : memref<16x256xf32, #tpu.memory_space<vmem>>, vector<16x256xf32>
    tpu.vector_store %arg7[%c0_6, %c0_7], %7 {strides = array<i32>} : memref<16x256xf32, #tpu.memory_space<vmem>>, vector<16x256xf32>,
    %c1_i32 = arith.constant 1 : i32
    %9 = arith.cmpi eq, %arg2, %c1_i32 : i32
    %10 = arith.extui %9 : i1 to i32
    %c0_i32_8 = arith.constant 0 : i32
    %11 = arith.cmpi ne, %10, %c0_i32_8 : i32
    scf.if %11 {
      %c0_9 = arith.constant 0 : index
      %c0_10 = arith.constant 0 : index
      %12 = vector.load %arg7[%c0_9, %c0_10] : memref<16x256xf32, #tpu.memory_space<vmem>>, vector<16x256xf32>
      %c0_11 = arith.constant 0 : index
      %c0_12 = arith.constant 0 : index
      %13 = vector.load %arg5[%c0_11, %c0_12] : memref<16x256xf32, #tpu.memory_space<vmem>>, vector<16x256xf32>
      %14 = arith.addf %12, %13 : vector<16x256xf32>
      %cst_13 = arith.constant 0.000000e+00 : f32
      %15 = vector.broadcast %cst_13 : f32 to vector<16x256xf32>
      %16 = arith.maximumf %14, %15 : vector<16x256xf32>
      %17 = arith.truncf %16 : vector<16x256xf32> to vector<16x256xbf16>
      %c0_14 = arith.constant 0 : index
      %c0_15 = arith.constant 0 : index
      %18 = vector.load %arg6[%c0_14, %c0_15] : memref<16x256xbf16, #tpu.memory_space<vmem>>, vector<16x256xbf16>
      tpu.vector_store %arg6[%c0_14, %c0_15], %17 {strides = array<i32>} : memref<16x256xbf16, #tpu.memory_space<vmem>>, vector<16x256xbf16>,
    } else {
    }
    return
  }
  func.func @transform_0(%arg0: i32, %arg1: i32, %arg2: i32) -> (i32, i32) {
    %c0_i32 = arith.constant 0 : i32
    return %arg0, %arg2 : i32, i32
  }
  func.func @transform_1(%arg0: i32, %arg1: i32, %arg2: i32) -> (i32, i32) {
    %c0_i32 = arith.constant 0 : i32
    return %arg2, %arg1 : i32, i32
  }
  func.func @transform_2(%arg0: i32, %arg1: i32, %arg2: i32) -> (i32, i32) {
    %c0_i32 = arith.constant 0 : i32
    return %arg0, %arg1 : i32, i32
  }
  func.func @transform_3(%arg0: i32, %arg1: i32, %arg2: i32) -> (i32, i32) {
    %c0_i32 = arith.constant 0 : i32
    return %arg0, %arg1 : i32, i32
  }
}

module attributes {stable_mosaic.version = 11 : i64} {
  func.func @_mm_kernel(%arg0: i32, %arg1: i32, %arg2: i32, %arg3: memref<16x256xbf16, #tpu.memory_space<vmem>>, %arg4: memref<256x256xbf16, #tpu.memory_space<vmem>>, %arg5: memref<16x256xf32, #tpu.memory_space<vmem>>, %arg6: memref<16x256xf32, #tpu.memory_space<vmem>>) attributes {dimension_semantics = [#tpu.dimension_semantics<parallel>, #tpu.dimension_semantics<parallel>, #tpu.dimension_semantics<arbitrary>], iteration_bounds = array<i64: 1, 8, 4>, scalar_prefetch = 0 : i64, scratch_operands = 1 : i64, tpu.core_type = #tpu.core_type<tc>, window_params = [{transform_indices = @transform_0, window_bounds = array<i64: 16, 256>}, {transform_indices = @transform_1, window_bounds = array<i64: 256, 256>}, {transform_indices = @transform_2, window_bounds = array<i64: 16, 256>}]} {
    %c0_i32 = arith.constant 0 : i32
    %0 = arith.cmpi eq, %arg2, %c0_i32 : i32
    %1 = arith.extui %0 : i1 to i32
    %c0_i32_0 = arith.constant 0 : i32
    %2 = arith.cmpi ne, %1, %c0_i32_0 : i32
    scf.if %2 {
      %cst_9 = arith.constant 0.000000e+00 : f32
      %12 = vector.broadcast %cst_9 : f32 to vector<16x256xf32>
      %c0_10 = arith.constant 0 : index
      %c0_11 = arith.constant 0 : index
      %13 = vector.load %arg6[%c0_10, %c0_11] : memref<16x256xf32, #tpu.memory_space<vmem>>, vector<16x256xf32>
      tpu.vector_store %arg6[%c0_10, %c0_11], %12 {strides = array<i32>} : memref<16x256xf32, #tpu.memory_space<vmem>>, vector<16x256xf32>,
    } else {
    }
    %c0 = arith.constant 0 : index
    %c0_1 = arith.constant 0 : index
    %3 = vector.load %arg6[%c0, %c0_1] : memref<16x256xf32, #tpu.memory_space<vmem>>, vector<16x256xf32>
    %c0_2 = arith.constant 0 : index
    %c0_3 = arith.constant 0 : index
    %4 = vector.load %arg3[%c0_2, %c0_3] : memref<16x256xbf16, #tpu.memory_space<vmem>>, vector<16x256xbf16>
    %c0_4 = arith.constant 0 : index
    %c0_5 = arith.constant 0 : index
    %5 = vector.load %arg4[%c0_4, %c0_5] : memref<256x256xbf16, #tpu.memory_space<vmem>>, vector<256x256xbf16>
    %cst = arith.constant dense<0.000000e+00> : vector<16x256xf32>
    %6 = tpu.matmul %4, %5, %cst {dimension_numbers = #tpu.dot_dimension_numbers<[1], [0], [0], [1], [0, 0, 1, 1], [], []>} : vector<16x256xbf16>, vector<256x256xbf16>, vector<16x256xf32> -> vector<16x256xf32>
    %7 = arith.addf %3, %6 : vector<16x256xf32>
    %c0_6 = arith.constant 0 : index
    %c0_7 = arith.constant 0 : index
    %8 = vector.load %arg6[%c0_6, %c0_7] : memref<16x256xf32, #tpu.memory_space<vmem>>, vector<16x256xf32>
    tpu.vector_store %arg6[%c0_6, %c0_7], %7 {strides = array<i32>} : memref<16x256xf32, #tpu.memory_space<vmem>>, vector<16x256xf32>,
    %c3_i32 = arith.constant 3 : i32
    %9 = arith.cmpi eq, %arg2, %c3_i32 : i32
    %10 = arith.extui %9 : i1 to i32
    %c0_i32_8 = arith.constant 0 : i32
    %11 = arith.cmpi ne, %10, %c0_i32_8 : i32
    scf.if %11 {
      %c0_9 = arith.constant 0 : index
      %c0_10 = arith.constant 0 : index
      %12 = vector.load %arg6[%c0_9, %c0_10] : memref<16x256xf32, #tpu.memory_space<vmem>>, vector<16x256xf32>
      %c0_11 = arith.constant 0 : index
      %c0_12 = arith.constant 0 : index
      %13 = vector.load %arg5[%c0_11, %c0_12] : memref<16x256xf32, #tpu.memory_space<vmem>>, vector<16x256xf32>
      tpu.vector_store %arg5[%c0_11, %c0_12], %12 {strides = array<i32>} : memref<16x256xf32, #tpu.memory_space<vmem>>, vector<16x256xf32>,
    } else {
    }
    return
  }
  func.func @transform_0(%arg0: i32, %arg1: i32, %arg2: i32) -> (i32, i32) {
    %c0_i32 = arith.constant 0 : i32
    return %arg0, %arg2 : i32, i32
  }
  func.func @transform_1(%arg0: i32, %arg1: i32, %arg2: i32) -> (i32, i32) {
    %c0_i32 = arith.constant 0 : i32
    return %arg2, %arg1 : i32, i32
  }
  func.func @transform_2(%arg0: i32, %arg1: i32, %arg2: i32) -> (i32, i32) {
    %c0_i32 = arith.constant 0 : i32
    return %arg0, %arg1 : i32, i32
  }
}

module attributes {stable_mosaic.version = 11 : i64} {
  func.func @_mm_kernel(%arg0: i32, %arg1: i32, %arg2: i32, %arg3: memref<16x256xbf16, #tpu.memory_space<vmem>>, %arg4: memref<256x128xbf16, #tpu.memory_space<vmem>>, %arg5: memref<1x128xf32, #tpu.memory_space<vmem>>, %arg6: memref<16x128xf32, #tpu.memory_space<vmem>>, %arg7: memref<16x128xf32, #tpu.memory_space<vmem>>) attributes {dimension_semantics = [#tpu.dimension_semantics<parallel>, #tpu.dimension_semantics<parallel>, #tpu.dimension_semantics<arbitrary>], iteration_bounds = array<i64: 1, 1, 8>, scalar_prefetch = 0 : i64, scratch_operands = 1 : i64, tpu.core_type = #tpu.core_type<tc>, window_params = [{transform_indices = @transform_0, window_bounds = array<i64: 16, 256>}, {transform_indices = @transform_1, window_bounds = array<i64: 256, 128>}, {transform_indices = @transform_2, window_bounds = array<i64: 1, 128>}, {transform_indices = @transform_3, window_bounds = array<i64: 16, 128>}]} {
    %c0_i32 = arith.constant 0 : i32
    %0 = arith.cmpi eq, %arg2, %c0_i32 : i32
    %1 = arith.extui %0 : i1 to i32
    %c0_i32_0 = arith.constant 0 : i32
    %2 = arith.cmpi ne, %1, %c0_i32_0 : i32
    scf.if %2 {
      %cst_9 = arith.constant 0.000000e+00 : f32
      %12 = vector.broadcast %cst_9 : f32 to vector<16x128xf32>
      %c0_10 = arith.constant 0 : index
      %c0_11 = arith.constant 0 : index
      %13 = vector.load %arg7[%c0_10, %c0_11] : memref<16x128xf32, #tpu.memory_space<vmem>>, vector<16x128xf32>
      tpu.vector_store %arg7[%c0_10, %c0_11], %12 {strides = array<i32>} : memref<16x128xf32, #tpu.memory_space<vmem>>, vector<16x128xf32>,
    } else {
    }
    %c0 = arith.constant 0 : index
    %c0_1 = arith.constant 0 : index
    %3 = vector.load %arg7[%c0, %c0_1] : memref<16x128xf32, #tpu.memory_space<vmem>>, vector<16x128xf32>
    %c0_2 = arith.constant 0 : index
    %c0_3 = arith.constant 0 : index
    %4 = vector.load %arg3[%c0_2, %c0_3] : memref<16x256xbf16, #tpu.memory_space<vmem>>, vector<16x256xbf16>
    %c0_4 = arith.constant 0 : index
    %c0_5 = arith.constant 0 : index
    %5 = vector.load %arg4[%c0_4, %c0_5] : memref<256x128xbf16, #tpu.memory_space<vmem>>, vector<256x128xbf16>
    %cst = arith.constant dense<0.000000e+00> : vector<16x128xf32>
    %6 = tpu.matmul %4, %5, %cst {dimension_numbers = #tpu.dot_dimension_numbers<[1], [0], [0], [1], [0, 0, 1, 1], [], []>} : vector<16x256xbf16>, vector<256x128xbf16>, vector<16x128xf32> -> vector<16x128xf32>
    %7 = arith.addf %3, %6 : vector<16x128xf32>
    %c0_6 = arith.constant 0 : index
    %c0_7 = arith.constant 0 : index
    %8 = vector.load %arg7[%c0_6, %c0_7] : memref<16x128xf32, #tpu.memory_space<vmem>>, vector<16x128xf32>
    tpu.vector_store %arg7[%c0_6, %c0_7], %7 {strides = array<i32>} : memref<16x128xf32, #tpu.memory_space<vmem>>, vector<16x128xf32>,
    %c7_i32 = arith.constant 7 : i32
    %9 = arith.cmpi eq, %arg2, %c7_i32 : i32
    %10 = arith.extui %9 : i1 to i32
    %c0_i32_8 = arith.constant 0 : i32
    %11 = arith.cmpi ne, %10, %c0_i32_8 : i32
    scf.if %11 {
      %c0_9 = arith.constant 0 : index
      %c0_10 = arith.constant 0 : index
      %12 = vector.load %arg7[%c0_9, %c0_10] : memref<16x128xf32, #tpu.memory_space<vmem>>, vector<16x128xf32>
      %c0_11 = arith.constant 0 : index
      %c0_12 = arith.constant 0 : index
      %13 = vector.load %arg5[%c0_11, %c0_12] : memref<1x128xf32, #tpu.memory_space<vmem>>, vector<1x128xf32>
      %14 = vector.broadcast %13 : vector<1x128xf32> to vector<16x128xf32>
      %15 = arith.addf %12, %14 : vector<16x128xf32>
      %c0_13 = arith.constant 0 : index
      %c0_14 = arith.constant 0 : index
      %16 = vector.load %arg6[%c0_13, %c0_14] : memref<16x128xf32, #tpu.memory_space<vmem>>, vector<16x128xf32>
      tpu.vector_store %arg6[%c0_13, %c0_14], %15 {strides = array<i32>} : memref<16x128xf32, #tpu.memory_space<vmem>>, vector<16x128xf32>,
    } else {
    }
    return
  }
  func.func @transform_0(%arg0: i32, %arg1: i32, %arg2: i32) -> (i32, i32) {
    %c0_i32 = arith.constant 0 : i32
    return %arg0, %arg2 : i32, i32
  }
  func.func @transform_1(%arg0: i32, %arg1: i32, %arg2: i32) -> (i32, i32) {
    %c0_i32 = arith.constant 0 : i32
    return %arg2, %arg1 : i32, i32
  }
  func.func @transform_2(%arg0: i32, %arg1: i32, %arg2: i32) -> (i32, i32) {
    %c0_i32 = arith.constant 0 : i32
    %c0_i32_0 = arith.constant 0 : i32
    return %c0_i32, %arg1 : i32, i32
  }
  func.func @transform_3(%arg0: i32, %arg1: i32, %arg2: i32) -> (i32, i32) {
    %c0_i32 = arith.constant 0 : i32
    return %arg0, %arg1 : i32, i32
  }
}

</mosaic_0001>

<bundles_post_ra>
// kernel: video_resnet_forward.20
= control target key start
LH: loop header
LB: loop body
LE: loop exit
PB: predicated region body
PF: predicated region fallthrough
CT: control target
= control target key end

     0   :  { %s1400_s9 = smov 0   ;;  %s1402_s10 = smov 0   ;;  %s1500_s0 = inlined_call_operand.vmem [shape: bf16[1024,128], index: 0, kind: input, shape index: {}]   ;;  %s1501_s1 = inlined_call_operand.vmem [shape: bf16[128,128], index: 1, kind: input, shape index: {}]   ;;  %s1502_s2 = inlined_call_operand.vmem [shape: bf16[1024,128], index: 2, kind: output, shape index: {}]  }
   0x1   :  { %s1404_s11 = smov 0  }
   0x2 LB: > { %s31_s12 = sadd.s32 1, %s1379_s10  ;;  %p1035_p0 = scmp.ge.s32.totalorder %s1383_s11, 1  ;;  %s1383_s11 = sphi %s1404_s11, %s12_s11   ;;  %s1379_s10 = sphi %s1402_s10, %s1504_s10   ;;  %s1375_s9 = sphi %s1400_s9, %s1503_s9  }
   0x3   : > { %p33_p1 = scmp.ge.s32.totalorder %s31_s12, 4  ;;  %p155_p2 = scmp.lt.s32.totalorder %s1383_s11, 5 }
   0x5   : > { %s1506_s12 = smov (%p33_p1, %s31_s12), 0  ;;  %p156_p3 = pnand %p1035_p0, %p155_p2 }
   0x6   : > { %s1036_s15 = sshll.u32 (!%p156_p3), %s1375_s9, 5 }
   0x7   : > { %159 = sbr.rel (%p156_p3) target bundleno = 273 (0x111), region = 28  ;;  %p192_p4 = scmp.lt.s32.totalorder (!%p156_p3), %s1036_s15, 127 }
   0xc   : > { %v1337_v0 = vld [vmem:[%s1501_s1 + $0x38] sm:$0xff]   ;;  %v1338_v1 = vld [vmem:[%s1501_s1 + $0x30] sm:$0xff]   ;;  %s1508_s15 = smov (!%p192_p4, %s1036_s15), 127  ;;  %v1339_v2 = vld [vmem:[%s1501_s1 + $0x28] sm:$0xff]  }
   0xd   : > { %1249 = vmatprep.subr.bf16.mxu0 %v1337_v0  ;;  %1297 = vmatprep.subr.bf16.mxu1 %v1337_v0  ;;  %s1037_s20 = sshll.u32 %s1508_s15, 2  ;;  %v1340_v3 = vld [vmem:[%s1501_s1 + $0x20] sm:$0xff]   ;;  %v1341_v6 = vld [vmem:[%s1501_s1 + $0x18] sm:$0xff]   ;;  %v1342_v7 = vld [vmem:[%s1501_s1 + $0x10] sm:$0xff]  }
   0xe   : > { %1250 = vmatpush3.bf16.msra.mxu0 %v1337_v0  ;;  %1305 = vmatpush3.bf16.msra.mxu1 %v1337_v0  ;;  %s1435_s23 = scalar_lea.vmem %s1500_s0, %s1037_s20  ;;  %v1343_v8 = vld [vmem:[%s1501_s1 + $0x8] sm:$0xff]   ;;  %v1344_v9 = vld [vmem:[%s1501_s1] sm:$0xff]   ;;  %s1473_s8 = scalar_lea.vmem %s1502_s2, %s1037_s20 }
   0xf   : > { %1251 = vmatprep.subr.bf16.mxu0 %v1338_v1  ;;  %1298 = vmatprep.subr.bf16.mxu1 %v1338_v1  ;;  %v1345_v4 = vld [vmem:[%s1435_s23] sm:$0xff]   ;;  %v1347_v10 = vld [vmem:[%s1435_s23 + $0x8] sm:$0xff]   ;;  %v1349_v12 = vld [vmem:[%s1435_s23 + $0x10] sm:$0xff]  }
  0x10   : > { %v1346_v5 = vld [vmem:[%s1435_s23 + $0x40] sm:$0xff]   ;;  %1265 = vmatprep.mubr.bf16.mxu0 %v1345_v4  ;;  %v1348_v11 = vld [vmem:[%s1435_s23 + $0x48] sm:$0xff]   ;;  %v1350_v13 = vld [vmem:[%s1435_s23 + $0x50] sm:$0xff]  }
  0x11   : > { %1281 = vmatprep.mubr.bf16.mxu1 %v1346_v5  ;;  %v1351_v14 = vld [vmem:[%s1435_s23 + $0x18] sm:$0xff]   ;;  %v1353_v16 = vld [vmem:[%s1435_s23 + $0x20] sm:$0xff]   ;;  %v1355_v18 = vld [vmem:[%s1435_s23 + $0x28] sm:$0xff]  }
  0x12   : > { %1252 = vmatpush3.bf16.msra.mxu0 %v1338_v1  ;;  %1306 = vmatpush3.bf16.msra.mxu1 %v1338_v1  ;;  %v1352_v15 = vld [vmem:[%s1435_s23 + $0x58] sm:$0xff]   ;;  %v1354_v17 = vld [vmem:[%s1435_s23 + $0x60] sm:$0xff]   ;;  %v1356_v19 = vld [vmem:[%s1435_s23 + $0x68] sm:$0xff]  }
  0x13   : > { %1253 = vmatprep.subr.bf16.mxu0 %v1339_v2  ;;  %1299 = vmatprep.subr.bf16.mxu1 %v1339_v2  ;;  %v1357_v20 = vld [vmem:[%s1435_s23 + $0x30] sm:$0xff]   ;;  %v1359_v22 = vld [vmem:[%s1435_s23 + $0x38] sm:$0xff]  }
  0x14   : > { %v1358_v21 = vld [vmem:[%s1435_s23 + $0x70] sm:$0xff]   ;;  %v1360_v23 = vld [vmem:[%s1435_s23 + $0x78] sm:$0xff]  }
  0x16   : > { %1254 = vmatpush3.bf16.msra.mxu0 %v1339_v2  ;;  %1307 = vmatpush3.bf16.msra.mxu1 %v1339_v2 }
  0x17   : > { %1255 = vmatprep.subr.bf16.mxu0 %v1340_v3  ;;  %1300 = vmatprep.subr.bf16.mxu1 %v1340_v3 }
  0x1a   : > { %1256 = vmatpush3.bf16.msra.mxu0 %v1340_v3  ;;  %1308 = vmatpush3.bf16.msra.mxu1 %v1340_v3 }
  0x1b   : > { %1257 = vmatprep.subr.bf16.mxu0 %v1341_v6  ;;  %1301 = vmatprep.subr.bf16.mxu1 %v1341_v6 }
  0x1e   : > { %1258 = vmatpush3.bf16.msra.mxu0 %v1341_v6  ;;  %1309 = vmatpush3.bf16.msra.mxu1 %v1341_v6 }
  0x1f   : > { %1259 = vmatprep.subr.bf16.mxu0 %v1342_v7  ;;  %1302 = vmatprep.subr.bf16.mxu1 %v1342_v7 }
  0x22   : > { %1260 = vmatpush3.bf16.msra.mxu0 %v1342_v7  ;;  %1310 = vmatpush3.bf16.msra.mxu1 %v1342_v7 }
  0x23   : > { %1261 = vmatprep.subr.bf16.mxu0 %v1343_v8  ;;  %1303 = vmatprep.subr.bf16.mxu1 %v1343_v8 }
  0x26   : > { %1262 = vmatpush3.bf16.msra.mxu0 %v1343_v8  ;;  %1311 = vmatpush3.bf16.msra.mxu1 %v1343_v8 }
  0x27   : > { %1263 = vmatprep.subr.bf16.mxu0 %v1344_v9  ;;  %1304 = vmatprep.subr.bf16.mxu1 %v1344_v9 }
  0x2a   : > { %1264 = vmatpush3.bf16.msra.mxu0 %v1344_v9  ;;  %1312 = vmatpush3.bf16.msra.mxu1 %v1344_v9 }
  0x2d   : > { %1266 = vmatmul.mubr.bf16.vlgmr.msra.gmra.mxu0 %v1347_v10  ;;  %1282 = vmatmul.mubr.bf16.vlgmr.msra.gmra.mxu1 %v1348_v11 }
  0x2e   : > { %1269 = vmatprep.mubr.bf16.mxu0 %v1349_v12  ;;  %1285 = vmatprep.mubr.bf16.mxu1 %v1350_v13 }
  0x35   : > { %1270 = vmatmul.mubr.bf16.gmra.mxu0 %v1351_v14  ;;  %1286 = vmatmul.mubr.bf16.gmra.mxu1 %v1352_v15 }
  0x36   : > { %1273 = vmatprep.mubr.bf16.mxu0 %v1353_v16  ;;  %1289 = vmatprep.mubr.bf16.mxu1 %v1354_v17 }
  0x3d   : > { %1274 = vmatmul.mubr.bf16.gmra.mxu0 %v1355_v18  ;;  %1290 = vmatmul.mubr.bf16.gmra.mxu1 %v1356_v19 }
  0x3e   : > { %1277 = vmatprep.mubr.bf16.mxu0 %v1357_v20  ;;  %1293 = vmatprep.mubr.bf16.mxu1 %v1358_v21 }
  0x45   : > { %1278 = vmatmul.mubr.bf16.gmra.mxu0 %v1359_v22  ;;  %1294 = vmatmul.mubr.bf16.gmra.mxu1 %v1360_v23 }
  0xed   : > { %v1267_v24 = vpop.f32.mrf.mxu0  ;;  %v1283_v25 = vpop.f32.mrf.mxu1 }
  0xee   : > { %v741_v30 = vmax.f32 %v1267_v24, 0.0  ;;  %v757_v31 = vmax.f32 %v1283_v25, 0.0 }
  0xef   : > { %v513_v26 = vpop.f32.mrf.mxu0  ;;  %v577_v27 = vpop.f32.mrf.mxu1 }
  0xf0   : > { %v739_v34 = vmax.f32 %v513_v26, 0.0  ;;  %v755_v35 = vmax.f32 %v577_v27, 0.0 }
  0xf1   : > { %v1268_v28 = vpop.f32.mrf.mxu0  ;;  %v1284_v29 = vpop.f32.mrf.mxu1 }
  0xf2   : > { %v742_v32 = vmax.f32 %v1268_v28, 0.0  ;;  %v758_v33 = vmax.f32 %v1284_v29, 0.0 }
  0xf3   : > { %v516_v36 = vpop.f32.mrf.mxu0  ;;  %v580_v37 = vpop.f32.mrf.mxu1 }
  0xf4   : > { %v1138_v38 = vpack.c.bf16 %v742_v32, %v741_v30  ;;  %v1178_v39 = vpack.c.bf16 %v758_v33, %v757_v31  ;;  %v740_v40 = vmax.f32 %v516_v36, 0.0  ;;  %v756_v41 = vmax.f32 %v580_v37, 0.0 }
  0xf5   : > { %v1271_v42 = vpop.f32.mrf.mxu0  ;;  %v1287_v43 = vpop.f32.mrf.mxu1 }
  0xf6   : > { %1210 = vst [vmem:[%s1473_s8 + $0x8] sm:$0xff] %v1138_v38   ;;  %1218 = vst [vmem:[%s1473_s8 + $0x48] sm:$0xff] %v1178_v39   ;;  %v1133_v44 = vpack.c.bf16 %v740_v40, %v739_v34  ;;  %v1173_v45 = vpack.c.bf16 %v756_v41, %v755_v35  ;;  %v745_v50 = vmax.f32 %v1271_v42, 0.0  ;;  %v761_v51 = vmax.f32 %v1287_v43, 0.0 }
  0xf7   : > { %v529_v46 = vpop.f32.mrf.mxu0  ;;  %v593_v47 = vpop.f32.mrf.mxu1 }
  0xf8   : > { %1134 = vst [vmem:[%s1473_s8] sm:$0xff] %v1133_v44   ;;  %1217 = vst [vmem:[%s1473_s8 + $0x40] sm:$0xff] %v1173_v45   ;;  %v743_v54 = vmax.f32 %v529_v46, 0.0  ;;  %v759_v55 = vmax.f32 %v593_v47, 0.0 }
  0xf9   : > { %v1272_v48 = vpop.f32.mrf.mxu0  ;;  %v1288_v49 = vpop.f32.mrf.mxu1 }
  0xfa   : > { %v746_v52 = vmax.f32 %v1272_v48, 0.0  ;;  %v762_v53 = vmax.f32 %v1288_v49, 0.0 }
  0xfb   : > { %v532_v56 = vpop.f32.mrf.mxu0  ;;  %v596_v57 = vpop.f32.mrf.mxu1 }
  0xfc   : > { %v1148_v58 = vpack.c.bf16 %v746_v52, %v745_v50  ;;  %v1188_v59 = vpack.c.bf16 %v762_v53, %v761_v51  ;;  %v744_v60 = vmax.f32 %v532_v56, 0.0  ;;  %v760_v61 = vmax.f32 %v596_v57, 0.0 }
  0xfd   : > { %v1275_v62 = vpop.f32.mrf.mxu0  ;;  %v1291_v63 = vpop.f32.mrf.mxu1 }
  0xfe   : > { %1212 = vst [vmem:[%s1473_s8 + $0x18] sm:$0xff] %v1148_v58   ;;  %1220 = vst [vmem:[%s1473_s8 + $0x58] sm:$0xff] %v1188_v59   ;;  %v1143_v0 = vpack.c.bf16 %v744_v60, %v743_v54  ;;  %v1183_v1 = vpack.c.bf16 %v760_v61, %v759_v55  ;;  %v749_v6 = vmax.f32 %v1275_v62, 0.0  ;;  %v765_v7 = vmax.f32 %v1291_v63, 0.0 }
  0xff   : > { %v545_v2 = vpop.f32.mrf.mxu0  ;;  %v609_v3 = vpop.f32.mrf.mxu1 }
 0x100   : > { %1211 = vst [vmem:[%s1473_s8 + $0x10] sm:$0xff] %v1143_v0   ;;  %1219 = vst [vmem:[%s1473_s8 + $0x50] sm:$0xff] %v1183_v1   ;;  %v747_v10 = vmax.f32 %v545_v2, 0.0  ;;  %v763_v11 = vmax.f32 %v609_v3, 0.0 }
 0x101   : > { %v1276_v4 = vpop.f32.mrf.mxu0  ;;  %v1292_v5 = vpop.f32.mrf.mxu1 }
 0x102   : > { %v750_v8 = vmax.f32 %v1276_v4, 0.0  ;;  %v766_v9 = vmax.f32 %v1292_v5, 0.0 }
 0x103   : > { %v548_v12 = vpop.f32.mrf.mxu0  ;;  %v612_v13 = vpop.f32.mrf.mxu1 }
 0x104   : > { %v1158_v14 = vpack.c.bf16 %v750_v8, %v749_v6  ;;  %v1198_v15 = vpack.c.bf16 %v766_v9, %v765_v7  ;;  %v748_v16 = vmax.f32 %v548_v12, 0.0  ;;  %v764_v17 = vmax.f32 %v612_v13, 0.0 }
 0x105   : > { %v1279_v18 = vpop.f32.mrf.mxu0  ;;  %v1295_v19 = vpop.f32.mrf.mxu1 }
 0x106   : > { %1214 = vst [vmem:[%s1473_s8 + $0x28] sm:$0xff] %v1158_v14   ;;  %1222 = vst [vmem:[%s1473_s8 + $0x68] sm:$0xff] %v1198_v15   ;;  %v1153_v20 = vpack.c.bf16 %v748_v16, %v747_v10  ;;  %v1193_v21 = vpack.c.bf16 %v764_v17, %v763_v11  ;;  %v753_v26 = vmax.f32 %v1279_v18, 0.0  ;;  %v769_v27 = vmax.f32 %v1295_v19, 0.0 }
 0x107   : > { %v561_v22 = vpop.f32.mrf.mxu0  ;;  %v625_v23 = vpop.f32.mrf.mxu1 }
 0x108   : > { %1213 = vst [vmem:[%s1473_s8 + $0x20] sm:$0xff] %v1153_v20   ;;  %1221 = vst [vmem:[%s1473_s8 + $0x60] sm:$0xff] %v1193_v21   ;;  %v751_v30 = vmax.f32 %v561_v22, 0.0  ;;  %v767_v31 = vmax.f32 %v625_v23, 0.0 }
 0x109   : > { %v1280_v24 = vpop.f32.mrf.mxu0  ;;  %v1296_v25 = vpop.f32.mrf.mxu1 }
 0x10a   : > { %v754_v28 = vmax.f32 %v1280_v24, 0.0  ;;  %v770_v29 = vmax.f32 %v1296_v25, 0.0 }
 0x10b   : > { %v564_v32 = vpop.f32.mrf.mxu0  ;;  %v628_v33 = vpop.f32.mrf.mxu1 }
 0x10c   : > { %v1168_v34 = vpack.c.bf16 %v754_v28, %v753_v26  ;;  %v1208_v35 = vpack.c.bf16 %v770_v29, %v769_v27  ;;  %v752_v36 = vmax.f32 %v564_v32, 0.0  ;;  %v768_v37 = vmax.f32 %v628_v33, 0.0 }
 0x10e   : > { %1216 = vst [vmem:[%s1473_s8 + $0x38] sm:$0xff] %v1168_v34   ;;  %1224 = vst [vmem:[%s1473_s8 + $0x78] sm:$0xff] %v1208_v35   ;;  %v1163_v38 = vpack.c.bf16 %v752_v36, %v751_v30  ;;  %v1203_v39 = vpack.c.bf16 %v768_v37, %v767_v31 }
 0x110   : > { %1215 = vst [vmem:[%s1473_s8 + $0x30] sm:$0xff] %v1163_v38   ;;  %1223 = vst [vmem:[%s1473_s8 + $0x70] sm:$0xff] %v1203_v39  }
 0x111 PF: > { %s12_s11 = sadd.s32 1, %s1383_s11   ;;  %s1503_s9 = smov %s1379_s10 }
 0x112   : > { %p9_p5 = scmp.ge.s32.totalorder %s12_s11, 6   ;;  %s1504_s10 = smov %s1506_s12 }
 0x114   :  { %11 = sbr.rel (!%p9_p5) target bundleno = 2 (0x2), region = 69 }

// kernel: video_resnet_forward.18
= control target key start
LH: loop header
LB: loop body
LE: loop exit
PB: predicated region body
PF: predicated region fallthrough
CT: control target
= control target key end

     0   :  { %s1867_s9 = smov 0   ;;  %s1869_s10 = smov 0   ;;  %s2099_s0 = inlined_call_operand.vmem [shape: bf16[1024,512], index: 0, kind: input, shape index: {}]   ;;  %s2100_s1 = inlined_call_operand.vmem [shape: bf16[512,128], index: 1, kind: input, shape index: {}]   ;;  %s2101_s2 = inlined_call_operand.vmem [shape: bf16[1024,128], index: 2, kind: output, shape index: {}]  }
   0x1   :  { %s1871_s11 = smov 0   ;;  %s1873_s12 = smov 0  }
   0x2   :  { %s1875_s13 = smov 0   ;;  %s1877_s14 = smov 0  }
   0x3   :  { %s1879_s15 = smov 0  }
   0x4 LB: > { %s24_s16 = sadd.s32 1, %s1841_s13  ;;  %s31_s17 = sadd.s32 1, %s1845_s14  ;;  %s1849_s15 = sphi %s1879_s15, %s12_s15   ;;  %s1845_s14 = sphi %s1877_s14, %s2107_s14   ;;  %s1841_s13 = sphi %s1875_s13, %s2106_s13   ;;  %s1837_s12 = sphi %s1873_s12, %s2105_s12   ;;  %s1833_s11 = sphi %s1871_s11, %s2104_s11   ;;  %s1829_s10 = sphi %s1869_s10, %s2103_s10   ;;  %s1825_s9 = sphi %s1867_s9, %s2102_s9  }
   0x5   : > { %p25_p0 = scmp.ge.s32.totalorder %s24_s16, 2  ;;  %p47_p1 = scmp.ne.s32.totalorder %s1829_s10, %s1825_s9 }
   0x6   : > { %p48_p2 = scmp.eq.s32.totalorder %s1849_s15, 0  ;;  %s40_s21 = sadd.s32 1, %s1829_s10 }
   0x7   : > { %s2109_s16 = smov (%p25_p0, %s24_s16), 0  ;;  %s2111_s17 = smov (!%p25_p0, %s31_s17), %s1845_s14 }
   0x8   : > { %p49_p3 = por %p48_p2, %p47_p1  ;;  %p33_p4 = scmp.ge.s32.totalorder %s2111_s17, 4 }
   0x9   : > { %s36_s18 = ssub.s32 %s1841_s13, %s2109_s16  ;;  %p1322_p6 = scmp.ge.s32.totalorder %s1849_s15, 8 }
   0xa   : > { %s2113_s17 = smov (%p33_p4, %s2111_s17), 0 }
   0xb   : > { %s35_s19 = ssub.s32 %s1845_s14, %s2113_s17  ;;  %129 = sbr.rel (%p1322_p6) target bundleno = 39 (0x27), region = 16 }
   0xc   : > { %s37_s20 = sor.u32 %s36_s18, %s35_s19 }
   0xd   : > { %p38_p5 = scmp.eq.s32.totalorder %s37_s20, 0 }
   0xf   : > { %s1918_s22 = scalar_select %p38_p5, %s1829_s10, %s40_s21  }
  0x10   : > { %132 = sbr.rel (!%p49_p3) target bundleno = 39 (0x27), region = 20  ;;  %s134_s23 = sand.u32 (%p49_p3), 1, %s1829_s10  }
  0x11   : > { %s1325_s24 = sshll.u32 (%p49_p3), %s1841_s13, 1  ;;  %s1323_s25 = sshll.u32 (%p49_p3), %s134_s23, 8 }
  0x12   : > { %s1418_s26 = sshll.u32 (%p49_p3), %s1845_s14, 7  ;;  %s1932_s4 = scalar_lea.vmem (%p49_p3), [#allocation3], %s1323_s25 }
  0x13   : > { %s140_s27 = sadd.s32 (%p49_p3), %s1418_s26, %s1325_s24 }
  0x14   : > { %s1327_s28 = sshll.u32 (%p49_p3), %s140_s27, 2 }
  0x15   : > { %s1927_s3 = scalar_lea.vmem %s2099_s0, %s1327_s28 }
  0x16   : > { %v233_v0 = vld [vmem:[%s1927_s3] sm:$0xff]  ;;  %v235_v1 = vld [vmem:[%s1927_s3 + $0x10] sm:$0xff] }
  0x17   : > { %v237_v2 = vld [vmem:[%s1927_s3 + $0x20] sm:$0xff]  ;;  %234 = vst [vmem:[%s1932_s4] sm:$0xff] %v233_v0  ;;  %236 = vst [vmem:[%s1932_s4 + $0x8] sm:$0xff] %v235_v1  ;;  %v239_v3 = vld [vmem:[%s1927_s3 + $0x30] sm:$0xff] }
  0x18   : > { %238 = vst [vmem:[%s1932_s4 + $0x10] sm:$0xff] %v237_v2  ;;  %v241_v4 = vld [vmem:[%s1927_s3 + $0x40] sm:$0xff]  ;;  %v243_v5 = vld [vmem:[%s1927_s3 + $0x50] sm:$0xff]  ;;  %240 = vst [vmem:[%s1932_s4 + $0x18] sm:$0xff] %v239_v3 }
  0x19   : > { %242 = vst [vmem:[%s1932_s4 + $0x20] sm:$0xff] %v241_v4  ;;  %244 = vst [vmem:[%s1932_s4 + $0x28] sm:$0xff] %v243_v5  ;;  %v245_v6 = vld [vmem:[%s1927_s3 + $0x60] sm:$0xff]  ;;  %v247_v7 = vld [vmem:[%s1927_s3 + $0x70] sm:$0xff] }
  0x1a   : > { %v249_v8 = vld [vmem:[%s1927_s3 + $0x80] sm:$0xff]  ;;  %246 = vst [vmem:[%s1932_s4 + $0x30] sm:$0xff] %v245_v6  ;;  %248 = vst [vmem:[%s1932_s4 + $0x38] sm:$0xff] %v247_v7  ;;  %v251_v9 = vld [vmem:[%s1927_s3 + $0x90] sm:$0xff] }
  0x1b   : > { %250 = vst [vmem:[%s1932_s4 + $0x40] sm:$0xff] %v249_v8  ;;  %v253_v10 = vld [vmem:[%s1927_s3 + $0xa0] sm:$0xff]  ;;  %v255_v11 = vld [vmem:[%s1927_s3 + $0xb0] sm:$0xff]  ;;  %252 = vst [vmem:[%s1932_s4 + $0x48] sm:$0xff] %v251_v9 }
  0x1c   : > { %254 = vst [vmem:[%s1932_s4 + $0x50] sm:$0xff] %v253_v10  ;;  %256 = vst [vmem:[%s1932_s4 + $0x58] sm:$0xff] %v255_v11  ;;  %v257_v12 = vld [vmem:[%s1927_s3 + $0xc0] sm:$0xff]  ;;  %v259_v13 = vld [vmem:[%s1927_s3 + $0xd0] sm:$0xff] }
  0x1d   : > { %v261_v14 = vld [vmem:[%s1927_s3 + $0xe0] sm:$0xff]  ;;  %258 = vst [vmem:[%s1932_s4 + $0x60] sm:$0xff] %v257_v12  ;;  %260 = vst [vmem:[%s1932_s4 + $0x68] sm:$0xff] %v259_v13  ;;  %v263_v15 = vld [vmem:[%s1927_s3 + $0xf0] sm:$0xff] }
  0x1e   : > { %262 = vst [vmem:[%s1932_s4 + $0x70] sm:$0xff] %v261_v14  ;;  %v265_v16 = vld [vmem:[%s1927_s3 + $0x100] sm:$0xff]  ;;  %v267_v17 = vld [vmem:[%s1927_s3 + $0x110] sm:$0xff]  ;;  %264 = vst [vmem:[%s1932_s4 + $0x78] sm:$0xff] %v263_v15 }
  0x1f   : > { %266 = vst [vmem:[%s1932_s4 + $0x80] sm:$0xff] %v265_v16  ;;  %268 = vst [vmem:[%s1932_s4 + $0x88] sm:$0xff] %v267_v17  ;;  %v269_v18 = vld [vmem:[%s1927_s3 + $0x120] sm:$0xff]  ;;  %v271_v19 = vld [vmem:[%s1927_s3 + $0x130] sm:$0xff] }
  0x20   : > { %v273_v20 = vld [vmem:[%s1927_s3 + $0x140] sm:$0xff]  ;;  %270 = vst [vmem:[%s1932_s4 + $0x90] sm:$0xff] %v269_v18  ;;  %272 = vst [vmem:[%s1932_s4 + $0x98] sm:$0xff] %v271_v19  ;;  %v275_v21 = vld [vmem:[%s1927_s3 + $0x150] sm:$0xff] }
  0x21   : > { %274 = vst [vmem:[%s1932_s4 + $0xa0] sm:$0xff] %v273_v20  ;;  %v277_v22 = vld [vmem:[%s1927_s3 + $0x160] sm:$0xff]  ;;  %v279_v23 = vld [vmem:[%s1927_s3 + $0x170] sm:$0xff]  ;;  %276 = vst [vmem:[%s1932_s4 + $0xa8] sm:$0xff] %v275_v21 }
  0x22   : > { %278 = vst [vmem:[%s1932_s4 + $0xb0] sm:$0xff] %v277_v22  ;;  %280 = vst [vmem:[%s1932_s4 + $0xb8] sm:$0xff] %v279_v23  ;;  %v281_v24 = vld [vmem:[%s1927_s3 + $0x180] sm:$0xff]  ;;  %v283_v25 = vld [vmem:[%s1927_s3 + $0x190] sm:$0xff] }
  0x23   : > { %v285_v26 = vld [vmem:[%s1927_s3 + $0x1a0] sm:$0xff]  ;;  %282 = vst [vmem:[%s1932_s4 + $0xc0] sm:$0xff] %v281_v24  ;;  %284 = vst [vmem:[%s1932_s4 + $0xc8] sm:$0xff] %v283_v25  ;;  %v287_v27 = vld [vmem:[%s1927_s3 + $0x1b0] sm:$0xff] }
  0x24   : > { %286 = vst [vmem:[%s1932_s4 + $0xd0] sm:$0xff] %v285_v26  ;;  %v289_v28 = vld [vmem:[%s1927_s3 + $0x1c0] sm:$0xff]  ;;  %v291_v29 = vld [vmem:[%s1927_s3 + $0x1d0] sm:$0xff]  ;;  %288 = vst [vmem:[%s1932_s4 + $0xd8] sm:$0xff] %v287_v27 }
  0x25   : > { %290 = vst [vmem:[%s1932_s4 + $0xe0] sm:$0xff] %v289_v28  ;;  %292 = vst [vmem:[%s1932_s4 + $0xe8] sm:$0xff] %v291_v29  ;;  %v293_v30 = vld [vmem:[%s1927_s3 + $0x1e0] sm:$0xff]  ;;  %v295_v31 = vld [vmem:[%s1927_s3 + $0x1f0] sm:$0xff] }
  0x26   : > { %294 = vst [vmem:[%s1932_s4 + $0xf0] sm:$0xff] %v293_v30  ;;  %296 = vst [vmem:[%s1932_s4 + $0xf8] sm:$0xff] %v295_v31 }
  0x27 PF: > { %p1328_p7 = scmp.ge.s32.totalorder %s1849_s15, 1  ;;  %p313_p8 = scmp.lt.s32.totalorder %s1849_s15, 9 }
  0x29   : > { %p314_p9 = pnand %p1328_p7, %p313_p8 }
  0x2a   : > { %s320_s5 = sand.u32 (!%p314_p9), 1, %s1825_s9   ;;  %s1330_s6 = sshll.u32 (!%p314_p9), %s1833_s11, 5 }
  0x2b   : > { %317 = sbr.rel (%p314_p9) target bundleno = 384 (0x180), region = 62  ;;  %s1329_s7 = sshll.u32 (!%p314_p9), %s320_s5, 8 }
  0x2c   : > { %p355_p10 = scmp.lt.s32.totalorder (!%p314_p9), %s1330_s6, 63  ;;  %s1332_s8 = sshll.u32 (!%p314_p9), %s1837_s12, 5 }
  0x2d   : > { %p364_p11 = scmp.lt.s32.totalorder (!%p314_p9), %s1332_s8, 127  ;;  %s2010_s9 = scalar_lea.vmem (!%p314_p9), [#allocation3], %s1329_s7 }
  0x2e   : > { %p1334_p12 = scmp.ne.s32.totalorder (!%p314_p9), %s1833_s11, 0 }
  0x30   : > { %s2115_s6 = smov (!%p355_p10, %s1330_s6), 63  ;;  %s2117_s8 = smov (!%p364_p11, %s1332_s8), 127 }
  0x31   : > { %s1331_s18 = sshll.u32 %s2115_s6, 2  ;;  %s1333_s23 = sshll.u32 %s2117_s8, 2 }
  0x32   : > { %s2003_s21 = scalar_lea.vmem %s2100_s1, %s1331_s18  ;;  %s2008_s26 = scalar_lea.vmem %s2101_s2, %s1333_s23 }
  0x33   : > { %376 = sbr.rel (%p1334_p12) target bundleno = 73 (0x49), region = 70 }
  0x38   : > { %v1851_v32 = vmov 0.0  }
  0x39   : > { %377 = vst [vmem:[#allocation2 + $0xb0] sm:$0xff] %v1851_v32  ;;  %378 = vst [vmem:[#allocation2] sm:$0xff] %v1851_v32 }
  0x3a   : > { %379 = vst [vmem:[#allocation2 + $0xd8] sm:$0xff] %v1851_v32  ;;  %380 = vst [vmem:[#allocation2 + $0x18] sm:$0xff] %v1851_v32 }
  0x3b   : > { %381 = vst [vmem:[#allocation2 + $0x50] sm:$0xff] %v1851_v32  ;;  %382 = vst [vmem:[#allocation2 + $0x68] sm:$0xff] %v1851_v32 }
  0x3c   : > { %383 = vst [vmem:[#allocation2 + $0x30] sm:$0xff] %v1851_v32  ;;  %384 = vst [vmem:[#allocation2 + $0x48] sm:$0xff] %v1851_v32 }
  0x3d   : > { %385 = vst [vmem:[#allocation2 + $0x80] sm:$0xff] %v1851_v32  ;;  %386 = vst [vmem:[#allocation2 + $0x88] sm:$0xff] %v1851_v32 }
  0x3e   : > { %387 = vst [vmem:[#allocation2 + $0xe8] sm:$0xff] %v1851_v32  ;;  %388 = vst [vmem:[#allocation2 + $0xb8] sm:$0xff] %v1851_v32 }
  0x3f   : > { %389 = vst [vmem:[#allocation2 + $0x60] sm:$0xff] %v1851_v32  ;;  %390 = vst [vmem:[#allocation2 + $0xf0] sm:$0xff] %v1851_v32 }
  0x40   : > { %391 = vst [vmem:[#allocation2 + $0x8] sm:$0xff] %v1851_v32  ;;  %392 = vst [vmem:[#allocation2 + $0x78] sm:$0xff] %v1851_v32 }
  0x41   : > { %393 = vst [vmem:[#allocation2 + $0x38] sm:$0xff] %v1851_v32  ;;  %394 = vst [vmem:[#allocation2 + $0x58] sm:$0xff] %v1851_v32 }
  0x42   : > { %395 = vst [vmem:[#allocation2 + $0x40] sm:$0xff] %v1851_v32  ;;  %396 = vst [vmem:[#allocation2 + $0xc8] sm:$0xff] %v1851_v32 }
  0x43   : > { %397 = vst [vmem:[#allocation2 + $0xe0] sm:$0xff] %v1851_v32  ;;  %398 = vst [vmem:[#allocation2 + $0x90] sm:$0xff] %v1851_v32 }
  0x44   : > { %399 = vst [vmem:[#allocation2 + $0x70] sm:$0xff] %v1851_v32  ;;  %400 = vst [vmem:[#allocation2 + $0xc0] sm:$0xff] %v1851_v32 }
  0x45   : > { %401 = vst [vmem:[#allocation2 + $0xa8] sm:$0xff] %v1851_v32  ;;  %402 = vst [vmem:[#allocation2 + $0xd0] sm:$0xff] %v1851_v32 }
  0x46   : > { %403 = vst [vmem:[#allocation2 + $0x10] sm:$0xff] %v1851_v32  ;;  %404 = vst [vmem:[#allocation2 + $0x28] sm:$0xff] %v1851_v32 }
  0x47   : > { %405 = vst [vmem:[#allocation2 + $0xa0] sm:$0xff] %v1851_v32  ;;  %406 = vst [vmem:[#allocation2 + $0xf8] sm:$0xff] %v1851_v32 }
  0x48   : > { %407 = vst [vmem:[#allocation2 + $0x20] sm:$0xff] %v1851_v32  ;;  %408 = vst [vmem:[#allocation2 + $0x98] sm:$0xff] %v1851_v32 }
  0x49 PF: > { %v1731_v33 = vld [vmem:[%s2003_s21 + $0x78] sm:$0xff]   ;;  %v1733_v35 = vld [vmem:[%s2003_s21 + $0x70] sm:$0xff]   ;;  %v1735_v37 = vld [vmem:[%s2003_s21 + $0x68] sm:$0xff]   ;;  %p1383_p13 = scmp.ne.s32.totalorder %s1833_s11, 1 }
  0x4a   : > { %v1732_v34 = vld [vmem:[%s2003_s21 + $0x38] sm:$0xff]   ;;  %1546 = vmatprep.subr.bf16.mxu0 %v1731_v33  ;;  %1658 = vmatprep.subr.bf16.mxu1 %v1731_v33  ;;  %v1734_v36 = vld [vmem:[%s2003_s21 + $0x30] sm:$0xff]   ;;  %v1736_v38 = vld [vmem:[%s2003_s21 + $0x28] sm:$0xff]  }
  0x4b   : > { %1547 = vmatpush3.bf16.msra.mxu0 %v1732_v34  ;;  %1666 = vmatpush3.bf16.msra.mxu1 %v1732_v34  ;;  %v1737_v39 = vld [vmem:[%s2003_s21 + $0x60] sm:$0xff]   ;;  %v1739_v41 = vld [vmem:[%s2003_s21 + $0x58] sm:$0xff]   ;;  %v1741_v43 = vld [vmem:[%s2003_s21 + $0x50] sm:$0xff]  }
  0x4c   : > { %1548 = vmatprep.subr.bf16.mxu0 %v1733_v35  ;;  %1659 = vmatprep.subr.bf16.mxu1 %v1733_v35  ;;  %v1738_v40 = vld [vmem:[%s2003_s21 + $0x20] sm:$0xff]   ;;  %v1740_v42 = vld [vmem:[%s2003_s21 + $0x18] sm:$0xff]   ;;  %v1742_v46 = vld [vmem:[%s2003_s21 + $0x10] sm:$0xff]  }
  0x4d   : > { %v1749_v44 = vld [vmem:[%s2010_s9 + $0x4] ss:$8 sps:$4 sm:$0xff]   ;;  %v1747_v51 = vld [vmem:[%s2010_s9] ss:$8 sps:$4 sm:$0xff]   ;;  %v1753_v53 = vld [vmem:[%s2010_s9 + $0x14] ss:$8 sps:$4 sm:$0xff]  }
  0x4e   : > { %v1752_v45 = vld [vmem:[%s2010_s9 + $0x84] ss:$8 sps:$4 sm:$0xff]   ;;  %793 = vmatprep.mubr.bf16.mxu0 %v1749_v44  ;;  %v1750_v52 = vld [vmem:[%s2010_s9 + $0x80] ss:$8 sps:$4 sm:$0xff]   ;;  %v1755_v54 = vld [vmem:[%s2010_s9 + $0x94] ss:$8 sps:$4 sm:$0xff]  }
  0x4f   : > { %1549 = vmatpush3.bf16.msra.mxu0 %v1734_v36  ;;  %1667 = vmatpush3.bf16.msra.mxu1 %v1734_v36  ;;  %v1743_v47 = vld [vmem:[%s2003_s21 + $0x48] sm:$0xff]   ;;  %v1745_v49 = vld [vmem:[%s2003_s21 + $0x40] sm:$0xff]   ;;  %v1757_v55 = vld [vmem:[%s2010_s9 + $0x10] ss:$8 sps:$4 sm:$0xff]  }
  0x50   : > { %1550 = vmatprep.subr.bf16.mxu0 %v1735_v37  ;;  %1660 = vmatprep.subr.bf16.mxu1 %v1735_v37  ;;  %v1744_v48 = vld [vmem:[%s2003_s21 + $0x8] sm:$0xff]   ;;  %v1746_v50 = vld [vmem:[%s2003_s21] sm:$0xff]   ;;  %v1758_v56 = vld [vmem:[%s2010_s9 + $0x90] ss:$8 sps:$4 sm:$0xff]  }
  0x51   : > { %857 = vmatprep.mubr.bf16.mxu1 %v1752_v45  ;;  %v1759_v57 = vld [vmem:[%s2010_s9 + $0x24] ss:$8 sps:$4 sm:$0xff]   ;;  %v1763_v59 = vld [vmem:[%s2010_s9 + $0x20] ss:$8 sps:$4 sm:$0xff]   ;;  %v1765_v61 = vld [vmem:[%s2010_s9 + $0x34] ss:$8 sps:$4 sm:$0xff]  }
  0x52   : > { %v1761_v58 = vld [vmem:[%s2010_s9 + $0xa4] ss:$8 sps:$4 sm:$0xff]   ;;  %v1764_v60 = vld [vmem:[%s2010_s9 + $0xa0] ss:$8 sps:$4 sm:$0xff]   ;;  %v1767_v62 = vld [vmem:[%s2010_s9 + $0xb4] ss:$8 sps:$4 sm:$0xff]  }
  0x53   : > { %1551 = vmatpush3.bf16.msra.mxu0 %v1736_v38  ;;  %1668 = vmatpush3.bf16.msra.mxu1 %v1736_v38  ;;  %v1769_v63 = vld [vmem:[%s2010_s9 + $0x30] ss:$8 sps:$4 sm:$0xff]   ;;  %v1771_v1 = vld [vmem:[%s2010_s9 + $0x44] ss:$8 sps:$4 sm:$0xff]   ;;  %v1775_v3 = vld [vmem:[%s2010_s9 + $0x40] ss:$8 sps:$4 sm:$0xff]  }
  0x54   : > { %1552 = vmatprep.subr.bf16.mxu0 %v1737_v39  ;;  %1661 = vmatprep.subr.bf16.mxu1 %v1737_v39  ;;  %v1770_v0 = vld [vmem:[%s2010_s9 + $0xb0] ss:$8 sps:$4 sm:$0xff]   ;;  %v1773_v2 = vld [vmem:[%s2010_s9 + $0xc4] ss:$8 sps:$4 sm:$0xff]   ;;  %v1776_v4 = vld [vmem:[%s2010_s9 + $0xc0] ss:$8 sps:$4 sm:$0xff]  }
  0x55   : > { %v1777_v5 = vld [vmem:[%s2010_s9 + $0x54] ss:$8 sps:$4 sm:$0xff]   ;;  %v1781_v7 = vld [vmem:[%s2010_s9 + $0x50] ss:$8 sps:$4 sm:$0xff]   ;;  %v1783_v9 = vld [vmem:[%s2010_s9 + $0x64] ss:$8 sps:$4 sm:$0xff]  }
  0x56   : > { %v1779_v6 = vld [vmem:[%s2010_s9 + $0xd4] ss:$8 sps:$4 sm:$0xff]   ;;  %v1782_v8 = vld [vmem:[%s2010_s9 + $0xd0] ss:$8 sps:$4 sm:$0xff]   ;;  %v1785_v10 = vld [vmem:[%s2010_s9 + $0xe4] ss:$8 sps:$4 sm:$0xff]  }
  0x57   : > { %1553 = vmatpush3.bf16.msra.mxu0 %v1738_v40  ;;  %1669 = vmatpush3.bf16.msra.mxu1 %v1738_v40  ;;  %v1787_v11 = vld [vmem:[%s2010_s9 + $0x60] ss:$8 sps:$4 sm:$0xff]   ;;  %v1789_v13 = vld [vmem:[%s2010_s9 + $0x74] ss:$8 sps:$4 sm:$0xff]   ;;  %v1793_v15 = vld [vmem:[%s2010_s9 + $0x70] ss:$8 sps:$4 sm:$0xff]  }
  0x58   : > { %1554 = vmatprep.subr.bf16.mxu0 %v1739_v41  ;;  %1662 = vmatprep.subr.bf16.mxu1 %v1739_v41  ;;  %v1788_v12 = vld [vmem:[%s2010_s9 + $0xe0] ss:$8 sps:$4 sm:$0xff]   ;;  %v1791_v14 = vld [vmem:[%s2010_s9 + $0xf4] ss:$8 sps:$4 sm:$0xff]   ;;  %v1794_v16 = vld [vmem:[%s2010_s9 + $0xf0] ss:$8 sps:$4 sm:$0xff]  }
  0x59   : > { %v409_v19 = vld [vmem:[#allocation2 + $0xb0] sm:$0xff]  ;;  %v425_v21 = vld [vmem:[#allocation2 + $0x38] sm:$0xff]  ;;  %v410_v29 = vld [vmem:[#allocation2] sm:$0xff] }
  0x5a   : > { %v426_v31 = vld [vmem:[#allocation2 + $0x58] sm:$0xff]  ;;  %v427_v41 = vld [vmem:[#allocation2 + $0x40] sm:$0xff] }
  0x5b   : > { %1555 = vmatpush3.bf16.msra.mxu0 %v1740_v42  ;;  %1670 = vmatpush3.bf16.msra.mxu1 %v1740_v42  ;;  %v411_v39 = vld [vmem:[#allocation2 + $0xd8] sm:$0xff] }
  0x5c   : > { %1556 = vmatprep.subr.bf16.mxu0 %v1741_v43  ;;  %1663 = vmatprep.subr.bf16.mxu1 %v1741_v43 }
  0x5f   : > { %1557 = vmatpush3.bf16.msra.mxu0 %v1742_v46  ;;  %1671 = vmatpush3.bf16.msra.mxu1 %v1742_v46 }
  0x60   : > { %1558 = vmatprep.subr.bf16.mxu0 %v1743_v47  ;;  %1664 = vmatprep.subr.bf16.mxu1 %v1743_v47 }
  0x63   : > { %1559 = vmatpush3.bf16.msra.mxu0 %v1744_v48  ;;  %1672 = vmatpush3.bf16.msra.mxu1 %v1744_v48 }
  0x64   : > { %1560 = vmatprep.subr.bf16.mxu0 %v1745_v49  ;;  %1665 = vmatprep.subr.bf16.mxu1 %v1745_v49  ;;  %v412_v49 = vld [vmem:[#allocation2 + $0x18] sm:$0xff] }
  0x67   : > { %1561 = vmatpush3.bf16.msra.mxu0 %v1746_v50  ;;  %1673 = vmatpush3.bf16.msra.mxu1 %v1746_v50 }
  0x6a   : > { %794 = vmatmul.mubr.bf16.vlgmr.msra.gmra.mxu0 %v1747_v51  ;;  %858 = vmatmul.mubr.bf16.vlgmr.msra.gmra.mxu1 %v1750_v52  ;;  %v428_v51 = vld [vmem:[#allocation2 + $0xc8] sm:$0xff] }
  0x6b   : > { %801 = vmatprep.mubr.bf16.mxu0 %v1753_v53  ;;  %865 = vmatprep.mubr.bf16.mxu1 %v1755_v54 }
  0x72   : > { %802 = vmatmul.mubr.bf16.gmra.mxu0 %v1757_v55  ;;  %866 = vmatmul.mubr.bf16.gmra.mxu1 %v1758_v56 }
  0x73   : > { %809 = vmatprep.mubr.bf16.mxu0 %v1759_v57  ;;  %873 = vmatprep.mubr.bf16.mxu1 %v1761_v58 }
  0x7a   : > { %810 = vmatmul.mubr.bf16.gmra.mxu0 %v1763_v59  ;;  %874 = vmatmul.mubr.bf16.gmra.mxu1 %v1764_v60  ;;  %v413_v59 = vld [vmem:[#allocation2 + $0x50] sm:$0xff] }
  0x7b   : > { %817 = vmatprep.mubr.bf16.mxu0 %v1765_v61  ;;  %881 = vmatprep.mubr.bf16.mxu1 %v1767_v62  ;;  %v429_v61 = vld [vmem:[#allocation2 + $0xe0] sm:$0xff] }
  0x82   : > { %818 = vmatmul.mubr.bf16.gmra.mxu0 %v1769_v63  ;;  %882 = vmatmul.mubr.bf16.gmra.mxu1 %v1770_v0 }
  0x83   : > { %825 = vmatprep.mubr.bf16.mxu0 %v1771_v1  ;;  %889 = vmatprep.mubr.bf16.mxu1 %v1773_v2 }
  0x8a   : > { %826 = vmatmul.mubr.bf16.gmra.mxu0 %v1775_v3  ;;  %890 = vmatmul.mubr.bf16.gmra.mxu1 %v1776_v4 }
  0x8b   : > { %833 = vmatprep.mubr.bf16.mxu0 %v1777_v5  ;;  %897 = vmatprep.mubr.bf16.mxu1 %v1779_v6  ;;  %v414_v5 = vld [vmem:[#allocation2 + $0x68] sm:$0xff] }
  0x92   : > { %834 = vmatmul.mubr.bf16.gmra.mxu0 %v1781_v7  ;;  %898 = vmatmul.mubr.bf16.gmra.mxu1 %v1782_v8  ;;  %v430_v7 = vld [vmem:[#allocation2 + $0x90] sm:$0xff] }
  0x93   : > { %841 = vmatprep.mubr.bf16.mxu0 %v1783_v9  ;;  %905 = vmatprep.mubr.bf16.mxu1 %v1785_v10 }
  0x9a   : > { %842 = vmatmul.mubr.bf16.gmra.mxu0 %v1787_v11  ;;  %906 = vmatmul.mubr.bf16.gmra.mxu1 %v1788_v12 }
  0x9b   : > { %849 = vmatprep.mubr.bf16.mxu0 %v1789_v13  ;;  %913 = vmatprep.mubr.bf16.mxu1 %v1791_v14 }
  0xa2   : > { %850 = vmatmul.mubr.bf16.gmra.mxu0 %v1793_v15  ;;  %914 = vmatmul.mubr.bf16.gmra.mxu1 %v1794_v16  ;;  %v415_v15 = vld [vmem:[#allocation2 + $0x30] sm:$0xff] }
 0x12a   : > { %v1562_v17 = vpop.f32.mrf.mxu0  ;;  %v1610_v18 = vpop.f32.mrf.mxu1 }
 0x12c   : > { %v1563_v20 = vpop.f32.mrf.mxu0  ;;  %v1611_v22 = vpop.f32.mrf.mxu1 }
 0x12d   : > { %v1564_v23 = vadd.f32 %v1563_v20, %v1562_v17  ;;  %v1612_v24 = vadd.f32 %v1611_v22, %v1610_v18  ;;  %v431_v17 = vld [vmem:[#allocation2 + $0x70] sm:$0xff] }
 0x12e   : > { %v1565_v25 = vpop.f32.mrf.mxu0  ;;  %v1613_v26 = vpop.f32.mrf.mxu1 }
 0x12f   : > { %v922_v27 = vadd.f32 %v1564_v23, %v409_v19  ;;  %v938_v28 = vadd.f32 %v1612_v24, %v425_v21 }
 0x130   : > { %v1566_v30 = vpop.f32.mrf.mxu0  ;;  %v1614_v32 = vpop.f32.mrf.mxu1 }
 0x131   : > { %954 = vst [vmem:[#allocation2 + $0xb0] sm:$0xff] %v922_v27  ;;  %970 = vst [vmem:[#allocation2 + $0x38] sm:$0xff] %v938_v28  ;;  %v1567_v33 = vadd.f32 %v1566_v30, %v1565_v25  ;;  %v1615_v34 = vadd.f32 %v1614_v32, %v1613_v26  ;;  %v416_v25 = vld [vmem:[#allocation2 + $0x48] sm:$0xff]  ;;  %v432_v27 = vld [vmem:[#allocation2 + $0xc0] sm:$0xff] }
 0x132   : > { %v1568_v35 = vpop.f32.mrf.mxu0  ;;  %v1616_v36 = vpop.f32.mrf.mxu1 }
 0x133   : > { %v923_v37 = vadd.f32 %v1567_v33, %v410_v29  ;;  %v939_v38 = vadd.f32 %v1615_v34, %v426_v31 }
 0x134   : > { %v1569_v40 = vpop.f32.mrf.mxu0  ;;  %v1617_v42 = vpop.f32.mrf.mxu1 }
 0x135   : > { %955 = vst [vmem:[#allocation2] sm:$0xff] %v923_v37  ;;  %971 = vst [vmem:[#allocation2 + $0x58] sm:$0xff] %v939_v38  ;;  %v1570_v43 = vadd.f32 %v1569_v40, %v1568_v35  ;;  %v1618_v44 = vadd.f32 %v1617_v42, %v1616_v36  ;;  %v417_v35 = vld [vmem:[#allocation2 + $0x80] sm:$0xff]  ;;  %v433_v37 = vld [vmem:[#allocation2 + $0xa8] sm:$0xff] }
 0x136   : > { %v1571_v45 = vpop.f32.mrf.mxu0  ;;  %v1619_v46 = vpop.f32.mrf.mxu1 }
 0x137   : > { %v924_v47 = vadd.f32 %v1570_v43, %v411_v39  ;;  %v940_v48 = vadd.f32 %v1618_v44, %v427_v41 }
 0x138   : > { %v1572_v50 = vpop.f32.mrf.mxu0  ;;  %v1620_v52 = vpop.f32.mrf.mxu1 }
 0x139   : > { %956 = vst [vmem:[#allocation2 + $0xd8] sm:$0xff] %v924_v47  ;;  %972 = vst [vmem:[#allocation2 + $0x40] sm:$0xff] %v940_v48  ;;  %v1573_v53 = vadd.f32 %v1572_v50, %v1571_v45  ;;  %v1621_v54 = vadd.f32 %v1620_v52, %v1619_v46  ;;  %v418_v45 = vld [vmem:[#allocation2 + $0x88] sm:$0xff]  ;;  %v434_v47 = vld [vmem:[#allocation2 + $0xd0] sm:$0xff] }
 0x13a   : > { %v1574_v55 = vpop.f32.mrf.mxu0  ;;  %v1622_v56 = vpop.f32.mrf.mxu1 }
 0x13b   : > { %v925_v57 = vadd.f32 %v1573_v53, %v412_v49  ;;  %v941_v58 = vadd.f32 %v1621_v54, %v428_v51 }
 0x13c   : > { %v1575_v60 = vpop.f32.mrf.mxu0  ;;  %v1623_v62 = vpop.f32.mrf.mxu1 }
 0x13d   : > { %957 = vst [vmem:[#allocation2 + $0x18] sm:$0xff] %v925_v57  ;;  %973 = vst [vmem:[#allocation2 + $0xc8] sm:$0xff] %v941_v58  ;;  %v1576_v63 = vadd.f32 %v1575_v60, %v1574_v55  ;;  %v1624_v0 = vadd.f32 %v1623_v62, %v1622_v56  ;;  %v419_v55 = vld [vmem:[#allocation2 + $0xe8] sm:$0xff]  ;;  %v435_v57 = vld [vmem:[#allocation2 + $0x10] sm:$0xff] }
 0x13e   : > { %v1577_v1 = vpop.f32.mrf.mxu0  ;;  %v1625_v2 = vpop.f32.mrf.mxu1 }
 0x13f   : > { %v926_v3 = vadd.f32 %v1576_v63, %v413_v59  ;;  %v942_v4 = vadd.f32 %v1624_v0, %v429_v61 }
 0x140   : > { %v1578_v6 = vpop.f32.mrf.mxu0  ;;  %v1626_v8 = vpop.f32.mrf.mxu1 }
 0x141   : > { %958 = vst [vmem:[#allocation2 + $0x50] sm:$0xff] %v926_v3  ;;  %974 = vst [vmem:[#allocation2 + $0xe0] sm:$0xff] %v942_v4  ;;  %v1579_v9 = vadd.f32 %v1578_v6, %v1577_v1  ;;  %v1627_v10 = vadd.f32 %v1626_v8, %v1625_v2  ;;  %v420_v1 = vld [vmem:[#allocation2 + $0xb8] sm:$0xff]  ;;  %v436_v3 = vld [vmem:[#allocation2 + $0x28] sm:$0xff] }
 0x142   : > { %v1580_v11 = vpop.f32.mrf.mxu0  ;;  %v1628_v12 = vpop.f32.mrf.mxu1 }
 0x143   : > { %v927_v13 = vadd.f32 %v1579_v9, %v414_v5  ;;  %v943_v14 = vadd.f32 %v1627_v10, %v430_v7 }
 0x144   : > { %v1581_v16 = vpop.f32.mrf.mxu0  ;;  %v1629_v18 = vpop.f32.mrf.mxu1 }
 0x145   : > { %959 = vst [vmem:[#allocation2 + $0x68] sm:$0xff] %v927_v13  ;;  %975 = vst [vmem:[#allocation2 + $0x90] sm:$0xff] %v943_v14  ;;  %v1582_v19 = vadd.f32 %v1581_v16, %v1580_v11  ;;  %v1630_v20 = vadd.f32 %v1629_v18, %v1628_v12  ;;  %v421_v11 = vld [vmem:[#allocation2 + $0x60] sm:$0xff] }
 0x146   : > { %v1583_v21 = vpop.f32.mrf.mxu0  ;;  %v1631_v22 = vpop.f32.mrf.mxu1  ;;  %v437_v13 = vld [vmem:[#allocation2 + $0xa0] sm:$0xff] }
 0x147   : > { %v928_v23 = vadd.f32 %v1582_v19, %v415_v15  ;;  %v944_v24 = vadd.f32 %v1630_v20, %v431_v17 }
 0x148   : > { %v1584_v26 = vpop.f32.mrf.mxu0  ;;  %v1632_v28 = vpop.f32.mrf.mxu1 }
 0x149   : > { %960 = vst [vmem:[#allocation2 + $0x30] sm:$0xff] %v928_v23  ;;  %976 = vst [vmem:[#allocation2 + $0x70] sm:$0xff] %v944_v24  ;;  %v1585_v29 = vadd.f32 %v1584_v26, %v1583_v21  ;;  %v1633_v30 = vadd.f32 %v1632_v28, %v1631_v22  ;;  %v422_v21 = vld [vmem:[#allocation2 + $0xf0] sm:$0xff]  ;;  %v438_v23 = vld [vmem:[#allocation2 + $0xf8] sm:$0xff] }
 0x14a   : > { %v1586_v31 = vpop.f32.mrf.mxu0  ;;  %v1634_v32 = vpop.f32.mrf.mxu1 }
 0x14b   : > { %v929_v33 = vadd.f32 %v1585_v29, %v416_v25  ;;  %v945_v34 = vadd.f32 %v1633_v30, %v432_v27 }
 0x14c   : > { %v1587_v36 = vpop.f32.mrf.mxu0  ;;  %v1635_v38 = vpop.f32.mrf.mxu1 }
 0x14d   : > { %961 = vst [vmem:[#allocation2 + $0x48] sm:$0xff] %v929_v33  ;;  %977 = vst [vmem:[#allocation2 + $0xc0] sm:$0xff] %v945_v34  ;;  %v1588_v39 = vadd.f32 %v1587_v36, %v1586_v31  ;;  %v1636_v40 = vadd.f32 %v1635_v38, %v1634_v32  ;;  %v423_v31 = vld [vmem:[#allocation2 + $0x8] sm:$0xff]  ;;  %v439_v33 = vld [vmem:[#allocation2 + $0x20] sm:$0xff] }
 0x14e   : > { %v1589_v41 = vpop.f32.mrf.mxu0  ;;  %v1637_v42 = vpop.f32.mrf.mxu1 }
 0x14f   : > { %v930_v43 = vadd.f32 %v1588_v39, %v417_v35  ;;  %v946_v44 = vadd.f32 %v1636_v40, %v433_v37 }
 0x150   : > { %v1590_v46 = vpop.f32.mrf.mxu0  ;;  %v1638_v48 = vpop.f32.mrf.mxu1 }
 0x151   : > { %962 = vst [vmem:[#allocation2 + $0x80] sm:$0xff] %v930_v43  ;;  %978 = vst [vmem:[#allocation2 + $0xa8] sm:$0xff] %v946_v44  ;;  %v1591_v49 = vadd.f32 %v1590_v46, %v1589_v41  ;;  %v1639_v50 = vadd.f32 %v1638_v48, %v1637_v42  ;;  %v424_v41 = vld [vmem:[#allocation2 + $0x78] sm:$0xff] }
 0x152   : > { %v1592_v51 = vpop.f32.mrf.mxu0  ;;  %v1640_v52 = vpop.f32.mrf.mxu1  ;;  %v440_v43 = vld [vmem:[#allocation2 + $0x98] sm:$0xff] }
 0x153   : > { %v931_v53 = vadd.f32 %v1591_v49, %v418_v45  ;;  %v947_v54 = vadd.f32 %v1639_v50, %v434_v47 }
 0x154   : > { %v1593_v56 = vpop.f32.mrf.mxu0  ;;  %v1641_v58 = vpop.f32.mrf.mxu1 }
 0x155   : > { %963 = vst [vmem:[#allocation2 + $0x88] sm:$0xff] %v931_v53  ;;  %979 = vst [vmem:[#allocation2 + $0xd0] sm:$0xff] %v947_v54  ;;  %v1594_v59 = vadd.f32 %v1593_v56, %v1592_v51  ;;  %v1642_v60 = vadd.f32 %v1641_v58, %v1640_v52 }
 0x156   : > { %v1595_v61 = vpop.f32.mrf.mxu0  ;;  %v1643_v62 = vpop.f32.mrf.mxu1 }
 0x157   : > { %v932_v63 = vadd.f32 %v1594_v59, %v419_v55  ;;  %v948_v0 = vadd.f32 %v1642_v60, %v435_v57 }
 0x158   : > { %v1596_v2 = vpop.f32.mrf.mxu0  ;;  %v1644_v4 = vpop.f32.mrf.mxu1 }
 0x159   : > { %964 = vst [vmem:[#allocation2 + $0xe8] sm:$0xff] %v932_v63  ;;  %980 = vst [vmem:[#allocation2 + $0x10] sm:$0xff] %v948_v0  ;;  %v1597_v5 = vadd.f32 %v1596_v2, %v1595_v61  ;;  %v1645_v6 = vadd.f32 %v1644_v4, %v1643_v62 }
 0x15a   : > { %v1598_v7 = vpop.f32.mrf.mxu0  ;;  %v1646_v8 = vpop.f32.mrf.mxu1 }
 0x15b   : > { %v933_v9 = vadd.f32 %v1597_v5, %v420_v1  ;;  %v949_v10 = vadd.f32 %v1645_v6, %v436_v3 }
 0x15c   : > { %v1599_v12 = vpop.f32.mrf.mxu0  ;;  %v1647_v14 = vpop.f32.mrf.mxu1 }
 0x15d   : > { %965 = vst [vmem:[#allocation2 + $0xb8] sm:$0xff] %v933_v9  ;;  %981 = vst [vmem:[#allocation2 + $0x28] sm:$0xff] %v949_v10  ;;  %v1600_v15 = vadd.f32 %v1599_v12, %v1598_v7  ;;  %v1648_v16 = vadd.f32 %v1647_v14, %v1646_v8 }
 0x15e   : > { %v1601_v17 = vpop.f32.mrf.mxu0  ;;  %v1649_v18 = vpop.f32.mrf.mxu1 }
 0x15f   : > { %v934_v19 = vadd.f32 %v1600_v15, %v421_v11  ;;  %v950_v20 = vadd.f32 %v1648_v16, %v437_v13 }
 0x160   : > { %v1602_v22 = vpop.f32.mrf.mxu0  ;;  %v1650_v24 = vpop.f32.mrf.mxu1 }
 0x161   : > { %966 = vst [vmem:[#allocation2 + $0x60] sm:$0xff] %v934_v19  ;;  %982 = vst [vmem:[#allocation2 + $0xa0] sm:$0xff] %v950_v20  ;;  %v1603_v25 = vadd.f32 %v1602_v22, %v1601_v17  ;;  %v1651_v26 = vadd.f32 %v1650_v24, %v1649_v18 }
 0x162   : > { %v1604_v27 = vpop.f32.mrf.mxu0  ;;  %v1652_v28 = vpop.f32.mrf.mxu1 }
 0x163   : > { %v935_v29 = vadd.f32 %v1603_v25, %v422_v21  ;;  %v951_v30 = vadd.f32 %v1651_v26, %v438_v23 }
 0x164   : > { %v1605_v32 = vpop.f32.mrf.mxu0  ;;  %v1653_v34 = vpop.f32.mrf.mxu1 }
 0x165   : > { %967 = vst [vmem:[#allocation2 + $0xf0] sm:$0xff] %v935_v29  ;;  %983 = vst [vmem:[#allocation2 + $0xf8] sm:$0xff] %v951_v30  ;;  %v1606_v35 = vadd.f32 %v1605_v32, %v1604_v27  ;;  %v1654_v36 = vadd.f32 %v1653_v34, %v1652_v28 }
 0x166   : > { %v1607_v37 = vpop.f32.mrf.mxu0  ;;  %v1655_v38 = vpop.f32.mrf.mxu1 }
 0x167   : > { %v936_v39 = vadd.f32 %v1606_v35, %v423_v31  ;;  %v952_v40 = vadd.f32 %v1654_v36, %v439_v33 }
 0x168   : > { %v1608_v42 = vpop.f32.mrf.mxu0  ;;  %v1656_v44 = vpop.f32.mrf.mxu1 }
 0x169   : > { %968 = vst [vmem:[#allocation2 + $0x8] sm:$0xff] %v936_v39  ;;  %984 = vst [vmem:[#allocation2 + $0x20] sm:$0xff] %v952_v40  ;;  %v1609_v45 = vadd.f32 %v1608_v42, %v1607_v37  ;;  %v1657_v46 = vadd.f32 %v1656_v44, %v1655_v38  ;;  %989 = sbr.rel (%p1383_p13) target bundleno = 384 (0x180), region = 74 }
 0x16b   : > { %v937_v47 = vadd.f32 %v1609_v45, %v424_v41  ;;  %v953_v48 = vadd.f32 %v1657_v46, %v440_v43 }
 0x16d   : > { %969 = vst [vmem:[#allocation2 + $0x78] sm:$0xff] %v937_v47  ;;  %985 = vst [vmem:[#allocation2 + $0x98] sm:$0xff] %v953_v48 }
 0x16e   : > { %v990_v49 = vld [vmem:[#allocation2 + $0xb0] sm:$0xff]  ;;  %v991_v50 = vld [vmem:[#allocation2] sm:$0xff]  ;;  %v992_v51 = vld [vmem:[#allocation2 + $0xd8] sm:$0xff] }
 0x16f   : > { %v1022_v52 = vmax.f32 %v990_v49, 0.0  ;;  %v1023_v53 = vmax.f32 %v991_v50, 0.0  ;;  %v993_v54 = vld [vmem:[#allocation2 + $0x18] sm:$0xff]  ;;  %v1024_v55 = vmax.f32 %v992_v51, 0.0  ;;  %v994_v56 = vld [vmem:[#allocation2 + $0x50] sm:$0xff]  ;;  %v995_v57 = vld [vmem:[#allocation2 + $0x68] sm:$0xff] }
 0x170   : > { %v1025_v58 = vmax.f32 %v993_v54, 0.0  ;;  %v1026_v59 = vmax.f32 %v994_v56, 0.0  ;;  %v1027_v60 = vmax.f32 %v995_v57, 0.0  ;;  %v996_v61 = vld [vmem:[#allocation2 + $0x30] sm:$0xff]  ;;  %v997_v62 = vld [vmem:[#allocation2 + $0x48] sm:$0xff]  ;;  %v998_v63 = vld [vmem:[#allocation2 + $0x80] sm:$0xff] }
 0x171   : > { %v1454_v0 = vpack.c.bf16 %v1023_v53, %v1022_v52  ;;  %v1028_v1 = vmax.f32 %v996_v61, 0.0  ;;  %v1029_v2 = vmax.f32 %v997_v62, 0.0  ;;  %v999_v3 = vld [vmem:[#allocation2 + $0x88] sm:$0xff]  ;;  %v1030_v4 = vmax.f32 %v998_v63, 0.0  ;;  %v1001_v6 = vld [vmem:[#allocation2 + $0xb8] sm:$0xff]  ;;  %v1002_v11 = vld [vmem:[#allocation2 + $0x60] sm:$0xff] }
 0x172   : > { %v1000_v5 = vld [vmem:[#allocation2 + $0xe8] sm:$0xff]  ;;  %v1459_v7 = vpack.c.bf16 %v1025_v58, %v1024_v55  ;;  %v1464_v8 = vpack.c.bf16 %v1027_v60, %v1026_v59  ;;  %v1031_v9 = vmax.f32 %v999_v3, 0.0  ;;  %v1003_v12 = vld [vmem:[#allocation2 + $0xf0] sm:$0xff]  ;;  %v1033_v15 = vmax.f32 %v1001_v6, 0.0  ;;  %v1006_v19 = vld [vmem:[#allocation2 + $0x38] sm:$0xff] }
 0x173   : > { %v1032_v10 = vmax.f32 %v1000_v5, 0.0  ;;  %v1004_v13 = vld [vmem:[#allocation2 + $0x8] sm:$0xff]  ;;  %1455 = vst [vmem:[%s2008_s26] sm:$0xff] %v1454_v0   ;;  %v1469_v14 = vpack.c.bf16 %v1029_v2, %v1028_v1  ;;  %v1034_v16 = vmax.f32 %v1002_v11, 0.0  ;;  %v1035_v17 = vmax.f32 %v1003_v12, 0.0  ;;  %v1007_v20 = vld [vmem:[#allocation2 + $0x58] sm:$0xff]  ;;  %v1008_v25 = vld [vmem:[#allocation2 + $0x40] sm:$0xff] }
 0x174   : > { %v1005_v18 = vld [vmem:[#allocation2 + $0x78] sm:$0xff]  ;;  %1531 = vst [vmem:[%s2008_s26 + $0x8] sm:$0xff] %v1459_v7   ;;  %1532 = vst [vmem:[%s2008_s26 + $0x10] sm:$0xff] %v1464_v8   ;;  %v1474_v21 = vpack.c.bf16 %v1031_v9, %v1030_v4  ;;  %v1036_v22 = vmax.f32 %v1004_v13, 0.0  ;;  %v1038_v24 = vmax.f32 %v1006_v19, 0.0  ;;  %v1009_v26 = vld [vmem:[#allocation2 + $0xc8] sm:$0xff] }
 0x175   : > { %v1037_v23 = vmax.f32 %v1005_v18, 0.0  ;;  %v1010_v27 = vld [vmem:[#allocation2 + $0xe0] sm:$0xff]  ;;  %1533 = vst [vmem:[%s2008_s26 + $0x18] sm:$0xff] %v1469_v14   ;;  %v1479_v28 = vpack.c.bf16 %v1033_v15, %v1032_v10  ;;  %v1484_v29 = vpack.c.bf16 %v1035_v17, %v1034_v16  ;;  %v1039_v30 = vmax.f32 %v1007_v20, 0.0  ;;  %v1011_v32 = vld [vmem:[#allocation2 + $0x90] sm:$0xff]  ;;  %v1014_v39 = vld [vmem:[#allocation2 + $0xa8] sm:$0xff] }
 0x176   : > { %v1040_v31 = vmax.f32 %v1008_v25, 0.0  ;;  %v1012_v33 = vld [vmem:[#allocation2 + $0x70] sm:$0xff]  ;;  %v1013_v34 = vld [vmem:[#allocation2 + $0xc0] sm:$0xff]  ;;  %1534 = vst [vmem:[%s2008_s26 + $0x20] sm:$0xff] %v1474_v21   ;;  %v1041_v36 = vmax.f32 %v1009_v26, 0.0  ;;  %v1042_v37 = vmax.f32 %v1010_v27, 0.0 }
 0x177   : > { %v1489_v35 = vpack.c.bf16 %v1037_v23, %v1036_v22  ;;  %v1043_v38 = vmax.f32 %v1011_v32, 0.0  ;;  %v1015_v40 = vld [vmem:[#allocation2 + $0xd0] sm:$0xff]  ;;  %1535 = vst [vmem:[%s2008_s26 + $0x28] sm:$0xff] %v1479_v28   ;;  %1536 = vst [vmem:[%s2008_s26 + $0x30] sm:$0xff] %v1484_v29   ;;  %v1494_v42 = vpack.c.bf16 %v1039_v30, %v1038_v24  ;;  %v1044_v43 = vmax.f32 %v1012_v33, 0.0  ;;  %v1017_v46 = vld [vmem:[#allocation2 + $0x28] sm:$0xff] }
 0x178   : > { %v1016_v41 = vld [vmem:[#allocation2 + $0x10] sm:$0xff]  ;;  %v1045_v44 = vmax.f32 %v1013_v34, 0.0  ;;  %v1046_v45 = vmax.f32 %v1014_v39, 0.0  ;;  %v1018_v47 = vld [vmem:[#allocation2 + $0xa0] sm:$0xff]  ;;  %v1019_v48 = vld [vmem:[#allocation2 + $0xf8] sm:$0xff]  ;;  %v1499_v49 = vpack.c.bf16 %v1041_v36, %v1040_v31  ;;  %v1047_v51 = vmax.f32 %v1015_v40, 0.0 }
 0x179   : > { %1537 = vst [vmem:[%s2008_s26 + $0x38] sm:$0xff] %v1489_v35   ;;  %v1504_v50 = vpack.c.bf16 %v1043_v38, %v1042_v37  ;;  %v1048_v52 = vmax.f32 %v1016_v41, 0.0  ;;  %v1020_v53 = vld [vmem:[#allocation2 + $0x20] sm:$0xff]  ;;  %v1021_v54 = vld [vmem:[#allocation2 + $0x98] sm:$0xff]  ;;  %1538 = vst [vmem:[%s2008_s26 + $0x40] sm:$0xff] %v1494_v42   ;;  %v1049_v56 = vmax.f32 %v1017_v46, 0.0 }
 0x17a   : > { %v1509_v55 = vpack.c.bf16 %v1045_v44, %v1044_v43  ;;  %v1050_v57 = vmax.f32 %v1018_v47, 0.0  ;;  %v1051_v58 = vmax.f32 %v1019_v48, 0.0  ;;  %1539 = vst [vmem:[%s2008_s26 + $0x48] sm:$0xff] %v1499_v49   ;;  %v1514_v59 = vpack.c.bf16 %v1047_v51, %v1046_v45 }
 0x17b   : > { %1540 = vst [vmem:[%s2008_s26 + $0x50] sm:$0xff] %v1504_v50   ;;  %v1052_v60 = vmax.f32 %v1020_v53, 0.0  ;;  %v1053_v61 = vmax.f32 %v1021_v54, 0.0  ;;  %v1519_v62 = vpack.c.bf16 %v1049_v56, %v1048_v52 }
 0x17c   : > { %1541 = vst [vmem:[%s2008_s26 + $0x58] sm:$0xff] %v1509_v55   ;;  %v1524_v63 = vpack.c.bf16 %v1051_v58, %v1050_v57  ;;  %1542 = vst [vmem:[%s2008_s26 + $0x60] sm:$0xff] %v1514_v59  }
 0x17d   : > { %v1529_v0 = vpack.c.bf16 %v1053_v61, %v1052_v60  ;;  %1543 = vst [vmem:[%s2008_s26 + $0x68] sm:$0xff] %v1519_v62  }
 0x17e   : > { %1544 = vst [vmem:[%s2008_s26 + $0x70] sm:$0xff] %v1524_v63  }
 0x17f   : > { %1545 = vst [vmem:[%s2008_s26 + $0x78] sm:$0xff] %v1529_v0  }
 0x180 PF: > { %s12_s15 = sadd.s32 1, %s1849_s15   ;;  %s2102_s9 = smov %s1829_s10 }
 0x181   : > { %p9_p0 = scmp.ge.s32.totalorder %s12_s15, 10   ;;  %s2103_s10 = smov %s1918_s22 }
 0x182   : > { %s2104_s11 = smov %s1841_s13  ;;  %s2105_s12 = smov %s1845_s14 }
 0x183   : > { %s2106_s13 = smov %s2109_s16  ;;  %s2107_s14 = smov %s2113_s17 }
 0x184   :  { %11 = sbr.rel (!%p9_p0) target bundleno = 4 (0x4), region = 112 }

// kernel: video_resnet_forward.21
= control target key start
LH: loop header
LB: loop body
LE: loop exit
PB: predicated region body
PF: predicated region fallthrough
CT: control target
= control target key end

     0   :  { %s1867_s9 = smov 0   ;;  %s1869_s10 = smov 0   ;;  %s2099_s0 = inlined_call_operand.vmem [shape: bf16[1024,1792], index: 0, kind: input, shape index: {}]   ;;  %s2100_s1 = inlined_call_operand.vmem [shape: bf16[1792,128], index: 1, kind: input, shape index: {}]   ;;  %s2101_s2 = inlined_call_operand.vmem [shape: bf16[1024,128], index: 2, kind: output, shape index: {}]  }
   0x1   :  { %s1871_s11 = smov 0   ;;  %s1873_s12 = smov 0  }
   0x2   :  { %s1875_s13 = smov 0   ;;  %s1877_s14 = smov 0  }
   0x3   :  { %s1879_s15 = smov 0  }
   0x4 LB: > { %s24_s16 = sadd.s32 1, %s1841_s13  ;;  %s31_s17 = sadd.s32 1, %s1845_s14  ;;  %s1849_s15 = sphi %s1879_s15, %s12_s15   ;;  %s1845_s14 = sphi %s1877_s14, %s2107_s14   ;;  %s1841_s13 = sphi %s1875_s13, %s2106_s13   ;;  %s1837_s12 = sphi %s1873_s12, %s2105_s12   ;;  %s1833_s11 = sphi %s1871_s11, %s2104_s11   ;;  %s1829_s10 = sphi %s1869_s10, %s2103_s10   ;;  %s1825_s9 = sphi %s1867_s9, %s2102_s9  }
   0x5   : > { %p25_p0 = scmp.ge.s32.totalorder %s24_s16, 7  ;;  %p47_p1 = scmp.ne.s32.totalorder %s1829_s10, %s1825_s9 }
   0x6   : > { %p48_p2 = scmp.eq.s32.totalorder %s1849_s15, 0  ;;  %s40_s21 = sadd.s32 1, %s1829_s10 }
   0x7   : > { %s2109_s16 = smov (%p25_p0, %s24_s16), 0  ;;  %s2111_s17 = smov (!%p25_p0, %s31_s17), %s1845_s14 }
   0x8   : > { %p49_p3 = por %p48_p2, %p47_p1  ;;  %p33_p4 = scmp.ge.s32.totalorder %s2111_s17, 4 }
   0x9   : > { %s36_s18 = ssub.s32 %s1841_s13, %s2109_s16  ;;  %p1322_p6 = scmp.ge.s32.totalorder %s1849_s15, 28 }
   0xa   : > { %s2113_s17 = smov (%p33_p4, %s2111_s17), 0 }
   0xb   : > { %s35_s19 = ssub.s32 %s1845_s14, %s2113_s17  ;;  %129 = sbr.rel (%p1322_p6) target bundleno = 40 (0x28), region = 16 }
   0xc   : > { %s37_s20 = sor.u32 %s36_s18, %s35_s19 }
   0xd   : > { %p38_p5 = scmp.eq.s32.totalorder %s37_s20, 0 }
   0xf   : > { %s1918_s22 = scalar_select %p38_p5, %s1829_s10, %s40_s21  }
  0x10   : > { %132 = sbr.rel (!%p49_p3) target bundleno = 40 (0x28), region = 20  ;;  %s134_s23 = sand.u32 (%p49_p3), 1, %s1829_s10  }
  0x11   : > { %s1325_s24 = sshll.u32 (%p49_p3), %s1841_s13, 1  ;;  %s1323_s25 = sshll.u32 (%p49_p3), %s134_s23, 8 }
  0x12   : > { %s1673_s26 = smul.u32 (%p49_p3), 448, %s1845_s14  ;;  %s1932_s4 = scalar_lea.vmem (%p49_p3), [#allocation3], %s1323_s25 }
  0x14   : > { %s140_s27 = sadd.s32 (%p49_p3), %s1673_s26, %s1325_s24 }
  0x15   : > { %s1327_s28 = sshll.u32 %s140_s27, 2 }
  0x16   : > { %s1927_s3 = scalar_lea.vmem %s2099_s0, %s1327_s28 }
  0x17   : > { %v233_v0 = vld [vmem:[%s1927_s3] sm:$0xff]  ;;  %v235_v1 = vld [vmem:[%s1927_s3 + $0x38] sm:$0xff]  ;;  %v237_v2 = vld [vmem:[%s1927_s3 + $0x70] sm:$0xff] }
  0x18   : > { %234 = vst [vmem:[%s1932_s4] sm:$0xff] %v233_v0  ;;  %236 = vst [vmem:[%s1932_s4 + $0x8] sm:$0xff] %v235_v1  ;;  %v239_v3 = vld [vmem:[%s1927_s3 + $0xa8] sm:$0xff]  ;;  %v241_v4 = vld [vmem:[%s1927_s3 + $0xe0] sm:$0xff] }
  0x19   : > { %238 = vst [vmem:[%s1932_s4 + $0x10] sm:$0xff] %v237_v2  ;;  %v243_v5 = vld [vmem:[%s1927_s3 + $0x118] sm:$0xff]  ;;  %240 = vst [vmem:[%s1932_s4 + $0x18] sm:$0xff] %v239_v3  ;;  %v245_v6 = vld [vmem:[%s1927_s3 + $0x150] sm:$0xff] }
  0x1a   : > { %242 = vst [vmem:[%s1932_s4 + $0x20] sm:$0xff] %v241_v4  ;;  %244 = vst [vmem:[%s1932_s4 + $0x28] sm:$0xff] %v243_v5  ;;  %v247_v7 = vld [vmem:[%s1927_s3 + $0x188] sm:$0xff]  ;;  %v249_v8 = vld [vmem:[%s1927_s3 + $0x1c0] sm:$0xff] }
  0x1b   : > { %246 = vst [vmem:[%s1932_s4 + $0x30] sm:$0xff] %v245_v6  ;;  %248 = vst [vmem:[%s1932_s4 + $0x38] sm:$0xff] %v247_v7  ;;  %v251_v9 = vld [vmem:[%s1927_s3 + $0x1f8] sm:$0xff]  ;;  %v253_v10 = vld [vmem:[%s1927_s3 + $0x230] sm:$0xff] }
  0x1c   : > { %250 = vst [vmem:[%s1932_s4 + $0x40] sm:$0xff] %v249_v8  ;;  %v255_v11 = vld [vmem:[%s1927_s3 + $0x268] sm:$0xff]  ;;  %252 = vst [vmem:[%s1932_s4 + $0x48] sm:$0xff] %v251_v9  ;;  %v257_v12 = vld [vmem:[%s1927_s3 + $0x2a0] sm:$0xff] }
  0x1d   : > { %254 = vst [vmem:[%s1932_s4 + $0x50] sm:$0xff] %v253_v10  ;;  %256 = vst [vmem:[%s1932_s4 + $0x58] sm:$0xff] %v255_v11  ;;  %v259_v13 = vld [vmem:[%s1927_s3 + $0x2d8] sm:$0xff]  ;;  %v261_v14 = vld [vmem:[%s1927_s3 + $0x310] sm:$0xff] }
  0x1e   : > { %258 = vst [vmem:[%s1932_s4 + $0x60] sm:$0xff] %v257_v12  ;;  %260 = vst [vmem:[%s1932_s4 + $0x68] sm:$0xff] %v259_v13  ;;  %v263_v15 = vld [vmem:[%s1927_s3 + $0x348] sm:$0xff]  ;;  %v265_v16 = vld [vmem:[%s1927_s3 + $0x380] sm:$0xff] }
  0x1f   : > { %262 = vst [vmem:[%s1932_s4 + $0x70] sm:$0xff] %v261_v14  ;;  %v267_v17 = vld [vmem:[%s1927_s3 + $0x3b8] sm:$0xff]  ;;  %264 = vst [vmem:[%s1932_s4 + $0x78] sm:$0xff] %v263_v15  ;;  %v269_v18 = vld [vmem:[%s1927_s3 + $0x3f0] sm:$0xff] }
  0x20   : > { %266 = vst [vmem:[%s1932_s4 + $0x80] sm:$0xff] %v265_v16  ;;  %268 = vst [vmem:[%s1932_s4 + $0x88] sm:$0xff] %v267_v17  ;;  %v271_v19 = vld [vmem:[%s1927_s3 + $0x428] sm:$0xff]  ;;  %v273_v20 = vld [vmem:[%s1927_s3 + $0x460] sm:$0xff] }
  0x21   : > { %270 = vst [vmem:[%s1932_s4 + $0x90] sm:$0xff] %v269_v18  ;;  %272 = vst [vmem:[%s1932_s4 + $0x98] sm:$0xff] %v271_v19  ;;  %v275_v21 = vld [vmem:[%s1927_s3 + $0x498] sm:$0xff]  ;;  %v277_v22 = vld [vmem:[%s1927_s3 + $0x4d0] sm:$0xff] }
  0x22   : > { %274 = vst [vmem:[%s1932_s4 + $0xa0] sm:$0xff] %v273_v20  ;;  %v279_v23 = vld [vmem:[%s1927_s3 + $0x508] sm:$0xff]  ;;  %276 = vst [vmem:[%s1932_s4 + $0xa8] sm:$0xff] %v275_v21  ;;  %v281_v24 = vld [vmem:[%s1927_s3 + $0x540] sm:$0xff] }
  0x23   : > { %278 = vst [vmem:[%s1932_s4 + $0xb0] sm:$0xff] %v277_v22  ;;  %280 = vst [vmem:[%s1932_s4 + $0xb8] sm:$0xff] %v279_v23  ;;  %v283_v25 = vld [vmem:[%s1927_s3 + $0x578] sm:$0xff]  ;;  %v285_v26 = vld [vmem:[%s1927_s3 + $0x5b0] sm:$0xff] }
  0x24   : > { %282 = vst [vmem:[%s1932_s4 + $0xc0] sm:$0xff] %v281_v24  ;;  %284 = vst [vmem:[%s1932_s4 + $0xc8] sm:$0xff] %v283_v25  ;;  %v287_v27 = vld [vmem:[%s1927_s3 + $0x5e8] sm:$0xff]  ;;  %v289_v28 = vld [vmem:[%s1927_s3 + $0x620] sm:$0xff] }
  0x25   : > { %286 = vst [vmem:[%s1932_s4 + $0xd0] sm:$0xff] %v285_v26  ;;  %v291_v29 = vld [vmem:[%s1927_s3 + $0x658] sm:$0xff]  ;;  %288 = vst [vmem:[%s1932_s4 + $0xd8] sm:$0xff] %v287_v27  ;;  %v293_v30 = vld [vmem:[%s1927_s3 + $0x690] sm:$0xff] }
  0x26   : > { %290 = vst [vmem:[%s1932_s4 + $0xe0] sm:$0xff] %v289_v28  ;;  %292 = vst [vmem:[%s1932_s4 + $0xe8] sm:$0xff] %v291_v29  ;;  %v295_v31 = vld [vmem:[%s1927_s3 + $0x6c8] sm:$0xff] }
  0x27   : > { %294 = vst [vmem:[%s1932_s4 + $0xf0] sm:$0xff] %v293_v30  ;;  %296 = vst [vmem:[%s1932_s4 + $0xf8] sm:$0xff] %v295_v31 }
  0x28 PF: > { %p1328_p7 = scmp.ge.s32.totalorder %s1849_s15, 1  ;;  %p313_p8 = scmp.lt.s32.totalorder %s1849_s15, 29 }
  0x2a   : > { %p314_p9 = pnand %p1328_p7, %p313_p8 }
  0x2b   : > { %s320_s5 = sand.u32 (!%p314_p9), 1, %s1825_s9   ;;  %s1330_s6 = sshll.u32 (!%p314_p9), %s1833_s11, 5 }
  0x2c   : > { %317 = sbr.rel (%p314_p9) target bundleno = 385 (0x181), region = 62  ;;  %s1329_s7 = sshll.u32 (!%p314_p9), %s320_s5, 8 }
  0x2d   : > { %p355_p10 = scmp.lt.s32.totalorder (!%p314_p9), %s1330_s6, 223  ;;  %s1332_s8 = sshll.u32 (!%p314_p9), %s1837_s12, 5 }
  0x2e   : > { %p364_p11 = scmp.lt.s32.totalorder (!%p314_p9), %s1332_s8, 127  ;;  %s2010_s9 = scalar_lea.vmem (!%p314_p9), [#allocation3], %s1329_s7 }
  0x2f   : > { %p1334_p12 = scmp.ne.s32.totalorder (!%p314_p9), %s1833_s11, 0 }
  0x31   : > { %s2115_s6 = smov (!%p355_p10, %s1330_s6), 223  ;;  %s2117_s8 = smov (!%p364_p11, %s1332_s8), 127 }
  0x32   : > { %s1331_s18 = sshll.u32 %s2115_s6, 2  ;;  %s1333_s23 = sshll.u32 %s2117_s8, 2 }
  0x33   : > { %s2003_s21 = scalar_lea.vmem %s2100_s1, %s1331_s18  ;;  %s2008_s26 = scalar_lea.vmem %s2101_s2, %s1333_s23 }
  0x34   : > { %376 = sbr.rel (%p1334_p12) target bundleno = 74 (0x4a), region = 70 }
  0x39   : > { %v1851_v32 = vmov 0.0  }
  0x3a   : > { %377 = vst [vmem:[#allocation2 + $0xb0] sm:$0xff] %v1851_v32  ;;  %378 = vst [vmem:[#allocation2] sm:$0xff] %v1851_v32 }
  0x3b   : > { %379 = vst [vmem:[#allocation2 + $0xd8] sm:$0xff] %v1851_v32  ;;  %380 = vst [vmem:[#allocation2 + $0x18] sm:$0xff] %v1851_v32 }
  0x3c   : > { %381 = vst [vmem:[#allocation2 + $0x50] sm:$0xff] %v1851_v32  ;;  %382 = vst [vmem:[#allocation2 + $0x68] sm:$0xff] %v1851_v32 }
  0x3d   : > { %383 = vst [vmem:[#allocation2 + $0x30] sm:$0xff] %v1851_v32  ;;  %384 = vst [vmem:[#allocation2 + $0x48] sm:$0xff] %v1851_v32 }
  0x3e   : > { %385 = vst [vmem:[#allocation2 + $0x80] sm:$0xff] %v1851_v32  ;;  %386 = vst [vmem:[#allocation2 + $0x88] sm:$0xff] %v1851_v32 }
  0x3f   : > { %387 = vst [vmem:[#allocation2 + $0xe8] sm:$0xff] %v1851_v32  ;;  %388 = vst [vmem:[#allocation2 + $0xb8] sm:$0xff] %v1851_v32 }
  0x40   : > { %389 = vst [vmem:[#allocation2 + $0x60] sm:$0xff] %v1851_v32  ;;  %390 = vst [vmem:[#allocation2 + $0xf0] sm:$0xff] %v1851_v32 }
  0x41   : > { %391 = vst [vmem:[#allocation2 + $0x8] sm:$0xff] %v1851_v32  ;;  %392 = vst [vmem:[#allocation2 + $0x78] sm:$0xff] %v1851_v32 }
  0x42   : > { %393 = vst [vmem:[#allocation2 + $0x38] sm:$0xff] %v1851_v32  ;;  %394 = vst [vmem:[#allocation2 + $0x58] sm:$0xff] %v1851_v32 }
  0x43   : > { %395 = vst [vmem:[#allocation2 + $0x40] sm:$0xff] %v1851_v32  ;;  %396 = vst [vmem:[#allocation2 + $0xc8] sm:$0xff] %v1851_v32 }
  0x44   : > { %397 = vst [vmem:[#allocation2 + $0xe0] sm:$0xff] %v1851_v32  ;;  %398 = vst [vmem:[#allocation2 + $0x90] sm:$0xff] %v1851_v32 }
  0x45   : > { %399 = vst [vmem:[#allocation2 + $0x70] sm:$0xff] %v1851_v32  ;;  %400 = vst [vmem:[#allocation2 + $0xc0] sm:$0xff] %v1851_v32 }
  0x46   : > { %401 = vst [vmem:[#allocation2 + $0xa8] sm:$0xff] %v1851_v32  ;;  %402 = vst [vmem:[#allocation2 + $0xd0] sm:$0xff] %v1851_v32 }
  0x47   : > { %403 = vst [vmem:[#allocation2 + $0x10] sm:$0xff] %v1851_v32  ;;  %404 = vst [vmem:[#allocation2 + $0x28] sm:$0xff] %v1851_v32 }
  0x48   : > { %405 = vst [vmem:[#allocation2 + $0xa0] sm:$0xff] %v1851_v32  ;;  %406 = vst [vmem:[#allocation2 + $0xf8] sm:$0xff] %v1851_v32 }
  0x49   : > { %407 = vst [vmem:[#allocation2 + $0x20] sm:$0xff] %v1851_v32  ;;  %408 = vst [vmem:[#allocation2 + $0x98] sm:$0xff] %v1851_v32 }
  0x4a PF: > { %v1731_v33 = vld [vmem:[%s2003_s21 + $0x78] sm:$0xff]   ;;  %v1733_v35 = vld [vmem:[%s2003_s21 + $0x70] sm:$0xff]   ;;  %v1735_v37 = vld [vmem:[%s2003_s21 + $0x68] sm:$0xff]   ;;  %p1383_p13 = scmp.ne.s32.totalorder %s1833_s11, 6 }
  0x4b   : > { %v1732_v34 = vld [vmem:[%s2003_s21 + $0x38] sm:$0xff]   ;;  %1545 = vmatprep.subr.bf16.mxu0 %v1731_v33  ;;  %1657 = vmatprep.subr.bf16.mxu1 %v1731_v33  ;;  %v1734_v36 = vld [vmem:[%s2003_s21 + $0x30] sm:$0xff]   ;;  %v1736_v38 = vld [vmem:[%s2003_s21 + $0x28] sm:$0xff]  }
  0x4c   : > { %1546 = vmatpush3.bf16.msra.mxu0 %v1732_v34  ;;  %1665 = vmatpush3.bf16.msra.mxu1 %v1732_v34  ;;  %v1737_v39 = vld [vmem:[%s2003_s21 + $0x60] sm:$0xff]   ;;  %v1739_v41 = vld [vmem:[%s2003_s21 + $0x58] sm:$0xff]   ;;  %v1741_v43 = vld [vmem:[%s2003_s21 + $0x50] sm:$0xff]  }
  0x4d   : > { %1547 = vmatprep.subr.bf16.mxu0 %v1733_v35  ;;  %1658 = vmatprep.subr.bf16.mxu1 %v1733_v35  ;;  %v1738_v40 = vld [vmem:[%s2003_s21 + $0x20] sm:$0xff]   ;;  %v1740_v42 = vld [vmem:[%s2003_s21 + $0x18] sm:$0xff]   ;;  %v1742_v46 = vld [vmem:[%s2003_s21 + $0x10] sm:$0xff]  }
  0x4e   : > { %v1749_v44 = vld [vmem:[%s2010_s9 + $0x4] ss:$8 sps:$4 sm:$0xff]   ;;  %v1747_v51 = vld [vmem:[%s2010_s9] ss:$8 sps:$4 sm:$0xff]   ;;  %v1753_v53 = vld [vmem:[%s2010_s9 + $0x14] ss:$8 sps:$4 sm:$0xff]  }
  0x4f   : > { %v1752_v45 = vld [vmem:[%s2010_s9 + $0x84] ss:$8 sps:$4 sm:$0xff]   ;;  %793 = vmatprep.mubr.bf16.mxu0 %v1749_v44  ;;  %v1750_v52 = vld [vmem:[%s2010_s9 + $0x80] ss:$8 sps:$4 sm:$0xff]   ;;  %v1755_v54 = vld [vmem:[%s2010_s9 + $0x94] ss:$8 sps:$4 sm:$0xff]  }
  0x50   : > { %1548 = vmatpush3.bf16.msra.mxu0 %v1734_v36  ;;  %1666 = vmatpush3.bf16.msra.mxu1 %v1734_v36  ;;  %v1743_v47 = vld [vmem:[%s2003_s21 + $0x48] sm:$0xff]   ;;  %v1745_v49 = vld [vmem:[%s2003_s21 + $0x40] sm:$0xff]   ;;  %v1757_v55 = vld [vmem:[%s2010_s9 + $0x10] ss:$8 sps:$4 sm:$0xff]  }
  0x51   : > { %1549 = vmatprep.subr.bf16.mxu0 %v1735_v37  ;;  %1659 = vmatprep.subr.bf16.mxu1 %v1735_v37  ;;  %v1744_v48 = vld [vmem:[%s2003_s21 + $0x8] sm:$0xff]   ;;  %v1746_v50 = vld [vmem:[%s2003_s21] sm:$0xff]   ;;  %v1758_v56 = vld [vmem:[%s2010_s9 + $0x90] ss:$8 sps:$4 sm:$0xff]  }
  0x52   : > { %857 = vmatprep.mubr.bf16.mxu1 %v1752_v45  ;;  %v1759_v57 = vld [vmem:[%s2010_s9 + $0x24] ss:$8 sps:$4 sm:$0xff]   ;;  %v1763_v59 = vld [vmem:[%s2010_s9 + $0x20] ss:$8 sps:$4 sm:$0xff]   ;;  %v1765_v61 = vld [vmem:[%s2010_s9 + $0x34] ss:$8 sps:$4 sm:$0xff]  }
  0x53   : > { %v1761_v58 = vld [vmem:[%s2010_s9 + $0xa4] ss:$8 sps:$4 sm:$0xff]   ;;  %v1764_v60 = vld [vmem:[%s2010_s9 + $0xa0] ss:$8 sps:$4 sm:$0xff]   ;;  %v1767_v62 = vld [vmem:[%s2010_s9 + $0xb4] ss:$8 sps:$4 sm:$0xff]  }
  0x54   : > { %1550 = vmatpush3.bf16.msra.mxu0 %v1736_v38  ;;  %1667 = vmatpush3.bf16.msra.mxu1 %v1736_v38  ;;  %v1769_v63 = vld [vmem:[%s2010_s9 + $0x30] ss:$8 sps:$4 sm:$0xff]   ;;  %v1771_v1 = vld [vmem:[%s2010_s9 + $0x44] ss:$8 sps:$4 sm:$0xff]   ;;  %v1775_v3 = vld [vmem:[%s2010_s9 + $0x40] ss:$8 sps:$4 sm:$0xff]  }
  0x55   : > { %1551 = vmatprep.subr.bf16.mxu0 %v1737_v39  ;;  %1660 = vmatprep.subr.bf16.mxu1 %v1737_v39  ;;  %v1770_v0 = vld [vmem:[%s2010_s9 + $0xb0] ss:$8 sps:$4 sm:$0xff]   ;;  %v1773_v2 = vld [vmem:[%s2010_s9 + $0xc4] ss:$8 sps:$4 sm:$0xff]   ;;  %v1776_v4 = vld [vmem:[%s2010_s9 + $0xc0] ss:$8 sps:$4 sm:$0xff]  }
  0x56   : > { %v1777_v5 = vld [vmem:[%s2010_s9 + $0x54] ss:$8 sps:$4 sm:$0xff]   ;;  %v1781_v7 = vld [vmem:[%s2010_s9 + $0x50] ss:$8 sps:$4 sm:$0xff]   ;;  %v1783_v9 = vld [vmem:[%s2010_s9 + $0x64] ss:$8 sps:$4 sm:$0xff]  }
  0x57   : > { %v1779_v6 = vld [vmem:[%s2010_s9 + $0xd4] ss:$8 sps:$4 sm:$0xff]   ;;  %v1782_v8 = vld [vmem:[%s2010_s9 + $0xd0] ss:$8 sps:$4 sm:$0xff]   ;;  %v1785_v10 = vld [vmem:[%s2010_s9 + $0xe4] ss:$8 sps:$4 sm:$0xff]  }
  0x58   : > { %1552 = vmatpush3.bf16.msra.mxu0 %v1738_v40  ;;  %1668 = vmatpush3.bf16.msra.mxu1 %v1738_v40  ;;  %v1787_v11 = vld [vmem:[%s2010_s9 + $0x60] ss:$8 sps:$4 sm:$0xff]   ;;  %v1789_v13 = vld [vmem:[%s2010_s9 + $0x74] ss:$8 sps:$4 sm:$0xff]   ;;  %v1793_v15 = vld [vmem:[%s2010_s9 + $0x70] ss:$8 sps:$4 sm:$0xff]  }
  0x59   : > { %1553 = vmatprep.subr.bf16.mxu0 %v1739_v41  ;;  %1661 = vmatprep.subr.bf16.mxu1 %v1739_v41  ;;  %v1788_v12 = vld [vmem:[%s2010_s9 + $0xe0] ss:$8 sps:$4 sm:$0xff]   ;;  %v1791_v14 = vld [vmem:[%s2010_s9 + $0xf4] ss:$8 sps:$4 sm:$0xff]   ;;  %v1794_v16 = vld [vmem:[%s2010_s9 + $0xf0] ss:$8 sps:$4 sm:$0xff]  }
  0x5a   : > { %v409_v19 = vld [vmem:[#allocation2 + $0xb0] sm:$0xff]  ;;  %v425_v21 = vld [vmem:[#allocation2 + $0x38] sm:$0xff]  ;;  %v410_v29 = vld [vmem:[#allocation2] sm:$0xff] }
  0x5b   : > { %v426_v31 = vld [vmem:[#allocation2 + $0x58] sm:$0xff]  ;;  %v427_v41 = vld [vmem:[#allocation2 + $0x40] sm:$0xff] }
  0x5c   : > { %1554 = vmatpush3.bf16.msra.mxu0 %v1740_v42  ;;  %1669 = vmatpush3.bf16.msra.mxu1 %v1740_v42  ;;  %v411_v39 = vld [vmem:[#allocation2 + $0xd8] sm:$0xff] }
  0x5d   : > { %1555 = vmatprep.subr.bf16.mxu0 %v1741_v43  ;;  %1662 = vmatprep.subr.bf16.mxu1 %v1741_v43 }
  0x60   : > { %1556 = vmatpush3.bf16.msra.mxu0 %v1742_v46  ;;  %1670 = vmatpush3.bf16.msra.mxu1 %v1742_v46 }
  0x61   : > { %1557 = vmatprep.subr.bf16.mxu0 %v1743_v47  ;;  %1663 = vmatprep.subr.bf16.mxu1 %v1743_v47 }
  0x64   : > { %1558 = vmatpush3.bf16.msra.mxu0 %v1744_v48  ;;  %1671 = vmatpush3.bf16.msra.mxu1 %v1744_v48 }
  0x65   : > { %1559 = vmatprep.subr.bf16.mxu0 %v1745_v49  ;;  %1664 = vmatprep.subr.bf16.mxu1 %v1745_v49  ;;  %v412_v49 = vld [vmem:[#allocation2 + $0x18] sm:$0xff] }
  0x68   : > { %1560 = vmatpush3.bf16.msra.mxu0 %v1746_v50  ;;  %1672 = vmatpush3.bf16.msra.mxu1 %v1746_v50 }
  0x6b   : > { %794 = vmatmul.mubr.bf16.vlgmr.msra.gmra.mxu0 %v1747_v51  ;;  %858 = vmatmul.mubr.bf16.vlgmr.msra.gmra.mxu1 %v1750_v52  ;;  %v428_v51 = vld [vmem:[#allocation2 + $0xc8] sm:$0xff] }
  0x6c   : > { %801 = vmatprep.mubr.bf16.mxu0 %v1753_v53  ;;  %865 = vmatprep.mubr.bf16.mxu1 %v1755_v54 }
  0x73   : > { %802 = vmatmul.mubr.bf16.gmra.mxu0 %v1757_v55  ;;  %866 = vmatmul.mubr.bf16.gmra.mxu1 %v1758_v56 }
  0x74   : > { %809 = vmatprep.mubr.bf16.mxu0 %v1759_v57  ;;  %873 = vmatprep.mubr.bf16.mxu1 %v1761_v58 }
  0x7b   : > { %810 = vmatmul.mubr.bf16.gmra.mxu0 %v1763_v59  ;;  %874 = vmatmul.mubr.bf16.gmra.mxu1 %v1764_v60  ;;  %v413_v59 = vld [vmem:[#allocation2 + $0x50] sm:$0xff] }
  0x7c   : > { %817 = vmatprep.mubr.bf16.mxu0 %v1765_v61  ;;  %881 = vmatprep.mubr.bf16.mxu1 %v1767_v62  ;;  %v429_v61 = vld [vmem:[#allocation2 + $0xe0] sm:$0xff] }
  0x83   : > { %818 = vmatmul.mubr.bf16.gmra.mxu0 %v1769_v63  ;;  %882 = vmatmul.mubr.bf16.gmra.mxu1 %v1770_v0 }
  0x84   : > { %825 = vmatprep.mubr.bf16.mxu0 %v1771_v1  ;;  %889 = vmatprep.mubr.bf16.mxu1 %v1773_v2 }
  0x8b   : > { %826 = vmatmul.mubr.bf16.gmra.mxu0 %v1775_v3  ;;  %890 = vmatmul.mubr.bf16.gmra.mxu1 %v1776_v4 }
  0x8c   : > { %833 = vmatprep.mubr.bf16.mxu0 %v1777_v5  ;;  %897 = vmatprep.mubr.bf16.mxu1 %v1779_v6  ;;  %v414_v5 = vld [vmem:[#allocation2 + $0x68] sm:$0xff] }
  0x93   : > { %834 = vmatmul.mubr.bf16.gmra.mxu0 %v1781_v7  ;;  %898 = vmatmul.mubr.bf16.gmra.mxu1 %v1782_v8  ;;  %v430_v7 = vld [vmem:[#allocation2 + $0x90] sm:$0xff] }
  0x94   : > { %841 = vmatprep.mubr.bf16.mxu0 %v1783_v9  ;;  %905 = vmatprep.mubr.bf16.mxu1 %v1785_v10 }
  0x9b   : > { %842 = vmatmul.mubr.bf16.gmra.mxu0 %v1787_v11  ;;  %906 = vmatmul.mubr.bf16.gmra.mxu1 %v1788_v12 }
  0x9c   : > { %849 = vmatprep.mubr.bf16.mxu0 %v1789_v13  ;;  %913 = vmatprep.mubr.bf16.mxu1 %v1791_v14 }
  0xa3   : > { %850 = vmatmul.mubr.bf16.gmra.mxu0 %v1793_v15  ;;  %914 = vmatmul.mubr.bf16.gmra.mxu1 %v1794_v16  ;;  %v415_v15 = vld [vmem:[#allocation2 + $0x30] sm:$0xff] }
 0x12b   : > { %v1561_v17 = vpop.f32.mrf.mxu0  ;;  %v1609_v18 = vpop.f32.mrf.mxu1 }
 0x12d   : > { %v1562_v20 = vpop.f32.mrf.mxu0  ;;  %v1610_v22 = vpop.f32.mrf.mxu1 }
 0x12e   : > { %v1563_v23 = vadd.f32 %v1562_v20, %v1561_v17  ;;  %v1611_v24 = vadd.f32 %v1610_v22, %v1609_v18  ;;  %v431_v17 = vld [vmem:[#allocation2 + $0x70] sm:$0xff] }
 0x12f   : > { %v1564_v25 = vpop.f32.mrf.mxu0  ;;  %v1612_v26 = vpop.f32.mrf.mxu1 }
 0x130   : > { %v922_v27 = vadd.f32 %v1563_v23, %v409_v19  ;;  %v938_v28 = vadd.f32 %v1611_v24, %v425_v21 }
 0x131   : > { %v1565_v30 = vpop.f32.mrf.mxu0  ;;  %v1613_v32 = vpop.f32.mrf.mxu1 }
 0x132   : > { %954 = vst [vmem:[#allocation2 + $0xb0] sm:$0xff] %v922_v27  ;;  %970 = vst [vmem:[#allocation2 + $0x38] sm:$0xff] %v938_v28  ;;  %v1566_v33 = vadd.f32 %v1565_v30, %v1564_v25  ;;  %v1614_v34 = vadd.f32 %v1613_v32, %v1612_v26  ;;  %v416_v25 = vld [vmem:[#allocation2 + $0x48] sm:$0xff]  ;;  %v432_v27 = vld [vmem:[#allocation2 + $0xc0] sm:$0xff] }
 0x133   : > { %v1567_v35 = vpop.f32.mrf.mxu0  ;;  %v1615_v36 = vpop.f32.mrf.mxu1 }
 0x134   : > { %v923_v37 = vadd.f32 %v1566_v33, %v410_v29  ;;  %v939_v38 = vadd.f32 %v1614_v34, %v426_v31 }
 0x135   : > { %v1568_v40 = vpop.f32.mrf.mxu0  ;;  %v1616_v42 = vpop.f32.mrf.mxu1 }
 0x136   : > { %955 = vst [vmem:[#allocation2] sm:$0xff] %v923_v37  ;;  %971 = vst [vmem:[#allocation2 + $0x58] sm:$0xff] %v939_v38  ;;  %v1569_v43 = vadd.f32 %v1568_v40, %v1567_v35  ;;  %v1617_v44 = vadd.f32 %v1616_v42, %v1615_v36  ;;  %v417_v35 = vld [vmem:[#allocation2 + $0x80] sm:$0xff]  ;;  %v433_v37 = vld [vmem:[#allocation2 + $0xa8] sm:$0xff] }
 0x137   : > { %v1570_v45 = vpop.f32.mrf.mxu0  ;;  %v1618_v46 = vpop.f32.mrf.mxu1 }
 0x138   : > { %v924_v47 = vadd.f32 %v1569_v43, %v411_v39  ;;  %v940_v48 = vadd.f32 %v1617_v44, %v427_v41 }
 0x139   : > { %v1571_v50 = vpop.f32.mrf.mxu0  ;;  %v1619_v52 = vpop.f32.mrf.mxu1 }
 0x13a   : > { %956 = vst [vmem:[#allocation2 + $0xd8] sm:$0xff] %v924_v47  ;;  %972 = vst [vmem:[#allocation2 + $0x40] sm:$0xff] %v940_v48  ;;  %v1572_v53 = vadd.f32 %v1571_v50, %v1570_v45  ;;  %v1620_v54 = vadd.f32 %v1619_v52, %v1618_v46  ;;  %v418_v45 = vld [vmem:[#allocation2 + $0x88] sm:$0xff]  ;;  %v434_v47 = vld [vmem:[#allocation2 + $0xd0] sm:$0xff] }
 0x13b   : > { %v1573_v55 = vpop.f32.mrf.mxu0  ;;  %v1621_v56 = vpop.f32.mrf.mxu1 }
 0x13c   : > { %v925_v57 = vadd.f32 %v1572_v53, %v412_v49  ;;  %v941_v58 = vadd.f32 %v1620_v54, %v428_v51 }
 0x13d   : > { %v1574_v60 = vpop.f32.mrf.mxu0  ;;  %v1622_v62 = vpop.f32.mrf.mxu1 }
 0x13e   : > { %957 = vst [vmem:[#allocation2 + $0x18] sm:$0xff] %v925_v57  ;;  %973 = vst [vmem:[#allocation2 + $0xc8] sm:$0xff] %v941_v58  ;;  %v1575_v63 = vadd.f32 %v1574_v60, %v1573_v55  ;;  %v1623_v0 = vadd.f32 %v1622_v62, %v1621_v56  ;;  %v419_v55 = vld [vmem:[#allocation2 + $0xe8] sm:$0xff]  ;;  %v435_v57 = vld [vmem:[#allocation2 + $0x10] sm:$0xff] }
 0x13f   : > { %v1576_v1 = vpop.f32.mrf.mxu0  ;;  %v1624_v2 = vpop.f32.mrf.mxu1 }
 0x140   : > { %v926_v3 = vadd.f32 %v1575_v63, %v413_v59  ;;  %v942_v4 = vadd.f32 %v1623_v0, %v429_v61 }
 0x141   : > { %v1577_v6 = vpop.f32.mrf.mxu0  ;;  %v1625_v8 = vpop.f32.mrf.mxu1 }
 0x142   : > { %958 = vst [vmem:[#allocation2 + $0x50] sm:$0xff] %v926_v3  ;;  %974 = vst [vmem:[#allocation2 + $0xe0] sm:$0xff] %v942_v4  ;;  %v1578_v9 = vadd.f32 %v1577_v6, %v1576_v1  ;;  %v1626_v10 = vadd.f32 %v1625_v8, %v1624_v2  ;;  %v420_v1 = vld [vmem:[#allocation2 + $0xb8] sm:$0xff]  ;;  %v436_v3 = vld [vmem:[#allocation2 + $0x28] sm:$0xff] }
 0x143   : > { %v1579_v11 = vpop.f32.mrf.mxu0  ;;  %v1627_v12 = vpop.f32.mrf.mxu1 }
 0x144   : > { %v927_v13 = vadd.f32 %v1578_v9, %v414_v5  ;;  %v943_v14 = vadd.f32 %v1626_v10, %v430_v7 }
 0x145   : > { %v1580_v16 = vpop.f32.mrf.mxu0  ;;  %v1628_v18 = vpop.f32.mrf.mxu1 }
 0x146   : > { %959 = vst [vmem:[#allocation2 + $0x68] sm:$0xff] %v927_v13  ;;  %975 = vst [vmem:[#allocation2 + $0x90] sm:$0xff] %v943_v14  ;;  %v1581_v19 = vadd.f32 %v1580_v16, %v1579_v11  ;;  %v1629_v20 = vadd.f32 %v1628_v18, %v1627_v12  ;;  %v421_v11 = vld [vmem:[#allocation2 + $0x60] sm:$0xff] }
 0x147   : > { %v1582_v21 = vpop.f32.mrf.mxu0  ;;  %v1630_v22 = vpop.f32.mrf.mxu1  ;;  %v437_v13 = vld [vmem:[#allocation2 + $0xa0] sm:$0xff] }
 0x148   : > { %v928_v23 = vadd.f32 %v1581_v19, %v415_v15  ;;  %v944_v24 = vadd.f32 %v1629_v20, %v431_v17 }
 0x149   : > { %v1583_v26 = vpop.f32.mrf.mxu0  ;;  %v1631_v28 = vpop.f32.mrf.mxu1 }
 0x14a   : > { %960 = vst [vmem:[#allocation2 + $0x30] sm:$0xff] %v928_v23  ;;  %976 = vst [vmem:[#allocation2 + $0x70] sm:$0xff] %v944_v24  ;;  %v1584_v29 = vadd.f32 %v1583_v26, %v1582_v21  ;;  %v1632_v30 = vadd.f32 %v1631_v28, %v1630_v22  ;;  %v422_v21 = vld [vmem:[#allocation2 + $0xf0] sm:$0xff]  ;;  %v438_v23 = vld [vmem:[#allocation2 + $0xf8] sm:$0xff] }
 0x14b   : > { %v1585_v31 = vpop.f32.mrf.mxu0  ;;  %v1633_v32 = vpop.f32.mrf.mxu1 }
 0x14c   : > { %v929_v33 = vadd.f32 %v1584_v29, %v416_v25  ;;  %v945_v34 = vadd.f32 %v1632_v30, %v432_v27 }
 0x14d   : > { %v1586_v36 = vpop.f32.mrf.mxu0  ;;  %v1634_v38 = vpop.f32.mrf.mxu1 }
 0x14e   : > { %961 = vst [vmem:[#allocation2 + $0x48] sm:$0xff] %v929_v33  ;;  %977 = vst [vmem:[#allocation2 + $0xc0] sm:$0xff] %v945_v34  ;;  %v1587_v39 = vadd.f32 %v1586_v36, %v1585_v31  ;;  %v1635_v40 = vadd.f32 %v1634_v38, %v1633_v32  ;;  %v423_v31 = vld [vmem:[#allocation2 + $0x8] sm:$0xff]  ;;  %v439_v33 = vld [vmem:[#allocation2 + $0x20] sm:$0xff] }
 0x14f   : > { %v1588_v41 = vpop.f32.mrf.mxu0  ;;  %v1636_v42 = vpop.f32.mrf.mxu1 }
 0x150   : > { %v930_v43 = vadd.f32 %v1587_v39, %v417_v35  ;;  %v946_v44 = vadd.f32 %v1635_v40, %v433_v37 }
 0x151   : > { %v1589_v46 = vpop.f32.mrf.mxu0  ;;  %v1637_v48 = vpop.f32.mrf.mxu1 }
 0x152   : > { %962 = vst [vmem:[#allocation2 + $0x80] sm:$0xff] %v930_v43  ;;  %978 = vst [vmem:[#allocation2 + $0xa8] sm:$0xff] %v946_v44  ;;  %v1590_v49 = vadd.f32 %v1589_v46, %v1588_v41  ;;  %v1638_v50 = vadd.f32 %v1637_v48, %v1636_v42  ;;  %v424_v41 = vld [vmem:[#allocation2 + $0x78] sm:$0xff] }
 0x153   : > { %v1591_v51 = vpop.f32.mrf.mxu0  ;;  %v1639_v52 = vpop.f32.mrf.mxu1  ;;  %v440_v43 = vld [vmem:[#allocation2 + $0x98] sm:$0xff] }
 0x154   : > { %v931_v53 = vadd.f32 %v1590_v49, %v418_v45  ;;  %v947_v54 = vadd.f32 %v1638_v50, %v434_v47 }
 0x155   : > { %v1592_v56 = vpop.f32.mrf.mxu0  ;;  %v1640_v58 = vpop.f32.mrf.mxu1 }
 0x156   : > { %963 = vst [vmem:[#allocation2 + $0x88] sm:$0xff] %v931_v53  ;;  %979 = vst [vmem:[#allocation2 + $0xd0] sm:$0xff] %v947_v54  ;;  %v1593_v59 = vadd.f32 %v1592_v56, %v1591_v51  ;;  %v1641_v60 = vadd.f32 %v1640_v58, %v1639_v52 }
 0x157   : > { %v1594_v61 = vpop.f32.mrf.mxu0  ;;  %v1642_v62 = vpop.f32.mrf.mxu1 }
 0x158   : > { %v932_v63 = vadd.f32 %v1593_v59, %v419_v55  ;;  %v948_v0 = vadd.f32 %v1641_v60, %v435_v57 }
 0x159   : > { %v1595_v2 = vpop.f32.mrf.mxu0  ;;  %v1643_v4 = vpop.f32.mrf.mxu1 }
 0x15a   : > { %964 = vst [vmem:[#allocation2 + $0xe8] sm:$0xff] %v932_v63  ;;  %980 = vst [vmem:[#allocation2 + $0x10] sm:$0xff] %v948_v0  ;;  %v1596_v5 = vadd.f32 %v1595_v2, %v1594_v61  ;;  %v1644_v6 = vadd.f32 %v1643_v4, %v1642_v62 }
 0x15b   : > { %v1597_v7 = vpop.f32.mrf.mxu0  ;;  %v1645_v8 = vpop.f32.mrf.mxu1 }
 0x15c   : > { %v933_v9 = vadd.f32 %v1596_v5, %v420_v1  ;;  %v949_v10 = vadd.f32 %v1644_v6, %v436_v3 }
 0x15d   : > { %v1598_v12 = vpop.f32.mrf.mxu0  ;;  %v1646_v14 = vpop.f32.mrf.mxu1 }
 0x15e   : > { %965 = vst [vmem:[#allocation2 + $0xb8] sm:$0xff] %v933_v9  ;;  %981 = vst [vmem:[#allocation2 + $0x28] sm:$0xff] %v949_v10  ;;  %v1599_v15 = vadd.f32 %v1598_v12, %v1597_v7  ;;  %v1647_v16 = vadd.f32 %v1646_v14, %v1645_v8 }
 0x15f   : > { %v1600_v17 = vpop.f32.mrf.mxu0  ;;  %v1648_v18 = vpop.f32.mrf.mxu1 }
 0x160   : > { %v934_v19 = vadd.f32 %v1599_v15, %v421_v11  ;;  %v950_v20 = vadd.f32 %v1647_v16, %v437_v13 }
 0x161   : > { %v1601_v22 = vpop.f32.mrf.mxu0  ;;  %v1649_v24 = vpop.f32.mrf.mxu1 }
 0x162   : > { %966 = vst [vmem:[#allocation2 + $0x60] sm:$0xff] %v934_v19  ;;  %982 = vst [vmem:[#allocation2 + $0xa0] sm:$0xff] %v950_v20  ;;  %v1602_v25 = vadd.f32 %v1601_v22, %v1600_v17  ;;  %v1650_v26 = vadd.f32 %v1649_v24, %v1648_v18 }
 0x163   : > { %v1603_v27 = vpop.f32.mrf.mxu0  ;;  %v1651_v28 = vpop.f32.mrf.mxu1 }
 0x164   : > { %v935_v29 = vadd.f32 %v1602_v25, %v422_v21  ;;  %v951_v30 = vadd.f32 %v1650_v26, %v438_v23 }
 0x165   : > { %v1604_v32 = vpop.f32.mrf.mxu0  ;;  %v1652_v34 = vpop.f32.mrf.mxu1 }
 0x166   : > { %967 = vst [vmem:[#allocation2 + $0xf0] sm:$0xff] %v935_v29  ;;  %983 = vst [vmem:[#allocation2 + $0xf8] sm:$0xff] %v951_v30  ;;  %v1605_v35 = vadd.f32 %v1604_v32, %v1603_v27  ;;  %v1653_v36 = vadd.f32 %v1652_v34, %v1651_v28 }
 0x167   : > { %v1606_v37 = vpop.f32.mrf.mxu0  ;;  %v1654_v38 = vpop.f32.mrf.mxu1 }
 0x168   : > { %v936_v39 = vadd.f32 %v1605_v35, %v423_v31  ;;  %v952_v40 = vadd.f32 %v1653_v36, %v439_v33 }
 0x169   : > { %v1607_v42 = vpop.f32.mrf.mxu0  ;;  %v1655_v44 = vpop.f32.mrf.mxu1 }
 0x16a   : > { %968 = vst [vmem:[#allocation2 + $0x8] sm:$0xff] %v936_v39  ;;  %984 = vst [vmem:[#allocation2 + $0x20] sm:$0xff] %v952_v40  ;;  %v1608_v45 = vadd.f32 %v1607_v42, %v1606_v37  ;;  %v1656_v46 = vadd.f32 %v1655_v44, %v1654_v38  ;;  %989 = sbr.rel (%p1383_p13) target bundleno = 385 (0x181), region = 74 }
 0x16c   : > { %v937_v47 = vadd.f32 %v1608_v45, %v424_v41  ;;  %v953_v48 = vadd.f32 %v1656_v46, %v440_v43 }
 0x16e   : > { %969 = vst [vmem:[#allocation2 + $0x78] sm:$0xff] %v937_v47  ;;  %985 = vst [vmem:[#allocation2 + $0x98] sm:$0xff] %v953_v48 }
 0x16f   : > { %v990_v49 = vld [vmem:[#allocation2 + $0xb0] sm:$0xff]  ;;  %v991_v50 = vld [vmem:[#allocation2] sm:$0xff]  ;;  %v992_v51 = vld [vmem:[#allocation2 + $0xd8] sm:$0xff] }
 0x170   : > { %v1022_v52 = vmax.f32 %v990_v49, 0.0  ;;  %v1023_v53 = vmax.f32 %v991_v50, 0.0  ;;  %v993_v54 = vld [vmem:[#allocation2 + $0x18] sm:$0xff]  ;;  %v1024_v55 = vmax.f32 %v992_v51, 0.0  ;;  %v994_v56 = vld [vmem:[#allocation2 + $0x50] sm:$0xff]  ;;  %v995_v57 = vld [vmem:[#allocation2 + $0x68] sm:$0xff] }
 0x171   : > { %v1025_v58 = vmax.f32 %v993_v54, 0.0  ;;  %v1026_v59 = vmax.f32 %v994_v56, 0.0  ;;  %v1027_v60 = vmax.f32 %v995_v57, 0.0  ;;  %v996_v61 = vld [vmem:[#allocation2 + $0x30] sm:$0xff]  ;;  %v997_v62 = vld [vmem:[#allocation2 + $0x48] sm:$0xff]  ;;  %v998_v63 = vld [vmem:[#allocation2 + $0x80] sm:$0xff] }
 0x172   : > { %v1453_v0 = vpack.c.bf16 %v1023_v53, %v1022_v52  ;;  %v1028_v1 = vmax.f32 %v996_v61, 0.0  ;;  %v1029_v2 = vmax.f32 %v997_v62, 0.0  ;;  %v999_v3 = vld [vmem:[#allocation2 + $0x88] sm:$0xff]  ;;  %v1030_v4 = vmax.f32 %v998_v63, 0.0  ;;  %v1001_v6 = vld [vmem:[#allocation2 + $0xb8] sm:$0xff]  ;;  %v1002_v11 = vld [vmem:[#allocation2 + $0x60] sm:$0xff] }
 0x173   : > { %v1000_v5 = vld [vmem:[#allocation2 + $0xe8] sm:$0xff]  ;;  %v1458_v7 = vpack.c.bf16 %v1025_v58, %v1024_v55  ;;  %v1463_v8 = vpack.c.bf16 %v1027_v60, %v1026_v59  ;;  %v1031_v9 = vmax.f32 %v999_v3, 0.0  ;;  %v1003_v12 = vld [vmem:[#allocation2 + $0xf0] sm:$0xff]  ;;  %v1033_v15 = vmax.f32 %v1001_v6, 0.0  ;;  %v1006_v19 = vld [vmem:[#allocation2 + $0x38] sm:$0xff] }
 0x174   : > { %v1032_v10 = vmax.f32 %v1000_v5, 0.0  ;;  %v1004_v13 = vld [vmem:[#allocation2 + $0x8] sm:$0xff]  ;;  %1454 = vst [vmem:[%s2008_s26] sm:$0xff] %v1453_v0   ;;  %v1468_v14 = vpack.c.bf16 %v1029_v2, %v1028_v1  ;;  %v1034_v16 = vmax.f32 %v1002_v11, 0.0  ;;  %v1035_v17 = vmax.f32 %v1003_v12, 0.0  ;;  %v1007_v20 = vld [vmem:[#allocation2 + $0x58] sm:$0xff]  ;;  %v1008_v25 = vld [vmem:[#allocation2 + $0x40] sm:$0xff] }
 0x175   : > { %v1005_v18 = vld [vmem:[#allocation2 + $0x78] sm:$0xff]  ;;  %1530 = vst [vmem:[%s2008_s26 + $0x8] sm:$0xff] %v1458_v7   ;;  %1531 = vst [vmem:[%s2008_s26 + $0x10] sm:$0xff] %v1463_v8   ;;  %v1473_v21 = vpack.c.bf16 %v1031_v9, %v1030_v4  ;;  %v1036_v22 = vmax.f32 %v1004_v13, 0.0  ;;  %v1038_v24 = vmax.f32 %v1006_v19, 0.0  ;;  %v1009_v26 = vld [vmem:[#allocation2 + $0xc8] sm:$0xff] }
 0x176   : > { %v1037_v23 = vmax.f32 %v1005_v18, 0.0  ;;  %v1010_v27 = vld [vmem:[#allocation2 + $0xe0] sm:$0xff]  ;;  %1532 = vst [vmem:[%s2008_s26 + $0x18] sm:$0xff] %v1468_v14   ;;  %v1478_v28 = vpack.c.bf16 %v1033_v15, %v1032_v10  ;;  %v1483_v29 = vpack.c.bf16 %v1035_v17, %v1034_v16  ;;  %v1039_v30 = vmax.f32 %v1007_v20, 0.0  ;;  %v1011_v32 = vld [vmem:[#allocation2 + $0x90] sm:$0xff]  ;;  %v1014_v39 = vld [vmem:[#allocation2 + $0xa8] sm:$0xff] }
 0x177   : > { %v1040_v31 = vmax.f32 %v1008_v25, 0.0  ;;  %v1012_v33 = vld [vmem:[#allocation2 + $0x70] sm:$0xff]  ;;  %v1013_v34 = vld [vmem:[#allocation2 + $0xc0] sm:$0xff]  ;;  %1533 = vst [vmem:[%s2008_s26 + $0x20] sm:$0xff] %v1473_v21   ;;  %v1041_v36 = vmax.f32 %v1009_v26, 0.0  ;;  %v1042_v37 = vmax.f32 %v1010_v27, 0.0 }
 0x178   : > { %v1488_v35 = vpack.c.bf16 %v1037_v23, %v1036_v22  ;;  %v1043_v38 = vmax.f32 %v1011_v32, 0.0  ;;  %v1015_v40 = vld [vmem:[#allocation2 + $0xd0] sm:$0xff]  ;;  %1534 = vst [vmem:[%s2008_s26 + $0x28] sm:$0xff] %v1478_v28   ;;  %1535 = vst [vmem:[%s2008_s26 + $0x30] sm:$0xff] %v1483_v29   ;;  %v1493_v42 = vpack.c.bf16 %v1039_v30, %v1038_v24  ;;  %v1044_v43 = vmax.f32 %v1012_v33, 0.0  ;;  %v1017_v46 = vld [vmem:[#allocation2 + $0x28] sm:$0xff] }
 0x179   : > { %v1016_v41 = vld [vmem:[#allocation2 + $0x10] sm:$0xff]  ;;  %v1045_v44 = vmax.f32 %v1013_v34, 0.0  ;;  %v1046_v45 = vmax.f32 %v1014_v39, 0.0  ;;  %v1018_v47 = vld [vmem:[#allocation2 + $0xa0] sm:$0xff]  ;;  %v1019_v48 = vld [vmem:[#allocation2 + $0xf8] sm:$0xff]  ;;  %v1498_v49 = vpack.c.bf16 %v1041_v36, %v1040_v31  ;;  %v1047_v51 = vmax.f32 %v1015_v40, 0.0 }
 0x17a   : > { %1536 = vst [vmem:[%s2008_s26 + $0x38] sm:$0xff] %v1488_v35   ;;  %v1503_v50 = vpack.c.bf16 %v1043_v38, %v1042_v37  ;;  %v1048_v52 = vmax.f32 %v1016_v41, 0.0  ;;  %v1020_v53 = vld [vmem:[#allocation2 + $0x20] sm:$0xff]  ;;  %v1021_v54 = vld [vmem:[#allocation2 + $0x98] sm:$0xff]  ;;  %1537 = vst [vmem:[%s2008_s26 + $0x40] sm:$0xff] %v1493_v42   ;;  %v1049_v56 = vmax.f32 %v1017_v46, 0.0 }
 0x17b   : > { %v1508_v55 = vpack.c.bf16 %v1045_v44, %v1044_v43  ;;  %v1050_v57 = vmax.f32 %v1018_v47, 0.0  ;;  %v1051_v58 = vmax.f32 %v1019_v48, 0.0  ;;  %1538 = vst [vmem:[%s2008_s26 + $0x48] sm:$0xff] %v1498_v49   ;;  %v1513_v59 = vpack.c.bf16 %v1047_v51, %v1046_v45 }
 0x17c   : > { %1539 = vst [vmem:[%s2008_s26 + $0x50] sm:$0xff] %v1503_v50   ;;  %v1052_v60 = vmax.f32 %v1020_v53, 0.0  ;;  %v1053_v61 = vmax.f32 %v1021_v54, 0.0  ;;  %v1518_v62 = vpack.c.bf16 %v1049_v56, %v1048_v52 }
 0x17d   : > { %1540 = vst [vmem:[%s2008_s26 + $0x58] sm:$0xff] %v1508_v55   ;;  %v1523_v63 = vpack.c.bf16 %v1051_v58, %v1050_v57  ;;  %1541 = vst [vmem:[%s2008_s26 + $0x60] sm:$0xff] %v1513_v59  }
 0x17e   : > { %v1528_v0 = vpack.c.bf16 %v1053_v61, %v1052_v60  ;;  %1542 = vst [vmem:[%s2008_s26 + $0x68] sm:$0xff] %v1518_v62  }
 0x17f   : > { %1543 = vst [vmem:[%s2008_s26 + $0x70] sm:$0xff] %v1523_v63  }
 0x180   : > { %1544 = vst [vmem:[%s2008_s26 + $0x78] sm:$0xff] %v1528_v0  }
 0x181 PF: > { %s12_s15 = sadd.s32 1, %s1849_s15   ;;  %s2102_s9 = smov %s1829_s10 }
 0x182   : > { %p9_p0 = scmp.ge.s32.totalorder %s12_s15, 30   ;;  %s2103_s10 = smov %s1918_s22 }
 0x183   : > { %s2104_s11 = smov %s1841_s13  ;;  %s2105_s12 = smov %s1845_s14 }
 0x184   : > { %s2106_s13 = smov %s2109_s16  ;;  %s2107_s14 = smov %s2113_s17 }
 0x185   :  { %11 = sbr.rel (!%p9_p0) target bundleno = 4 (0x4), region = 112 }

// kernel: video_resnet_forward.19
= control target key start
LH: loop header
LB: loop body
LE: loop exit
PB: predicated region body
PF: predicated region fallthrough
CT: control target
= control target key end

     0   :  { %s1318_s9 = smov 0   ;;  %s1320_s10 = smov 0   ;;  %s1503_s0 = inlined_call_operand.vmem [shape: bf16[1024,128], index: 0, kind: input, shape index: {}]   ;;  %s1504_s1 = inlined_call_operand.vmem [shape: bf16[128,256], index: 1, kind: input, shape index: {}]   ;;  %s1505_s2 = inlined_call_operand.vmem [shape: f32[1024,256], index: 2, kind: output, shape index: {}]  }
   0x1   :  { %s1322_s11 = smov 0  }
   0x2 LB: > { %s31_s12 = sadd.s32 1, %s1296_s10  ;;  %p1156_p0 = scmp.ge.s32.totalorder %s1300_s11, 1  ;;  %s1300_s11 = sphi %s1322_s11, %s12_s11   ;;  %s1296_s10 = sphi %s1320_s10, %s1507_s10   ;;  %s1292_s9 = sphi %s1318_s9, %s1506_s9  }
   0x3   : > { %p33_p1 = scmp.ge.s32.totalorder %s31_s12, 4  ;;  %p158_p2 = scmp.lt.s32.totalorder %s1300_s11, 5 }
   0x5   : > { %s1509_s12 = smov (%p33_p1, %s31_s12), 0  ;;  %p159_p3 = pnand %p1156_p0, %p158_p2 }
   0x6   : > { %s1157_s15 = sshll.u32 (!%p159_p3), %s1292_s9, 5 }
   0x7   : > { %162 = sbr.rel (%p159_p3) target bundleno = 302 (0x12e), region = 28  ;;  %p199_p4 = scmp.lt.s32.totalorder (!%p159_p3), %s1157_s15, 127 }
   0xc   : > { %v1238_v0 = vld [vmem:[%s1504_s1 + $0x74] ss:$8 sps:$4 sm:$0xff]   ;;  %v1240_v1 = vld [vmem:[%s1504_s1 + $0x70] ss:$8 sps:$4 sm:$0xff]   ;;  %v1302_v2 = vmov 0   ;;  %s1511_s15 = smov (!%p199_p4, %s1157_s15), 127 }
   0xd   : > { %620 = vmatprep.mubr.bf16.mxu0 %v1302_v2  ;;  %700 = vmatprep.mubr.bf16.mxu1 %v1302_v2  ;;  %v1241_v3 = vld [vmem:[%s1504_s1 + $0x64] ss:$8 sps:$4 sm:$0xff]   ;;  %v1243_v4 = vld [vmem:[%s1504_s1 + $0x60] ss:$8 sps:$4 sm:$0xff]   ;;  %v1244_v5 = vld [vmem:[%s1504_s1 + $0x54] ss:$8 sps:$4 sm:$0xff]  }
   0xe   : > { %588 = vmatprep.subr.bf16.mxu0 %v1238_v0  ;;  %1197 = vmatprep.subr.bf16.mxu1 %v1238_v0  ;;  %s1158_s24 = sshll.u32 %s1511_s15, 2  ;;  %v1246_v6 = vld [vmem:[%s1504_s1 + $0x50] ss:$8 sps:$4 sm:$0xff]   ;;  %v1247_v7 = vld [vmem:[%s1504_s1 + $0x44] ss:$8 sps:$4 sm:$0xff]   ;;  %s1196_s26 = sshll.u32 %s1511_s15, 4 }
   0xf   : > { %589 = vmatpush1.bf16.msra.mxu0 %v1240_v1  ;;  %1205 = vmatpush1.bf16.msra.mxu1 %v1240_v1  ;;  %s1365_s3 = scalar_lea.vmem %s1503_s0, %s1158_s24  ;;  %v1249_v8 = vld [vmem:[%s1504_s1 + $0x40] ss:$8 sps:$4 sm:$0xff]   ;;  %v1250_v9 = vld [vmem:[%s1504_s1 + $0x34] ss:$8 sps:$4 sm:$0xff]   ;;  %v1252_v10 = vld [vmem:[%s1504_s1 + $0x30] ss:$8 sps:$4 sm:$0xff]   ;;  %s1428_s29 = scalar_lea.vmem %s1505_s2, %s1196_s26 }
  0x10   : > { %590 = vmatprep.subr.bf16.mxu0 %v1241_v3  ;;  %1198 = vmatprep.subr.bf16.mxu1 %v1241_v3  ;;  %v1253_v11 = vld [vmem:[%s1504_s1 + $0x24] ss:$8 sps:$4 sm:$0xff]   ;;  %v1255_v12 = vld [vmem:[%s1504_s1 + $0x20] ss:$8 sps:$4 sm:$0xff]   ;;  %v1256_v13 = vld [vmem:[%s1504_s1 + $0x14] ss:$8 sps:$4 sm:$0xff]  }
  0x11   : > { %v1258_v14 = vld [vmem:[%s1504_s1 + $0x10] ss:$8 sps:$4 sm:$0xff]   ;;  %v1259_v15 = vld [vmem:[%s1504_s1 + $0x4] ss:$8 sps:$4 sm:$0xff]   ;;  %v1261_v16 = vld [vmem:[%s1504_s1] ss:$8 sps:$4 sm:$0xff]  }
  0x12   : > { %v1262_v17 = vld [vmem:[%s1365_s3] sm:$0xff]   ;;  %v1264_v19 = vld [vmem:[%s1365_s3 + $0x8] sm:$0xff]   ;;  %v1266_v21 = vld [vmem:[%s1365_s3 + $0x10] sm:$0xff]  }
  0x13   : > { %591 = vmatpush1.bf16.msra.mxu0 %v1243_v4  ;;  %1206 = vmatpush1.bf16.msra.mxu1 %v1243_v4  ;;  %v1263_v18 = vld [vmem:[%s1365_s3 + $0x40] sm:$0xff]   ;;  %v1265_v20 = vld [vmem:[%s1365_s3 + $0x48] sm:$0xff]   ;;  %v1267_v22 = vld [vmem:[%s1365_s3 + $0x50] sm:$0xff]  }
  0x14   : > { %592 = vmatprep.subr.bf16.mxu0 %v1244_v5  ;;  %1199 = vmatprep.subr.bf16.mxu1 %v1244_v5  ;;  %v1268_v23 = vld [vmem:[%s1365_s3 + $0x18] sm:$0xff]   ;;  %v1270_v25 = vld [vmem:[%s1365_s3 + $0x20] sm:$0xff]   ;;  %v1272_v27 = vld [vmem:[%s1365_s3 + $0x28] sm:$0xff]  }
  0x15   : > { %v1269_v24 = vld [vmem:[%s1365_s3 + $0x58] sm:$0xff]   ;;  %v1271_v26 = vld [vmem:[%s1365_s3 + $0x60] sm:$0xff]   ;;  %v1273_v28 = vld [vmem:[%s1365_s3 + $0x68] sm:$0xff]  }
  0x16   : > { %v1274_v29 = vld [vmem:[%s1365_s3 + $0x30] sm:$0xff]   ;;  %v1276_v31 = vld [vmem:[%s1365_s3 + $0x38] sm:$0xff]  }
  0x17   : > { %593 = vmatpush1.bf16.msra.mxu0 %v1246_v6  ;;  %1207 = vmatpush1.bf16.msra.mxu1 %v1246_v6  ;;  %v1275_v30 = vld [vmem:[%s1365_s3 + $0x70] sm:$0xff]   ;;  %v1277_v32 = vld [vmem:[%s1365_s3 + $0x78] sm:$0xff]  }
  0x18   : > { %594 = vmatprep.subr.bf16.mxu0 %v1247_v7  ;;  %1200 = vmatprep.subr.bf16.mxu1 %v1247_v7 }
  0x1b   : > { %595 = vmatpush1.bf16.msra.mxu0 %v1249_v8  ;;  %1208 = vmatpush1.bf16.msra.mxu1 %v1249_v8 }
  0x1c   : > { %596 = vmatprep.subr.bf16.mxu0 %v1250_v9  ;;  %1201 = vmatprep.subr.bf16.mxu1 %v1250_v9 }
  0x1f   : > { %597 = vmatpush1.bf16.msra.mxu0 %v1252_v10  ;;  %1209 = vmatpush1.bf16.msra.mxu1 %v1252_v10 }
  0x20   : > { %598 = vmatprep.subr.bf16.mxu0 %v1253_v11  ;;  %1202 = vmatprep.subr.bf16.mxu1 %v1253_v11 }
  0x23   : > { %599 = vmatpush1.bf16.msra.mxu0 %v1255_v12  ;;  %1210 = vmatpush1.bf16.msra.mxu1 %v1255_v12 }
  0x24   : > { %600 = vmatprep.subr.bf16.mxu0 %v1256_v13  ;;  %1203 = vmatprep.subr.bf16.mxu1 %v1256_v13 }
  0x27   : > { %601 = vmatpush1.bf16.msra.mxu0 %v1258_v14  ;;  %1211 = vmatpush1.bf16.msra.mxu1 %v1258_v14 }
  0x28   : > { %602 = vmatprep.subr.bf16.mxu0 %v1259_v15  ;;  %1204 = vmatprep.subr.bf16.mxu1 %v1259_v15 }
  0x2b   : > { %603 = vmatpush1.bf16.msra.mxu0 %v1261_v16  ;;  %1212 = vmatpush1.bf16.msra.mxu1 %v1261_v16 }
  0x2e   : > { %621 = vmatmul.mubr.bf16.vlgmr.msra.gmra.mxu0 %v1262_v17  ;;  %701 = vmatmul.mubr.bf16.vlgmr.msra.gmra.mxu1 %v1263_v18 }
  0x2f   : > { %630 = vmatprep.mubr.bf16.mxu0 %v1302_v2  ;;  %710 = vmatprep.mubr.bf16.mxu1 %v1302_v2 }
  0x36   : > { %631 = vmatmul.mubr.bf16.gmra.mxu0 %v1264_v19  ;;  %711 = vmatmul.mubr.bf16.gmra.mxu1 %v1265_v20 }
  0x37   : > { %640 = vmatprep.mubr.bf16.mxu0 %v1302_v2  ;;  %720 = vmatprep.mubr.bf16.mxu1 %v1302_v2 }
  0x3e   : > { %641 = vmatmul.mubr.bf16.gmra.mxu0 %v1266_v21  ;;  %721 = vmatmul.mubr.bf16.gmra.mxu1 %v1267_v22 }
  0x3f   : > { %650 = vmatprep.mubr.bf16.mxu0 %v1302_v2  ;;  %730 = vmatprep.mubr.bf16.mxu1 %v1302_v2 }
  0x46   : > { %651 = vmatmul.mubr.bf16.gmra.mxu0 %v1268_v23  ;;  %731 = vmatmul.mubr.bf16.gmra.mxu1 %v1269_v24 }
  0x47   : > { %660 = vmatprep.mubr.bf16.mxu0 %v1302_v2  ;;  %740 = vmatprep.mubr.bf16.mxu1 %v1302_v2 }
  0x4e   : > { %661 = vmatmul.mubr.bf16.gmra.mxu0 %v1270_v25  ;;  %741 = vmatmul.mubr.bf16.gmra.mxu1 %v1271_v26 }
  0x4f   : > { %670 = vmatprep.mubr.bf16.mxu0 %v1302_v2  ;;  %750 = vmatprep.mubr.bf16.mxu1 %v1302_v2 }
  0x56   : > { %671 = vmatmul.mubr.bf16.gmra.mxu0 %v1272_v27  ;;  %751 = vmatmul.mubr.bf16.gmra.mxu1 %v1273_v28 }
  0x57   : > { %680 = vmatprep.mubr.bf16.mxu0 %v1302_v2  ;;  %760 = vmatprep.mubr.bf16.mxu1 %v1302_v2 }
  0x5e   : > { %681 = vmatmul.mubr.bf16.gmra.mxu0 %v1274_v29  ;;  %761 = vmatmul.mubr.bf16.gmra.mxu1 %v1275_v30 }
  0x5f   : > { %690 = vmatprep.mubr.bf16.mxu0 %v1302_v2  ;;  %770 = vmatprep.mubr.bf16.mxu1 %v1302_v2 }
  0x66   : > { %691 = vmatmul.mubr.bf16.gmra.mxu0 %v1276_v31  ;;  %771 = vmatmul.mubr.bf16.gmra.mxu1 %v1277_v32 }
  0xee   : > { %v622_v33 = vpop.f32.mrf.mxu0  ;;  %v702_v34 = vpop.f32.mrf.mxu1 }
  0xef   : > { %976 = vst [vmem:[%s1428_s29] sm:$0xff] %v622_v33  ;;  %1008 = vst [vmem:[%s1428_s29 + $0x100] sm:$0xff] %v702_v34 }
  0xf0   : > { %v624_v35 = vpop.f32.mrf.mxu0  ;;  %v704_v36 = vpop.f32.mrf.mxu1 }
  0xf1   : > { %977 = vst [vmem:[%s1428_s29 + $0x8] sm:$0xff] %v624_v35  ;;  %1009 = vst [vmem:[%s1428_s29 + $0x108] sm:$0xff] %v704_v36 }
  0xf2   : > { %v626_v37 = vpop.f32.mrf.mxu0  ;;  %v706_v38 = vpop.f32.mrf.mxu1 }
  0xf3   : > { %978 = vst [vmem:[%s1428_s29 + $0x10] sm:$0xff] %v626_v37  ;;  %1010 = vst [vmem:[%s1428_s29 + $0x110] sm:$0xff] %v706_v38 }
  0xf4   : > { %v628_v39 = vpop.f32.mrf.mxu0  ;;  %v708_v40 = vpop.f32.mrf.mxu1 }
  0xf5   : > { %979 = vst [vmem:[%s1428_s29 + $0x18] sm:$0xff] %v628_v39  ;;  %1011 = vst [vmem:[%s1428_s29 + $0x118] sm:$0xff] %v708_v40 }
  0xf6   : > { %v632_v41 = vpop.f32.mrf.mxu0  ;;  %v712_v42 = vpop.f32.mrf.mxu1 }
  0xf7   : > { %980 = vst [vmem:[%s1428_s29 + $0x20] sm:$0xff] %v632_v41  ;;  %1012 = vst [vmem:[%s1428_s29 + $0x120] sm:$0xff] %v712_v42 }
  0xf8   : > { %v634_v43 = vpop.f32.mrf.mxu0  ;;  %v714_v44 = vpop.f32.mrf.mxu1 }
  0xf9   : > { %981 = vst [vmem:[%s1428_s29 + $0x28] sm:$0xff] %v634_v43  ;;  %1013 = vst [vmem:[%s1428_s29 + $0x128] sm:$0xff] %v714_v44 }
  0xfa   : > { %v636_v45 = vpop.f32.mrf.mxu0  ;;  %v716_v46 = vpop.f32.mrf.mxu1 }
  0xfb   : > { %982 = vst [vmem:[%s1428_s29 + $0x30] sm:$0xff] %v636_v45  ;;  %1014 = vst [vmem:[%s1428_s29 + $0x130] sm:$0xff] %v716_v46 }
  0xfc   : > { %v638_v47 = vpop.f32.mrf.mxu0  ;;  %v718_v48 = vpop.f32.mrf.mxu1 }
  0xfd   : > { %983 = vst [vmem:[%s1428_s29 + $0x38] sm:$0xff] %v638_v47  ;;  %1015 = vst [vmem:[%s1428_s29 + $0x138] sm:$0xff] %v718_v48 }
  0xfe   : > { %v642_v49 = vpop.f32.mrf.mxu0  ;;  %v722_v50 = vpop.f32.mrf.mxu1 }
  0xff   : > { %984 = vst [vmem:[%s1428_s29 + $0x40] sm:$0xff] %v642_v49  ;;  %1016 = vst [vmem:[%s1428_s29 + $0x140] sm:$0xff] %v722_v50 }
 0x100   : > { %v644_v51 = vpop.f32.mrf.mxu0  ;;  %v724_v52 = vpop.f32.mrf.mxu1 }
 0x101   : > { %985 = vst [vmem:[%s1428_s29 + $0x48] sm:$0xff] %v644_v51  ;;  %1017 = vst [vmem:[%s1428_s29 + $0x148] sm:$0xff] %v724_v52 }
 0x102   : > { %v646_v53 = vpop.f32.mrf.mxu0  ;;  %v726_v54 = vpop.f32.mrf.mxu1 }
 0x103   : > { %986 = vst [vmem:[%s1428_s29 + $0x50] sm:$0xff] %v646_v53  ;;  %1018 = vst [vmem:[%s1428_s29 + $0x150] sm:$0xff] %v726_v54 }
 0x104   : > { %v648_v55 = vpop.f32.mrf.mxu0  ;;  %v728_v56 = vpop.f32.mrf.mxu1 }
 0x105   : > { %987 = vst [vmem:[%s1428_s29 + $0x58] sm:$0xff] %v648_v55  ;;  %1019 = vst [vmem:[%s1428_s29 + $0x158] sm:$0xff] %v728_v56 }
 0x106   : > { %v652_v57 = vpop.f32.mrf.mxu0  ;;  %v732_v58 = vpop.f32.mrf.mxu1 }
 0x107   : > { %988 = vst [vmem:[%s1428_s29 + $0x60] sm:$0xff] %v652_v57  ;;  %1020 = vst [vmem:[%s1428_s29 + $0x160] sm:$0xff] %v732_v58 }
 0x108   : > { %v654_v59 = vpop.f32.mrf.mxu0  ;;  %v734_v60 = vpop.f32.mrf.mxu1 }
 0x109   : > { %989 = vst [vmem:[%s1428_s29 + $0x68] sm:$0xff] %v654_v59  ;;  %1021 = vst [vmem:[%s1428_s29 + $0x168] sm:$0xff] %v734_v60 }
 0x10a   : > { %v656_v61 = vpop.f32.mrf.mxu0  ;;  %v736_v62 = vpop.f32.mrf.mxu1 }
 0x10b   : > { %990 = vst [vmem:[%s1428_s29 + $0x70] sm:$0xff] %v656_v61  ;;  %1022 = vst [vmem:[%s1428_s29 + $0x170] sm:$0xff] %v736_v62 }
 0x10c   : > { %v658_v63 = vpop.f32.mrf.mxu0  ;;  %v738_v0 = vpop.f32.mrf.mxu1 }
 0x10d   : > { %991 = vst [vmem:[%s1428_s29 + $0x78] sm:$0xff] %v658_v63  ;;  %1023 = vst [vmem:[%s1428_s29 + $0x178] sm:$0xff] %v738_v0 }
 0x10e   : > { %v662_v1 = vpop.f32.mrf.mxu0  ;;  %v742_v2 = vpop.f32.mrf.mxu1 }
 0x10f   : > { %992 = vst [vmem:[%s1428_s29 + $0x80] sm:$0xff] %v662_v1  ;;  %1024 = vst [vmem:[%s1428_s29 + $0x180] sm:$0xff] %v742_v2 }
 0x110   : > { %v664_v3 = vpop.f32.mrf.mxu0  ;;  %v744_v4 = vpop.f32.mrf.mxu1 }
 0x111   : > { %993 = vst [vmem:[%s1428_s29 + $0x88] sm:$0xff] %v664_v3  ;;  %1025 = vst [vmem:[%s1428_s29 + $0x188] sm:$0xff] %v744_v4 }
 0x112   : > { %v666_v5 = vpop.f32.mrf.mxu0  ;;  %v746_v6 = vpop.f32.mrf.mxu1 }
 0x113   : > { %994 = vst [vmem:[%s1428_s29 + $0x90] sm:$0xff] %v666_v5  ;;  %1026 = vst [vmem:[%s1428_s29 + $0x190] sm:$0xff] %v746_v6 }
 0x114   : > { %v668_v7 = vpop.f32.mrf.mxu0  ;;  %v748_v8 = vpop.f32.mrf.mxu1 }
 0x115   : > { %995 = vst [vmem:[%s1428_s29 + $0x98] sm:$0xff] %v668_v7  ;;  %1027 = vst [vmem:[%s1428_s29 + $0x198] sm:$0xff] %v748_v8 }
 0x116   : > { %v672_v9 = vpop.f32.mrf.mxu0  ;;  %v752_v10 = vpop.f32.mrf.mxu1 }
 0x117   : > { %996 = vst [vmem:[%s1428_s29 + $0xa0] sm:$0xff] %v672_v9  ;;  %1028 = vst [vmem:[%s1428_s29 + $0x1a0] sm:$0xff] %v752_v10 }
 0x118   : > { %v674_v11 = vpop.f32.mrf.mxu0  ;;  %v754_v12 = vpop.f32.mrf.mxu1 }
 0x119   : > { %997 = vst [vmem:[%s1428_s29 + $0xa8] sm:$0xff] %v674_v11  ;;  %1029 = vst [vmem:[%s1428_s29 + $0x1a8] sm:$0xff] %v754_v12 }
 0x11a   : > { %v676_v13 = vpop.f32.mrf.mxu0  ;;  %v756_v14 = vpop.f32.mrf.mxu1 }
 0x11b   : > { %998 = vst [vmem:[%s1428_s29 + $0xb0] sm:$0xff] %v676_v13  ;;  %1030 = vst [vmem:[%s1428_s29 + $0x1b0] sm:$0xff] %v756_v14 }
 0x11c   : > { %v678_v15 = vpop.f32.mrf.mxu0  ;;  %v758_v16 = vpop.f32.mrf.mxu1 }
 0x11d   : > { %999 = vst [vmem:[%s1428_s29 + $0xb8] sm:$0xff] %v678_v15  ;;  %1031 = vst [vmem:[%s1428_s29 + $0x1b8] sm:$0xff] %v758_v16 }
 0x11e   : > { %v682_v17 = vpop.f32.mrf.mxu0  ;;  %v762_v18 = vpop.f32.mrf.mxu1 }
 0x11f   : > { %1000 = vst [vmem:[%s1428_s29 + $0xc0] sm:$0xff] %v682_v17  ;;  %1032 = vst [vmem:[%s1428_s29 + $0x1c0] sm:$0xff] %v762_v18 }
 0x120   : > { %v684_v19 = vpop.f32.mrf.mxu0  ;;  %v764_v20 = vpop.f32.mrf.mxu1 }
 0x121   : > { %1001 = vst [vmem:[%s1428_s29 + $0xc8] sm:$0xff] %v684_v19  ;;  %1033 = vst [vmem:[%s1428_s29 + $0x1c8] sm:$0xff] %v764_v20 }
 0x122   : > { %v686_v21 = vpop.f32.mrf.mxu0  ;;  %v766_v22 = vpop.f32.mrf.mxu1 }
 0x123   : > { %1002 = vst [vmem:[%s1428_s29 + $0xd0] sm:$0xff] %v686_v21  ;;  %1034 = vst [vmem:[%s1428_s29 + $0x1d0] sm:$0xff] %v766_v22 }
 0x124   : > { %v688_v23 = vpop.f32.mrf.mxu0  ;;  %v768_v24 = vpop.f32.mrf.mxu1 }
 0x125   : > { %1003 = vst [vmem:[%s1428_s29 + $0xd8] sm:$0xff] %v688_v23  ;;  %1035 = vst [vmem:[%s1428_s29 + $0x1d8] sm:$0xff] %v768_v24 }
 0x126   : > { %v692_v25 = vpop.f32.mrf.mxu0  ;;  %v772_v26 = vpop.f32.mrf.mxu1 }
 0x127   : > { %1004 = vst [vmem:[%s1428_s29 + $0xe0] sm:$0xff] %v692_v25  ;;  %1036 = vst [vmem:[%s1428_s29 + $0x1e0] sm:$0xff] %v772_v26 }
 0x128   : > { %v694_v27 = vpop.f32.mrf.mxu0  ;;  %v774_v28 = vpop.f32.mrf.mxu1 }
 0x129   : > { %1005 = vst [vmem:[%s1428_s29 + $0xe8] sm:$0xff] %v694_v27  ;;  %1037 = vst [vmem:[%s1428_s29 + $0x1e8] sm:$0xff] %v774_v28 }
 0x12a   : > { %v696_v29 = vpop.f32.mrf.mxu0  ;;  %v776_v30 = vpop.f32.mrf.mxu1 }
 0x12b   : > { %1006 = vst [vmem:[%s1428_s29 + $0xf0] sm:$0xff] %v696_v29  ;;  %1038 = vst [vmem:[%s1428_s29 + $0x1f0] sm:$0xff] %v776_v30 }
 0x12c   : > { %v698_v31 = vpop.f32.mrf.mxu0  ;;  %v778_v32 = vpop.f32.mrf.mxu1 }
 0x12d   : > { %1007 = vst [vmem:[%s1428_s29 + $0xf8] sm:$0xff] %v698_v31  ;;  %1039 = vst [vmem:[%s1428_s29 + $0x1f8] sm:$0xff] %v778_v32 }
 0x12e PF: > { %s12_s11 = sadd.s32 1, %s1300_s11   ;;  %s1506_s9 = smov %s1296_s10 }
 0x12f   : > { %p9_p5 = scmp.ge.s32.totalorder %s12_s11, 6   ;;  %s1507_s10 = smov %s1509_s12 }
 0x131   :  { %11 = sbr.rel (!%p9_p5) target bundleno = 2 (0x2), region = 69 }

// kernel: video_resnet_forward.24
= control target key start
LH: loop header
LB: loop body
LE: loop exit
PB: predicated region body
PF: predicated region fallthrough
CT: control target
= control target key end

     0   :  { %s1645_s9 = smov 0   ;;  %s1647_s10 = smov 0   ;;  %s1782_s0 = inlined_call_operand.vmem [shape: bf16[1024,256], index: 0, kind: input, shape index: {}]   ;;  %s1783_s1 = inlined_call_operand.vmem [shape: bf16[256,128], index: 1, kind: input, shape index: {}]   ;;  %s1784_s2 = inlined_call_operand.vmem [shape: bf16[1024,128], index: 2, kind: output, shape index: {}]  }
   0x1   :  { %s1649_s11 = smov 0  }
   0x2 LB: > { %s31_s12 = sadd.s32 1, %s1624_s10  ;;  %p1174_p0 = scmp.ge.s32.totalorder %s1628_s11, 1  ;;  %s1628_s11 = sphi %s1649_s11, %s12_s11   ;;  %s1624_s10 = sphi %s1647_s10, %s1786_s10   ;;  %s1620_s9 = sphi %s1645_s9, %s1785_s9  }
   0x3   : > { %p33_p1 = scmp.ge.s32.totalorder %s31_s12, 4  ;;  %p158_p2 = scmp.lt.s32.totalorder %s1628_s11, 5 }
   0x5   : > { %s1788_s12 = smov (%p33_p1, %s31_s12), 0  ;;  %p159_p3 = pnand %p1174_p0, %p158_p2 }
   0x6   : > { %s1175_s15 = sshll.u32 (!%p159_p3), %s1620_s9, 5 }
   0x7   : > { %162 = sbr.rel (%p159_p3) target bundleno = 307 (0x133), region = 28  ;;  %p198_p4 = scmp.lt.s32.totalorder (!%p159_p3), %s1175_s15, 127 }
   0xc   : > { %v1542_v0 = vld [vmem:[%s1783_s1 + $0x78] sm:$0xff]   ;;  %v1544_v2 = vld [vmem:[%s1783_s1 + $0x70] sm:$0xff]   ;;  %v1546_v4 = vld [vmem:[%s1783_s1 + $0x68] sm:$0xff]   ;;  %s1790_s15 = smov (!%p198_p4, %s1175_s15), 127 }
   0xd   : > { %v1543_v1 = vld [vmem:[%s1783_s1 + $0x38] sm:$0xff]   ;;  %1390 = vmatprep.subr.bf16.mxu0 %v1542_v0  ;;  %1502 = vmatprep.subr.bf16.mxu1 %v1542_v0  ;;  %v1545_v3 = vld [vmem:[%s1783_s1 + $0x30] sm:$0xff]   ;;  %v1547_v5 = vld [vmem:[%s1783_s1 + $0x28] sm:$0xff]   ;;  %s1262_s30 = sshll.u32 %s1790_s15, 3  ;;  %s1179_s26 = sshll.u32 %s1790_s15, 2 }
   0xe   : > { %1391 = vmatpush3.bf16.msra.mxu0 %v1543_v1  ;;  %1510 = vmatpush3.bf16.msra.mxu1 %v1543_v1  ;;  %v1548_v6 = vld [vmem:[%s1783_s1 + $0x60] sm:$0xff]   ;;  %v1550_v8 = vld [vmem:[%s1783_s1 + $0x58] sm:$0xff]   ;;  %s1696_s7 = scalar_lea.vmem %s1782_s0, %s1262_s30  ;;  %v1552_v10 = vld [vmem:[%s1783_s1 + $0x50] sm:$0xff]   ;;  %s1755_s29 = scalar_lea.vmem %s1784_s2, %s1179_s26 }
   0xf   : > { %1392 = vmatprep.subr.bf16.mxu0 %v1544_v2  ;;  %1503 = vmatprep.subr.bf16.mxu1 %v1544_v2  ;;  %v1549_v7 = vld [vmem:[%s1783_s1 + $0x20] sm:$0xff]   ;;  %v1551_v9 = vld [vmem:[%s1783_s1 + $0x18] sm:$0xff]   ;;  %v1553_v13 = vld [vmem:[%s1783_s1 + $0x10] sm:$0xff]  }
  0x10   : > { %v1560_v11 = vld [vmem:[%s1696_s7 + $0x4] ss:$8 sps:$4 sm:$0xff]   ;;  %v1558_v18 = vld [vmem:[%s1696_s7] ss:$8 sps:$4 sm:$0xff]   ;;  %v1564_v20 = vld [vmem:[%s1696_s7 + $0x14] ss:$8 sps:$4 sm:$0xff]  }
  0x11   : > { %v1563_v12 = vld [vmem:[%s1696_s7 + $0x84] ss:$8 sps:$4 sm:$0xff]   ;;  %647 = vmatprep.mubr.bf16.mxu0 %v1560_v11  ;;  %v1561_v19 = vld [vmem:[%s1696_s7 + $0x80] ss:$8 sps:$4 sm:$0xff]   ;;  %v1566_v21 = vld [vmem:[%s1696_s7 + $0x94] ss:$8 sps:$4 sm:$0xff]  }
  0x12   : > { %1393 = vmatpush3.bf16.msra.mxu0 %v1545_v3  ;;  %1511 = vmatpush3.bf16.msra.mxu1 %v1545_v3  ;;  %v1554_v14 = vld [vmem:[%s1783_s1 + $0x48] sm:$0xff]   ;;  %v1556_v16 = vld [vmem:[%s1783_s1 + $0x40] sm:$0xff]   ;;  %v1568_v22 = vld [vmem:[%s1696_s7 + $0x10] ss:$8 sps:$4 sm:$0xff]  }
  0x13   : > { %1394 = vmatprep.subr.bf16.mxu0 %v1546_v4  ;;  %1504 = vmatprep.subr.bf16.mxu1 %v1546_v4  ;;  %v1555_v15 = vld [vmem:[%s1783_s1 + $0x8] sm:$0xff]   ;;  %v1557_v17 = vld [vmem:[%s1783_s1] sm:$0xff]   ;;  %v1569_v23 = vld [vmem:[%s1696_s7 + $0x90] ss:$8 sps:$4 sm:$0xff]  }
  0x14   : > { %711 = vmatprep.mubr.bf16.mxu1 %v1563_v12  ;;  %v1570_v24 = vld [vmem:[%s1696_s7 + $0x24] ss:$8 sps:$4 sm:$0xff]   ;;  %v1574_v26 = vld [vmem:[%s1696_s7 + $0x20] ss:$8 sps:$4 sm:$0xff]   ;;  %v1576_v28 = vld [vmem:[%s1696_s7 + $0x34] ss:$8 sps:$4 sm:$0xff]  }
  0x15   : > { %v1572_v25 = vld [vmem:[%s1696_s7 + $0xa4] ss:$8 sps:$4 sm:$0xff]   ;;  %v1575_v27 = vld [vmem:[%s1696_s7 + $0xa0] ss:$8 sps:$4 sm:$0xff]   ;;  %v1578_v29 = vld [vmem:[%s1696_s7 + $0xb4] ss:$8 sps:$4 sm:$0xff]  }
  0x16   : > { %1395 = vmatpush3.bf16.msra.mxu0 %v1547_v5  ;;  %1512 = vmatpush3.bf16.msra.mxu1 %v1547_v5  ;;  %v1580_v30 = vld [vmem:[%s1696_s7 + $0x30] ss:$8 sps:$4 sm:$0xff]   ;;  %v1582_v32 = vld [vmem:[%s1696_s7 + $0x44] ss:$8 sps:$4 sm:$0xff]   ;;  %v1586_v34 = vld [vmem:[%s1696_s7 + $0x40] ss:$8 sps:$4 sm:$0xff]  }
  0x17   : > { %1396 = vmatprep.subr.bf16.mxu0 %v1548_v6  ;;  %1505 = vmatprep.subr.bf16.mxu1 %v1548_v6  ;;  %v1581_v31 = vld [vmem:[%s1696_s7 + $0xb0] ss:$8 sps:$4 sm:$0xff]   ;;  %v1584_v33 = vld [vmem:[%s1696_s7 + $0xc4] ss:$8 sps:$4 sm:$0xff]   ;;  %v1587_v35 = vld [vmem:[%s1696_s7 + $0xc0] ss:$8 sps:$4 sm:$0xff]  }
  0x18   : > { %v1588_v36 = vld [vmem:[%s1696_s7 + $0x54] ss:$8 sps:$4 sm:$0xff]   ;;  %v1592_v38 = vld [vmem:[%s1696_s7 + $0x50] ss:$8 sps:$4 sm:$0xff]   ;;  %v1594_v40 = vld [vmem:[%s1696_s7 + $0x64] ss:$8 sps:$4 sm:$0xff]  }
  0x19   : > { %v1590_v37 = vld [vmem:[%s1696_s7 + $0xd4] ss:$8 sps:$4 sm:$0xff]   ;;  %v1593_v39 = vld [vmem:[%s1696_s7 + $0xd0] ss:$8 sps:$4 sm:$0xff]   ;;  %v1596_v41 = vld [vmem:[%s1696_s7 + $0xe4] ss:$8 sps:$4 sm:$0xff]  }
  0x1a   : > { %1397 = vmatpush3.bf16.msra.mxu0 %v1549_v7  ;;  %1513 = vmatpush3.bf16.msra.mxu1 %v1549_v7  ;;  %v1598_v42 = vld [vmem:[%s1696_s7 + $0x60] ss:$8 sps:$4 sm:$0xff]   ;;  %v1600_v44 = vld [vmem:[%s1696_s7 + $0x74] ss:$8 sps:$4 sm:$0xff]   ;;  %v1604_v46 = vld [vmem:[%s1696_s7 + $0x70] ss:$8 sps:$4 sm:$0xff]  }
  0x1b   : > { %1398 = vmatprep.subr.bf16.mxu0 %v1550_v8  ;;  %1506 = vmatprep.subr.bf16.mxu1 %v1550_v8  ;;  %v1599_v43 = vld [vmem:[%s1696_s7 + $0xe0] ss:$8 sps:$4 sm:$0xff]   ;;  %v1602_v45 = vld [vmem:[%s1696_s7 + $0xf4] ss:$8 sps:$4 sm:$0xff]   ;;  %v1605_v47 = vld [vmem:[%s1696_s7 + $0xf0] ss:$8 sps:$4 sm:$0xff]  }
  0x1e   : > { %1399 = vmatpush3.bf16.msra.mxu0 %v1551_v9  ;;  %1514 = vmatpush3.bf16.msra.mxu1 %v1551_v9 }
  0x1f   : > { %1400 = vmatprep.subr.bf16.mxu0 %v1552_v10  ;;  %1507 = vmatprep.subr.bf16.mxu1 %v1552_v10 }
  0x22   : > { %1401 = vmatpush3.bf16.msra.mxu0 %v1553_v13  ;;  %1515 = vmatpush3.bf16.msra.mxu1 %v1553_v13 }
  0x23   : > { %1402 = vmatprep.subr.bf16.mxu0 %v1554_v14  ;;  %1508 = vmatprep.subr.bf16.mxu1 %v1554_v14 }
  0x26   : > { %1403 = vmatpush3.bf16.msra.mxu0 %v1555_v15  ;;  %1516 = vmatpush3.bf16.msra.mxu1 %v1555_v15 }
  0x27   : > { %1404 = vmatprep.subr.bf16.mxu0 %v1556_v16  ;;  %1509 = vmatprep.subr.bf16.mxu1 %v1556_v16 }
  0x2a   : > { %1405 = vmatpush3.bf16.msra.mxu0 %v1557_v17  ;;  %1517 = vmatpush3.bf16.msra.mxu1 %v1557_v17 }
  0x2d   : > { %648 = vmatmul.mubr.bf16.vlgmr.msra.gmra.mxu0 %v1558_v18  ;;  %712 = vmatmul.mubr.bf16.vlgmr.msra.gmra.mxu1 %v1561_v19 }
  0x2e   : > { %655 = vmatprep.mubr.bf16.mxu0 %v1564_v20  ;;  %719 = vmatprep.mubr.bf16.mxu1 %v1566_v21 }
  0x35   : > { %656 = vmatmul.mubr.bf16.gmra.mxu0 %v1568_v22  ;;  %720 = vmatmul.mubr.bf16.gmra.mxu1 %v1569_v23 }
  0x36   : > { %663 = vmatprep.mubr.bf16.mxu0 %v1570_v24  ;;  %727 = vmatprep.mubr.bf16.mxu1 %v1572_v25 }
  0x3d   : > { %664 = vmatmul.mubr.bf16.gmra.mxu0 %v1574_v26  ;;  %728 = vmatmul.mubr.bf16.gmra.mxu1 %v1575_v27 }
  0x3e   : > { %671 = vmatprep.mubr.bf16.mxu0 %v1576_v28  ;;  %735 = vmatprep.mubr.bf16.mxu1 %v1578_v29 }
  0x45   : > { %672 = vmatmul.mubr.bf16.gmra.mxu0 %v1580_v30  ;;  %736 = vmatmul.mubr.bf16.gmra.mxu1 %v1581_v31 }
  0x46   : > { %679 = vmatprep.mubr.bf16.mxu0 %v1582_v32  ;;  %743 = vmatprep.mubr.bf16.mxu1 %v1584_v33 }
  0x4d   : > { %680 = vmatmul.mubr.bf16.gmra.mxu0 %v1586_v34  ;;  %744 = vmatmul.mubr.bf16.gmra.mxu1 %v1587_v35 }
  0x4e   : > { %687 = vmatprep.mubr.bf16.mxu0 %v1588_v36  ;;  %751 = vmatprep.mubr.bf16.mxu1 %v1590_v37 }
  0x55   : > { %688 = vmatmul.mubr.bf16.gmra.mxu0 %v1592_v38  ;;  %752 = vmatmul.mubr.bf16.gmra.mxu1 %v1593_v39 }
  0x56   : > { %695 = vmatprep.mubr.bf16.mxu0 %v1594_v40  ;;  %759 = vmatprep.mubr.bf16.mxu1 %v1596_v41 }
  0x5d   : > { %696 = vmatmul.mubr.bf16.gmra.mxu0 %v1598_v42  ;;  %760 = vmatmul.mubr.bf16.gmra.mxu1 %v1599_v43 }
  0x5e   : > { %703 = vmatprep.mubr.bf16.mxu0 %v1600_v44  ;;  %767 = vmatprep.mubr.bf16.mxu1 %v1602_v45 }
  0x65   : > { %704 = vmatmul.mubr.bf16.gmra.mxu0 %v1604_v46  ;;  %768 = vmatmul.mubr.bf16.gmra.mxu1 %v1605_v47 }
  0xed   : > { %v1406_v48 = vpop.f32.mrf.mxu0  ;;  %v1454_v49 = vpop.f32.mrf.mxu1 }
  0xef   : > { %v1407_v50 = vpop.f32.mrf.mxu0  ;;  %v1455_v51 = vpop.f32.mrf.mxu1 }
  0xf0   : > { %v1408_v54 = vadd.f32 %v1407_v50, %v1406_v48  ;;  %v1456_v55 = vadd.f32 %v1455_v51, %v1454_v49 }
  0xf1   : > { %v1409_v52 = vpop.f32.mrf.mxu0  ;;  %v1457_v53 = vpop.f32.mrf.mxu1 }
  0xf2   : > { %v875_v62 = vmax.f32 %v1408_v54, 0.0  ;;  %v891_v63 = vmax.f32 %v1456_v55, 0.0 }
  0xf3   : > { %v1410_v56 = vpop.f32.mrf.mxu0  ;;  %v1458_v57 = vpop.f32.mrf.mxu1 }
  0xf4   : > { %v1411_v58 = vadd.f32 %v1410_v56, %v1409_v52  ;;  %v1459_v59 = vadd.f32 %v1458_v57, %v1457_v53 }
  0xf5   : > { %v1412_v60 = vpop.f32.mrf.mxu0  ;;  %v1460_v61 = vpop.f32.mrf.mxu1 }
  0xf6   : > { %v876_v0 = vmax.f32 %v1411_v58, 0.0  ;;  %v892_v1 = vmax.f32 %v1459_v59, 0.0 }
  0xf7   : > { %v1413_v2 = vpop.f32.mrf.mxu0  ;;  %v1461_v3 = vpop.f32.mrf.mxu1 }
  0xf8   : > { %v1298_v4 = vpack.c.bf16 %v876_v0, %v875_v62  ;;  %v1338_v5 = vpack.c.bf16 %v892_v1, %v891_v63  ;;  %v1414_v8 = vadd.f32 %v1413_v2, %v1412_v60  ;;  %v1462_v9 = vadd.f32 %v1461_v3, %v1460_v61 }
  0xf9   : > { %v1415_v6 = vpop.f32.mrf.mxu0  ;;  %v1463_v7 = vpop.f32.mrf.mxu1 }
  0xfa   : > { %1299 = vst [vmem:[%s1755_s29] sm:$0xff] %v1298_v4   ;;  %1382 = vst [vmem:[%s1755_s29 + $0x40] sm:$0xff] %v1338_v5   ;;  %v877_v16 = vmax.f32 %v1414_v8, 0.0  ;;  %v893_v17 = vmax.f32 %v1462_v9, 0.0 }
  0xfb   : > { %v1416_v10 = vpop.f32.mrf.mxu0  ;;  %v1464_v11 = vpop.f32.mrf.mxu1 }
  0xfc   : > { %v1417_v12 = vadd.f32 %v1416_v10, %v1415_v6  ;;  %v1465_v13 = vadd.f32 %v1464_v11, %v1463_v7 }
  0xfd   : > { %v1418_v14 = vpop.f32.mrf.mxu0  ;;  %v1466_v15 = vpop.f32.mrf.mxu1 }
  0xfe   : > { %v878_v18 = vmax.f32 %v1417_v12, 0.0  ;;  %v894_v19 = vmax.f32 %v1465_v13, 0.0 }
  0xff   : > { %v1419_v20 = vpop.f32.mrf.mxu0  ;;  %v1467_v21 = vpop.f32.mrf.mxu1 }
 0x100   : > { %v1303_v22 = vpack.c.bf16 %v878_v18, %v877_v16  ;;  %v1343_v23 = vpack.c.bf16 %v894_v19, %v893_v17  ;;  %v1420_v26 = vadd.f32 %v1419_v20, %v1418_v14  ;;  %v1468_v27 = vadd.f32 %v1467_v21, %v1466_v15 }
 0x101   : > { %v1421_v24 = vpop.f32.mrf.mxu0  ;;  %v1469_v25 = vpop.f32.mrf.mxu1 }
 0x102   : > { %1375 = vst [vmem:[%s1755_s29 + $0x8] sm:$0xff] %v1303_v22   ;;  %1383 = vst [vmem:[%s1755_s29 + $0x48] sm:$0xff] %v1343_v23   ;;  %v879_v34 = vmax.f32 %v1420_v26, 0.0  ;;  %v895_v35 = vmax.f32 %v1468_v27, 0.0 }
 0x103   : > { %v1422_v28 = vpop.f32.mrf.mxu0  ;;  %v1470_v29 = vpop.f32.mrf.mxu1 }
 0x104   : > { %v1423_v30 = vadd.f32 %v1422_v28, %v1421_v24  ;;  %v1471_v31 = vadd.f32 %v1470_v29, %v1469_v25 }
 0x105   : > { %v1424_v32 = vpop.f32.mrf.mxu0  ;;  %v1472_v33 = vpop.f32.mrf.mxu1 }
 0x106   : > { %v880_v36 = vmax.f32 %v1423_v30, 0.0  ;;  %v896_v37 = vmax.f32 %v1471_v31, 0.0 }
 0x107   : > { %v1425_v38 = vpop.f32.mrf.mxu0  ;;  %v1473_v39 = vpop.f32.mrf.mxu1 }
 0x108   : > { %v1308_v40 = vpack.c.bf16 %v880_v36, %v879_v34  ;;  %v1348_v41 = vpack.c.bf16 %v896_v37, %v895_v35  ;;  %v1426_v44 = vadd.f32 %v1425_v38, %v1424_v32  ;;  %v1474_v45 = vadd.f32 %v1473_v39, %v1472_v33 }
 0x109   : > { %v1427_v42 = vpop.f32.mrf.mxu0  ;;  %v1475_v43 = vpop.f32.mrf.mxu1 }
 0x10a   : > { %1376 = vst [vmem:[%s1755_s29 + $0x10] sm:$0xff] %v1308_v40   ;;  %1384 = vst [vmem:[%s1755_s29 + $0x50] sm:$0xff] %v1348_v41   ;;  %v881_v52 = vmax.f32 %v1426_v44, 0.0  ;;  %v897_v53 = vmax.f32 %v1474_v45, 0.0 }
 0x10b   : > { %v1428_v46 = vpop.f32.mrf.mxu0  ;;  %v1476_v47 = vpop.f32.mrf.mxu1 }
 0x10c   : > { %v1429_v48 = vadd.f32 %v1428_v46, %v1427_v42  ;;  %v1477_v49 = vadd.f32 %v1476_v47, %v1475_v43 }
 0x10d   : > { %v1430_v50 = vpop.f32.mrf.mxu0  ;;  %v1478_v51 = vpop.f32.mrf.mxu1 }
 0x10e   : > { %v882_v54 = vmax.f32 %v1429_v48, 0.0  ;;  %v898_v55 = vmax.f32 %v1477_v49, 0.0 }
 0x10f   : > { %v1431_v56 = vpop.f32.mrf.mxu0  ;;  %v1479_v57 = vpop.f32.mrf.mxu1 }
 0x110   : > { %v1313_v58 = vpack.c.bf16 %v882_v54, %v881_v52  ;;  %v1353_v59 = vpack.c.bf16 %v898_v55, %v897_v53  ;;  %v1432_v62 = vadd.f32 %v1431_v56, %v1430_v50  ;;  %v1480_v63 = vadd.f32 %v1479_v57, %v1478_v51 }
 0x111   : > { %v1433_v60 = vpop.f32.mrf.mxu0  ;;  %v1481_v61 = vpop.f32.mrf.mxu1 }
 0x112   : > { %1377 = vst [vmem:[%s1755_s29 + $0x18] sm:$0xff] %v1313_v58   ;;  %1385 = vst [vmem:[%s1755_s29 + $0x58] sm:$0xff] %v1353_v59   ;;  %v883_v6 = vmax.f32 %v1432_v62, 0.0  ;;  %v899_v7 = vmax.f32 %v1480_v63, 0.0 }
 0x113   : > { %v1434_v0 = vpop.f32.mrf.mxu0  ;;  %v1482_v1 = vpop.f32.mrf.mxu1 }
 0x114   : > { %v1435_v2 = vadd.f32 %v1434_v0, %v1433_v60  ;;  %v1483_v3 = vadd.f32 %v1482_v1, %v1481_v61 }
 0x115   : > { %v1436_v4 = vpop.f32.mrf.mxu0  ;;  %v1484_v5 = vpop.f32.mrf.mxu1 }
 0x116   : > { %v884_v8 = vmax.f32 %v1435_v2, 0.0  ;;  %v900_v9 = vmax.f32 %v1483_v3, 0.0 }
 0x117   : > { %v1437_v10 = vpop.f32.mrf.mxu0  ;;  %v1485_v11 = vpop.f32.mrf.mxu1 }
 0x118   : > { %v1318_v12 = vpack.c.bf16 %v884_v8, %v883_v6  ;;  %v1358_v13 = vpack.c.bf16 %v900_v9, %v899_v7  ;;  %v1438_v16 = vadd.f32 %v1437_v10, %v1436_v4  ;;  %v1486_v17 = vadd.f32 %v1485_v11, %v1484_v5 }
 0x119   : > { %v1439_v14 = vpop.f32.mrf.mxu0  ;;  %v1487_v15 = vpop.f32.mrf.mxu1 }
 0x11a   : > { %1378 = vst [vmem:[%s1755_s29 + $0x20] sm:$0xff] %v1318_v12   ;;  %1386 = vst [vmem:[%s1755_s29 + $0x60] sm:$0xff] %v1358_v13   ;;  %v885_v24 = vmax.f32 %v1438_v16, 0.0  ;;  %v901_v25 = vmax.f32 %v1486_v17, 0.0 }
 0x11b   : > { %v1440_v18 = vpop.f32.mrf.mxu0  ;;  %v1488_v19 = vpop.f32.mrf.mxu1 }
 0x11c   : > { %v1441_v20 = vadd.f32 %v1440_v18, %v1439_v14  ;;  %v1489_v21 = vadd.f32 %v1488_v19, %v1487_v15 }
 0x11d   : > { %v1442_v22 = vpop.f32.mrf.mxu0  ;;  %v1490_v23 = vpop.f32.mrf.mxu1 }
 0x11e   : > { %v886_v26 = vmax.f32 %v1441_v20, 0.0  ;;  %v902_v27 = vmax.f32 %v1489_v21, 0.0 }
 0x11f   : > { %v1443_v28 = vpop.f32.mrf.mxu0  ;;  %v1491_v29 = vpop.f32.mrf.mxu1 }
 0x120   : > { %v1323_v30 = vpack.c.bf16 %v886_v26, %v885_v24  ;;  %v1363_v31 = vpack.c.bf16 %v902_v27, %v901_v25  ;;  %v1444_v34 = vadd.f32 %v1443_v28, %v1442_v22  ;;  %v1492_v35 = vadd.f32 %v1491_v29, %v1490_v23 }
 0x121   : > { %v1445_v32 = vpop.f32.mrf.mxu0  ;;  %v1493_v33 = vpop.f32.mrf.mxu1 }
 0x122   : > { %1379 = vst [vmem:[%s1755_s29 + $0x28] sm:$0xff] %v1323_v30   ;;  %1387 = vst [vmem:[%s1755_s29 + $0x68] sm:$0xff] %v1363_v31   ;;  %v887_v42 = vmax.f32 %v1444_v34, 0.0  ;;  %v903_v43 = vmax.f32 %v1492_v35, 0.0 }
 0x123   : > { %v1446_v36 = vpop.f32.mrf.mxu0  ;;  %v1494_v37 = vpop.f32.mrf.mxu1 }
 0x124   : > { %v1447_v38 = vadd.f32 %v1446_v36, %v1445_v32  ;;  %v1495_v39 = vadd.f32 %v1494_v37, %v1493_v33 }
 0x125   : > { %v1448_v40 = vpop.f32.mrf.mxu0  ;;  %v1496_v41 = vpop.f32.mrf.mxu1 }
 0x126   : > { %v888_v44 = vmax.f32 %v1447_v38, 0.0  ;;  %v904_v45 = vmax.f32 %v1495_v39, 0.0 }
 0x127   : > { %v1449_v46 = vpop.f32.mrf.mxu0  ;;  %v1497_v47 = vpop.f32.mrf.mxu1 }
 0x128   : > { %v1328_v48 = vpack.c.bf16 %v888_v44, %v887_v42  ;;  %v1368_v49 = vpack.c.bf16 %v904_v45, %v903_v43  ;;  %v1450_v52 = vadd.f32 %v1449_v46, %v1448_v40  ;;  %v1498_v53 = vadd.f32 %v1497_v47, %v1496_v41 }
 0x129   : > { %v1451_v50 = vpop.f32.mrf.mxu0  ;;  %v1499_v51 = vpop.f32.mrf.mxu1 }
 0x12a   : > { %1380 = vst [vmem:[%s1755_s29 + $0x30] sm:$0xff] %v1328_v48   ;;  %1388 = vst [vmem:[%s1755_s29 + $0x70] sm:$0xff] %v1368_v49   ;;  %v889_v58 = vmax.f32 %v1450_v52, 0.0  ;;  %v905_v59 = vmax.f32 %v1498_v53, 0.0 }
 0x12b   : > { %v1452_v54 = vpop.f32.mrf.mxu0  ;;  %v1500_v55 = vpop.f32.mrf.mxu1 }
 0x12c   : > { %v1453_v56 = vadd.f32 %v1452_v54, %v1451_v50  ;;  %v1501_v57 = vadd.f32 %v1500_v55, %v1499_v51 }
 0x12e   : > { %v890_v60 = vmax.f32 %v1453_v56, 0.0  ;;  %v906_v61 = vmax.f32 %v1501_v57, 0.0 }
 0x130   : > { %v1333_v62 = vpack.c.bf16 %v890_v60, %v889_v58  ;;  %v1373_v63 = vpack.c.bf16 %v906_v61, %v905_v59 }
 0x132   : > { %1381 = vst [vmem:[%s1755_s29 + $0x38] sm:$0xff] %v1333_v62   ;;  %1389 = vst [vmem:[%s1755_s29 + $0x78] sm:$0xff] %v1373_v63  }
 0x133 PF: > { %s12_s11 = sadd.s32 1, %s1628_s11   ;;  %s1785_s9 = smov %s1624_s10 }
 0x134   : > { %p9_p5 = scmp.ge.s32.totalorder %s12_s11, 6   ;;  %s1786_s10 = smov %s1788_s12 }
 0x136   :  { %11 = sbr.rel (!%p9_p5) target bundleno = 2 (0x2), region = 69 }

// kernel: video_resnet_forward.22
= control target key start
LH: loop header
LB: loop body
LE: loop exit
PB: predicated region body
PF: predicated region fallthrough
CT: control target
= control target key end

     0   :  { %s1829_s12 = smov 0   ;;  %s1831_s13 = smov 0   ;;  %s2052_s0 = inlined_call_operand.vmem [shape: bf16[1024,128], index: 0, kind: input, shape index: {}]   ;;  %s2053_s1 = inlined_call_operand.vmem [shape: bf16[128,256], index: 1, kind: input, shape index: {}]   ;;  %s2054_s2 = inlined_call_operand.vmem [shape: f32[1024,256], index: 2, kind: input, shape index: {}]   ;;  %s2055_s3 = inlined_call_operand.vmem [shape: bf16[1024,256], index: 3, kind: output, shape index: {}]  }
   0x1   :  { %s1833_s14 = smov 0  }
   0x2 LB: > { %s32_s15 = sadd.s32 1, %s1802_s13  ;;  %p1594_p0 = scmp.ge.s32.totalorder %s1806_s14, 1  ;;  %s1806_s14 = sphi %s1833_s14, %s13_s14   ;;  %s1802_s13 = sphi %s1831_s13, %s2057_s13   ;;  %s1798_s12 = sphi %s1829_s12, %s2056_s12  }
   0x3   : > { %p34_p1 = scmp.ge.s32.totalorder %s32_s15, 4  ;;  %p202_p2 = scmp.lt.s32.totalorder %s1806_s14, 5 }
   0x5   : > { %s2059_s15 = smov (%p34_p1, %s32_s15), 0  ;;  %p203_p3 = pnand %p1594_p0, %p202_p2 }
   0x6   : > { %s1595_s18 = sshll.u32 (!%p203_p3), %s1798_s12, 5 }
   0x7   : > { %206 = sbr.rel (%p203_p3) target bundleno = 308 (0x134), region = 32  ;;  %p255_p4 = scmp.lt.s32.totalorder (!%p203_p3), %s1595_s18, 127 }
   0xc   : > { %v1744_v0 = vld [vmem:[%s2053_s1 + $0x74] ss:$8 sps:$4 sm:$0xff]   ;;  %v1746_v1 = vld [vmem:[%s2053_s1 + $0x70] ss:$8 sps:$4 sm:$0xff]   ;;  %v1808_v2 = vmov 0   ;;  %s2061_s18 = smov (!%p255_p4, %s1595_s18), 127 }
   0xd   : > { %688 = vmatprep.mubr.bf16.mxu0 %v1808_v2  ;;  %768 = vmatprep.mubr.bf16.mxu1 %v1808_v2  ;;  %v1747_v3 = vld [vmem:[%s2053_s1 + $0x64] ss:$8 sps:$4 sm:$0xff]   ;;  %v1749_v4 = vld [vmem:[%s2053_s1 + $0x60] ss:$8 sps:$4 sm:$0xff]   ;;  %v1750_v5 = vld [vmem:[%s2053_s1 + $0x54] ss:$8 sps:$4 sm:$0xff]  }
   0xe   : > { %656 = vmatprep.subr.bf16.mxu0 %v1744_v0  ;;  %1703 = vmatprep.subr.bf16.mxu1 %v1744_v0  ;;  %s1596_s27 = sshll.u32 %s2061_s18, 2  ;;  %v1752_v6 = vld [vmem:[%s2053_s1 + $0x50] ss:$8 sps:$4 sm:$0xff]   ;;  %v1753_v7 = vld [vmem:[%s2053_s1 + $0x44] ss:$8 sps:$4 sm:$0xff]   ;;  %s1669_s30 = sshll.u32 %s2061_s18, 4 }
   0xf   : > { %657 = vmatpush1.bf16.msra.mxu0 %v1746_v1  ;;  %1711 = vmatpush1.bf16.msra.mxu1 %v1746_v1  ;;  %s1876_s7 = scalar_lea.vmem %s2052_s0, %s1596_s27  ;;  %v1755_v8 = vld [vmem:[%s2053_s1 + $0x40] ss:$8 sps:$4 sm:$0xff]   ;;  %v1756_v9 = vld [vmem:[%s2053_s1 + $0x34] ss:$8 sps:$4 sm:$0xff]   ;;  %v1758_v10 = vld [vmem:[%s2053_s1 + $0x30] ss:$8 sps:$4 sm:$0xff]   ;;  %s1939_s6 = scalar_lea.vmem %s2054_s2, %s1669_s30 }
  0x10   : > { %658 = vmatprep.subr.bf16.mxu0 %v1747_v3  ;;  %1704 = vmatprep.subr.bf16.mxu1 %v1747_v3  ;;  %v1759_v11 = vld [vmem:[%s2053_s1 + $0x24] ss:$8 sps:$4 sm:$0xff]   ;;  %v1761_v12 = vld [vmem:[%s2053_s1 + $0x20] ss:$8 sps:$4 sm:$0xff]   ;;  %v1762_v13 = vld [vmem:[%s2053_s1 + $0x14] ss:$8 sps:$4 sm:$0xff]  }
  0x11   : > { %v1764_v14 = vld [vmem:[%s2053_s1 + $0x10] ss:$8 sps:$4 sm:$0xff]   ;;  %v1765_v15 = vld [vmem:[%s2053_s1 + $0x4] ss:$8 sps:$4 sm:$0xff]   ;;  %v1767_v16 = vld [vmem:[%s2053_s1] ss:$8 sps:$4 sm:$0xff]  }
  0x12   : > { %v1768_v17 = vld [vmem:[%s1876_s7] sm:$0xff]   ;;  %v1770_v19 = vld [vmem:[%s1876_s7 + $0x8] sm:$0xff]   ;;  %v1772_v21 = vld [vmem:[%s1876_s7 + $0x10] sm:$0xff]  }
  0x13   : > { %659 = vmatpush1.bf16.msra.mxu0 %v1749_v4  ;;  %1712 = vmatpush1.bf16.msra.mxu1 %v1749_v4  ;;  %v1769_v18 = vld [vmem:[%s1876_s7 + $0x40] sm:$0xff]   ;;  %v1771_v20 = vld [vmem:[%s1876_s7 + $0x48] sm:$0xff]   ;;  %v1773_v22 = vld [vmem:[%s1876_s7 + $0x50] sm:$0xff]  }
  0x14   : > { %660 = vmatprep.subr.bf16.mxu0 %v1750_v5  ;;  %1705 = vmatprep.subr.bf16.mxu1 %v1750_v5  ;;  %v1774_v23 = vld [vmem:[%s1876_s7 + $0x18] sm:$0xff]   ;;  %v1776_v25 = vld [vmem:[%s1876_s7 + $0x20] sm:$0xff]   ;;  %v1778_v27 = vld [vmem:[%s1876_s7 + $0x28] sm:$0xff]  }
  0x15   : > { %v1775_v24 = vld [vmem:[%s1876_s7 + $0x58] sm:$0xff]   ;;  %v1777_v26 = vld [vmem:[%s1876_s7 + $0x60] sm:$0xff]   ;;  %v1779_v28 = vld [vmem:[%s1876_s7 + $0x68] sm:$0xff]  }
  0x16   : > { %v1780_v29 = vld [vmem:[%s1876_s7 + $0x30] sm:$0xff]   ;;  %v1782_v31 = vld [vmem:[%s1876_s7 + $0x38] sm:$0xff]   ;;  %v1044_v33 = vld [vmem:[%s1939_s6] sm:$0xff] }
  0x17   : > { %661 = vmatpush1.bf16.msra.mxu0 %v1752_v6  ;;  %1713 = vmatpush1.bf16.msra.mxu1 %v1752_v6  ;;  %v1781_v30 = vld [vmem:[%s1876_s7 + $0x70] sm:$0xff]   ;;  %v1783_v32 = vld [vmem:[%s1876_s7 + $0x78] sm:$0xff]   ;;  %v1076_v34 = vld [vmem:[%s1939_s6 + $0x100] sm:$0xff]  ;;  %s1670_s7 = sshll.u32 %s2061_s18, 3 }
  0x18   : > { %662 = vmatprep.subr.bf16.mxu0 %v1753_v7  ;;  %1706 = vmatprep.subr.bf16.mxu1 %v1753_v7  ;;  %v1045_v37 = vld [vmem:[%s1939_s6 + $0x8] sm:$0xff]  ;;  %v1046_v45 = vld [vmem:[%s1939_s6 + $0x10] sm:$0xff]  ;;  %v1047_v53 = vld [vmem:[%s1939_s6 + $0x18] sm:$0xff]  ;;  %s1953_s18 = scalar_lea.vmem %s2055_s3, %s1670_s7 }
  0x19   : > { %v1077_v38 = vld [vmem:[%s1939_s6 + $0x108] sm:$0xff]  ;;  %v1078_v46 = vld [vmem:[%s1939_s6 + $0x110] sm:$0xff]  ;;  %v1079_v54 = vld [vmem:[%s1939_s6 + $0x118] sm:$0xff] }
  0x1a   : > { %v1048_v59 = vld [vmem:[%s1939_s6 + $0x20] sm:$0xff]  ;;  %v1049_v3 = vld [vmem:[%s1939_s6 + $0x28] sm:$0xff] }
  0x1b   : > { %663 = vmatpush1.bf16.msra.mxu0 %v1755_v8  ;;  %1714 = vmatpush1.bf16.msra.mxu1 %v1755_v8  ;;  %v1080_v60 = vld [vmem:[%s1939_s6 + $0x120] sm:$0xff]  ;;  %v1081_v4 = vld [vmem:[%s1939_s6 + $0x128] sm:$0xff] }
  0x1c   : > { %664 = vmatprep.subr.bf16.mxu0 %v1756_v9  ;;  %1707 = vmatprep.subr.bf16.mxu1 %v1756_v9 }
  0x1f   : > { %665 = vmatpush1.bf16.msra.mxu0 %v1758_v10  ;;  %1715 = vmatpush1.bf16.msra.mxu1 %v1758_v10 }
  0x20   : > { %666 = vmatprep.subr.bf16.mxu0 %v1759_v11  ;;  %1708 = vmatprep.subr.bf16.mxu1 %v1759_v11 }
  0x23   : > { %667 = vmatpush1.bf16.msra.mxu0 %v1761_v12  ;;  %1716 = vmatpush1.bf16.msra.mxu1 %v1761_v12 }
  0x24   : > { %668 = vmatprep.subr.bf16.mxu0 %v1762_v13  ;;  %1709 = vmatprep.subr.bf16.mxu1 %v1762_v13 }
  0x27   : > { %669 = vmatpush1.bf16.msra.mxu0 %v1764_v14  ;;  %1717 = vmatpush1.bf16.msra.mxu1 %v1764_v14 }
  0x28   : > { %670 = vmatprep.subr.bf16.mxu0 %v1765_v15  ;;  %1710 = vmatprep.subr.bf16.mxu1 %v1765_v15  ;;  %v1050_v15 = vld [vmem:[%s1939_s6 + $0x30] sm:$0xff] }
  0x2b   : > { %671 = vmatpush1.bf16.msra.mxu0 %v1767_v16  ;;  %1718 = vmatpush1.bf16.msra.mxu1 %v1767_v16  ;;  %v1082_v16 = vld [vmem:[%s1939_s6 + $0x130] sm:$0xff] }
  0x2e   : > { %689 = vmatmul.mubr.bf16.vlgmr.msra.gmra.mxu0 %v1768_v17  ;;  %769 = vmatmul.mubr.bf16.vlgmr.msra.gmra.mxu1 %v1769_v18 }
  0x2f   : > { %698 = vmatprep.mubr.bf16.mxu0 %v1808_v2  ;;  %778 = vmatprep.mubr.bf16.mxu1 %v1808_v2 }
  0x36   : > { %699 = vmatmul.mubr.bf16.gmra.mxu0 %v1770_v19  ;;  %779 = vmatmul.mubr.bf16.gmra.mxu1 %v1771_v20 }
  0x37   : > { %708 = vmatprep.mubr.bf16.mxu0 %v1808_v2  ;;  %788 = vmatprep.mubr.bf16.mxu1 %v1808_v2 }
  0x3e   : > { %709 = vmatmul.mubr.bf16.gmra.mxu0 %v1772_v21  ;;  %789 = vmatmul.mubr.bf16.gmra.mxu1 %v1773_v22 }
  0x3f   : > { %718 = vmatprep.mubr.bf16.mxu0 %v1808_v2  ;;  %798 = vmatprep.mubr.bf16.mxu1 %v1808_v2 }
  0x46   : > { %719 = vmatmul.mubr.bf16.gmra.mxu0 %v1774_v23  ;;  %799 = vmatmul.mubr.bf16.gmra.mxu1 %v1775_v24 }
  0x47   : > { %728 = vmatprep.mubr.bf16.mxu0 %v1808_v2  ;;  %808 = vmatprep.mubr.bf16.mxu1 %v1808_v2 }
  0x4e   : > { %729 = vmatmul.mubr.bf16.gmra.mxu0 %v1776_v25  ;;  %809 = vmatmul.mubr.bf16.gmra.mxu1 %v1777_v26  ;;  %v1051_v25 = vld [vmem:[%s1939_s6 + $0x38] sm:$0xff] }
  0x4f   : > { %738 = vmatprep.mubr.bf16.mxu0 %v1808_v2  ;;  %818 = vmatprep.mubr.bf16.mxu1 %v1808_v2  ;;  %v1083_v26 = vld [vmem:[%s1939_s6 + $0x138] sm:$0xff] }
  0x56   : > { %739 = vmatmul.mubr.bf16.gmra.mxu0 %v1778_v27  ;;  %819 = vmatmul.mubr.bf16.gmra.mxu1 %v1779_v28 }
  0x57   : > { %748 = vmatprep.mubr.bf16.mxu0 %v1808_v2  ;;  %828 = vmatprep.mubr.bf16.mxu1 %v1808_v2 }
  0x5e   : > { %749 = vmatmul.mubr.bf16.gmra.mxu0 %v1780_v29  ;;  %829 = vmatmul.mubr.bf16.gmra.mxu1 %v1781_v30 }
  0x5f   : > { %758 = vmatprep.mubr.bf16.mxu0 %v1808_v2  ;;  %838 = vmatprep.mubr.bf16.mxu1 %v1808_v2 }
  0x66   : > { %759 = vmatmul.mubr.bf16.gmra.mxu0 %v1782_v31  ;;  %839 = vmatmul.mubr.bf16.gmra.mxu1 %v1783_v32  ;;  %v1052_v31 = vld [vmem:[%s1939_s6 + $0x40] sm:$0xff] }
  0x67   : > { %v1084_v32 = vld [vmem:[%s1939_s6 + $0x140] sm:$0xff] }
  0xee   : > { %v690_v35 = vpop.f32.mrf.mxu0  ;;  %v770_v36 = vpop.f32.mrf.mxu1 }
  0xef   : > { %v1108_v39 = vadd.f32 %v1044_v33, %v690_v35  ;;  %v1140_v40 = vadd.f32 %v1076_v34, %v770_v36 }
  0xf0   : > { %v692_v41 = vpop.f32.mrf.mxu0  ;;  %v772_v42 = vpop.f32.mrf.mxu1 }
  0xf1   : > { %v1109_v43 = vadd.f32 %v1045_v37, %v692_v41  ;;  %v1141_v44 = vadd.f32 %v1077_v38, %v772_v42  ;;  %v1172_v49 = vmax.f32 %v1108_v39, 0.0  ;;  %v1204_v50 = vmax.f32 %v1140_v40, 0.0  ;;  %v1053_v39 = vld [vmem:[%s1939_s6 + $0x48] sm:$0xff] }
  0xf2   : > { %v694_v47 = vpop.f32.mrf.mxu0  ;;  %v774_v48 = vpop.f32.mrf.mxu1  ;;  %v1085_v40 = vld [vmem:[%s1939_s6 + $0x148] sm:$0xff] }
  0xf3   : > { %v1173_v51 = vmax.f32 %v1109_v43, 0.0  ;;  %v1205_v52 = vmax.f32 %v1141_v44, 0.0  ;;  %v1110_v55 = vadd.f32 %v1046_v45, %v694_v47  ;;  %v1142_v56 = vadd.f32 %v1078_v46, %v774_v48 }
  0xf4   : > { %v696_v57 = vpop.f32.mrf.mxu0  ;;  %v776_v58 = vpop.f32.mrf.mxu1 }
  0xf5   : > { %v1671_v61 = vpack.c.bf16 %v1173_v51, %v1172_v49  ;;  %v1687_v62 = vpack.c.bf16 %v1205_v52, %v1204_v50  ;;  %v1111_v63 = vadd.f32 %v1047_v53, %v696_v57  ;;  %v1143_v0 = vadd.f32 %v1079_v54, %v776_v58  ;;  %v1054_v51 = vld [vmem:[%s1939_s6 + $0x50] sm:$0xff] }
  0xf6   : > { %v700_v1 = vpop.f32.mrf.mxu0  ;;  %v780_v2 = vpop.f32.mrf.mxu1  ;;  %v1174_v7 = vmax.f32 %v1110_v55, 0.0  ;;  %v1206_v8 = vmax.f32 %v1142_v56, 0.0  ;;  %v1086_v52 = vld [vmem:[%s1939_s6 + $0x150] sm:$0xff] }
  0xf7   : > { %1428 = vst [vmem:[%s1953_s18] sm:$0xff] %v1671_v61  ;;  %1444 = vst [vmem:[%s1953_s18 + $0x80] sm:$0xff] %v1687_v62  ;;  %v1112_v5 = vadd.f32 %v1048_v59, %v700_v1  ;;  %v1144_v6 = vadd.f32 %v1080_v60, %v780_v2  ;;  %v1175_v9 = vmax.f32 %v1111_v63, 0.0  ;;  %v1207_v10 = vmax.f32 %v1143_v0, 0.0  ;;  %v1055_v61 = vld [vmem:[%s1939_s6 + $0x58] sm:$0xff] }
  0xf8   : > { %v702_v11 = vpop.f32.mrf.mxu0  ;;  %v782_v12 = vpop.f32.mrf.mxu1  ;;  %v1087_v62 = vld [vmem:[%s1939_s6 + $0x158] sm:$0xff] }
  0xf9   : > { %v1113_v13 = vadd.f32 %v1049_v3, %v702_v11  ;;  %v1145_v14 = vadd.f32 %v1081_v4, %v782_v12  ;;  %v1672_v17 = vpack.c.bf16 %v1175_v9, %v1174_v7  ;;  %v1688_v18 = vpack.c.bf16 %v1207_v10, %v1206_v8  ;;  %v1056_v3 = vld [vmem:[%s1939_s6 + $0x60] sm:$0xff]  ;;  %v1057_v11 = vld [vmem:[%s1939_s6 + $0x68] sm:$0xff] }
  0xfa   : > { %v704_v19 = vpop.f32.mrf.mxu0  ;;  %v784_v20 = vpop.f32.mrf.mxu1  ;;  %v1176_v21 = vmax.f32 %v1112_v5, 0.0  ;;  %v1208_v22 = vmax.f32 %v1144_v6, 0.0  ;;  %v1088_v4 = vld [vmem:[%s1939_s6 + $0x160] sm:$0xff]  ;;  %v1089_v12 = vld [vmem:[%s1939_s6 + $0x168] sm:$0xff] }
  0xfb   : > { %v1177_v23 = vmax.f32 %v1113_v13, 0.0  ;;  %v1209_v24 = vmax.f32 %v1145_v14, 0.0  ;;  %1429 = vst [vmem:[%s1953_s18 + $0x8] sm:$0xff] %v1672_v17  ;;  %1445 = vst [vmem:[%s1953_s18 + $0x88] sm:$0xff] %v1688_v18  ;;  %v1114_v27 = vadd.f32 %v1050_v15, %v704_v19  ;;  %v1146_v28 = vadd.f32 %v1082_v16, %v784_v20 }
  0xfc   : > { %v706_v29 = vpop.f32.mrf.mxu0  ;;  %v786_v30 = vpop.f32.mrf.mxu1 }
  0xfd   : > { %v1673_v33 = vpack.c.bf16 %v1177_v23, %v1176_v21  ;;  %v1689_v34 = vpack.c.bf16 %v1209_v24, %v1208_v22  ;;  %v1115_v35 = vadd.f32 %v1051_v25, %v706_v29  ;;  %v1147_v36 = vadd.f32 %v1083_v26, %v786_v30  ;;  %v1058_v23 = vld [vmem:[%s1939_s6 + $0x70] sm:$0xff] }
  0xfe   : > { %v710_v37 = vpop.f32.mrf.mxu0  ;;  %v790_v38 = vpop.f32.mrf.mxu1  ;;  %v1178_v43 = vmax.f32 %v1114_v27, 0.0  ;;  %v1210_v44 = vmax.f32 %v1146_v28, 0.0  ;;  %v1090_v24 = vld [vmem:[%s1939_s6 + $0x170] sm:$0xff] }
  0xff   : > { %1430 = vst [vmem:[%s1953_s18 + $0x10] sm:$0xff] %v1673_v33  ;;  %1446 = vst [vmem:[%s1953_s18 + $0x90] sm:$0xff] %v1689_v34  ;;  %v1116_v41 = vadd.f32 %v1052_v31, %v710_v37  ;;  %v1148_v42 = vadd.f32 %v1084_v32, %v790_v38  ;;  %v1179_v45 = vmax.f32 %v1115_v35, 0.0  ;;  %v1211_v46 = vmax.f32 %v1147_v36, 0.0  ;;  %v1059_v33 = vld [vmem:[%s1939_s6 + $0x78] sm:$0xff] }
 0x100   : > { %v712_v47 = vpop.f32.mrf.mxu0  ;;  %v792_v48 = vpop.f32.mrf.mxu1  ;;  %v1091_v34 = vld [vmem:[%s1939_s6 + $0x178] sm:$0xff] }
 0x101   : > { %v1117_v49 = vadd.f32 %v1053_v39, %v712_v47  ;;  %v1149_v50 = vadd.f32 %v1085_v40, %v792_v48  ;;  %v1674_v53 = vpack.c.bf16 %v1179_v45, %v1178_v43  ;;  %v1690_v54 = vpack.c.bf16 %v1211_v46, %v1210_v44  ;;  %v1060_v39 = vld [vmem:[%s1939_s6 + $0x80] sm:$0xff]  ;;  %v1061_v47 = vld [vmem:[%s1939_s6 + $0x88] sm:$0xff] }
 0x102   : > { %v714_v55 = vpop.f32.mrf.mxu0  ;;  %v794_v56 = vpop.f32.mrf.mxu1  ;;  %v1180_v57 = vmax.f32 %v1116_v41, 0.0  ;;  %v1212_v58 = vmax.f32 %v1148_v42, 0.0  ;;  %v1092_v40 = vld [vmem:[%s1939_s6 + $0x180] sm:$0xff]  ;;  %v1093_v48 = vld [vmem:[%s1939_s6 + $0x188] sm:$0xff] }
 0x103   : > { %v1181_v59 = vmax.f32 %v1117_v49, 0.0  ;;  %v1213_v60 = vmax.f32 %v1149_v50, 0.0  ;;  %1431 = vst [vmem:[%s1953_s18 + $0x18] sm:$0xff] %v1674_v53  ;;  %1447 = vst [vmem:[%s1953_s18 + $0x98] sm:$0xff] %v1690_v54  ;;  %v1118_v63 = vadd.f32 %v1054_v51, %v714_v55  ;;  %v1150_v0 = vadd.f32 %v1086_v52, %v794_v56 }
 0x104   : > { %v716_v1 = vpop.f32.mrf.mxu0  ;;  %v796_v2 = vpop.f32.mrf.mxu1 }
 0x105   : > { %v1675_v5 = vpack.c.bf16 %v1181_v59, %v1180_v57  ;;  %v1691_v6 = vpack.c.bf16 %v1213_v60, %v1212_v58  ;;  %v1119_v7 = vadd.f32 %v1055_v61, %v716_v1  ;;  %v1151_v8 = vadd.f32 %v1087_v62, %v796_v2  ;;  %v1062_v59 = vld [vmem:[%s1939_s6 + $0x90] sm:$0xff] }
 0x106   : > { %v720_v9 = vpop.f32.mrf.mxu0  ;;  %v800_v10 = vpop.f32.mrf.mxu1  ;;  %v1182_v15 = vmax.f32 %v1118_v63, 0.0  ;;  %v1214_v16 = vmax.f32 %v1150_v0, 0.0  ;;  %v1094_v60 = vld [vmem:[%s1939_s6 + $0x190] sm:$0xff] }
 0x107   : > { %1432 = vst [vmem:[%s1953_s18 + $0x20] sm:$0xff] %v1675_v5  ;;  %1448 = vst [vmem:[%s1953_s18 + $0xa0] sm:$0xff] %v1691_v6  ;;  %v1120_v13 = vadd.f32 %v1056_v3, %v720_v9  ;;  %v1152_v14 = vadd.f32 %v1088_v4, %v800_v10  ;;  %v1183_v17 = vmax.f32 %v1119_v7, 0.0  ;;  %v1215_v18 = vmax.f32 %v1151_v8, 0.0  ;;  %v1063_v5 = vld [vmem:[%s1939_s6 + $0x98] sm:$0xff] }
 0x108   : > { %v722_v19 = vpop.f32.mrf.mxu0  ;;  %v802_v20 = vpop.f32.mrf.mxu1  ;;  %v1095_v6 = vld [vmem:[%s1939_s6 + $0x198] sm:$0xff] }
 0x109   : > { %v1121_v21 = vadd.f32 %v1057_v11, %v722_v19  ;;  %v1153_v22 = vadd.f32 %v1089_v12, %v802_v20  ;;  %v1676_v25 = vpack.c.bf16 %v1183_v17, %v1182_v15  ;;  %v1692_v26 = vpack.c.bf16 %v1215_v18, %v1214_v16  ;;  %v1064_v11 = vld [vmem:[%s1939_s6 + $0xa0] sm:$0xff]  ;;  %v1065_v19 = vld [vmem:[%s1939_s6 + $0xa8] sm:$0xff] }
 0x10a   : > { %v724_v27 = vpop.f32.mrf.mxu0  ;;  %v804_v28 = vpop.f32.mrf.mxu1  ;;  %v1184_v29 = vmax.f32 %v1120_v13, 0.0  ;;  %v1216_v30 = vmax.f32 %v1152_v14, 0.0  ;;  %v1096_v12 = vld [vmem:[%s1939_s6 + $0x1a0] sm:$0xff]  ;;  %v1097_v20 = vld [vmem:[%s1939_s6 + $0x1a8] sm:$0xff] }
 0x10b   : > { %v1185_v31 = vmax.f32 %v1121_v21, 0.0  ;;  %v1217_v32 = vmax.f32 %v1153_v22, 0.0  ;;  %1433 = vst [vmem:[%s1953_s18 + $0x28] sm:$0xff] %v1676_v25  ;;  %1449 = vst [vmem:[%s1953_s18 + $0xa8] sm:$0xff] %v1692_v26  ;;  %v1122_v35 = vadd.f32 %v1058_v23, %v724_v27  ;;  %v1154_v36 = vadd.f32 %v1090_v24, %v804_v28 }
 0x10c   : > { %v726_v37 = vpop.f32.mrf.mxu0  ;;  %v806_v38 = vpop.f32.mrf.mxu1 }
 0x10d   : > { %v1677_v41 = vpack.c.bf16 %v1185_v31, %v1184_v29  ;;  %v1693_v42 = vpack.c.bf16 %v1217_v32, %v1216_v30  ;;  %v1123_v43 = vadd.f32 %v1059_v33, %v726_v37  ;;  %v1155_v44 = vadd.f32 %v1091_v34, %v806_v38  ;;  %v1066_v31 = vld [vmem:[%s1939_s6 + $0xb0] sm:$0xff] }
 0x10e   : > { %v730_v45 = vpop.f32.mrf.mxu0  ;;  %v810_v46 = vpop.f32.mrf.mxu1  ;;  %v1186_v51 = vmax.f32 %v1122_v35, 0.0  ;;  %v1218_v52 = vmax.f32 %v1154_v36, 0.0  ;;  %v1098_v32 = vld [vmem:[%s1939_s6 + $0x1b0] sm:$0xff] }
 0x10f   : > { %1434 = vst [vmem:[%s1953_s18 + $0x30] sm:$0xff] %v1677_v41  ;;  %1450 = vst [vmem:[%s1953_s18 + $0xb0] sm:$0xff] %v1693_v42  ;;  %v1124_v49 = vadd.f32 %v1060_v39, %v730_v45  ;;  %v1156_v50 = vadd.f32 %v1092_v40, %v810_v46  ;;  %v1187_v53 = vmax.f32 %v1123_v43, 0.0  ;;  %v1219_v54 = vmax.f32 %v1155_v44, 0.0  ;;  %v1067_v41 = vld [vmem:[%s1939_s6 + $0xb8] sm:$0xff] }
 0x110   : > { %v732_v55 = vpop.f32.mrf.mxu0  ;;  %v812_v56 = vpop.f32.mrf.mxu1  ;;  %v1099_v42 = vld [vmem:[%s1939_s6 + $0x1b8] sm:$0xff] }
 0x111   : > { %v1125_v57 = vadd.f32 %v1061_v47, %v732_v55  ;;  %v1157_v58 = vadd.f32 %v1093_v48, %v812_v56  ;;  %v1678_v61 = vpack.c.bf16 %v1187_v53, %v1186_v51  ;;  %v1694_v62 = vpack.c.bf16 %v1219_v54, %v1218_v52  ;;  %v1068_v47 = vld [vmem:[%s1939_s6 + $0xc0] sm:$0xff]  ;;  %v1069_v55 = vld [vmem:[%s1939_s6 + $0xc8] sm:$0xff] }
 0x112   : > { %v734_v63 = vpop.f32.mrf.mxu0  ;;  %v814_v0 = vpop.f32.mrf.mxu1  ;;  %v1188_v1 = vmax.f32 %v1124_v49, 0.0  ;;  %v1220_v2 = vmax.f32 %v1156_v50, 0.0  ;;  %v1100_v48 = vld [vmem:[%s1939_s6 + $0x1c0] sm:$0xff]  ;;  %v1101_v56 = vld [vmem:[%s1939_s6 + $0x1c8] sm:$0xff] }
 0x113   : > { %v1189_v3 = vmax.f32 %v1125_v57, 0.0  ;;  %v1221_v4 = vmax.f32 %v1157_v58, 0.0  ;;  %1435 = vst [vmem:[%s1953_s18 + $0x38] sm:$0xff] %v1678_v61  ;;  %1451 = vst [vmem:[%s1953_s18 + $0xb8] sm:$0xff] %v1694_v62  ;;  %v1126_v7 = vadd.f32 %v1062_v59, %v734_v63  ;;  %v1158_v8 = vadd.f32 %v1094_v60, %v814_v0 }
 0x114   : > { %v736_v9 = vpop.f32.mrf.mxu0  ;;  %v816_v10 = vpop.f32.mrf.mxu1 }
 0x115   : > { %v1679_v13 = vpack.c.bf16 %v1189_v3, %v1188_v1  ;;  %v1695_v14 = vpack.c.bf16 %v1221_v4, %v1220_v2  ;;  %v1127_v15 = vadd.f32 %v1063_v5, %v736_v9  ;;  %v1159_v16 = vadd.f32 %v1095_v6, %v816_v10  ;;  %v1070_v3 = vld [vmem:[%s1939_s6 + $0xd0] sm:$0xff] }
 0x116   : > { %v740_v17 = vpop.f32.mrf.mxu0  ;;  %v820_v18 = vpop.f32.mrf.mxu1  ;;  %v1190_v23 = vmax.f32 %v1126_v7, 0.0  ;;  %v1222_v24 = vmax.f32 %v1158_v8, 0.0  ;;  %v1102_v4 = vld [vmem:[%s1939_s6 + $0x1d0] sm:$0xff] }
 0x117   : > { %1436 = vst [vmem:[%s1953_s18 + $0x40] sm:$0xff] %v1679_v13  ;;  %1452 = vst [vmem:[%s1953_s18 + $0xc0] sm:$0xff] %v1695_v14  ;;  %v1128_v21 = vadd.f32 %v1064_v11, %v740_v17  ;;  %v1160_v22 = vadd.f32 %v1096_v12, %v820_v18  ;;  %v1191_v25 = vmax.f32 %v1127_v15, 0.0  ;;  %v1223_v26 = vmax.f32 %v1159_v16, 0.0  ;;  %v1071_v13 = vld [vmem:[%s1939_s6 + $0xd8] sm:$0xff] }
 0x118   : > { %v742_v27 = vpop.f32.mrf.mxu0  ;;  %v822_v28 = vpop.f32.mrf.mxu1  ;;  %v1103_v14 = vld [vmem:[%s1939_s6 + $0x1d8] sm:$0xff] }
 0x119   : > { %v1129_v29 = vadd.f32 %v1065_v19, %v742_v27  ;;  %v1161_v30 = vadd.f32 %v1097_v20, %v822_v28  ;;  %v1680_v33 = vpack.c.bf16 %v1191_v25, %v1190_v23  ;;  %v1696_v34 = vpack.c.bf16 %v1223_v26, %v1222_v24  ;;  %v1072_v19 = vld [vmem:[%s1939_s6 + $0xe0] sm:$0xff]  ;;  %v1073_v27 = vld [vmem:[%s1939_s6 + $0xe8] sm:$0xff] }
 0x11a   : > { %v744_v35 = vpop.f32.mrf.mxu0  ;;  %v824_v36 = vpop.f32.mrf.mxu1  ;;  %v1192_v37 = vmax.f32 %v1128_v21, 0.0  ;;  %v1224_v38 = vmax.f32 %v1160_v22, 0.0  ;;  %v1104_v20 = vld [vmem:[%s1939_s6 + $0x1e0] sm:$0xff]  ;;  %v1105_v28 = vld [vmem:[%s1939_s6 + $0x1e8] sm:$0xff] }
 0x11b   : > { %v1193_v39 = vmax.f32 %v1129_v29, 0.0  ;;  %v1225_v40 = vmax.f32 %v1161_v30, 0.0  ;;  %1437 = vst [vmem:[%s1953_s18 + $0x48] sm:$0xff] %v1680_v33  ;;  %1453 = vst [vmem:[%s1953_s18 + $0xc8] sm:$0xff] %v1696_v34  ;;  %v1130_v43 = vadd.f32 %v1066_v31, %v744_v35  ;;  %v1162_v44 = vadd.f32 %v1098_v32, %v824_v36 }
 0x11c   : > { %v746_v45 = vpop.f32.mrf.mxu0  ;;  %v826_v46 = vpop.f32.mrf.mxu1 }
 0x11d   : > { %v1681_v49 = vpack.c.bf16 %v1193_v39, %v1192_v37  ;;  %v1697_v50 = vpack.c.bf16 %v1225_v40, %v1224_v38  ;;  %v1131_v51 = vadd.f32 %v1067_v41, %v746_v45  ;;  %v1163_v52 = vadd.f32 %v1099_v42, %v826_v46  ;;  %v1074_v39 = vld [vmem:[%s1939_s6 + $0xf0] sm:$0xff] }
 0x11e   : > { %v750_v53 = vpop.f32.mrf.mxu0  ;;  %v830_v54 = vpop.f32.mrf.mxu1  ;;  %v1194_v59 = vmax.f32 %v1130_v43, 0.0  ;;  %v1226_v60 = vmax.f32 %v1162_v44, 0.0  ;;  %v1106_v40 = vld [vmem:[%s1939_s6 + $0x1f0] sm:$0xff] }
 0x11f   : > { %1438 = vst [vmem:[%s1953_s18 + $0x50] sm:$0xff] %v1681_v49  ;;  %1454 = vst [vmem:[%s1953_s18 + $0xd0] sm:$0xff] %v1697_v50  ;;  %v1132_v57 = vadd.f32 %v1068_v47, %v750_v53  ;;  %v1164_v58 = vadd.f32 %v1100_v48, %v830_v54  ;;  %v1195_v61 = vmax.f32 %v1131_v51, 0.0  ;;  %v1227_v62 = vmax.f32 %v1163_v52, 0.0  ;;  %v1075_v49 = vld [vmem:[%s1939_s6 + $0xf8] sm:$0xff] }
 0x120   : > { %v752_v63 = vpop.f32.mrf.mxu0  ;;  %v832_v0 = vpop.f32.mrf.mxu1  ;;  %v1107_v50 = vld [vmem:[%s1939_s6 + $0x1f8] sm:$0xff] }
 0x121   : > { %v1133_v1 = vadd.f32 %v1069_v55, %v752_v63  ;;  %v1165_v2 = vadd.f32 %v1101_v56, %v832_v0  ;;  %v1682_v5 = vpack.c.bf16 %v1195_v61, %v1194_v59  ;;  %v1698_v6 = vpack.c.bf16 %v1227_v62, %v1226_v60 }
 0x122   : > { %v754_v7 = vpop.f32.mrf.mxu0  ;;  %v834_v8 = vpop.f32.mrf.mxu1  ;;  %v1196_v9 = vmax.f32 %v1132_v57, 0.0  ;;  %v1228_v10 = vmax.f32 %v1164_v58, 0.0 }
 0x123   : > { %v1197_v11 = vmax.f32 %v1133_v1, 0.0  ;;  %v1229_v12 = vmax.f32 %v1165_v2, 0.0  ;;  %1439 = vst [vmem:[%s1953_s18 + $0x58] sm:$0xff] %v1682_v5  ;;  %1455 = vst [vmem:[%s1953_s18 + $0xd8] sm:$0xff] %v1698_v6  ;;  %v1134_v15 = vadd.f32 %v1070_v3, %v754_v7  ;;  %v1166_v16 = vadd.f32 %v1102_v4, %v834_v8 }
 0x124   : > { %v756_v17 = vpop.f32.mrf.mxu0  ;;  %v836_v18 = vpop.f32.mrf.mxu1 }
 0x125   : > { %v1683_v21 = vpack.c.bf16 %v1197_v11, %v1196_v9  ;;  %v1699_v22 = vpack.c.bf16 %v1229_v12, %v1228_v10  ;;  %v1135_v23 = vadd.f32 %v1071_v13, %v756_v17  ;;  %v1167_v24 = vadd.f32 %v1103_v14, %v836_v18 }
 0x126   : > { %v760_v25 = vpop.f32.mrf.mxu0  ;;  %v840_v26 = vpop.f32.mrf.mxu1  ;;  %v1198_v31 = vmax.f32 %v1134_v15, 0.0  ;;  %v1230_v32 = vmax.f32 %v1166_v16, 0.0 }
 0x127   : > { %1440 = vst [vmem:[%s1953_s18 + $0x60] sm:$0xff] %v1683_v21  ;;  %1456 = vst [vmem:[%s1953_s18 + $0xe0] sm:$0xff] %v1699_v22  ;;  %v1136_v29 = vadd.f32 %v1072_v19, %v760_v25  ;;  %v1168_v30 = vadd.f32 %v1104_v20, %v840_v26  ;;  %v1199_v33 = vmax.f32 %v1135_v23, 0.0  ;;  %v1231_v34 = vmax.f32 %v1167_v24, 0.0 }
 0x128   : > { %v762_v35 = vpop.f32.mrf.mxu0  ;;  %v842_v36 = vpop.f32.mrf.mxu1 }
 0x129   : > { %v1137_v37 = vadd.f32 %v1073_v27, %v762_v35  ;;  %v1169_v38 = vadd.f32 %v1105_v28, %v842_v36  ;;  %v1684_v41 = vpack.c.bf16 %v1199_v33, %v1198_v31  ;;  %v1700_v42 = vpack.c.bf16 %v1231_v34, %v1230_v32 }
 0x12a   : > { %v764_v43 = vpop.f32.mrf.mxu0  ;;  %v844_v44 = vpop.f32.mrf.mxu1  ;;  %v1200_v45 = vmax.f32 %v1136_v29, 0.0  ;;  %v1232_v46 = vmax.f32 %v1168_v30, 0.0 }
 0x12b   : > { %v1201_v47 = vmax.f32 %v1137_v37, 0.0  ;;  %v1233_v48 = vmax.f32 %v1169_v38, 0.0  ;;  %1441 = vst [vmem:[%s1953_s18 + $0x68] sm:$0xff] %v1684_v41  ;;  %1457 = vst [vmem:[%s1953_s18 + $0xe8] sm:$0xff] %v1700_v42  ;;  %v1138_v51 = vadd.f32 %v1074_v39, %v764_v43  ;;  %v1170_v52 = vadd.f32 %v1106_v40, %v844_v44 }
 0x12c   : > { %v766_v53 = vpop.f32.mrf.mxu0  ;;  %v846_v54 = vpop.f32.mrf.mxu1 }
 0x12d   : > { %v1685_v55 = vpack.c.bf16 %v1201_v47, %v1200_v45  ;;  %v1701_v56 = vpack.c.bf16 %v1233_v48, %v1232_v46  ;;  %v1139_v57 = vadd.f32 %v1075_v49, %v766_v53  ;;  %v1171_v58 = vadd.f32 %v1107_v50, %v846_v54 }
 0x12e   : > { %v1202_v59 = vmax.f32 %v1138_v51, 0.0  ;;  %v1234_v60 = vmax.f32 %v1170_v52, 0.0 }
 0x12f   : > { %1442 = vst [vmem:[%s1953_s18 + $0x70] sm:$0xff] %v1685_v55  ;;  %1458 = vst [vmem:[%s1953_s18 + $0xf0] sm:$0xff] %v1701_v56  ;;  %v1203_v61 = vmax.f32 %v1139_v57, 0.0  ;;  %v1235_v62 = vmax.f32 %v1171_v58, 0.0 }
 0x131   : > { %v1686_v63 = vpack.c.bf16 %v1203_v61, %v1202_v59  ;;  %v1702_v0 = vpack.c.bf16 %v1235_v62, %v1234_v60 }
 0x133   : > { %1443 = vst [vmem:[%s1953_s18 + $0x78] sm:$0xff] %v1686_v63  ;;  %1459 = vst [vmem:[%s1953_s18 + $0xf8] sm:$0xff] %v1702_v0 }
 0x134 PF: > { %s13_s14 = sadd.s32 1, %s1806_s14   ;;  %s2056_s12 = smov %s1802_s13 }
 0x135   : > { %p10_p5 = scmp.ge.s32.totalorder %s13_s14, 6   ;;  %s2057_s13 = smov %s2059_s15 }
 0x137   :  { %12 = sbr.rel (!%p10_p5) target bundleno = 2 (0x2), region = 76 }

// kernel: video_resnet_forward.23
= control target key start
LH: loop header
LB: loop body
LE: loop exit
PB: predicated region body
PF: predicated region fallthrough
CT: control target
= control target key end

     0   :  { %s1421_s9 = smov 0   ;;  %s1423_s10 = smov 0   ;;  %s1747_s0 = inlined_call_operand.vmem [shape: bf16[128,256], index: 0, kind: input, shape index: {}]   ;;  %s1748_s1 = inlined_call_operand.vmem [shape: bf16[256,512], index: 1, kind: input, shape index: {}]   ;;  %s1749_s2 = inlined_call_operand.vmem [shape: f32[128,512], index: 2, kind: output, shape index: {}]  }
   0x1   :  { %s1425_s11 = smov 0   ;;  %s1427_s12 = smov 0  }
   0x2   :  { %s1429_s13 = smov 0  }
   0x3 LB: > { %s27_s14 = sadd.s32 1, %s1400_s12  ;;  %s1156_s15 = sadd.s32 4294967295, %s1404_s13   ;;  %s1404_s13 = sphi %s1429_s13, %s12_s13   ;;  %s1400_s12 = sphi %s1427_s12, %s1754_s12   ;;  %s1396_s11 = sphi %s1425_s11, %s1753_s11   ;;  %s1392_s10 = sphi %s1423_s10, %s1752_s10   ;;  %s1388_s9 = sphi %s1421_s9, %s1751_s9  }
   0x4   : > { %p29_p0 = scmp.ge.s32.totalorder %s27_s14, 2  ;;  %p75_p1 = scmp.ne.s32.totalorder %s1392_s10, %s1388_s9 }
   0x5   : > { %p76_p2 = scmp.eq.s32.totalorder %s1404_s13, 0  ;;  %p107_p4 = scmp.eq.s32.totalorder %s1156_s15, 1 }
   0x6   : > { %s1756_s14 = smov (%p29_p0, %s27_s14), 0  ;;  %s68_s17 = sadd.s32 1, %s1392_s10 }
   0x7   : > { %p77_p3 = por %p76_p2, %p75_p1  ;;  %s64_s16 = ssub.s32 %s1400_s12, %s1756_s14 }
   0x8   : > { %p66_p5 = scmp.eq.s32.totalorder %s64_s16, 0  ;;  %p1456_p6 = por %p107_p4, %p75_p1 }
   0x9   : > { %p1160_p7 = scmp.ge.s32.totalorder %s1404_s13, 2 }
   0xa   : > { %s1461_s19 = scalar_select %p66_p5, %s1392_s10, %s68_s17  }
   0xb   : > { %144 = sbr.rel (%p1160_p7) target bundleno = 36 (0x24), region = 20 }
  0x10   : > { %147 = sbr.rel (!%p77_p3) target bundleno = 36 (0x24), region = 24  ;;  %s149_s20 = sand.u32 (%p77_p3), 1, %s1392_s10  }
  0x11   : > { %s1220_s21 = sshll.u32 (%p77_p3), %s1400_s12, 3  ;;  %s1161_s22 = sshll.u32 (%p77_p3), %s149_s20, 8 }
  0x12   : > { %s1469_s25 = scalar_lea.vmem (%p77_p3), %s1748_s1, %s1220_s21  ;;  %s1474_s26 = scalar_lea.vmem (%p77_p3), [#allocation3], %s1161_s22 }
  0x13   : > { %v248_v0 = vld [vmem:[%s1469_s25] sm:$0xff] (%p77_p3)  ;;  %v250_v1 = vld [vmem:[%s1469_s25 + $0x10] sm:$0xff] (%p77_p3) }
  0x14   : > { %v252_v2 = vld [vmem:[%s1469_s25 + $0x20] sm:$0xff] (%p77_p3)  ;;  %249 = vst [vmem:[%s1474_s26] sm:$0xff] (%p77_p3), %v248_v0  ;;  %251 = vst [vmem:[%s1474_s26 + $0x8] sm:$0xff] (%p77_p3), %v250_v1  ;;  %v254_v3 = vld [vmem:[%s1469_s25 + $0x30] sm:$0xff] (%p77_p3) }
  0x15   : > { %253 = vst [vmem:[%s1474_s26 + $0x10] sm:$0xff] %v252_v2  ;;  %v256_v4 = vld [vmem:[%s1469_s25 + $0x40] sm:$0xff]  ;;  %v258_v5 = vld [vmem:[%s1469_s25 + $0x50] sm:$0xff]  ;;  %255 = vst [vmem:[%s1474_s26 + $0x18] sm:$0xff] %v254_v3 }
  0x16   : > { %257 = vst [vmem:[%s1474_s26 + $0x20] sm:$0xff] %v256_v4  ;;  %259 = vst [vmem:[%s1474_s26 + $0x28] sm:$0xff] %v258_v5  ;;  %v260_v6 = vld [vmem:[%s1469_s25 + $0x60] sm:$0xff]  ;;  %v262_v7 = vld [vmem:[%s1469_s25 + $0x70] sm:$0xff] }
  0x17   : > { %v264_v8 = vld [vmem:[%s1469_s25 + $0x80] sm:$0xff]  ;;  %261 = vst [vmem:[%s1474_s26 + $0x30] sm:$0xff] %v260_v6  ;;  %263 = vst [vmem:[%s1474_s26 + $0x38] sm:$0xff] %v262_v7  ;;  %v266_v9 = vld [vmem:[%s1469_s25 + $0x90] sm:$0xff] }
  0x18   : > { %265 = vst [vmem:[%s1474_s26 + $0x40] sm:$0xff] %v264_v8  ;;  %v268_v10 = vld [vmem:[%s1469_s25 + $0xa0] sm:$0xff]  ;;  %v270_v11 = vld [vmem:[%s1469_s25 + $0xb0] sm:$0xff]  ;;  %267 = vst [vmem:[%s1474_s26 + $0x48] sm:$0xff] %v266_v9 }
  0x19   : > { %269 = vst [vmem:[%s1474_s26 + $0x50] sm:$0xff] %v268_v10  ;;  %271 = vst [vmem:[%s1474_s26 + $0x58] sm:$0xff] %v270_v11  ;;  %v272_v12 = vld [vmem:[%s1469_s25 + $0xc0] sm:$0xff]  ;;  %v274_v13 = vld [vmem:[%s1469_s25 + $0xd0] sm:$0xff] }
  0x1a   : > { %v276_v14 = vld [vmem:[%s1469_s25 + $0xe0] sm:$0xff]  ;;  %273 = vst [vmem:[%s1474_s26 + $0x60] sm:$0xff] %v272_v12  ;;  %275 = vst [vmem:[%s1474_s26 + $0x68] sm:$0xff] %v274_v13  ;;  %v278_v15 = vld [vmem:[%s1469_s25 + $0xf0] sm:$0xff] }
  0x1b   : > { %277 = vst [vmem:[%s1474_s26 + $0x70] sm:$0xff] %v276_v14  ;;  %v280_v16 = vld [vmem:[%s1469_s25 + $0x100] sm:$0xff]  ;;  %v282_v17 = vld [vmem:[%s1469_s25 + $0x110] sm:$0xff]  ;;  %279 = vst [vmem:[%s1474_s26 + $0x78] sm:$0xff] %v278_v15 }
  0x1c   : > { %281 = vst [vmem:[%s1474_s26 + $0x80] sm:$0xff] %v280_v16  ;;  %283 = vst [vmem:[%s1474_s26 + $0x88] sm:$0xff] %v282_v17  ;;  %v284_v18 = vld [vmem:[%s1469_s25 + $0x120] sm:$0xff]  ;;  %v286_v19 = vld [vmem:[%s1469_s25 + $0x130] sm:$0xff] }
  0x1d   : > { %v288_v20 = vld [vmem:[%s1469_s25 + $0x140] sm:$0xff]  ;;  %285 = vst [vmem:[%s1474_s26 + $0x90] sm:$0xff] %v284_v18  ;;  %287 = vst [vmem:[%s1474_s26 + $0x98] sm:$0xff] %v286_v19  ;;  %v290_v21 = vld [vmem:[%s1469_s25 + $0x150] sm:$0xff] }
  0x1e   : > { %289 = vst [vmem:[%s1474_s26 + $0xa0] sm:$0xff] %v288_v20  ;;  %v292_v22 = vld [vmem:[%s1469_s25 + $0x160] sm:$0xff]  ;;  %v294_v23 = vld [vmem:[%s1469_s25 + $0x170] sm:$0xff]  ;;  %291 = vst [vmem:[%s1474_s26 + $0xa8] sm:$0xff] %v290_v21 }
  0x1f   : > { %293 = vst [vmem:[%s1474_s26 + $0xb0] sm:$0xff] %v292_v22  ;;  %295 = vst [vmem:[%s1474_s26 + $0xb8] sm:$0xff] %v294_v23  ;;  %v296_v24 = vld [vmem:[%s1469_s25 + $0x180] sm:$0xff]  ;;  %v298_v25 = vld [vmem:[%s1469_s25 + $0x190] sm:$0xff] }
  0x20   : > { %v300_v26 = vld [vmem:[%s1469_s25 + $0x1a0] sm:$0xff]  ;;  %297 = vst [vmem:[%s1474_s26 + $0xc0] sm:$0xff] %v296_v24  ;;  %299 = vst [vmem:[%s1474_s26 + $0xc8] sm:$0xff] %v298_v25  ;;  %v302_v27 = vld [vmem:[%s1469_s25 + $0x1b0] sm:$0xff] }
  0x21   : > { %301 = vst [vmem:[%s1474_s26 + $0xd0] sm:$0xff] %v300_v26  ;;  %v304_v28 = vld [vmem:[%s1469_s25 + $0x1c0] sm:$0xff]  ;;  %v306_v29 = vld [vmem:[%s1469_s25 + $0x1d0] sm:$0xff]  ;;  %303 = vst [vmem:[%s1474_s26 + $0xd8] sm:$0xff] %v302_v27 }
  0x22   : > { %305 = vst [vmem:[%s1474_s26 + $0xe0] sm:$0xff] %v304_v28  ;;  %307 = vst [vmem:[%s1474_s26 + $0xe8] sm:$0xff] %v306_v29  ;;  %v308_v30 = vld [vmem:[%s1469_s25 + $0x1e0] sm:$0xff]  ;;  %v310_v31 = vld [vmem:[%s1469_s25 + $0x1f0] sm:$0xff] }
  0x23   : > { %309 = vst [vmem:[%s1474_s26 + $0xf0] sm:$0xff] %v308_v30  ;;  %311 = vst [vmem:[%s1474_s26 + $0xf8] sm:$0xff] %v310_v31 }
  0x24 PF: > { %p1164_p8 = scmp.ge.s32.totalorder %s1404_s13, 1  ;;  %p316_p9 = scmp.lt.s32.totalorder %s1404_s13, 3 }
  0x26   : > { %p317_p10 = pnand %p1164_p8, %p316_p9 }
  0x27   : > { %s323_s27 = sand.u32 (!%p317_p10), 1, %s1388_s9  }
  0x28   : > { %320 = sbr.rel (%p317_p10) target bundleno = 344 (0x158), region = 62  ;;  %s1540_s28 = sshll.u32 (!%p317_p10), %s323_s27, 8 }
  0x29   : > { %s1549_s5 = scalar_lea.vmem (!%p317_p10), [#allocation3], %s1540_s28  ;;  %s1626_s21 = scalar_lea.vmem (!%p317_p10), [#allocation4], %s1540_s28 }
  0x2d   : > { %v1344_v32 = vld [vmem:[%s1747_s0 + $0x4] ss:$8 sps:$4 sm:$0xff]   ;;  %v1294_v34 = vld [vmem:[%s1549_s5 + $0x74] ss:$8 sps:$4 sm:$0xff]   ;;  %v1296_v35 = vld [vmem:[%s1549_s5 + $0x70] ss:$8 sps:$4 sm:$0xff]  }
  0x2e   : > { %v1347_v33 = vld [vmem:[%s1747_s0 + $0x44] ss:$8 sps:$4 sm:$0xff]   ;;  %757 = vmatprep.mubr.bf16.mxu0 %v1344_v32  ;;  %725 = vmatprep.subr.bf16.mxu0 %v1294_v34  ;;  %v1299_v37 = vld [vmem:[%s1549_s5 + $0x60] ss:$8 sps:$4 sm:$0xff]   ;;  %v1300_v38 = vld [vmem:[%s1549_s5 + $0x54] ss:$8 sps:$4 sm:$0xff]  }
  0x2f   : > { %797 = vmatprep.mubr.bf16.mxu1 %v1347_v33  ;;  %1222 = vmatprep.subr.bf16.mxu1 %v1294_v34  ;;  %v1297_v36 = vld [vmem:[%s1549_s5 + $0x64] ss:$8 sps:$4 sm:$0xff]   ;;  %v1302_v39 = vld [vmem:[%s1549_s5 + $0x50] ss:$8 sps:$4 sm:$0xff]   ;;  %v1305_v41 = vld [vmem:[%s1549_s5 + $0x40] ss:$8 sps:$4 sm:$0xff]  }
  0x30   : > { %726 = vmatpush1.bf16.msra.mxu0 %v1296_v35  ;;  %1238 = vmatpush1.bf16.msra.mxu1 %v1296_v35  ;;  %v1303_v40 = vld [vmem:[%s1549_s5 + $0x44] ss:$8 sps:$4 sm:$0xff]   ;;  %v1306_v42 = vld [vmem:[%s1549_s5 + $0x34] ss:$8 sps:$4 sm:$0xff]   ;;  %v1308_v43 = vld [vmem:[%s1549_s5 + $0x30] ss:$8 sps:$4 sm:$0xff]  }
  0x31   : > { %727 = vmatprep.subr.bf16.mxu0 %v1297_v36  ;;  %1223 = vmatprep.subr.bf16.mxu1 %v1297_v36  ;;  %v1309_v44 = vld [vmem:[%s1549_s5 + $0x24] ss:$8 sps:$4 sm:$0xff]   ;;  %v1311_v45 = vld [vmem:[%s1549_s5 + $0x20] ss:$8 sps:$4 sm:$0xff]   ;;  %v1312_v46 = vld [vmem:[%s1549_s5 + $0x14] ss:$8 sps:$4 sm:$0xff]  }
  0x32   : > { %v1314_v47 = vld [vmem:[%s1549_s5 + $0x10] ss:$8 sps:$4 sm:$0xff]   ;;  %v1315_v48 = vld [vmem:[%s1549_s5 + $0x4] ss:$8 sps:$4 sm:$0xff]   ;;  %v1317_v49 = vld [vmem:[%s1549_s5] ss:$8 sps:$4 sm:$0xff]  }
  0x33   : > { %v1318_v50 = vld [vmem:[%s1549_s5 + $0xf4] ss:$8 sps:$4 sm:$0xff]   ;;  %v1320_v51 = vld [vmem:[%s1549_s5 + $0xf0] ss:$8 sps:$4 sm:$0xff]   ;;  %v1321_v52 = vld [vmem:[%s1549_s5 + $0xe4] ss:$8 sps:$4 sm:$0xff]  }
  0x34   : > { %728 = vmatpush1.bf16.msra.mxu0 %v1299_v37  ;;  %1239 = vmatpush1.bf16.msra.mxu1 %v1299_v37  ;;  %v1323_v53 = vld [vmem:[%s1549_s5 + $0xe0] ss:$8 sps:$4 sm:$0xff]   ;;  %v1324_v54 = vld [vmem:[%s1549_s5 + $0xd4] ss:$8 sps:$4 sm:$0xff]   ;;  %v1326_v55 = vld [vmem:[%s1549_s5 + $0xd0] ss:$8 sps:$4 sm:$0xff]  }
  0x35   : > { %729 = vmatprep.subr.bf16.mxu0 %v1300_v38  ;;  %1224 = vmatprep.subr.bf16.mxu1 %v1300_v38  ;;  %v1327_v56 = vld [vmem:[%s1549_s5 + $0xc4] ss:$8 sps:$4 sm:$0xff]   ;;  %v1329_v57 = vld [vmem:[%s1549_s5 + $0xc0] ss:$8 sps:$4 sm:$0xff]   ;;  %v1330_v58 = vld [vmem:[%s1549_s5 + $0xb4] ss:$8 sps:$4 sm:$0xff]  }
  0x36   : > { %v1332_v59 = vld [vmem:[%s1549_s5 + $0xb0] ss:$8 sps:$4 sm:$0xff]   ;;  %v1333_v60 = vld [vmem:[%s1549_s5 + $0xa4] ss:$8 sps:$4 sm:$0xff]   ;;  %v1335_v61 = vld [vmem:[%s1549_s5 + $0xa0] ss:$8 sps:$4 sm:$0xff]  }
  0x37   : > { %v1336_v62 = vld [vmem:[%s1549_s5 + $0x94] ss:$8 sps:$4 sm:$0xff]   ;;  %v1338_v63 = vld [vmem:[%s1549_s5 + $0x90] ss:$8 sps:$4 sm:$0xff]   ;;  %v1339_v0 = vld [vmem:[%s1549_s5 + $0x84] ss:$8 sps:$4 sm:$0xff]  }
  0x38   : > { %730 = vmatpush1.bf16.msra.mxu0 %v1302_v39  ;;  %1240 = vmatpush1.bf16.msra.mxu1 %v1302_v39  ;;  %v1341_v1 = vld [vmem:[%s1549_s5 + $0x80] ss:$8 sps:$4 sm:$0xff]   ;;  %v1348_v4 = vld [vmem:[%s1747_s0 + $0x14] ss:$8 sps:$4 sm:$0xff]   ;;  %v1352_v6 = vld [vmem:[%s1747_s0 + $0x10] ss:$8 sps:$4 sm:$0xff]  }
  0x39   : > { %731 = vmatprep.subr.bf16.mxu0 %v1303_v40  ;;  %1225 = vmatprep.subr.bf16.mxu1 %v1303_v40  ;;  %v1342_v2 = vld [vmem:[%s1747_s0] ss:$8 sps:$4 sm:$0xff]   ;;  %v1350_v5 = vld [vmem:[%s1747_s0 + $0x54] ss:$8 sps:$4 sm:$0xff]   ;;  %v1353_v7 = vld [vmem:[%s1747_s0 + $0x50] ss:$8 sps:$4 sm:$0xff]  }
  0x3a   : > { %v1345_v3 = vld [vmem:[%s1747_s0 + $0x40] ss:$8 sps:$4 sm:$0xff]   ;;  %v1354_v8 = vld [vmem:[%s1747_s0 + $0x24] ss:$8 sps:$4 sm:$0xff]   ;;  %v1360_v12 = vld [vmem:[%s1747_s0 + $0x34] ss:$8 sps:$4 sm:$0xff]  }
  0x3b   : > { %v1356_v9 = vld [vmem:[%s1747_s0 + $0x64] ss:$8 sps:$4 sm:$0xff]   ;;  %v1358_v10 = vld [vmem:[%s1747_s0 + $0x20] ss:$8 sps:$4 sm:$0xff]   ;;  %v1362_v13 = vld [vmem:[%s1747_s0 + $0x74] ss:$8 sps:$4 sm:$0xff]  }
  0x3c   : > { %732 = vmatpush1.bf16.msra.mxu0 %v1305_v41  ;;  %1241 = vmatpush1.bf16.msra.mxu1 %v1305_v41  ;;  %v1359_v11 = vld [vmem:[%s1747_s0 + $0x60] ss:$8 sps:$4 sm:$0xff]   ;;  %v1364_v14 = vld [vmem:[%s1747_s0 + $0x30] ss:$8 sps:$4 sm:$0xff]   ;;  %s1221_s28 = sshll.u32 (%p1456_p6), %s1396_s11, 4 }
  0x3d   : > { %733 = vmatprep.subr.bf16.mxu0 %v1306_v42  ;;  %1226 = vmatprep.subr.bf16.mxu1 %v1306_v42  ;;  %v1365_v15 = vld [vmem:[%s1747_s0 + $0x70] ss:$8 sps:$4 sm:$0xff]   ;;  %s1669_s24 = scalar_lea.vmem (%p1456_p6), %s1749_s2, %s1221_s28 }
  0x40   : > { %734 = vmatpush1.bf16.msra.mxu0 %v1308_v43  ;;  %1242 = vmatpush1.bf16.msra.mxu1 %v1308_v43 }
  0x41   : > { %735 = vmatprep.subr.bf16.mxu0 %v1309_v44  ;;  %1227 = vmatprep.subr.bf16.mxu1 %v1309_v44 }
  0x44   : > { %736 = vmatpush1.bf16.msra.mxu0 %v1311_v45  ;;  %1243 = vmatpush1.bf16.msra.mxu1 %v1311_v45 }
  0x45   : > { %737 = vmatprep.subr.bf16.mxu0 %v1312_v46  ;;  %1228 = vmatprep.subr.bf16.mxu1 %v1312_v46 }
  0x48   : > { %738 = vmatpush1.bf16.msra.mxu0 %v1314_v47  ;;  %1244 = vmatpush1.bf16.msra.mxu1 %v1314_v47 }
  0x49   : > { %739 = vmatprep.subr.bf16.mxu0 %v1315_v48  ;;  %1229 = vmatprep.subr.bf16.mxu1 %v1315_v48 }
  0x4c   : > { %740 = vmatpush1.bf16.msra.mxu0 %v1317_v49  ;;  %1245 = vmatpush1.bf16.msra.mxu1 %v1317_v49 }
  0x4d   : > { %741 = vmatprep.subr.bf16.mxu0 %v1318_v50  ;;  %1230 = vmatprep.subr.bf16.mxu1 %v1318_v50 }
  0x50   : > { %742 = vmatpush2.bf16.msra.mxu0 %v1320_v51  ;;  %1246 = vmatpush2.bf16.msra.mxu1 %v1320_v51 }
  0x51   : > { %743 = vmatprep.subr.bf16.mxu0 %v1321_v52  ;;  %1231 = vmatprep.subr.bf16.mxu1 %v1321_v52 }
  0x54   : > { %744 = vmatpush2.bf16.msra.mxu0 %v1323_v53  ;;  %1247 = vmatpush2.bf16.msra.mxu1 %v1323_v53 }
  0x55   : > { %745 = vmatprep.subr.bf16.mxu0 %v1324_v54  ;;  %1232 = vmatprep.subr.bf16.mxu1 %v1324_v54 }
  0x58   : > { %746 = vmatpush2.bf16.msra.mxu0 %v1326_v55  ;;  %1248 = vmatpush2.bf16.msra.mxu1 %v1326_v55 }
  0x59   : > { %747 = vmatprep.subr.bf16.mxu0 %v1327_v56  ;;  %1233 = vmatprep.subr.bf16.mxu1 %v1327_v56 }
  0x5c   : > { %748 = vmatpush2.bf16.msra.mxu0 %v1329_v57  ;;  %1249 = vmatpush2.bf16.msra.mxu1 %v1329_v57 }
  0x5d   : > { %749 = vmatprep.subr.bf16.mxu0 %v1330_v58  ;;  %1234 = vmatprep.subr.bf16.mxu1 %v1330_v58 }
  0x60   : > { %750 = vmatpush2.bf16.msra.mxu0 %v1332_v59  ;;  %1250 = vmatpush2.bf16.msra.mxu1 %v1332_v59 }
  0x61   : > { %751 = vmatprep.subr.bf16.mxu0 %v1333_v60  ;;  %1235 = vmatprep.subr.bf16.mxu1 %v1333_v60 }
  0x64   : > { %752 = vmatpush2.bf16.msra.mxu0 %v1335_v61  ;;  %1251 = vmatpush2.bf16.msra.mxu1 %v1335_v61 }
  0x65   : > { %753 = vmatprep.subr.bf16.mxu0 %v1336_v62  ;;  %1236 = vmatprep.subr.bf16.mxu1 %v1336_v62 }
  0x68   : > { %754 = vmatpush2.bf16.msra.mxu0 %v1338_v63  ;;  %1252 = vmatpush2.bf16.msra.mxu1 %v1338_v63 }
  0x69   : > { %755 = vmatprep.subr.bf16.mxu0 %v1339_v0  ;;  %1237 = vmatprep.subr.bf16.mxu1 %v1339_v0 }
  0x6c   : > { %756 = vmatpush2.bf16.msra.mxu0 %v1341_v1  ;;  %1253 = vmatpush2.bf16.msra.mxu1 %v1341_v1 }
  0x6f   : > { %758 = vmatmul.mubr.bf16.vlgmr.msra.gmra.mxu0 %v1342_v2  ;;  %798 = vmatmul.mubr.bf16.vlgmr.msra.gmra.mxu1 %v1345_v3 }
  0x70   : > { %767 = vmatprep.mubr.bf16.mxu0 %v1348_v4  ;;  %807 = vmatprep.mubr.bf16.mxu1 %v1350_v5 }
  0x77   : > { %768 = vmatmul.mubr.bf16.gmra.mxu0 %v1352_v6  ;;  %808 = vmatmul.mubr.bf16.gmra.mxu1 %v1353_v7 }
  0x78   : > { %777 = vmatprep.mubr.bf16.mxu0 %v1354_v8  ;;  %817 = vmatprep.mubr.bf16.mxu1 %v1356_v9 }
  0x7f   : > { %778 = vmatmul.mubr.bf16.gmra.mxu0 %v1358_v10  ;;  %818 = vmatmul.mubr.bf16.gmra.mxu1 %v1359_v11 }
  0x80   : > { %787 = vmatprep.mubr.bf16.mxu0 %v1360_v12  ;;  %827 = vmatprep.mubr.bf16.mxu1 %v1362_v13 }
  0x87   : > { %788 = vmatmul.mubr.bf16.gmra.mxu0 %v1364_v14  ;;  %828 = vmatmul.mubr.bf16.gmra.mxu1 %v1365_v15 }
 0x12f   : > { %v759_v16 = vpop.f32.mrf.mxu0  ;;  %v799_v17 = vpop.f32.mrf.mxu1 }
 0x130   : > { %937 = vst [vmem:[%s1626_s21] sm:$0xff] %v759_v16  ;;  %953 = vst [vmem:[%s1626_s21 + $0x80] sm:$0xff] %v799_v17 }
 0x131   : > { %v761_v18 = vpop.f32.mrf.mxu0  ;;  %v801_v19 = vpop.f32.mrf.mxu1 }
 0x132   : > { %938 = vst [vmem:[%s1626_s21 + $0x8] sm:$0xff] %v761_v18  ;;  %954 = vst [vmem:[%s1626_s21 + $0x88] sm:$0xff] %v801_v19 }
 0x133   : > { %v763_v20 = vpop.f32.mrf.mxu0  ;;  %v803_v21 = vpop.f32.mrf.mxu1 }
 0x134   : > { %939 = vst [vmem:[%s1626_s21 + $0x10] sm:$0xff] %v763_v20  ;;  %955 = vst [vmem:[%s1626_s21 + $0x90] sm:$0xff] %v803_v21 }
 0x135   : > { %v765_v22 = vpop.f32.mrf.mxu0  ;;  %v805_v23 = vpop.f32.mrf.mxu1 }
 0x136   : > { %940 = vst [vmem:[%s1626_s21 + $0x18] sm:$0xff] %v765_v22  ;;  %956 = vst [vmem:[%s1626_s21 + $0x98] sm:$0xff] %v805_v23 }
 0x137   : > { %v769_v24 = vpop.f32.mrf.mxu0  ;;  %v809_v25 = vpop.f32.mrf.mxu1  ;;  %v994_v48 = vld [vmem:[%s1626_s21] sm:$0xff] (%p1456_p6) }
 0x138   : > { %941 = vst [vmem:[%s1626_s21 + $0x20] sm:$0xff] %v769_v24  ;;  %957 = vst [vmem:[%s1626_s21 + $0xa0] sm:$0xff] %v809_v25  ;;  %v1026_v0 = vld [vmem:[%s1626_s21 + $0x80] sm:$0xff] (%p1456_p6) }
 0x139   : > { %v771_v26 = vpop.f32.mrf.mxu0  ;;  %v811_v27 = vpop.f32.mrf.mxu1  ;;  %v996_v49 = vld [vmem:[%s1626_s21 + $0x8] sm:$0xff] (%p1456_p6)  ;;  %995 = vst [vmem:[%s1669_s24] sm:$0xff] (%p1456_p6), %v994_v48  ;;  %1027 = vst [vmem:[%s1669_s24 + $0x100] sm:$0xff] (%p1456_p6), %v1026_v0 }
 0x13a   : > { %942 = vst [vmem:[%s1626_s21 + $0x28] sm:$0xff] %v771_v26  ;;  %958 = vst [vmem:[%s1626_s21 + $0xa8] sm:$0xff] %v811_v27  ;;  %v1028_v1 = vld [vmem:[%s1626_s21 + $0x88] sm:$0xff] (%p1456_p6) }
 0x13b   : > { %v773_v28 = vpop.f32.mrf.mxu0  ;;  %v813_v29 = vpop.f32.mrf.mxu1  ;;  %v998_v50 = vld [vmem:[%s1626_s21 + $0x10] sm:$0xff] (%p1456_p6)  ;;  %997 = vst [vmem:[%s1669_s24 + $0x8] sm:$0xff] (%p1456_p6), %v996_v49  ;;  %1029 = vst [vmem:[%s1669_s24 + $0x108] sm:$0xff] (%p1456_p6), %v1028_v1 }
 0x13c   : > { %943 = vst [vmem:[%s1626_s21 + $0x30] sm:$0xff] %v773_v28  ;;  %959 = vst [vmem:[%s1626_s21 + $0xb0] sm:$0xff] %v813_v29  ;;  %v1030_v2 = vld [vmem:[%s1626_s21 + $0x90] sm:$0xff] (%p1456_p6) }
 0x13d   : > { %v775_v30 = vpop.f32.mrf.mxu0  ;;  %v815_v31 = vpop.f32.mrf.mxu1  ;;  %v1000_v51 = vld [vmem:[%s1626_s21 + $0x18] sm:$0xff] (%p1456_p6)  ;;  %999 = vst [vmem:[%s1669_s24 + $0x20] sm:$0xff] (%p1456_p6), %v998_v50  ;;  %1031 = vst [vmem:[%s1669_s24 + $0x120] sm:$0xff] (%p1456_p6), %v1030_v2 }
 0x13e   : > { %944 = vst [vmem:[%s1626_s21 + $0x38] sm:$0xff] %v775_v30  ;;  %960 = vst [vmem:[%s1626_s21 + $0xb8] sm:$0xff] %v815_v31  ;;  %v1032_v3 = vld [vmem:[%s1626_s21 + $0x98] sm:$0xff] (%p1456_p6) }
 0x13f   : > { %v779_v32 = vpop.f32.mrf.mxu0  ;;  %v819_v33 = vpop.f32.mrf.mxu1  ;;  %v1002_v52 = vld [vmem:[%s1626_s21 + $0x20] sm:$0xff] (%p1456_p6)  ;;  %1001 = vst [vmem:[%s1669_s24 + $0x28] sm:$0xff] (%p1456_p6), %v1000_v51  ;;  %1033 = vst [vmem:[%s1669_s24 + $0x128] sm:$0xff] (%p1456_p6), %v1032_v3 }
 0x140   : > { %945 = vst [vmem:[%s1626_s21 + $0x40] sm:$0xff] %v779_v32  ;;  %961 = vst [vmem:[%s1626_s21 + $0xc0] sm:$0xff] %v819_v33  ;;  %v1034_v4 = vld [vmem:[%s1626_s21 + $0xa0] sm:$0xff] (%p1456_p6) }
 0x141   : > { %v781_v34 = vpop.f32.mrf.mxu0  ;;  %v821_v35 = vpop.f32.mrf.mxu1  ;;  %v1004_v53 = vld [vmem:[%s1626_s21 + $0x28] sm:$0xff] (%p1456_p6)  ;;  %1003 = vst [vmem:[%s1669_s24 + $0x40] sm:$0xff] (%p1456_p6), %v1002_v52  ;;  %1035 = vst [vmem:[%s1669_s24 + $0x140] sm:$0xff] (%p1456_p6), %v1034_v4 }
 0x142   : > { %946 = vst [vmem:[%s1626_s21 + $0x48] sm:$0xff] %v781_v34  ;;  %962 = vst [vmem:[%s1626_s21 + $0xc8] sm:$0xff] %v821_v35  ;;  %v1036_v5 = vld [vmem:[%s1626_s21 + $0xa8] sm:$0xff] (%p1456_p6) }
 0x143   : > { %v783_v36 = vpop.f32.mrf.mxu0  ;;  %v823_v37 = vpop.f32.mrf.mxu1  ;;  %1005 = vst [vmem:[%s1669_s24 + $0x48] sm:$0xff] (%p1456_p6), %v1004_v53  ;;  %v1006_v54 = vld [vmem:[%s1626_s21 + $0x30] sm:$0xff] (%p1456_p6)  ;;  %1037 = vst [vmem:[%s1669_s24 + $0x148] sm:$0xff] (%p1456_p6), %v1036_v5 }
 0x144   : > { %947 = vst [vmem:[%s1626_s21 + $0x50] sm:$0xff] %v783_v36  ;;  %963 = vst [vmem:[%s1626_s21 + $0xd0] sm:$0xff] %v823_v37  ;;  %v1038_v6 = vld [vmem:[%s1626_s21 + $0xb0] sm:$0xff] (%p1456_p6) }
 0x145   : > { %v785_v38 = vpop.f32.mrf.mxu0  ;;  %v825_v39 = vpop.f32.mrf.mxu1  ;;  %v1008_v55 = vld [vmem:[%s1626_s21 + $0x38] sm:$0xff] (%p1456_p6)  ;;  %1007 = vst [vmem:[%s1669_s24 + $0x60] sm:$0xff] (%p1456_p6), %v1006_v54  ;;  %1039 = vst [vmem:[%s1669_s24 + $0x160] sm:$0xff] (%p1456_p6), %v1038_v6 }
 0x146   : > { %948 = vst [vmem:[%s1626_s21 + $0x58] sm:$0xff] %v785_v38  ;;  %964 = vst [vmem:[%s1626_s21 + $0xd8] sm:$0xff] %v825_v39  ;;  %v1040_v7 = vld [vmem:[%s1626_s21 + $0xb8] sm:$0xff] (%p1456_p6) }
 0x147   : > { %v789_v40 = vpop.f32.mrf.mxu0  ;;  %v829_v41 = vpop.f32.mrf.mxu1  ;;  %v1010_v56 = vld [vmem:[%s1626_s21 + $0x40] sm:$0xff] (%p1456_p6)  ;;  %1009 = vst [vmem:[%s1669_s24 + $0x68] sm:$0xff] (%p1456_p6), %v1008_v55  ;;  %1041 = vst [vmem:[%s1669_s24 + $0x168] sm:$0xff] (%p1456_p6), %v1040_v7 }
 0x148   : > { %949 = vst [vmem:[%s1626_s21 + $0x60] sm:$0xff] %v789_v40  ;;  %965 = vst [vmem:[%s1626_s21 + $0xe0] sm:$0xff] %v829_v41  ;;  %v1042_v8 = vld [vmem:[%s1626_s21 + $0xc0] sm:$0xff] (%p1456_p6) }
 0x149   : > { %v791_v42 = vpop.f32.mrf.mxu0  ;;  %v831_v43 = vpop.f32.mrf.mxu1  ;;  %1011 = vst [vmem:[%s1669_s24 + $0x80] sm:$0xff] (%p1456_p6), %v1010_v56  ;;  %v1012_v57 = vld [vmem:[%s1626_s21 + $0x48] sm:$0xff] (%p1456_p6)  ;;  %1043 = vst [vmem:[%s1669_s24 + $0x180] sm:$0xff] (%p1456_p6), %v1042_v8 }
 0x14a   : > { %950 = vst [vmem:[%s1626_s21 + $0x68] sm:$0xff] %v791_v42  ;;  %966 = vst [vmem:[%s1626_s21 + $0xe8] sm:$0xff] %v831_v43  ;;  %975 = sbr.rel (!%p1456_p6) target bundleno = 344 (0x158), region = 78  ;;  %v1044_v9 = vld [vmem:[%s1626_s21 + $0xc8] sm:$0xff] (%p1456_p6) }
 0x14b   : > { %v793_v44 = vpop.f32.mrf.mxu0  ;;  %v833_v45 = vpop.f32.mrf.mxu1  ;;  %v1014_v58 = vld [vmem:[%s1626_s21 + $0x50] sm:$0xff] (%p1456_p6)  ;;  %1013 = vst [vmem:[%s1669_s24 + $0x88] sm:$0xff] (%p1456_p6), %v1012_v57  ;;  %1045 = vst [vmem:[%s1669_s24 + $0x188] sm:$0xff] (%p1456_p6), %v1044_v9 }
 0x14c   : > { %951 = vst [vmem:[%s1626_s21 + $0x70] sm:$0xff] %v793_v44  ;;  %967 = vst [vmem:[%s1626_s21 + $0xf0] sm:$0xff] %v833_v45  ;;  %v1046_v10 = vld [vmem:[%s1626_s21 + $0xd0] sm:$0xff] (%p1456_p6) }
 0x14d   : > { %v795_v46 = vpop.f32.mrf.mxu0  ;;  %v835_v47 = vpop.f32.mrf.mxu1  ;;  %v1016_v59 = vld [vmem:[%s1626_s21 + $0x58] sm:$0xff] (%p1456_p6)  ;;  %1015 = vst [vmem:[%s1669_s24 + $0xa0] sm:$0xff] (%p1456_p6), %v1014_v58  ;;  %1047 = vst [vmem:[%s1669_s24 + $0x1a0] sm:$0xff] (%p1456_p6), %v1046_v10 }
 0x14e   : > { %952 = vst [vmem:[%s1626_s21 + $0x78] sm:$0xff] %v795_v46  ;;  %968 = vst [vmem:[%s1626_s21 + $0xf8] sm:$0xff] %v835_v47  ;;  %v1048_v11 = vld [vmem:[%s1626_s21 + $0xd8] sm:$0xff] (%p1456_p6) }
 0x14f   : > { %1017 = vst [vmem:[%s1669_s24 + $0xa8] sm:$0xff] %v1016_v59  ;;  %v1018_v60 = vld [vmem:[%s1626_s21 + $0x60] sm:$0xff]  ;;  %1049 = vst [vmem:[%s1669_s24 + $0x1a8] sm:$0xff] %v1048_v11 }
 0x150   : > { %1019 = vst [vmem:[%s1669_s24 + $0xc0] sm:$0xff] %v1018_v60  ;;  %v1050_v12 = vld [vmem:[%s1626_s21 + $0xe0] sm:$0xff] }
 0x151   : > { %v1020_v61 = vld [vmem:[%s1626_s21 + $0x68] sm:$0xff]  ;;  %1051 = vst [vmem:[%s1669_s24 + $0x1c0] sm:$0xff] %v1050_v12 }
 0x152   : > { %1021 = vst [vmem:[%s1669_s24 + $0xc8] sm:$0xff] %v1020_v61  ;;  %v1052_v13 = vld [vmem:[%s1626_s21 + $0xe8] sm:$0xff] }
 0x153   : > { %v1022_v62 = vld [vmem:[%s1626_s21 + $0x70] sm:$0xff]  ;;  %1053 = vst [vmem:[%s1669_s24 + $0x1c8] sm:$0xff] %v1052_v13 }
 0x154   : > { %1023 = vst [vmem:[%s1669_s24 + $0xe0] sm:$0xff] %v1022_v62  ;;  %v1054_v14 = vld [vmem:[%s1626_s21 + $0xf0] sm:$0xff] }
 0x155   : > { %v1024_v63 = vld [vmem:[%s1626_s21 + $0x78] sm:$0xff]  ;;  %1055 = vst [vmem:[%s1669_s24 + $0x1e0] sm:$0xff] %v1054_v14 }
 0x156   : > { %1025 = vst [vmem:[%s1669_s24 + $0xe8] sm:$0xff] %v1024_v63  ;;  %v1056_v15 = vld [vmem:[%s1626_s21 + $0xf8] sm:$0xff] }
 0x157   : > { %1057 = vst [vmem:[%s1669_s24 + $0x1e8] sm:$0xff] %v1056_v15 }
 0x158 PF: > { %s12_s13 = sadd.s32 1, %s1404_s13   ;;  %s1751_s9 = smov %s1392_s10 }
 0x159   : > { %p9_p11 = scmp.ge.s32.totalorder %s12_s13, 4   ;;  %s1752_s10 = smov %s1461_s19 }
 0x15a   : > { %s1753_s11 = smov %s1400_s12  ;;  %s1754_s12 = smov %s1756_s14 }
 0x15b   :  { %11 = sbr.rel (!%p9_p11) target bundleno = 3 (0x3), region = 135 }

// kernel: video_resnet_forward.25
= control target key start
LH: loop header
LB: loop body
LE: loop exit
PB: predicated region body
PF: predicated region fallthrough
CT: control target
= control target key end

     0   :  { %s1109_s9 = smov 0   ;;  %s1111_s10 = smov 0   ;;  %s1238_s0 = inlined_call_operand.vmem [shape: bf16[128,3456], index: 0, kind: input, shape index: {}]   ;;  %s1239_s1 = inlined_call_operand.vmem [shape: bf16[3456,128], index: 1, kind: input, shape index: {}]   ;;  %s1240_s2 = inlined_call_operand.vmem [shape: bf16[128,128], index: 2, kind: output, shape index: {}]  }
   0x1   :  { %s1113_s11 = smov 0   ;;  %s1115_s12 = smov 0  }
   0x2   :  { %s1117_s13 = smov 0  }
   0x3 LB: > { %s24_s14 = sadd.s32 1, %s1087_s12  ;;  %p47_p1 = scmp.ne.s32.totalorder %s1079_s10, %s1075_s9  ;;  %s1091_s13 = sphi %s1117_s13, %s12_s13   ;;  %s1087_s12 = sphi %s1115_s12, %s1244_s12   ;;  %s1083_s11 = sphi %s1113_s11, %s1243_s11   ;;  %s1079_s10 = sphi %s1111_s10, %s1242_s10   ;;  %s1075_s9 = sphi %s1109_s9, %s1241_s9  }
   0x4   : > { %p25_p0 = scmp.ge.s32.totalorder %s24_s14, 27  ;;  %p48_p2 = scmp.eq.s32.totalorder %s1091_s13, 0 }
   0x5   : > { %s40_s16 = sadd.s32 1, %s1079_s10  ;;  %p824_p5 = scmp.ge.s32.totalorder %s1091_s13, 27 }
   0x6   : > { %s1246_s14 = smov (%p25_p0, %s24_s14), 0  ;;  %p49_p3 = por %p48_p2, %p47_p1 }
   0x7   : > { %s36_s15 = ssub.s32 %s1087_s12, %s1246_s14  ;;  %129 = sbr.rel (%p824_p5) target bundleno = 26 (0x1a), region = 16 }
   0x8   : > { %p38_p4 = scmp.eq.s32.totalorder %s36_s15, 0 }
   0xa   : > { %s1144_s17 = scalar_select %p38_p4, %s1079_s10, %s40_s16  }
   0xc   : > { %132 = sbr.rel (!%p49_p3) target bundleno = 26 (0x1a), region = 20  ;;  %s134_s18 = sand.u32 (%p49_p3), 1, %s1079_s10  }
   0xd   : > { %s826_s19 = sshll.u32 (%p49_p3), %s1087_s12, 2  ;;  %s825_s20 = sshll.u32 (%p49_p3), %s134_s18, 6 }
   0xe   : > { %s1152_s23 = scalar_lea.vmem (%p49_p3), %s1238_s0, %s826_s19  ;;  %s136_s24 = scalar_lea.vmem (%p49_p3), [#allocation3], %s825_s20 }
   0xf   : > { %v158_v0 = vld [vmem:[%s1152_s23] sm:$0xf] (%p49_p3)  ;;  %v160_v1 = vld [vmem:[%s1152_s23 + $0x6c] sm:$0xf] (%p49_p3)  ;;  %v162_v2 = vld [vmem:[%s1152_s23 + $0xd8] sm:$0xf] (%p49_p3) }
  0x10   : > { %159 = vst [vmem:[%s136_s24] sm:$0xf] (%p49_p3), %v158_v0  ;;  %161 = vst [vmem:[%s136_s24 + $0x4] sm:$0xf] (%p49_p3), %v160_v1  ;;  %v164_v3 = vld [vmem:[%s1152_s23 + $0x144] sm:$0xf] (%p49_p3) }
  0x11   : > { %v166_v4 = vld [vmem:[%s1152_s23 + $0x1b0] sm:$0xf]  ;;  %163 = vst [vmem:[%s136_s24 + $0x8] sm:$0xf] %v162_v2  ;;  %165 = vst [vmem:[%s136_s24 + $0xc] sm:$0xf] %v164_v3 }
  0x12   : > { %167 = vst [vmem:[%s136_s24 + $0x10] sm:$0xf] %v166_v4  ;;  %v168_v5 = vld [vmem:[%s1152_s23 + $0x21c] sm:$0xf]  ;;  %v170_v6 = vld [vmem:[%s1152_s23 + $0x288] sm:$0xf] }
  0x13   : > { %v172_v7 = vld [vmem:[%s1152_s23 + $0x2f4] sm:$0xf]  ;;  %169 = vst [vmem:[%s136_s24 + $0x14] sm:$0xf] %v168_v5  ;;  %171 = vst [vmem:[%s136_s24 + $0x18] sm:$0xf] %v170_v6 }
  0x14   : > { %173 = vst [vmem:[%s136_s24 + $0x1c] sm:$0xf] %v172_v7  ;;  %v174_v8 = vld [vmem:[%s1152_s23 + $0x360] sm:$0xf]  ;;  %v176_v9 = vld [vmem:[%s1152_s23 + $0x3cc] sm:$0xf] }
  0x15   : > { %v178_v10 = vld [vmem:[%s1152_s23 + $0x438] sm:$0xf]  ;;  %175 = vst [vmem:[%s136_s24 + $0x20] sm:$0xf] %v174_v8  ;;  %177 = vst [vmem:[%s136_s24 + $0x24] sm:$0xf] %v176_v9 }
  0x16   : > { %179 = vst [vmem:[%s136_s24 + $0x28] sm:$0xf] %v178_v10  ;;  %v180_v11 = vld [vmem:[%s1152_s23 + $0x4a4] sm:$0xf]  ;;  %v182_v12 = vld [vmem:[%s1152_s23 + $0x510] sm:$0xf] }
  0x17   : > { %v184_v13 = vld [vmem:[%s1152_s23 + $0x57c] sm:$0xf]  ;;  %181 = vst [vmem:[%s136_s24 + $0x2c] sm:$0xf] %v180_v11  ;;  %183 = vst [vmem:[%s136_s24 + $0x30] sm:$0xf] %v182_v12 }
  0x18   : > { %185 = vst [vmem:[%s136_s24 + $0x34] sm:$0xf] %v184_v13  ;;  %v186_v14 = vld [vmem:[%s1152_s23 + $0x5e8] sm:$0xf]  ;;  %v188_v15 = vld [vmem:[%s1152_s23 + $0x654] sm:$0xf] }
  0x19   : > { %187 = vst [vmem:[%s136_s24 + $0x38] sm:$0xf] %v186_v14  ;;  %189 = vst [vmem:[%s136_s24 + $0x3c] sm:$0xf] %v188_v15 }
  0x1a PF: > { %p827_p6 = scmp.ge.s32.totalorder %s1091_s13, 1  ;;  %p256_p7 = scmp.lt.s32.totalorder %s1091_s13, 28 }
  0x1c   : > { %p257_p8 = pnand %p827_p6, %p256_p7 }
  0x1d   : > { %s263_s25 = sand.u32 (!%p257_p8), 1, %s1075_s9   ;;  %s829_s26 = sshll.u32 (!%p257_p8), %s1083_s11, 4 }
  0x1e   : > { %260 = sbr.rel (%p257_p8) target bundleno = 304 (0x130), region = 65  ;;  %s828_s27 = sshll.u32 (!%p257_p8), %s263_s25, 6 }
  0x1f   : > { %p297_p9 = scmp.lt.s32.totalorder (!%p257_p8), %s829_s26, 431  ;;  %s1179_s4 = scalar_lea.vmem (!%p257_p8), [#allocation3], %s828_s27 }
  0x20   : > { %p831_p10 = scmp.ne.s32.totalorder (!%p257_p8), %s1083_s11, 0 }
  0x23   : > { %s1248_s26 = smov (!%p297_p9, %s829_s26), 431  ;;  %318 = sbr.rel (%p831_p10) target bundleno = 49 (0x31), region = 73 }
  0x24   : > { %s830_s28 = sshll.u32 %s1248_s26, 2 }
  0x25   : > { %s1177_s3 = scalar_lea.vmem %s1239_s1, %s830_s28 }
  0x28   : > { %v1093_v16 = vmov 0.0  }
  0x29   : > { %319 = vst [vmem:[#allocation2 + $0x30] sm:$0xff] %v1093_v16  ;;  %320 = vst [vmem:[#allocation2] sm:$0xff] %v1093_v16 }
  0x2a   : > { %321 = vst [vmem:[#allocation2 + $0x58] sm:$0xff] %v1093_v16  ;;  %322 = vst [vmem:[#allocation2 + $0x18] sm:$0xff] %v1093_v16 }
  0x2b   : > { %323 = vst [vmem:[#allocation2 + $0x50] sm:$0xff] %v1093_v16  ;;  %324 = vst [vmem:[#allocation2 + $0x68] sm:$0xff] %v1093_v16 }
  0x2c   : > { %325 = vst [vmem:[#allocation2 + $0x8] sm:$0xff] %v1093_v16  ;;  %326 = vst [vmem:[#allocation2 + $0x48] sm:$0xff] %v1093_v16 }
  0x2d   : > { %327 = vst [vmem:[#allocation2 + $0x40] sm:$0xff] %v1093_v16  ;;  %328 = vst [vmem:[#allocation2 + $0x20] sm:$0xff] %v1093_v16 }
  0x2e   : > { %329 = vst [vmem:[#allocation2 + $0x10] sm:$0xff] %v1093_v16  ;;  %330 = vst [vmem:[#allocation2 + $0x38] sm:$0xff] %v1093_v16 }
  0x2f   : > { %331 = vst [vmem:[#allocation2 + $0x60] sm:$0xff] %v1093_v16  ;;  %332 = vst [vmem:[#allocation2 + $0x70] sm:$0xff] %v1093_v16 }
  0x30   : > { %333 = vst [vmem:[#allocation2 + $0x78] sm:$0xff] %v1093_v16  ;;  %334 = vst [vmem:[#allocation2 + $0x28] sm:$0xff] %v1093_v16 }
  0x31 PF: > { %v1037_v17 = vld [vmem:[%s1177_s3 + $0x38] sm:$0xff]   ;;  %v1038_v18 = vld [vmem:[%s1177_s3 + $0x30] sm:$0xff]   ;;  %v1039_v19 = vld [vmem:[%s1177_s3 + $0x28] sm:$0xff]   ;;  %p848_p11 = scmp.ne.s32.totalorder %s1083_s11, 26 }
  0x32   : > { %948 = vmatprep.subr.bf16.mxu0 %v1037_v17  ;;  %980 = vmatprep.subr.bf16.mxu1 %v1037_v17  ;;  %v1040_v20 = vld [vmem:[%s1177_s3 + $0x20] sm:$0xff]   ;;  %v1041_v23 = vld [vmem:[%s1177_s3 + $0x18] sm:$0xff]   ;;  %v1042_v24 = vld [vmem:[%s1177_s3 + $0x10] sm:$0xff]  }
  0x33   : > { %949 = vmatpush3.bf16.msra.mxu0 %v1037_v17  ;;  %988 = vmatpush3.bf16.msra.mxu1 %v1037_v17  ;;  %v1045_v21 = vld [vmem:[%s1179_s4] sm:$0xff]   ;;  %v1043_v25 = vld [vmem:[%s1177_s3 + $0x8] sm:$0xff]   ;;  %v1049_v29 = vld [vmem:[%s1179_s4 + $0x10] sm:$0xff]  }
  0x34   : > { %950 = vmatprep.subr.bf16.mxu0 %v1038_v18  ;;  %981 = vmatprep.subr.bf16.mxu1 %v1038_v18  ;;  %v1046_v22 = vld [vmem:[%s1179_s4 + $0x20] sm:$0xff]   ;;  %v1047_v27 = vld [vmem:[%s1179_s4 + $0x8] sm:$0xff]   ;;  %v1050_v30 = vld [vmem:[%s1179_s4 + $0x30] sm:$0xff]  }
  0x35   : > { %964 = vmatprep.mubr.bf16.mxu0 %v1045_v21  ;;  %972 = vmatprep.mubr.bf16.mxu1 %v1046_v22  ;;  %v1044_v26 = vld [vmem:[%s1177_s3] sm:$0xff]   ;;  %v1048_v28 = vld [vmem:[%s1179_s4 + $0x28] sm:$0xff]   ;;  %v1051_v31 = vld [vmem:[%s1179_s4 + $0x18] sm:$0xff]  }
  0x36   : > { %v1052_v32 = vld [vmem:[%s1179_s4 + $0x38] sm:$0xff]   ;;  %v345_v34 = vld [vmem:[#allocation2 + $0x10] sm:$0xff]  ;;  %v343_v38 = vld [vmem:[#allocation2 + $0x40] sm:$0xff] }
  0x37   : > { %951 = vmatpush3.bf16.msra.mxu0 %v1038_v18  ;;  %989 = vmatpush3.bf16.msra.mxu1 %v1038_v18  ;;  %v337_v33 = vld [vmem:[#allocation2 + $0x58] sm:$0xff]  ;;  %v335_v37 = vld [vmem:[#allocation2 + $0x30] sm:$0xff]  ;;  %v336_v49 = vld [vmem:[#allocation2] sm:$0xff] }
  0x38   : > { %952 = vmatprep.subr.bf16.mxu0 %v1039_v19  ;;  %982 = vmatprep.subr.bf16.mxu1 %v1039_v19  ;;  %v338_v43 = vld [vmem:[#allocation2 + $0x18] sm:$0xff]  ;;  %v344_v50 = vld [vmem:[#allocation2 + $0x20] sm:$0xff]  ;;  %v341_v55 = vld [vmem:[#allocation2 + $0x8] sm:$0xff] }
  0x39   : > { %v346_v44 = vld [vmem:[#allocation2 + $0x38] sm:$0xff]  ;;  %v339_v61 = vld [vmem:[#allocation2 + $0x50] sm:$0xff]  ;;  %v347_v62 = vld [vmem:[#allocation2 + $0x60] sm:$0xff] }
  0x3a   : > { %v349_v56 = vld [vmem:[#allocation2 + $0x78] sm:$0xff]  ;;  %v342_v3 = vld [vmem:[#allocation2 + $0x48] sm:$0xff]  ;;  %v348_v10 = vld [vmem:[#allocation2 + $0x70] sm:$0xff] }
  0x3b   : > { %953 = vmatpush3.bf16.msra.mxu0 %v1039_v19  ;;  %990 = vmatpush3.bf16.msra.mxu1 %v1039_v19  ;;  %v350_v4 = vld [vmem:[#allocation2 + $0x28] sm:$0xff] }
  0x3c   : > { %954 = vmatprep.subr.bf16.mxu0 %v1040_v20  ;;  %983 = vmatprep.subr.bf16.mxu1 %v1040_v20  ;;  %v340_v9 = vld [vmem:[#allocation2 + $0x68] sm:$0xff] }
  0x3f   : > { %955 = vmatpush3.bf16.msra.mxu0 %v1040_v20  ;;  %991 = vmatpush3.bf16.msra.mxu1 %v1040_v20 }
  0x40   : > { %956 = vmatprep.subr.bf16.mxu0 %v1041_v23  ;;  %984 = vmatprep.subr.bf16.mxu1 %v1041_v23 }
  0x43   : > { %957 = vmatpush3.bf16.msra.mxu0 %v1041_v23  ;;  %992 = vmatpush3.bf16.msra.mxu1 %v1041_v23 }
  0x44   : > { %958 = vmatprep.subr.bf16.mxu0 %v1042_v24  ;;  %985 = vmatprep.subr.bf16.mxu1 %v1042_v24 }
  0x47   : > { %959 = vmatpush3.bf16.msra.mxu0 %v1042_v24  ;;  %993 = vmatpush3.bf16.msra.mxu1 %v1042_v24 }
  0x48   : > { %960 = vmatprep.subr.bf16.mxu0 %v1043_v25  ;;  %986 = vmatprep.subr.bf16.mxu1 %v1043_v25 }
  0x4b   : > { %961 = vmatpush3.bf16.msra.mxu0 %v1043_v25  ;;  %994 = vmatpush3.bf16.msra.mxu1 %v1043_v25 }
  0x4c   : > { %962 = vmatprep.subr.bf16.mxu0 %v1044_v26  ;;  %987 = vmatprep.subr.bf16.mxu1 %v1044_v26 }
  0x4f   : > { %963 = vmatpush3.bf16.msra.mxu0 %v1044_v26  ;;  %995 = vmatpush3.bf16.msra.mxu1 %v1044_v26 }
  0x52   : > { %965 = vmatmul.mubr.bf16.vlgmr.msra.gmra.mxu0 %v1047_v27  ;;  %973 = vmatmul.mubr.bf16.vlgmr.msra.gmra.mxu1 %v1048_v28 }
  0x53   : > { %968 = vmatprep.mubr.bf16.mxu0 %v1049_v29  ;;  %976 = vmatprep.mubr.bf16.mxu1 %v1050_v30 }
  0x5a   : > { %969 = vmatmul.mubr.bf16.gmra.mxu0 %v1051_v31  ;;  %977 = vmatmul.mubr.bf16.gmra.mxu1 %v1052_v32 }
 0x112   : > { %v966_v35 = vpop.f32.mrf.mxu0  ;;  %v974_v36 = vpop.f32.mrf.mxu1 }
 0x113   : > { %v578_v39 = vadd.f32 %v966_v35, %v337_v33  ;;  %v586_v40 = vadd.f32 %v974_v36, %v345_v34 }
 0x114   : > { %v513_v41 = vpop.f32.mrf.mxu0  ;;  %v545_v42 = vpop.f32.mrf.mxu1 }
 0x115   : > { %594 = vst [vmem:[#allocation2 + $0x58] sm:$0xff] %v578_v39  ;;  %602 = vst [vmem:[#allocation2 + $0x10] sm:$0xff] %v586_v40  ;;  %v576_v45 = vadd.f32 %v513_v41, %v335_v37  ;;  %v584_v46 = vadd.f32 %v545_v42, %v343_v38 }
 0x116   : > { %v967_v47 = vpop.f32.mrf.mxu0  ;;  %v975_v48 = vpop.f32.mrf.mxu1 }
 0x117   : > { %592 = vst [vmem:[#allocation2 + $0x30] sm:$0xff] %v576_v45  ;;  %600 = vst [vmem:[#allocation2 + $0x40] sm:$0xff] %v584_v46  ;;  %v579_v51 = vadd.f32 %v967_v47, %v338_v43  ;;  %v587_v52 = vadd.f32 %v975_v48, %v346_v44 }
 0x118   : > { %v516_v53 = vpop.f32.mrf.mxu0  ;;  %v548_v54 = vpop.f32.mrf.mxu1 }
 0x119   : > { %595 = vst [vmem:[#allocation2 + $0x18] sm:$0xff] %v579_v51  ;;  %603 = vst [vmem:[#allocation2 + $0x38] sm:$0xff] %v587_v52  ;;  %v577_v57 = vadd.f32 %v516_v53, %v336_v49  ;;  %v585_v58 = vadd.f32 %v548_v54, %v344_v50 }
 0x11a   : > { %v970_v59 = vpop.f32.mrf.mxu0  ;;  %v978_v60 = vpop.f32.mrf.mxu1 }
 0x11b   : > { %593 = vst [vmem:[#allocation2] sm:$0xff] %v577_v57  ;;  %601 = vst [vmem:[#allocation2 + $0x20] sm:$0xff] %v585_v58  ;;  %v582_v63 = vadd.f32 %v970_v59, %v341_v55  ;;  %v590_v0 = vadd.f32 %v978_v60, %v349_v56 }
 0x11c   : > { %v529_v1 = vpop.f32.mrf.mxu0  ;;  %v561_v2 = vpop.f32.mrf.mxu1 }
 0x11d   : > { %598 = vst [vmem:[#allocation2 + $0x8] sm:$0xff] %v582_v63  ;;  %606 = vst [vmem:[#allocation2 + $0x78] sm:$0xff] %v590_v0  ;;  %v580_v5 = vadd.f32 %v529_v1, %v339_v61  ;;  %v588_v6 = vadd.f32 %v561_v2, %v347_v62 }
 0x11e   : > { %v971_v7 = vpop.f32.mrf.mxu0  ;;  %v979_v8 = vpop.f32.mrf.mxu1 }
 0x11f   : > { %596 = vst [vmem:[#allocation2 + $0x50] sm:$0xff] %v580_v5  ;;  %604 = vst [vmem:[#allocation2 + $0x60] sm:$0xff] %v588_v6  ;;  %v583_v11 = vadd.f32 %v971_v7, %v342_v3  ;;  %v591_v12 = vadd.f32 %v979_v8, %v350_v4  ;;  %611 = sbr.rel (%p848_p11) target bundleno = 304 (0x130), region = 77 }
 0x120   : > { %v532_v13 = vpop.f32.mrf.mxu0  ;;  %v564_v14 = vpop.f32.mrf.mxu1 }
 0x121   : > { %599 = vst [vmem:[#allocation2 + $0x48] sm:$0xff] %v583_v11  ;;  %607 = vst [vmem:[#allocation2 + $0x28] sm:$0xff] %v591_v12  ;;  %v581_v15 = vadd.f32 %v532_v13, %v340_v9  ;;  %v589_v16 = vadd.f32 %v564_v14, %v348_v10 }
 0x123   : > { %597 = vst [vmem:[#allocation2 + $0x68] sm:$0xff] %v581_v15  ;;  %605 = vst [vmem:[#allocation2 + $0x70] sm:$0xff] %v589_v16 }
 0x124   : > { %v612_v17 = vld [vmem:[#allocation2 + $0x30] sm:$0xff]  ;;  %v613_v18 = vld [vmem:[#allocation2] sm:$0xff]  ;;  %v614_v19 = vld [vmem:[#allocation2 + $0x58] sm:$0xff] }
 0x125   : > { %v628_v20 = vmax.f32 %v612_v17, 0.0  ;;  %v629_v21 = vmax.f32 %v613_v18, 0.0  ;;  %v615_v22 = vld [vmem:[#allocation2 + $0x18] sm:$0xff]  ;;  %v630_v23 = vmax.f32 %v614_v19, 0.0  ;;  %v618_v29 = vld [vmem:[#allocation2 + $0x8] sm:$0xff]  ;;  %v620_v31 = vld [vmem:[#allocation2 + $0x40] sm:$0xff] }
 0x126   : > { %v616_v24 = vld [vmem:[#allocation2 + $0x50] sm:$0xff]  ;;  %v631_v26 = vmax.f32 %v615_v22, 0.0  ;;  %v634_v33 = vmax.f32 %v618_v29, 0.0  ;;  %v621_v35 = vld [vmem:[#allocation2 + $0x20] sm:$0xff]  ;;  %v636_v36 = vmax.f32 %v620_v31, 0.0  ;;  %v623_v38 = vld [vmem:[#allocation2 + $0x38] sm:$0xff] }
 0x127   : > { %v632_v27 = vmax.f32 %v616_v24, 0.0  ;;  %v888_v32 = vpack.c.bf16 %v629_v21, %v628_v20  ;;  %v622_v37 = vld [vmem:[#allocation2 + $0x10] sm:$0xff]  ;;  %v637_v41 = vmax.f32 %v621_v35, 0.0  ;;  %v624_v43 = vld [vmem:[#allocation2 + $0x60] sm:$0xff]  ;;  %v626_v45 = vld [vmem:[#allocation2 + $0x78] sm:$0xff]  ;;  %v639_v47 = vmax.f32 %v623_v38, 0.0 }
 0x128   : > { %v619_v30 = vld [vmem:[#allocation2 + $0x48] sm:$0xff]  ;;  %v893_v39 = vpack.c.bf16 %v631_v26, %v630_v23  ;;  %v638_v42 = vmax.f32 %v622_v37, 0.0  ;;  %v640_v48 = vmax.f32 %v624_v43, 0.0  ;;  %v642_v52 = vmax.f32 %v626_v45, 0.0 }
 0x129   : > { %v635_v34 = vmax.f32 %v619_v30, 0.0  ;;  %889 = vst [vmem:[%s1240_s2] sm:$0xff] %v888_v32   ;;  %v627_v50 = vld [vmem:[#allocation2 + $0x28] sm:$0xff]  ;;  %v908_v51 = vpack.c.bf16 %v637_v41, %v636_v36 }
 0x12a   : > { %v617_v25 = vld [vmem:[#allocation2 + $0x68] sm:$0xff]  ;;  %v625_v44 = vld [vmem:[#allocation2 + $0x70] sm:$0xff]  ;;  %925 = vst [vmem:[%s1240_s2 + $0x8] sm:$0xff] %v893_v39   ;;  %v643_v53 = vmax.f32 %v627_v50, 0.0  ;;  %v913_v54 = vpack.c.bf16 %v639_v47, %v638_v42 }
 0x12b   : > { %v633_v28 = vmax.f32 %v617_v25, 0.0  ;;  %v903_v46 = vpack.c.bf16 %v635_v34, %v634_v33  ;;  %v641_v49 = vmax.f32 %v625_v44, 0.0  ;;  %928 = vst [vmem:[%s1240_s2 + $0x20] sm:$0xff] %v908_v51  }
 0x12c   : > { %v923_v56 = vpack.c.bf16 %v643_v53, %v642_v52  ;;  %929 = vst [vmem:[%s1240_s2 + $0x28] sm:$0xff] %v913_v54  }
 0x12d   : > { %v898_v40 = vpack.c.bf16 %v633_v28, %v632_v27  ;;  %927 = vst [vmem:[%s1240_s2 + $0x18] sm:$0xff] %v903_v46   ;;  %v918_v55 = vpack.c.bf16 %v641_v49, %v640_v48 }
 0x12e   : > { %931 = vst [vmem:[%s1240_s2 + $0x38] sm:$0xff] %v923_v56  }
 0x12f   : > { %926 = vst [vmem:[%s1240_s2 + $0x10] sm:$0xff] %v898_v40   ;;  %930 = vst [vmem:[%s1240_s2 + $0x30] sm:$0xff] %v918_v55  }
 0x130 PF: > { %s12_s13 = sadd.s32 1, %s1091_s13   ;;  %s1241_s9 = smov %s1079_s10 }
 0x131   : > { %p9_p12 = scmp.ge.s32.totalorder %s12_s13, 29   ;;  %s1242_s10 = smov %s1144_s17 }
 0x132   : > { %s1243_s11 = smov %s1087_s12  ;;  %s1244_s12 = smov %s1246_s14 }
 0x133   :  { %11 = sbr.rel (!%p9_p12) target bundleno = 3 (0x3), region = 115 }

// kernel: video_resnet_forward.26
= control target key start
LH: loop header
LB: loop body
LE: loop exit
PB: predicated region body
PF: predicated region fallthrough
CT: control target
= control target key end

     0   :  { %s1530_s12 = smov 0   ;;  %s1532_s13 = smov 0   ;;  %s1827_s0 = inlined_call_operand.vmem [shape: bf16[128,128], index: 0, kind: input, shape index: {}]   ;;  %s1828_s1 = inlined_call_operand.vmem [shape: bf16[128,512], index: 1, kind: input, shape index: {}]   ;;  %s1829_s2 = inlined_call_operand.vmem [shape: f32[128,512], index: 2, kind: input, shape index: {}]   ;;  %s1830_s3 = inlined_call_operand.vmem [shape: bf16[128,512], index: 3, kind: output, shape index: {}]  }
   0x1   :  { %s1534_s14 = smov 0   ;;  %s1536_s15 = smov 0  }
   0x2   :  { %s1538_s16 = smov 0  }
   0x3 LB: > { %s28_s17 = sadd.s32 1, %s1503_s15  ;;  %s1301_s18 = sadd.s32 4294967295, %s1507_s16   ;;  %s1507_s16 = sphi %s1538_s16, %s13_s16   ;;  %s1503_s15 = sphi %s1536_s15, %s1836_s15   ;;  %s1499_s14 = sphi %s1534_s14, %s1835_s14   ;;  %s1495_s13 = sphi %s1532_s13, %s1834_s13   ;;  %s1491_s12 = sphi %s1530_s12, %s1833_s12  }
   0x4   : > { %p30_p0 = scmp.ge.s32.totalorder %s28_s17, 2  ;;  %p76_p1 = scmp.ne.s32.totalorder %s1495_s13, %s1491_s12 }
   0x5   : > { %p77_p2 = scmp.eq.s32.totalorder %s1507_s16, 0  ;;  %p136_p4 = scmp.eq.s32.totalorder %s1301_s18, 1 }
   0x6   : > { %s1838_s17 = smov (%p30_p0, %s28_s17), 0  ;;  %s69_s21 = sadd.s32 1, %s1495_s13 }
   0x7   : > { %p1562_p3 = por %p77_p2, %p76_p1  ;;  %s65_s20 = ssub.s32 %s1503_s15, %s1838_s17 }
   0x8   : > { %p67_p5 = scmp.eq.s32.totalorder %s65_s20, 0  ;;  %p1569_p6 = por %p136_p4, %p76_p1 }
   0x9   : > { %p1305_p7 = scmp.ge.s32.totalorder %s1507_s16, 2 }
   0xa   : > { %s1574_s23 = scalar_select %p67_p5, %s1495_s13, %s69_s21  }
   0xb   : > { %170 = sbr.rel (%p1305_p7) target bundleno = 48 (0x30), region = 20 }
  0x10   : > { %173 = sbr.rel (!%p1562_p3) target bundleno = 28 (0x1c), region = 24  ;;  %s175_s24 = sand.u32 (%p1562_p3), 1, %s1495_s13  }
  0x11   : > { %s1361_s25 = sshll.u32 (%p1562_p3), %s1503_s15, 3  ;;  %s1306_s26 = sshll.u32 (%p1562_p3), %s175_s24, 7 }
  0x12   : > { %s1584_s29 = scalar_lea.vmem (%p1562_p3), %s1828_s1, %s1361_s25  ;;  %s177_s30 = scalar_lea.vmem (%p1562_p3), [#allocation3], %s1306_s26 }
  0x13   : > { %v242_v0 = vld [vmem:[%s1584_s29] sm:$0xff] (%p1562_p3)  ;;  %v244_v1 = vld [vmem:[%s1584_s29 + $0x10] sm:$0xff] (%p1562_p3) }
  0x14   : > { %v246_v2 = vld [vmem:[%s1584_s29 + $0x20] sm:$0xff] (%p1562_p3)  ;;  %243 = vst [vmem:[%s177_s30] sm:$0xff] (%p1562_p3), %v242_v0  ;;  %245 = vst [vmem:[%s177_s30 + $0x8] sm:$0xff] (%p1562_p3), %v244_v1  ;;  %v248_v3 = vld [vmem:[%s1584_s29 + $0x30] sm:$0xff] (%p1562_p3) }
  0x15   : > { %247 = vst [vmem:[%s177_s30 + $0x10] sm:$0xff] %v246_v2  ;;  %v250_v4 = vld [vmem:[%s1584_s29 + $0x40] sm:$0xff]  ;;  %v252_v5 = vld [vmem:[%s1584_s29 + $0x50] sm:$0xff]  ;;  %249 = vst [vmem:[%s177_s30 + $0x18] sm:$0xff] %v248_v3 }
  0x16   : > { %251 = vst [vmem:[%s177_s30 + $0x20] sm:$0xff] %v250_v4  ;;  %253 = vst [vmem:[%s177_s30 + $0x28] sm:$0xff] %v252_v5  ;;  %v254_v6 = vld [vmem:[%s1584_s29 + $0x60] sm:$0xff]  ;;  %v256_v7 = vld [vmem:[%s1584_s29 + $0x70] sm:$0xff] }
  0x17   : > { %v258_v8 = vld [vmem:[%s1584_s29 + $0x80] sm:$0xff]  ;;  %255 = vst [vmem:[%s177_s30 + $0x30] sm:$0xff] %v254_v6  ;;  %257 = vst [vmem:[%s177_s30 + $0x38] sm:$0xff] %v256_v7  ;;  %v260_v9 = vld [vmem:[%s1584_s29 + $0x90] sm:$0xff] }
  0x18   : > { %259 = vst [vmem:[%s177_s30 + $0x40] sm:$0xff] %v258_v8  ;;  %v262_v10 = vld [vmem:[%s1584_s29 + $0xa0] sm:$0xff]  ;;  %v264_v11 = vld [vmem:[%s1584_s29 + $0xb0] sm:$0xff]  ;;  %261 = vst [vmem:[%s177_s30 + $0x48] sm:$0xff] %v260_v9 }
  0x19   : > { %263 = vst [vmem:[%s177_s30 + $0x50] sm:$0xff] %v262_v10  ;;  %265 = vst [vmem:[%s177_s30 + $0x58] sm:$0xff] %v264_v11  ;;  %v266_v12 = vld [vmem:[%s1584_s29 + $0xc0] sm:$0xff]  ;;  %v268_v13 = vld [vmem:[%s1584_s29 + $0xd0] sm:$0xff] }
  0x1a   : > { %v270_v14 = vld [vmem:[%s1584_s29 + $0xe0] sm:$0xff]  ;;  %267 = vst [vmem:[%s177_s30 + $0x60] sm:$0xff] %v266_v12  ;;  %269 = vst [vmem:[%s177_s30 + $0x68] sm:$0xff] %v268_v13  ;;  %v272_v15 = vld [vmem:[%s1584_s29 + $0xf0] sm:$0xff] }
  0x1b   : > { %271 = vst [vmem:[%s177_s30 + $0x70] sm:$0xff] %v270_v14  ;;  %273 = vst [vmem:[%s177_s30 + $0x78] sm:$0xff] %v272_v15 }
  0x1c PF: > { %279 = sbr.rel (!%p1562_p3) target bundleno = 48 (0x30), region = 62  ;;  %s281_s4 = sand.u32 (%p1562_p3), 1, %s1495_s13  }
  0x1d   : > { %s1362_s5 = sshll.u32 (%p1562_p3), %s1503_s15, 4  ;;  %s1309_s6 = sshll.u32 (%p1562_p3), %s281_s4, 8 }
  0x1e   : > { %s1609_s9 = scalar_lea.vmem (%p1562_p3), %s1829_s2, %s1362_s5  ;;  %s1614_s10 = scalar_lea.vmem (%p1562_p3), [#allocation4], %s1309_s6 }
  0x1f   : > { %v302_v16 = vld [vmem:[%s1609_s9] sm:$0xff] (%p1562_p3)  ;;  %v304_v17 = vld [vmem:[%s1609_s9 + $0x8] sm:$0xff] (%p1562_p3) }
  0x20   : > { %v306_v18 = vld [vmem:[%s1609_s9 + $0x20] sm:$0xff] (%p1562_p3)  ;;  %303 = vst [vmem:[%s1614_s10] sm:$0xff] (%p1562_p3), %v302_v16  ;;  %305 = vst [vmem:[%s1614_s10 + $0x8] sm:$0xff] (%p1562_p3), %v304_v17  ;;  %v308_v19 = vld [vmem:[%s1609_s9 + $0x28] sm:$0xff] (%p1562_p3) }
  0x21   : > { %307 = vst [vmem:[%s1614_s10 + $0x10] sm:$0xff] %v306_v18  ;;  %v310_v20 = vld [vmem:[%s1609_s9 + $0x40] sm:$0xff]  ;;  %v312_v21 = vld [vmem:[%s1609_s9 + $0x48] sm:$0xff]  ;;  %309 = vst [vmem:[%s1614_s10 + $0x18] sm:$0xff] %v308_v19 }
  0x22   : > { %311 = vst [vmem:[%s1614_s10 + $0x20] sm:$0xff] %v310_v20  ;;  %313 = vst [vmem:[%s1614_s10 + $0x28] sm:$0xff] %v312_v21  ;;  %v314_v22 = vld [vmem:[%s1609_s9 + $0x60] sm:$0xff]  ;;  %v316_v23 = vld [vmem:[%s1609_s9 + $0x68] sm:$0xff] }
  0x23   : > { %v318_v24 = vld [vmem:[%s1609_s9 + $0x80] sm:$0xff]  ;;  %315 = vst [vmem:[%s1614_s10 + $0x30] sm:$0xff] %v314_v22  ;;  %317 = vst [vmem:[%s1614_s10 + $0x38] sm:$0xff] %v316_v23  ;;  %v320_v25 = vld [vmem:[%s1609_s9 + $0x88] sm:$0xff] }
  0x24   : > { %319 = vst [vmem:[%s1614_s10 + $0x40] sm:$0xff] %v318_v24  ;;  %v322_v26 = vld [vmem:[%s1609_s9 + $0xa0] sm:$0xff]  ;;  %v324_v27 = vld [vmem:[%s1609_s9 + $0xa8] sm:$0xff]  ;;  %321 = vst [vmem:[%s1614_s10 + $0x48] sm:$0xff] %v320_v25 }
  0x25   : > { %323 = vst [vmem:[%s1614_s10 + $0x50] sm:$0xff] %v322_v26  ;;  %325 = vst [vmem:[%s1614_s10 + $0x58] sm:$0xff] %v324_v27  ;;  %v326_v28 = vld [vmem:[%s1609_s9 + $0xc0] sm:$0xff]  ;;  %v328_v29 = vld [vmem:[%s1609_s9 + $0xc8] sm:$0xff] }
  0x26   : > { %v330_v30 = vld [vmem:[%s1609_s9 + $0xe0] sm:$0xff]  ;;  %327 = vst [vmem:[%s1614_s10 + $0x60] sm:$0xff] %v326_v28  ;;  %329 = vst [vmem:[%s1614_s10 + $0x68] sm:$0xff] %v328_v29  ;;  %v332_v31 = vld [vmem:[%s1609_s9 + $0xe8] sm:$0xff] }
  0x27   : > { %331 = vst [vmem:[%s1614_s10 + $0x70] sm:$0xff] %v330_v30  ;;  %v334_v32 = vld [vmem:[%s1609_s9 + $0x100] sm:$0xff]  ;;  %v336_v33 = vld [vmem:[%s1609_s9 + $0x108] sm:$0xff]  ;;  %333 = vst [vmem:[%s1614_s10 + $0x78] sm:$0xff] %v332_v31 }
  0x28   : > { %335 = vst [vmem:[%s1614_s10 + $0x80] sm:$0xff] %v334_v32  ;;  %337 = vst [vmem:[%s1614_s10 + $0x88] sm:$0xff] %v336_v33  ;;  %v338_v34 = vld [vmem:[%s1609_s9 + $0x120] sm:$0xff]  ;;  %v340_v35 = vld [vmem:[%s1609_s9 + $0x128] sm:$0xff] }
  0x29   : > { %v342_v36 = vld [vmem:[%s1609_s9 + $0x140] sm:$0xff]  ;;  %339 = vst [vmem:[%s1614_s10 + $0x90] sm:$0xff] %v338_v34  ;;  %341 = vst [vmem:[%s1614_s10 + $0x98] sm:$0xff] %v340_v35  ;;  %v344_v37 = vld [vmem:[%s1609_s9 + $0x148] sm:$0xff] }
  0x2a   : > { %343 = vst [vmem:[%s1614_s10 + $0xa0] sm:$0xff] %v342_v36  ;;  %v346_v38 = vld [vmem:[%s1609_s9 + $0x160] sm:$0xff]  ;;  %v348_v39 = vld [vmem:[%s1609_s9 + $0x168] sm:$0xff]  ;;  %345 = vst [vmem:[%s1614_s10 + $0xa8] sm:$0xff] %v344_v37 }
  0x2b   : > { %347 = vst [vmem:[%s1614_s10 + $0xb0] sm:$0xff] %v346_v38  ;;  %349 = vst [vmem:[%s1614_s10 + $0xb8] sm:$0xff] %v348_v39  ;;  %v350_v40 = vld [vmem:[%s1609_s9 + $0x180] sm:$0xff]  ;;  %v352_v41 = vld [vmem:[%s1609_s9 + $0x188] sm:$0xff] }
  0x2c   : > { %v354_v42 = vld [vmem:[%s1609_s9 + $0x1a0] sm:$0xff]  ;;  %351 = vst [vmem:[%s1614_s10 + $0xc0] sm:$0xff] %v350_v40  ;;  %353 = vst [vmem:[%s1614_s10 + $0xc8] sm:$0xff] %v352_v41  ;;  %v356_v43 = vld [vmem:[%s1609_s9 + $0x1a8] sm:$0xff] }
  0x2d   : > { %355 = vst [vmem:[%s1614_s10 + $0xd0] sm:$0xff] %v354_v42  ;;  %v358_v44 = vld [vmem:[%s1609_s9 + $0x1c0] sm:$0xff]  ;;  %v360_v45 = vld [vmem:[%s1609_s9 + $0x1c8] sm:$0xff]  ;;  %357 = vst [vmem:[%s1614_s10 + $0xd8] sm:$0xff] %v356_v43 }
  0x2e   : > { %359 = vst [vmem:[%s1614_s10 + $0xe0] sm:$0xff] %v358_v44  ;;  %361 = vst [vmem:[%s1614_s10 + $0xe8] sm:$0xff] %v360_v45  ;;  %v362_v46 = vld [vmem:[%s1609_s9 + $0x1e0] sm:$0xff]  ;;  %v364_v47 = vld [vmem:[%s1609_s9 + $0x1e8] sm:$0xff] }
  0x2f   : > { %363 = vst [vmem:[%s1614_s10 + $0xf0] sm:$0xff] %v362_v46  ;;  %365 = vst [vmem:[%s1614_s10 + $0xf8] sm:$0xff] %v364_v47 }
  0x30 PF: > { %p1312_p8 = scmp.ge.s32.totalorder %s1507_s16, 1  ;;  %p370_p9 = scmp.lt.s32.totalorder %s1507_s16, 3 }
  0x32   : > { %p371_p10 = pnand %p1312_p8, %p370_p9 }
  0x33   : > { %s377_s11 = sand.u32 (!%p371_p10), 1, %s1491_s12  }
  0x34   : > { %374 = sbr.rel (%p371_p10) target bundleno = 330 (0x14a), region = 85  ;;  %s1682_s18 = sshll.u32 (!%p371_p10), %s377_s11, 7 }
  0x35   : > { %s1687_s19 = scalar_lea.vmem (!%p371_p10), [#allocation3], %s1682_s18  ;;  %s1752_s12 = scalar_lea.vmem (!%p371_p10), [#allocation5], %s1682_s18 }
  0x39   : > { %v1509_v48 = vmov 0   ;;  %v1437_v49 = vld [vmem:[%s1687_s19 + $0x74] ss:$8 sps:$4 sm:$0xff]   ;;  %v1439_v50 = vld [vmem:[%s1687_s19 + $0x70] ss:$8 sps:$4 sm:$0xff]   ;;  %v1461_v1 = vld [vmem:[%s1827_s0] sm:$0xff]  }
  0x3a   : > { %694 = vmatprep.mubr.bf16.mxu0 %v1509_v48  ;;  %734 = vmatprep.mubr.bf16.mxu1 %v1509_v48  ;;  %v1440_v51 = vld [vmem:[%s1687_s19 + $0x64] ss:$8 sps:$4 sm:$0xff]   ;;  %v1442_v52 = vld [vmem:[%s1687_s19 + $0x60] ss:$8 sps:$4 sm:$0xff]   ;;  %v1443_v53 = vld [vmem:[%s1687_s19 + $0x54] ss:$8 sps:$4 sm:$0xff]  }
  0x3b   : > { %662 = vmatprep.subr.bf16.mxu0 %v1437_v49  ;;  %1380 = vmatprep.subr.bf16.mxu1 %v1437_v49  ;;  %v1445_v54 = vld [vmem:[%s1687_s19 + $0x50] ss:$8 sps:$4 sm:$0xff]   ;;  %v1446_v55 = vld [vmem:[%s1687_s19 + $0x44] ss:$8 sps:$4 sm:$0xff]   ;;  %v1448_v56 = vld [vmem:[%s1687_s19 + $0x40] ss:$8 sps:$4 sm:$0xff]  }
  0x3c   : > { %663 = vmatpush1.bf16.msra.mxu0 %v1439_v50  ;;  %1388 = vmatpush1.bf16.msra.mxu1 %v1439_v50  ;;  %v1449_v57 = vld [vmem:[%s1687_s19 + $0x34] ss:$8 sps:$4 sm:$0xff]   ;;  %v1451_v58 = vld [vmem:[%s1687_s19 + $0x30] ss:$8 sps:$4 sm:$0xff]   ;;  %v1452_v59 = vld [vmem:[%s1687_s19 + $0x24] ss:$8 sps:$4 sm:$0xff]  }
  0x3d   : > { %664 = vmatprep.subr.bf16.mxu0 %v1440_v51  ;;  %1381 = vmatprep.subr.bf16.mxu1 %v1440_v51  ;;  %v1454_v60 = vld [vmem:[%s1687_s19 + $0x20] ss:$8 sps:$4 sm:$0xff]   ;;  %v1455_v61 = vld [vmem:[%s1687_s19 + $0x14] ss:$8 sps:$4 sm:$0xff]   ;;  %v1457_v62 = vld [vmem:[%s1687_s19 + $0x10] ss:$8 sps:$4 sm:$0xff]  }
  0x3e   : > { %v1458_v63 = vld [vmem:[%s1687_s19 + $0x4] ss:$8 sps:$4 sm:$0xff]   ;;  %v1460_v0 = vld [vmem:[%s1687_s19] ss:$8 sps:$4 sm:$0xff]   ;;  %v1465_v5 = vld [vmem:[%s1827_s0 + $0x10] sm:$0xff]   ;;  %s1314_s19 = sshll.u32 %s377_s11, 8 }
  0x3f   : > { %v1462_v2 = vld [vmem:[%s1827_s0 + $0x20] sm:$0xff]   ;;  %v1463_v3 = vld [vmem:[%s1827_s0 + $0x8] sm:$0xff]   ;;  %v1466_v6 = vld [vmem:[%s1827_s0 + $0x30] sm:$0xff]   ;;  %s1737_s20 = scalar_lea.vmem [#allocation4], %s1314_s19  ;;  %s1379_s11 = sshll.u32 (%p1569_p6), %s1499_s14, 3 }
  0x40   : > { %665 = vmatpush1.bf16.msra.mxu0 %v1442_v52  ;;  %1389 = vmatpush1.bf16.msra.mxu1 %v1442_v52  ;;  %v1464_v4 = vld [vmem:[%s1827_s0 + $0x28] sm:$0xff]   ;;  %v1467_v7 = vld [vmem:[%s1827_s0 + $0x18] sm:$0xff]   ;;  %v874_v9 = vld [vmem:[%s1737_s20] sm:$0xff]  ;;  %s1094_s24 = scalar_lea.vmem (%p1569_p6), %s1830_s3, %s1379_s11 }
  0x41   : > { %666 = vmatprep.subr.bf16.mxu0 %v1443_v53  ;;  %1382 = vmatprep.subr.bf16.mxu1 %v1443_v53  ;;  %v1468_v8 = vld [vmem:[%s1827_s0 + $0x38] sm:$0xff]   ;;  %v890_v10 = vld [vmem:[%s1737_s20 + $0x80] sm:$0xff]  ;;  %v875_v13 = vld [vmem:[%s1737_s20 + $0x8] sm:$0xff] }
  0x42   : > { %v891_v14 = vld [vmem:[%s1737_s20 + $0x88] sm:$0xff]  ;;  %v876_v21 = vld [vmem:[%s1737_s20 + $0x10] sm:$0xff]  ;;  %v877_v29 = vld [vmem:[%s1737_s20 + $0x18] sm:$0xff] }
  0x43   : > { %v892_v22 = vld [vmem:[%s1737_s20 + $0x90] sm:$0xff]  ;;  %v893_v30 = vld [vmem:[%s1737_s20 + $0x98] sm:$0xff]  ;;  %v878_v35 = vld [vmem:[%s1737_s20 + $0x20] sm:$0xff] }
  0x44   : > { %667 = vmatpush1.bf16.msra.mxu0 %v1445_v54  ;;  %1390 = vmatpush1.bf16.msra.mxu1 %v1445_v54  ;;  %v894_v36 = vld [vmem:[%s1737_s20 + $0xa0] sm:$0xff]  ;;  %v879_v43 = vld [vmem:[%s1737_s20 + $0x28] sm:$0xff] }
  0x45   : > { %668 = vmatprep.subr.bf16.mxu0 %v1446_v55  ;;  %1383 = vmatprep.subr.bf16.mxu1 %v1446_v55  ;;  %v895_v44 = vld [vmem:[%s1737_s20 + $0xa8] sm:$0xff]  ;;  %v880_v55 = vld [vmem:[%s1737_s20 + $0x30] sm:$0xff] }
  0x48   : > { %669 = vmatpush1.bf16.msra.mxu0 %v1448_v56  ;;  %1391 = vmatpush1.bf16.msra.mxu1 %v1448_v56  ;;  %v896_v56 = vld [vmem:[%s1737_s20 + $0xb0] sm:$0xff] }
  0x49   : > { %670 = vmatprep.subr.bf16.mxu0 %v1449_v57  ;;  %1384 = vmatprep.subr.bf16.mxu1 %v1449_v57 }
  0x4c   : > { %671 = vmatpush1.bf16.msra.mxu0 %v1451_v58  ;;  %1392 = vmatpush1.bf16.msra.mxu1 %v1451_v58 }
  0x4d   : > { %672 = vmatprep.subr.bf16.mxu0 %v1452_v59  ;;  %1385 = vmatprep.subr.bf16.mxu1 %v1452_v59 }
  0x50   : > { %673 = vmatpush1.bf16.msra.mxu0 %v1454_v60  ;;  %1393 = vmatpush1.bf16.msra.mxu1 %v1454_v60 }
  0x51   : > { %674 = vmatprep.subr.bf16.mxu0 %v1455_v61  ;;  %1386 = vmatprep.subr.bf16.mxu1 %v1455_v61 }
  0x54   : > { %675 = vmatpush1.bf16.msra.mxu0 %v1457_v62  ;;  %1394 = vmatpush1.bf16.msra.mxu1 %v1457_v62 }
  0x55   : > { %676 = vmatprep.subr.bf16.mxu0 %v1458_v63  ;;  %1387 = vmatprep.subr.bf16.mxu1 %v1458_v63 }
  0x58   : > { %677 = vmatpush1.bf16.msra.mxu0 %v1460_v0  ;;  %1395 = vmatpush1.bf16.msra.mxu1 %v1460_v0 }
  0x5b   : > { %695 = vmatmul.mubr.bf16.vlgmr.msra.gmra.mxu0 %v1461_v1  ;;  %735 = vmatmul.mubr.bf16.vlgmr.msra.gmra.mxu1 %v1462_v2  ;;  %v881_v1 = vld [vmem:[%s1737_s20 + $0x38] sm:$0xff] }
  0x5c   : > { %704 = vmatprep.mubr.bf16.mxu0 %v1509_v48  ;;  %744 = vmatprep.mubr.bf16.mxu1 %v1509_v48  ;;  %v897_v2 = vld [vmem:[%s1737_s20 + $0xb8] sm:$0xff] }
  0x63   : > { %705 = vmatmul.mubr.bf16.gmra.mxu0 %v1463_v3  ;;  %745 = vmatmul.mubr.bf16.gmra.mxu1 %v1464_v4 }
  0x64   : > { %714 = vmatprep.mubr.bf16.mxu0 %v1509_v48  ;;  %754 = vmatprep.mubr.bf16.mxu1 %v1509_v48 }
  0x6b   : > { %715 = vmatmul.mubr.bf16.gmra.mxu0 %v1465_v5  ;;  %755 = vmatmul.mubr.bf16.gmra.mxu1 %v1466_v6 }
  0x6c   : > { %724 = vmatprep.mubr.bf16.mxu0 %v1509_v48  ;;  %764 = vmatprep.mubr.bf16.mxu1 %v1509_v48 }
  0x73   : > { %725 = vmatmul.mubr.bf16.gmra.mxu0 %v1467_v7  ;;  %765 = vmatmul.mubr.bf16.gmra.mxu1 %v1468_v8  ;;  %v882_v7 = vld [vmem:[%s1737_s20 + $0x40] sm:$0xff] }
  0x74   : > { %v898_v8 = vld [vmem:[%s1737_s20 + $0xc0] sm:$0xff] }
 0x11b   : > { %v696_v11 = vpop.f32.mrf.mxu0  ;;  %v736_v12 = vpop.f32.mrf.mxu1 }
 0x11c   : > { %v906_v15 = vadd.f32 %v874_v9, %v696_v11  ;;  %v922_v16 = vadd.f32 %v890_v10, %v736_v12 }
 0x11d   : > { %v698_v17 = vpop.f32.mrf.mxu0  ;;  %v738_v18 = vpop.f32.mrf.mxu1 }
 0x11e   : > { %v907_v19 = vadd.f32 %v875_v13, %v698_v17  ;;  %v923_v20 = vadd.f32 %v891_v14, %v738_v18  ;;  %v938_v25 = vmax.f32 %v906_v15, 0.0  ;;  %v954_v26 = vmax.f32 %v922_v16, 0.0  ;;  %v883_v15 = vld [vmem:[%s1737_s20 + $0x48] sm:$0xff] }
 0x11f   : > { %v700_v23 = vpop.f32.mrf.mxu0  ;;  %v740_v24 = vpop.f32.mrf.mxu1  ;;  %v899_v16 = vld [vmem:[%s1737_s20 + $0xc8] sm:$0xff] }
 0x120   : > { %v939_v27 = vmax.f32 %v907_v19, 0.0  ;;  %v955_v28 = vmax.f32 %v923_v20, 0.0  ;;  %v908_v31 = vadd.f32 %v876_v21, %v700_v23  ;;  %v924_v32 = vadd.f32 %v892_v22, %v740_v24 }
 0x121   : > { %v702_v33 = vpop.f32.mrf.mxu0  ;;  %v742_v34 = vpop.f32.mrf.mxu1 }
 0x122   : > { %v1363_v37 = vpack.c.bf16 %v939_v27, %v938_v25  ;;  %v1371_v38 = vpack.c.bf16 %v955_v28, %v954_v26  ;;  %v909_v39 = vadd.f32 %v877_v29, %v702_v33  ;;  %v925_v40 = vadd.f32 %v893_v30, %v742_v34  ;;  %v884_v27 = vld [vmem:[%s1737_s20 + $0x50] sm:$0xff] }
 0x123   : > { %v706_v41 = vpop.f32.mrf.mxu0  ;;  %v746_v42 = vpop.f32.mrf.mxu1  ;;  %v940_v47 = vmax.f32 %v908_v31, 0.0  ;;  %v956_v48 = vmax.f32 %v924_v32, 0.0  ;;  %v900_v28 = vld [vmem:[%s1737_s20 + $0xd0] sm:$0xff] }
 0x124   : > { %1066 = vst [vmem:[%s1752_s12] sm:$0xff] %v1363_v37  ;;  %1074 = vst [vmem:[%s1752_s12 + $0x40] sm:$0xff] %v1371_v38  ;;  %v910_v45 = vadd.f32 %v878_v35, %v706_v41  ;;  %v926_v46 = vadd.f32 %v894_v36, %v746_v42  ;;  %v941_v49 = vmax.f32 %v909_v39, 0.0  ;;  %v957_v50 = vmax.f32 %v925_v40, 0.0  ;;  %v885_v37 = vld [vmem:[%s1737_s20 + $0x58] sm:$0xff] }
 0x125   : > { %v708_v51 = vpop.f32.mrf.mxu0  ;;  %v748_v52 = vpop.f32.mrf.mxu1  ;;  %v901_v38 = vld [vmem:[%s1737_s20 + $0xd8] sm:$0xff] }
 0x126   : > { %v911_v53 = vadd.f32 %v879_v43, %v708_v51  ;;  %v927_v54 = vadd.f32 %v895_v44, %v748_v52  ;;  %v1364_v57 = vpack.c.bf16 %v941_v49, %v940_v47  ;;  %v1372_v58 = vpack.c.bf16 %v957_v50, %v956_v48  ;;  %v886_v43 = vld [vmem:[%s1737_s20 + $0x60] sm:$0xff]  ;;  %v887_v51 = vld [vmem:[%s1737_s20 + $0x68] sm:$0xff] }
 0x127   : > { %v710_v59 = vpop.f32.mrf.mxu0  ;;  %v750_v60 = vpop.f32.mrf.mxu1  ;;  %v942_v61 = vmax.f32 %v910_v45, 0.0  ;;  %v958_v62 = vmax.f32 %v926_v46, 0.0  ;;  %v902_v44 = vld [vmem:[%s1737_s20 + $0xe0] sm:$0xff]  ;;  %v903_v52 = vld [vmem:[%s1737_s20 + $0xe8] sm:$0xff] }
 0x128   : > { %v943_v63 = vmax.f32 %v911_v53, 0.0  ;;  %v959_v0 = vmax.f32 %v927_v54, 0.0  ;;  %1067 = vst [vmem:[%s1752_s12 + $0x8] sm:$0xff] %v1364_v57  ;;  %1075 = vst [vmem:[%s1752_s12 + $0x48] sm:$0xff] %v1372_v58  ;;  %v912_v3 = vadd.f32 %v880_v55, %v710_v59  ;;  %v928_v4 = vadd.f32 %v896_v56, %v750_v60 }
 0x129   : > { %v712_v5 = vpop.f32.mrf.mxu0  ;;  %v752_v6 = vpop.f32.mrf.mxu1 }
 0x12a   : > { %v1365_v9 = vpack.c.bf16 %v943_v63, %v942_v61  ;;  %v1373_v10 = vpack.c.bf16 %v959_v0, %v958_v62  ;;  %v913_v11 = vadd.f32 %v881_v1, %v712_v5  ;;  %v929_v12 = vadd.f32 %v897_v2, %v752_v6  ;;  %v888_v63 = vld [vmem:[%s1737_s20 + $0x70] sm:$0xff] }
 0x12b   : > { %v716_v13 = vpop.f32.mrf.mxu0  ;;  %v756_v14 = vpop.f32.mrf.mxu1  ;;  %v944_v19 = vmax.f32 %v912_v3, 0.0  ;;  %v960_v20 = vmax.f32 %v928_v4, 0.0  ;;  %v904_v0 = vld [vmem:[%s1737_s20 + $0xf0] sm:$0xff] }
 0x12c   : > { %1068 = vst [vmem:[%s1752_s12 + $0x10] sm:$0xff] %v1365_v9  ;;  %1076 = vst [vmem:[%s1752_s12 + $0x50] sm:$0xff] %v1373_v10  ;;  %v914_v17 = vadd.f32 %v882_v7, %v716_v13  ;;  %v930_v18 = vadd.f32 %v898_v8, %v756_v14  ;;  %v945_v21 = vmax.f32 %v913_v11, 0.0  ;;  %v961_v22 = vmax.f32 %v929_v12, 0.0  ;;  %v889_v9 = vld [vmem:[%s1737_s20 + $0x78] sm:$0xff] }
 0x12d   : > { %v718_v23 = vpop.f32.mrf.mxu0  ;;  %v758_v24 = vpop.f32.mrf.mxu1  ;;  %v905_v10 = vld [vmem:[%s1737_s20 + $0xf8] sm:$0xff] }
 0x12e   : > { %v915_v25 = vadd.f32 %v883_v15, %v718_v23  ;;  %v931_v26 = vadd.f32 %v899_v16, %v758_v24  ;;  %v1366_v29 = vpack.c.bf16 %v945_v21, %v944_v19  ;;  %v1374_v30 = vpack.c.bf16 %v961_v22, %v960_v20 }
 0x12f   : > { %v720_v31 = vpop.f32.mrf.mxu0  ;;  %v760_v32 = vpop.f32.mrf.mxu1  ;;  %v946_v33 = vmax.f32 %v914_v17, 0.0  ;;  %v962_v34 = vmax.f32 %v930_v18, 0.0 }
 0x130   : > { %v947_v35 = vmax.f32 %v915_v25, 0.0  ;;  %v963_v36 = vmax.f32 %v931_v26, 0.0  ;;  %1069 = vst [vmem:[%s1752_s12 + $0x18] sm:$0xff] %v1366_v29  ;;  %1077 = vst [vmem:[%s1752_s12 + $0x58] sm:$0xff] %v1374_v30  ;;  %v916_v39 = vadd.f32 %v884_v27, %v720_v31  ;;  %v932_v40 = vadd.f32 %v900_v28, %v760_v32  ;;  %v1153_v25 = vld [vmem:[%s1752_s12] sm:$0xff] (%p1569_p6)  ;;  %v1155_v26 = vld [vmem:[%s1752_s12 + $0x8] sm:$0xff] (%p1569_p6) }
 0x131   : > { %v722_v41 = vpop.f32.mrf.mxu0  ;;  %v762_v42 = vpop.f32.mrf.mxu1  ;;  %1154 = vst [vmem:[%s1094_s24] sm:$0xff] (%p1569_p6), %v1153_v25  ;;  %1156 = vst [vmem:[%s1094_s24 + $0x10] sm:$0xff] (%p1569_p6), %v1155_v26 }
 0x132   : > { %v1367_v45 = vpack.c.bf16 %v947_v35, %v946_v33  ;;  %v1375_v46 = vpack.c.bf16 %v963_v36, %v962_v34  ;;  %v917_v47 = vadd.f32 %v885_v37, %v722_v41  ;;  %v933_v48 = vadd.f32 %v901_v38, %v762_v42  ;;  %v1169_v33 = vld [vmem:[%s1752_s12 + $0x40] sm:$0xff] (%p1569_p6)  ;;  %v1171_v34 = vld [vmem:[%s1752_s12 + $0x48] sm:$0xff] (%p1569_p6) }
 0x133   : > { %v726_v49 = vpop.f32.mrf.mxu0  ;;  %v766_v50 = vpop.f32.mrf.mxu1  ;;  %v948_v55 = vmax.f32 %v916_v39, 0.0  ;;  %v964_v56 = vmax.f32 %v932_v40, 0.0  ;;  %v1157_v27 = vld [vmem:[%s1752_s12 + $0x10] sm:$0xff] (%p1569_p6)  ;;  %1170 = vst [vmem:[%s1094_s24 + $0x80] sm:$0xff] (%p1569_p6), %v1169_v33  ;;  %1172 = vst [vmem:[%s1094_s24 + $0x90] sm:$0xff] (%p1569_p6), %v1171_v34 }
 0x134   : > { %1070 = vst [vmem:[%s1752_s12 + $0x20] sm:$0xff] %v1367_v45  ;;  %1078 = vst [vmem:[%s1752_s12 + $0x60] sm:$0xff] %v1375_v46  ;;  %v918_v53 = vadd.f32 %v886_v43, %v726_v49  ;;  %v934_v54 = vadd.f32 %v902_v44, %v766_v50  ;;  %v949_v57 = vmax.f32 %v917_v47, 0.0  ;;  %v965_v58 = vmax.f32 %v933_v48, 0.0  ;;  %v1173_v35 = vld [vmem:[%s1752_s12 + $0x50] sm:$0xff] (%p1569_p6) }
 0x135   : > { %v728_v59 = vpop.f32.mrf.mxu0  ;;  %v768_v60 = vpop.f32.mrf.mxu1  ;;  %1158 = vst [vmem:[%s1094_s24 + $0x20] sm:$0xff] (%p1569_p6), %v1157_v27  ;;  %1174 = vst [vmem:[%s1094_s24 + $0xa0] sm:$0xff] (%p1569_p6), %v1173_v35 }
 0x136   : > { %v919_v61 = vadd.f32 %v887_v51, %v728_v59  ;;  %v935_v62 = vadd.f32 %v903_v52, %v768_v60  ;;  %v1368_v1 = vpack.c.bf16 %v949_v57, %v948_v55  ;;  %v1376_v2 = vpack.c.bf16 %v965_v58, %v964_v56 }
 0x137   : > { %v730_v3 = vpop.f32.mrf.mxu0  ;;  %v770_v4 = vpop.f32.mrf.mxu1  ;;  %v950_v5 = vmax.f32 %v918_v53, 0.0  ;;  %v966_v6 = vmax.f32 %v934_v54, 0.0  ;;  %v1159_v28 = vld [vmem:[%s1752_s12 + $0x18] sm:$0xff] (%p1569_p6) }
 0x138   : > { %v951_v7 = vmax.f32 %v919_v61, 0.0  ;;  %v967_v8 = vmax.f32 %v935_v62, 0.0  ;;  %1071 = vst [vmem:[%s1752_s12 + $0x28] sm:$0xff] %v1368_v1  ;;  %1079 = vst [vmem:[%s1752_s12 + $0x68] sm:$0xff] %v1376_v2  ;;  %v920_v11 = vadd.f32 %v888_v63, %v730_v3  ;;  %v936_v12 = vadd.f32 %v904_v0, %v770_v4  ;;  %v1175_v36 = vld [vmem:[%s1752_s12 + $0x58] sm:$0xff] (%p1569_p6) }
 0x139   : > { %v732_v13 = vpop.f32.mrf.mxu0  ;;  %v772_v14 = vpop.f32.mrf.mxu1  ;;  %1160 = vst [vmem:[%s1094_s24 + $0x30] sm:$0xff] (%p1569_p6), %v1159_v28  ;;  %1176 = vst [vmem:[%s1094_s24 + $0xb0] sm:$0xff] (%p1569_p6), %v1175_v36 }
 0x13a   : > { %v1369_v15 = vpack.c.bf16 %v951_v7, %v950_v5  ;;  %v1377_v16 = vpack.c.bf16 %v967_v8, %v966_v6  ;;  %v921_v17 = vadd.f32 %v889_v9, %v732_v13  ;;  %v937_v18 = vadd.f32 %v905_v10, %v772_v14 }
 0x13b   : > { %v952_v19 = vmax.f32 %v920_v11, 0.0  ;;  %v968_v20 = vmax.f32 %v936_v12, 0.0  ;;  %v1161_v29 = vld [vmem:[%s1752_s12 + $0x20] sm:$0xff] (%p1569_p6) }
 0x13c   : > { %1072 = vst [vmem:[%s1752_s12 + $0x30] sm:$0xff] %v1369_v15  ;;  %1080 = vst [vmem:[%s1752_s12 + $0x70] sm:$0xff] %v1377_v16  ;;  %v953_v21 = vmax.f32 %v921_v17, 0.0  ;;  %v969_v22 = vmax.f32 %v937_v18, 0.0  ;;  %1088 = sbr.rel (!%p1569_p6) target bundleno = 330 (0x14a), region = 105  ;;  %v1177_v37 = vld [vmem:[%s1752_s12 + $0x60] sm:$0xff] (%p1569_p6) }
 0x13d   : > { %1162 = vst [vmem:[%s1094_s24 + $0x40] sm:$0xff] (%p1569_p6), %v1161_v29  ;;  %1178 = vst [vmem:[%s1094_s24 + $0xc0] sm:$0xff] (%p1569_p6), %v1177_v37 }
 0x13e   : > { %v1370_v23 = vpack.c.bf16 %v953_v21, %v952_v19  ;;  %v1378_v24 = vpack.c.bf16 %v969_v22, %v968_v20 }
 0x13f   : > { %v1163_v30 = vld [vmem:[%s1752_s12 + $0x28] sm:$0xff] (%p1569_p6) }
 0x140   : > { %1073 = vst [vmem:[%s1752_s12 + $0x38] sm:$0xff] %v1370_v23  ;;  %1081 = vst [vmem:[%s1752_s12 + $0x78] sm:$0xff] %v1378_v24  ;;  %v1179_v38 = vld [vmem:[%s1752_s12 + $0x68] sm:$0xff] (%p1569_p6) }
 0x141   : > { %1164 = vst [vmem:[%s1094_s24 + $0x50] sm:$0xff] %v1163_v30  ;;  %1180 = vst [vmem:[%s1094_s24 + $0xd0] sm:$0xff] %v1179_v38 }
 0x143   : > { %v1165_v31 = vld [vmem:[%s1752_s12 + $0x30] sm:$0xff] }
 0x144   : > { %1166 = vst [vmem:[%s1094_s24 + $0x60] sm:$0xff] %v1165_v31  ;;  %v1181_v39 = vld [vmem:[%s1752_s12 + $0x70] sm:$0xff] }
 0x145   : > { %1182 = vst [vmem:[%s1094_s24 + $0xe0] sm:$0xff] %v1181_v39 }
 0x147   : > { %v1167_v32 = vld [vmem:[%s1752_s12 + $0x38] sm:$0xff] }
 0x148   : > { %1168 = vst [vmem:[%s1094_s24 + $0x70] sm:$0xff] %v1167_v32  ;;  %v1183_v40 = vld [vmem:[%s1752_s12 + $0x78] sm:$0xff] }
 0x149   : > { %1184 = vst [vmem:[%s1094_s24 + $0xf0] sm:$0xff] %v1183_v40 }
 0x14a PF: > { %s13_s16 = sadd.s32 1, %s1507_s16   ;;  %s1833_s12 = smov %s1495_s13 }
 0x14b   : > { %p10_p11 = scmp.ge.s32.totalorder %s13_s16, 4   ;;  %s1834_s13 = smov %s1574_s23 }
 0x14c   : > { %s1835_s14 = smov %s1503_s15  ;;  %s1836_s15 = smov %s1838_s17 }
 0x14d   :  { %12 = sbr.rel (!%p10_p11) target bundleno = 3 (0x3), region = 185 }

// kernel: video_resnet_forward.28
= control target key start
LH: loop header
LB: loop body
LE: loop exit
PB: predicated region body
PF: predicated region fallthrough
CT: control target
= control target key end

     0   :  { %s1445_s9 = smov 0   ;;  %s1447_s10 = smov 0   ;;  %s1630_s0 = inlined_call_operand.vmem [shape: bf16[128,512], index: 0, kind: input, shape index: {}]   ;;  %s1631_s1 = inlined_call_operand.vmem [shape: bf16[512,256], index: 1, kind: input, shape index: {}]   ;;  %s1632_s2 = inlined_call_operand.vmem [shape: bf16[128,256], index: 2, kind: output, shape index: {}]  }
   0x1   :  { %s1449_s11 = smov 0   ;;  %s1451_s12 = smov 0  }
   0x2   :  { %s1453_s13 = smov 0  }
   0x3 LB: > { %s24_s14 = sadd.s32 1, %s1423_s12  ;;  %p47_p1 = scmp.ne.s32.totalorder %s1415_s10, %s1411_s9  ;;  %s1427_s13 = sphi %s1453_s13, %s12_s13   ;;  %s1423_s12 = sphi %s1451_s12, %s1636_s12   ;;  %s1419_s11 = sphi %s1449_s11, %s1635_s11   ;;  %s1415_s10 = sphi %s1447_s10, %s1634_s10   ;;  %s1411_s9 = sphi %s1445_s9, %s1633_s9  }
   0x4   : > { %p25_p0 = scmp.ge.s32.totalorder %s24_s14, 2  ;;  %p48_p2 = scmp.eq.s32.totalorder %s1427_s13, 0 }
   0x5   : > { %s40_s16 = sadd.s32 1, %s1415_s10  ;;  %p1147_p5 = scmp.ge.s32.totalorder %s1427_s13, 2 }
   0x6   : > { %s1638_s14 = smov (%p25_p0, %s24_s14), 0  ;;  %p49_p3 = por %p48_p2, %p47_p1 }
   0x7   : > { %s36_s15 = ssub.s32 %s1423_s12, %s1638_s14  ;;  %129 = sbr.rel (%p1147_p5) target bundleno = 24 (0x18), region = 16 }
   0x8   : > { %p38_p4 = scmp.eq.s32.totalorder %s36_s15, 0 }
   0xa   : > { %s1480_s17 = scalar_select %p38_p4, %s1415_s10, %s40_s16  }
   0xc   : > { %132 = sbr.rel (!%p49_p3) target bundleno = 24 (0x18), region = 20  ;;  %s134_s18 = sand.u32 (%p49_p3), 1, %s1415_s10  }
   0xd   : > { %s1226_s19 = sshll.u32 (%p49_p3), %s1423_s12, 3  ;;  %s1148_s20 = sshll.u32 (%p49_p3), %s134_s18, 7 }
   0xe   : > { %s1488_s23 = scalar_lea.vmem (%p49_p3), %s1630_s0, %s1226_s19  ;;  %s136_s24 = scalar_lea.vmem (%p49_p3), [#allocation3], %s1148_s20 }
   0xf   : > { %v201_v0 = vld [vmem:[%s1488_s23] sm:$0xff] (%p49_p3)  ;;  %v203_v1 = vld [vmem:[%s1488_s23 + $0x10] sm:$0xff] (%p49_p3) }
  0x10   : > { %v205_v2 = vld [vmem:[%s1488_s23 + $0x20] sm:$0xff] (%p49_p3)  ;;  %202 = vst [vmem:[%s136_s24] sm:$0xff] (%p49_p3), %v201_v0  ;;  %204 = vst [vmem:[%s136_s24 + $0x8] sm:$0xff] (%p49_p3), %v203_v1  ;;  %v207_v3 = vld [vmem:[%s1488_s23 + $0x30] sm:$0xff] (%p49_p3) }
  0x11   : > { %206 = vst [vmem:[%s136_s24 + $0x10] sm:$0xff] %v205_v2  ;;  %v209_v4 = vld [vmem:[%s1488_s23 + $0x40] sm:$0xff]  ;;  %v211_v5 = vld [vmem:[%s1488_s23 + $0x50] sm:$0xff]  ;;  %208 = vst [vmem:[%s136_s24 + $0x18] sm:$0xff] %v207_v3 }
  0x12   : > { %210 = vst [vmem:[%s136_s24 + $0x20] sm:$0xff] %v209_v4  ;;  %212 = vst [vmem:[%s136_s24 + $0x28] sm:$0xff] %v211_v5  ;;  %v213_v6 = vld [vmem:[%s1488_s23 + $0x60] sm:$0xff]  ;;  %v215_v7 = vld [vmem:[%s1488_s23 + $0x70] sm:$0xff] }
  0x13   : > { %v217_v8 = vld [vmem:[%s1488_s23 + $0x80] sm:$0xff]  ;;  %214 = vst [vmem:[%s136_s24 + $0x30] sm:$0xff] %v213_v6  ;;  %216 = vst [vmem:[%s136_s24 + $0x38] sm:$0xff] %v215_v7  ;;  %v219_v9 = vld [vmem:[%s1488_s23 + $0x90] sm:$0xff] }
  0x14   : > { %218 = vst [vmem:[%s136_s24 + $0x40] sm:$0xff] %v217_v8  ;;  %v221_v10 = vld [vmem:[%s1488_s23 + $0xa0] sm:$0xff]  ;;  %v223_v11 = vld [vmem:[%s1488_s23 + $0xb0] sm:$0xff]  ;;  %220 = vst [vmem:[%s136_s24 + $0x48] sm:$0xff] %v219_v9 }
  0x15   : > { %222 = vst [vmem:[%s136_s24 + $0x50] sm:$0xff] %v221_v10  ;;  %224 = vst [vmem:[%s136_s24 + $0x58] sm:$0xff] %v223_v11  ;;  %v225_v12 = vld [vmem:[%s1488_s23 + $0xc0] sm:$0xff]  ;;  %v227_v13 = vld [vmem:[%s1488_s23 + $0xd0] sm:$0xff] }
  0x16   : > { %v229_v14 = vld [vmem:[%s1488_s23 + $0xe0] sm:$0xff]  ;;  %226 = vst [vmem:[%s136_s24 + $0x60] sm:$0xff] %v225_v12  ;;  %228 = vst [vmem:[%s136_s24 + $0x68] sm:$0xff] %v227_v13  ;;  %v231_v15 = vld [vmem:[%s1488_s23 + $0xf0] sm:$0xff] }
  0x17   : > { %230 = vst [vmem:[%s136_s24 + $0x70] sm:$0xff] %v229_v14  ;;  %232 = vst [vmem:[%s136_s24 + $0x78] sm:$0xff] %v231_v15 }
  0x18 PF: > { %p1151_p6 = scmp.ge.s32.totalorder %s1427_s13, 1  ;;  %p252_p7 = scmp.lt.s32.totalorder %s1427_s13, 3 }
  0x1a   : > { %p253_p8 = pnand %p1151_p6, %p252_p7 }
  0x1b   : > { %s259_s25 = sand.u32 (!%p253_p8), 1, %s1411_s9   ;;  %s1153_s26 = sshll.u32 (!%p253_p8), %s1419_s11, 5 }
  0x1c   : > { %256 = sbr.rel (%p253_p8) target bundleno = 364 (0x16c), region = 62  ;;  %s1152_s27 = sshll.u32 (!%p253_p8), %s259_s25, 7 }
  0x1d   : > { %p299_p9 = scmp.lt.s32.totalorder (!%p253_p8), %s1153_s26, 63  ;;  %s1515_s4 = scalar_lea.vmem (!%p253_p8), [#allocation3], %s1152_s27 }
  0x1e   : > { %p1156_p10 = scmp.ne.s32.totalorder (!%p253_p8), %s1419_s11, 0 }
  0x21   : > { %s1640_s26 = smov (!%p299_p9, %s1153_s26), 63  ;;  %324 = sbr.rel (%p1156_p10) target bundleno = 55 (0x37), region = 70 }
  0x22   : > { %s1227_s28 = sshll.u32 %s1640_s26, 3 }
  0x23   : > { %s1513_s3 = scalar_lea.vmem %s1631_s1, %s1227_s28 }
  0x26   : > { %v1429_v16 = vmov 0.0  }
  0x27   : > { %325 = vst [vmem:[#allocation2 + $0xb0] sm:$0xff] %v1429_v16  ;;  %326 = vst [vmem:[#allocation2] sm:$0xff] %v1429_v16 }
  0x28   : > { %327 = vst [vmem:[#allocation2 + $0xd8] sm:$0xff] %v1429_v16  ;;  %328 = vst [vmem:[#allocation2 + $0x18] sm:$0xff] %v1429_v16 }
  0x29   : > { %329 = vst [vmem:[#allocation2 + $0x50] sm:$0xff] %v1429_v16  ;;  %330 = vst [vmem:[#allocation2 + $0x68] sm:$0xff] %v1429_v16 }
  0x2a   : > { %331 = vst [vmem:[#allocation2 + $0x30] sm:$0xff] %v1429_v16  ;;  %332 = vst [vmem:[#allocation2 + $0x48] sm:$0xff] %v1429_v16 }
  0x2b   : > { %333 = vst [vmem:[#allocation2 + $0x80] sm:$0xff] %v1429_v16  ;;  %334 = vst [vmem:[#allocation2 + $0x88] sm:$0xff] %v1429_v16 }
  0x2c   : > { %335 = vst [vmem:[#allocation2 + $0xe8] sm:$0xff] %v1429_v16  ;;  %336 = vst [vmem:[#allocation2 + $0xb8] sm:$0xff] %v1429_v16 }
  0x2d   : > { %337 = vst [vmem:[#allocation2 + $0x60] sm:$0xff] %v1429_v16  ;;  %338 = vst [vmem:[#allocation2 + $0xf0] sm:$0xff] %v1429_v16 }
  0x2e   : > { %339 = vst [vmem:[#allocation2 + $0x8] sm:$0xff] %v1429_v16  ;;  %340 = vst [vmem:[#allocation2 + $0x78] sm:$0xff] %v1429_v16 }
  0x2f   : > { %341 = vst [vmem:[#allocation2 + $0x38] sm:$0xff] %v1429_v16  ;;  %342 = vst [vmem:[#allocation2 + $0x58] sm:$0xff] %v1429_v16 }
  0x30   : > { %343 = vst [vmem:[#allocation2 + $0x40] sm:$0xff] %v1429_v16  ;;  %344 = vst [vmem:[#allocation2 + $0xc8] sm:$0xff] %v1429_v16 }
  0x31   : > { %345 = vst [vmem:[#allocation2 + $0xe0] sm:$0xff] %v1429_v16  ;;  %346 = vst [vmem:[#allocation2 + $0x90] sm:$0xff] %v1429_v16 }
  0x32   : > { %347 = vst [vmem:[#allocation2 + $0x70] sm:$0xff] %v1429_v16  ;;  %348 = vst [vmem:[#allocation2 + $0xc0] sm:$0xff] %v1429_v16 }
  0x33   : > { %349 = vst [vmem:[#allocation2 + $0xa8] sm:$0xff] %v1429_v16  ;;  %350 = vst [vmem:[#allocation2 + $0xd0] sm:$0xff] %v1429_v16 }
  0x34   : > { %351 = vst [vmem:[#allocation2 + $0x10] sm:$0xff] %v1429_v16  ;;  %352 = vst [vmem:[#allocation2 + $0x28] sm:$0xff] %v1429_v16 }
  0x35   : > { %353 = vst [vmem:[#allocation2 + $0xa0] sm:$0xff] %v1429_v16  ;;  %354 = vst [vmem:[#allocation2 + $0xf8] sm:$0xff] %v1429_v16 }
  0x36   : > { %355 = vst [vmem:[#allocation2 + $0x20] sm:$0xff] %v1429_v16  ;;  %356 = vst [vmem:[#allocation2 + $0x98] sm:$0xff] %v1429_v16 }
  0x37 PF: > { %v1317_v17 = vld [vmem:[%s1513_s3 + $0x74] ss:$8 sps:$4 sm:$0xff]   ;;  %v1319_v18 = vld [vmem:[%s1513_s3 + $0x70] ss:$8 sps:$4 sm:$0xff]   ;;  %v1320_v19 = vld [vmem:[%s1513_s3 + $0x64] ss:$8 sps:$4 sm:$0xff]  }
  0x38   : > { %677 = vmatprep.subr.bf16.mxu0 %v1317_v17  ;;  %1244 = vmatprep.subr.bf16.mxu1 %v1317_v17  ;;  %v1322_v20 = vld [vmem:[%s1513_s3 + $0x60] ss:$8 sps:$4 sm:$0xff]   ;;  %v1323_v21 = vld [vmem:[%s1513_s3 + $0x54] ss:$8 sps:$4 sm:$0xff]   ;;  %v1325_v22 = vld [vmem:[%s1513_s3 + $0x50] ss:$8 sps:$4 sm:$0xff]  }
  0x39   : > { %678 = vmatpush1.bf16.msra.mxu0 %v1319_v18  ;;  %1260 = vmatpush1.bf16.msra.mxu1 %v1319_v18  ;;  %v1326_v23 = vld [vmem:[%s1513_s3 + $0x44] ss:$8 sps:$4 sm:$0xff]   ;;  %v1328_v24 = vld [vmem:[%s1513_s3 + $0x40] ss:$8 sps:$4 sm:$0xff]   ;;  %v1329_v25 = vld [vmem:[%s1513_s3 + $0x34] ss:$8 sps:$4 sm:$0xff]  }
  0x3a   : > { %679 = vmatprep.subr.bf16.mxu0 %v1320_v19  ;;  %1245 = vmatprep.subr.bf16.mxu1 %v1320_v19  ;;  %v1331_v26 = vld [vmem:[%s1513_s3 + $0x30] ss:$8 sps:$4 sm:$0xff]   ;;  %v1332_v27 = vld [vmem:[%s1513_s3 + $0x24] ss:$8 sps:$4 sm:$0xff]   ;;  %v1334_v28 = vld [vmem:[%s1513_s3 + $0x20] ss:$8 sps:$4 sm:$0xff]  }
  0x3b   : > { %v1335_v29 = vld [vmem:[%s1513_s3 + $0x14] ss:$8 sps:$4 sm:$0xff]   ;;  %v1367_v30 = vld [vmem:[%s1515_s4 + $0x4] ss:$8 sps:$4 sm:$0xff]   ;;  %v1337_v31 = vld [vmem:[%s1513_s3 + $0x10] ss:$8 sps:$4 sm:$0xff]  }
  0x3c   : > { %v1370_v32 = vld [vmem:[%s1515_s4 + $0x44] ss:$8 sps:$4 sm:$0xff]   ;;  %709 = vmatprep.mubr.bf16.mxu0 %v1367_v30  ;;  %v1340_v34 = vld [vmem:[%s1513_s3] ss:$8 sps:$4 sm:$0xff]   ;;  %v1341_v35 = vld [vmem:[%s1513_s3 + $0xf4] ss:$8 sps:$4 sm:$0xff]  }
  0x3d   : > { %680 = vmatpush1.bf16.msra.mxu0 %v1322_v20  ;;  %1261 = vmatpush1.bf16.msra.mxu1 %v1322_v20  ;;  %v1338_v33 = vld [vmem:[%s1513_s3 + $0x4] ss:$8 sps:$4 sm:$0xff]   ;;  %v1343_v36 = vld [vmem:[%s1513_s3 + $0xf0] ss:$8 sps:$4 sm:$0xff]   ;;  %v1346_v38 = vld [vmem:[%s1513_s3 + $0xe0] ss:$8 sps:$4 sm:$0xff]  }
  0x3e   : > { %681 = vmatprep.subr.bf16.mxu0 %v1323_v21  ;;  %1246 = vmatprep.subr.bf16.mxu1 %v1323_v21  ;;  %v1344_v37 = vld [vmem:[%s1513_s3 + $0xe4] ss:$8 sps:$4 sm:$0xff]   ;;  %v1347_v39 = vld [vmem:[%s1513_s3 + $0xd4] ss:$8 sps:$4 sm:$0xff]   ;;  %v1349_v40 = vld [vmem:[%s1513_s3 + $0xd0] ss:$8 sps:$4 sm:$0xff]  }
  0x3f   : > { %749 = vmatprep.mubr.bf16.mxu1 %v1370_v32  ;;  %v1350_v41 = vld [vmem:[%s1513_s3 + $0xc4] ss:$8 sps:$4 sm:$0xff]   ;;  %v1352_v42 = vld [vmem:[%s1513_s3 + $0xc0] ss:$8 sps:$4 sm:$0xff]   ;;  %v1353_v43 = vld [vmem:[%s1513_s3 + $0xb4] ss:$8 sps:$4 sm:$0xff]  }
  0x40   : > { %v1355_v44 = vld [vmem:[%s1513_s3 + $0xb0] ss:$8 sps:$4 sm:$0xff]   ;;  %v1356_v45 = vld [vmem:[%s1513_s3 + $0xa4] ss:$8 sps:$4 sm:$0xff]   ;;  %v1358_v46 = vld [vmem:[%s1513_s3 + $0xa0] ss:$8 sps:$4 sm:$0xff]  }
  0x41   : > { %682 = vmatpush1.bf16.msra.mxu0 %v1325_v22  ;;  %1262 = vmatpush1.bf16.msra.mxu1 %v1325_v22  ;;  %v1359_v47 = vld [vmem:[%s1513_s3 + $0x94] ss:$8 sps:$4 sm:$0xff]   ;;  %v1361_v48 = vld [vmem:[%s1513_s3 + $0x90] ss:$8 sps:$4 sm:$0xff]   ;;  %v1362_v49 = vld [vmem:[%s1513_s3 + $0x84] ss:$8 sps:$4 sm:$0xff]  }
  0x42   : > { %683 = vmatprep.subr.bf16.mxu0 %v1326_v23  ;;  %1247 = vmatprep.subr.bf16.mxu1 %v1326_v23  ;;  %v1364_v50 = vld [vmem:[%s1513_s3 + $0x80] ss:$8 sps:$4 sm:$0xff]   ;;  %v1371_v53 = vld [vmem:[%s1515_s4 + $0x14] ss:$8 sps:$4 sm:$0xff]   ;;  %v1375_v55 = vld [vmem:[%s1515_s4 + $0x10] ss:$8 sps:$4 sm:$0xff]  }
  0x43   : > { %v1365_v51 = vld [vmem:[%s1515_s4] ss:$8 sps:$4 sm:$0xff]   ;;  %v1373_v54 = vld [vmem:[%s1515_s4 + $0x54] ss:$8 sps:$4 sm:$0xff]   ;;  %v1376_v56 = vld [vmem:[%s1515_s4 + $0x50] ss:$8 sps:$4 sm:$0xff]  }
  0x44   : > { %v1368_v52 = vld [vmem:[%s1515_s4 + $0x40] ss:$8 sps:$4 sm:$0xff]   ;;  %v1377_v57 = vld [vmem:[%s1515_s4 + $0x24] ss:$8 sps:$4 sm:$0xff]   ;;  %v1383_v61 = vld [vmem:[%s1515_s4 + $0x34] ss:$8 sps:$4 sm:$0xff]  }
  0x45   : > { %684 = vmatpush1.bf16.msra.mxu0 %v1328_v24  ;;  %1263 = vmatpush1.bf16.msra.mxu1 %v1328_v24  ;;  %v1379_v58 = vld [vmem:[%s1515_s4 + $0x64] ss:$8 sps:$4 sm:$0xff]   ;;  %v1381_v59 = vld [vmem:[%s1515_s4 + $0x20] ss:$8 sps:$4 sm:$0xff]   ;;  %v1385_v62 = vld [vmem:[%s1515_s4 + $0x74] ss:$8 sps:$4 sm:$0xff]  }
  0x46   : > { %685 = vmatprep.subr.bf16.mxu0 %v1329_v25  ;;  %1248 = vmatprep.subr.bf16.mxu1 %v1329_v25  ;;  %v1382_v60 = vld [vmem:[%s1515_s4 + $0x60] ss:$8 sps:$4 sm:$0xff]   ;;  %v1387_v63 = vld [vmem:[%s1515_s4 + $0x30] ss:$8 sps:$4 sm:$0xff]   ;;  %p1205_p11 = scmp.ne.s32.totalorder %s1419_s11, 1 }
  0x47   : > { %v1388_v0 = vld [vmem:[%s1515_s4 + $0x70] ss:$8 sps:$4 sm:$0xff]   ;;  %v358_v5 = vld [vmem:[#allocation2] sm:$0xff]  ;;  %v376_v18 = vld [vmem:[#allocation2 + $0xc8] sm:$0xff] }
  0x48   : > { %v357_v1 = vld [vmem:[#allocation2 + $0xb0] sm:$0xff]  ;;  %v373_v2 = vld [vmem:[#allocation2 + $0x38] sm:$0xff]  ;;  %v375_v12 = vld [vmem:[#allocation2 + $0x40] sm:$0xff] }
  0x49   : > { %686 = vmatpush1.bf16.msra.mxu0 %v1331_v26  ;;  %1264 = vmatpush1.bf16.msra.mxu1 %v1331_v26  ;;  %v374_v6 = vld [vmem:[#allocation2 + $0x58] sm:$0xff]  ;;  %v361_v23 = vld [vmem:[#allocation2 + $0x50] sm:$0xff]  ;;  %v377_v24 = vld [vmem:[#allocation2 + $0xe0] sm:$0xff] }
  0x4a   : > { %687 = vmatprep.subr.bf16.mxu0 %v1332_v27  ;;  %1249 = vmatprep.subr.bf16.mxu1 %v1332_v27  ;;  %v359_v11 = vld [vmem:[#allocation2 + $0xd8] sm:$0xff]  ;;  %v378_v30 = vld [vmem:[#allocation2 + $0x90] sm:$0xff] }
  0x4b   : > { %v360_v17 = vld [vmem:[#allocation2 + $0x18] sm:$0xff] }
  0x4d   : > { %688 = vmatpush1.bf16.msra.mxu0 %v1334_v28  ;;  %1265 = vmatpush1.bf16.msra.mxu1 %v1334_v28 }
  0x4e   : > { %689 = vmatprep.subr.bf16.mxu0 %v1335_v29  ;;  %1250 = vmatprep.subr.bf16.mxu1 %v1335_v29  ;;  %v362_v29 = vld [vmem:[#allocation2 + $0x68] sm:$0xff] }
  0x51   : > { %690 = vmatpush1.bf16.msra.mxu0 %v1337_v31  ;;  %1266 = vmatpush1.bf16.msra.mxu1 %v1337_v31 }
  0x52   : > { %691 = vmatprep.subr.bf16.mxu0 %v1338_v33  ;;  %1251 = vmatprep.subr.bf16.mxu1 %v1338_v33 }
  0x55   : > { %692 = vmatpush1.bf16.msra.mxu0 %v1340_v34  ;;  %1267 = vmatpush1.bf16.msra.mxu1 %v1340_v34 }
  0x56   : > { %693 = vmatprep.subr.bf16.mxu0 %v1341_v35  ;;  %1252 = vmatprep.subr.bf16.mxu1 %v1341_v35  ;;  %v363_v35 = vld [vmem:[#allocation2 + $0x30] sm:$0xff] }
  0x59   : > { %694 = vmatpush2.bf16.msra.mxu0 %v1343_v36  ;;  %1268 = vmatpush2.bf16.msra.mxu1 %v1343_v36  ;;  %v379_v36 = vld [vmem:[#allocation2 + $0x70] sm:$0xff] }
  0x5a   : > { %695 = vmatprep.subr.bf16.mxu0 %v1344_v37  ;;  %1253 = vmatprep.subr.bf16.mxu1 %v1344_v37 }
  0x5d   : > { %696 = vmatpush2.bf16.msra.mxu0 %v1346_v38  ;;  %1269 = vmatpush2.bf16.msra.mxu1 %v1346_v38 }
  0x5e   : > { %697 = vmatprep.subr.bf16.mxu0 %v1347_v39  ;;  %1254 = vmatprep.subr.bf16.mxu1 %v1347_v39 }
  0x61   : > { %698 = vmatpush2.bf16.msra.mxu0 %v1349_v40  ;;  %1270 = vmatpush2.bf16.msra.mxu1 %v1349_v40 }
  0x62   : > { %699 = vmatprep.subr.bf16.mxu0 %v1350_v41  ;;  %1255 = vmatprep.subr.bf16.mxu1 %v1350_v41  ;;  %v364_v41 = vld [vmem:[#allocation2 + $0x48] sm:$0xff] }
  0x65   : > { %700 = vmatpush2.bf16.msra.mxu0 %v1352_v42  ;;  %1271 = vmatpush2.bf16.msra.mxu1 %v1352_v42  ;;  %v380_v42 = vld [vmem:[#allocation2 + $0xc0] sm:$0xff] }
  0x66   : > { %701 = vmatprep.subr.bf16.mxu0 %v1353_v43  ;;  %1256 = vmatprep.subr.bf16.mxu1 %v1353_v43 }
  0x69   : > { %702 = vmatpush2.bf16.msra.mxu0 %v1355_v44  ;;  %1272 = vmatpush2.bf16.msra.mxu1 %v1355_v44 }
  0x6a   : > { %703 = vmatprep.subr.bf16.mxu0 %v1356_v45  ;;  %1257 = vmatprep.subr.bf16.mxu1 %v1356_v45 }
  0x6d   : > { %704 = vmatpush2.bf16.msra.mxu0 %v1358_v46  ;;  %1273 = vmatpush2.bf16.msra.mxu1 %v1358_v46 }
  0x6e   : > { %705 = vmatprep.subr.bf16.mxu0 %v1359_v47  ;;  %1258 = vmatprep.subr.bf16.mxu1 %v1359_v47  ;;  %v365_v47 = vld [vmem:[#allocation2 + $0x80] sm:$0xff] }
  0x71   : > { %706 = vmatpush2.bf16.msra.mxu0 %v1361_v48  ;;  %1274 = vmatpush2.bf16.msra.mxu1 %v1361_v48  ;;  %v381_v48 = vld [vmem:[#allocation2 + $0xa8] sm:$0xff] }
  0x72   : > { %707 = vmatprep.subr.bf16.mxu0 %v1362_v49  ;;  %1259 = vmatprep.subr.bf16.mxu1 %v1362_v49 }
  0x75   : > { %708 = vmatpush2.bf16.msra.mxu0 %v1364_v50  ;;  %1275 = vmatpush2.bf16.msra.mxu1 %v1364_v50 }
  0x78   : > { %710 = vmatmul.mubr.bf16.vlgmr.msra.gmra.mxu0 %v1365_v51  ;;  %750 = vmatmul.mubr.bf16.vlgmr.msra.gmra.mxu1 %v1368_v52 }
  0x79   : > { %719 = vmatprep.mubr.bf16.mxu0 %v1371_v53  ;;  %759 = vmatprep.mubr.bf16.mxu1 %v1373_v54  ;;  %v366_v53 = vld [vmem:[#allocation2 + $0x88] sm:$0xff]  ;;  %v382_v54 = vld [vmem:[#allocation2 + $0xd0] sm:$0xff] }
  0x80   : > { %720 = vmatmul.mubr.bf16.gmra.mxu0 %v1375_v55  ;;  %760 = vmatmul.mubr.bf16.gmra.mxu1 %v1376_v56 }
  0x81   : > { %729 = vmatprep.mubr.bf16.mxu0 %v1377_v57  ;;  %769 = vmatprep.mubr.bf16.mxu1 %v1379_v58 }
  0x88   : > { %730 = vmatmul.mubr.bf16.gmra.mxu0 %v1381_v59  ;;  %770 = vmatmul.mubr.bf16.gmra.mxu1 %v1382_v60  ;;  %v367_v59 = vld [vmem:[#allocation2 + $0xe8] sm:$0xff]  ;;  %v383_v60 = vld [vmem:[#allocation2 + $0x10] sm:$0xff] }
  0x89   : > { %739 = vmatprep.mubr.bf16.mxu0 %v1383_v61  ;;  %779 = vmatprep.mubr.bf16.mxu1 %v1385_v62 }
  0x90   : > { %740 = vmatmul.mubr.bf16.gmra.mxu0 %v1387_v63  ;;  %780 = vmatmul.mubr.bf16.gmra.mxu1 %v1388_v0 }
 0x138   : > { %v711_v3 = vpop.f32.mrf.mxu0  ;;  %v751_v4 = vpop.f32.mrf.mxu1 }
 0x139   : > { %v790_v7 = vadd.f32 %v711_v3, %v357_v1  ;;  %v806_v8 = vadd.f32 %v751_v4, %v373_v2  ;;  %v368_v1 = vld [vmem:[#allocation2 + $0xb8] sm:$0xff]  ;;  %v384_v2 = vld [vmem:[#allocation2 + $0x28] sm:$0xff] }
 0x13a   : > { %v713_v9 = vpop.f32.mrf.mxu0  ;;  %v753_v10 = vpop.f32.mrf.mxu1 }
 0x13b   : > { %822 = vst [vmem:[#allocation2 + $0xb0] sm:$0xff] %v790_v7  ;;  %838 = vst [vmem:[#allocation2 + $0x38] sm:$0xff] %v806_v8  ;;  %v791_v13 = vadd.f32 %v713_v9, %v358_v5  ;;  %v807_v14 = vadd.f32 %v753_v10, %v374_v6  ;;  %v369_v7 = vld [vmem:[#allocation2 + $0x60] sm:$0xff] }
 0x13c   : > { %v715_v15 = vpop.f32.mrf.mxu0  ;;  %v755_v16 = vpop.f32.mrf.mxu1  ;;  %v385_v8 = vld [vmem:[#allocation2 + $0xa0] sm:$0xff] }
 0x13d   : > { %823 = vst [vmem:[#allocation2] sm:$0xff] %v791_v13  ;;  %839 = vst [vmem:[#allocation2 + $0x58] sm:$0xff] %v807_v14  ;;  %v792_v19 = vadd.f32 %v715_v15, %v359_v11  ;;  %v808_v20 = vadd.f32 %v755_v16, %v375_v12  ;;  %v370_v13 = vld [vmem:[#allocation2 + $0xf0] sm:$0xff]  ;;  %v386_v14 = vld [vmem:[#allocation2 + $0xf8] sm:$0xff] }
 0x13e   : > { %v717_v21 = vpop.f32.mrf.mxu0  ;;  %v757_v22 = vpop.f32.mrf.mxu1 }
 0x13f   : > { %824 = vst [vmem:[#allocation2 + $0xd8] sm:$0xff] %v792_v19  ;;  %840 = vst [vmem:[#allocation2 + $0x40] sm:$0xff] %v808_v20  ;;  %v793_v25 = vadd.f32 %v717_v21, %v360_v17  ;;  %v809_v26 = vadd.f32 %v757_v22, %v376_v18  ;;  %v371_v19 = vld [vmem:[#allocation2 + $0x8] sm:$0xff]  ;;  %v387_v20 = vld [vmem:[#allocation2 + $0x20] sm:$0xff] }
 0x140   : > { %v721_v27 = vpop.f32.mrf.mxu0  ;;  %v761_v28 = vpop.f32.mrf.mxu1 }
 0x141   : > { %825 = vst [vmem:[#allocation2 + $0x18] sm:$0xff] %v793_v25  ;;  %841 = vst [vmem:[#allocation2 + $0xc8] sm:$0xff] %v809_v26  ;;  %v794_v31 = vadd.f32 %v721_v27, %v361_v23  ;;  %v810_v32 = vadd.f32 %v761_v28, %v377_v24  ;;  %v372_v25 = vld [vmem:[#allocation2 + $0x78] sm:$0xff] }
 0x142   : > { %v723_v33 = vpop.f32.mrf.mxu0  ;;  %v763_v34 = vpop.f32.mrf.mxu1  ;;  %v388_v26 = vld [vmem:[#allocation2 + $0x98] sm:$0xff] }
 0x143   : > { %826 = vst [vmem:[#allocation2 + $0x50] sm:$0xff] %v794_v31  ;;  %842 = vst [vmem:[#allocation2 + $0xe0] sm:$0xff] %v810_v32  ;;  %v795_v37 = vadd.f32 %v723_v33, %v362_v29  ;;  %v811_v38 = vadd.f32 %v763_v34, %v378_v30 }
 0x144   : > { %v725_v39 = vpop.f32.mrf.mxu0  ;;  %v765_v40 = vpop.f32.mrf.mxu1 }
 0x145   : > { %827 = vst [vmem:[#allocation2 + $0x68] sm:$0xff] %v795_v37  ;;  %843 = vst [vmem:[#allocation2 + $0x90] sm:$0xff] %v811_v38  ;;  %v796_v43 = vadd.f32 %v725_v39, %v363_v35  ;;  %v812_v44 = vadd.f32 %v765_v40, %v379_v36 }
 0x146   : > { %v727_v45 = vpop.f32.mrf.mxu0  ;;  %v767_v46 = vpop.f32.mrf.mxu1 }
 0x147   : > { %828 = vst [vmem:[#allocation2 + $0x30] sm:$0xff] %v796_v43  ;;  %844 = vst [vmem:[#allocation2 + $0x70] sm:$0xff] %v812_v44  ;;  %v797_v49 = vadd.f32 %v727_v45, %v364_v41  ;;  %v813_v50 = vadd.f32 %v767_v46, %v380_v42 }
 0x148   : > { %v731_v51 = vpop.f32.mrf.mxu0  ;;  %v771_v52 = vpop.f32.mrf.mxu1 }
 0x149   : > { %829 = vst [vmem:[#allocation2 + $0x48] sm:$0xff] %v797_v49  ;;  %845 = vst [vmem:[#allocation2 + $0xc0] sm:$0xff] %v813_v50  ;;  %v798_v55 = vadd.f32 %v731_v51, %v365_v47  ;;  %v814_v56 = vadd.f32 %v771_v52, %v381_v48 }
 0x14a   : > { %v733_v57 = vpop.f32.mrf.mxu0  ;;  %v773_v58 = vpop.f32.mrf.mxu1 }
 0x14b   : > { %830 = vst [vmem:[#allocation2 + $0x80] sm:$0xff] %v798_v55  ;;  %846 = vst [vmem:[#allocation2 + $0xa8] sm:$0xff] %v814_v56  ;;  %v799_v61 = vadd.f32 %v733_v57, %v366_v53  ;;  %v815_v62 = vadd.f32 %v773_v58, %v382_v54 }
 0x14c   : > { %v735_v63 = vpop.f32.mrf.mxu0  ;;  %v775_v0 = vpop.f32.mrf.mxu1 }
 0x14d   : > { %831 = vst [vmem:[#allocation2 + $0x88] sm:$0xff] %v799_v61  ;;  %847 = vst [vmem:[#allocation2 + $0xd0] sm:$0xff] %v815_v62  ;;  %v800_v3 = vadd.f32 %v735_v63, %v367_v59  ;;  %v816_v4 = vadd.f32 %v775_v0, %v383_v60 }
 0x14e   : > { %v737_v5 = vpop.f32.mrf.mxu0  ;;  %v777_v6 = vpop.f32.mrf.mxu1 }
 0x14f   : > { %832 = vst [vmem:[#allocation2 + $0xe8] sm:$0xff] %v800_v3  ;;  %848 = vst [vmem:[#allocation2 + $0x10] sm:$0xff] %v816_v4  ;;  %v801_v9 = vadd.f32 %v737_v5, %v368_v1  ;;  %v817_v10 = vadd.f32 %v777_v6, %v384_v2 }
 0x150   : > { %v741_v11 = vpop.f32.mrf.mxu0  ;;  %v781_v12 = vpop.f32.mrf.mxu1 }
 0x151   : > { %833 = vst [vmem:[#allocation2 + $0xb8] sm:$0xff] %v801_v9  ;;  %849 = vst [vmem:[#allocation2 + $0x28] sm:$0xff] %v817_v10  ;;  %v802_v15 = vadd.f32 %v741_v11, %v369_v7  ;;  %v818_v16 = vadd.f32 %v781_v12, %v385_v8 }
 0x152   : > { %v743_v17 = vpop.f32.mrf.mxu0  ;;  %v783_v18 = vpop.f32.mrf.mxu1 }
 0x153   : > { %834 = vst [vmem:[#allocation2 + $0x60] sm:$0xff] %v802_v15  ;;  %850 = vst [vmem:[#allocation2 + $0xa0] sm:$0xff] %v818_v16  ;;  %v803_v21 = vadd.f32 %v743_v17, %v370_v13  ;;  %v819_v22 = vadd.f32 %v783_v18, %v386_v14 }
 0x154   : > { %v745_v23 = vpop.f32.mrf.mxu0  ;;  %v785_v24 = vpop.f32.mrf.mxu1 }
 0x155   : > { %835 = vst [vmem:[#allocation2 + $0xf0] sm:$0xff] %v803_v21  ;;  %851 = vst [vmem:[#allocation2 + $0xf8] sm:$0xff] %v819_v22  ;;  %v804_v27 = vadd.f32 %v745_v23, %v371_v19  ;;  %v820_v28 = vadd.f32 %v785_v24, %v387_v20  ;;  %857 = sbr.rel (%p1205_p11) target bundleno = 364 (0x16c), region = 74 }
 0x156   : > { %v747_v29 = vpop.f32.mrf.mxu0  ;;  %v787_v30 = vpop.f32.mrf.mxu1 }
 0x157   : > { %836 = vst [vmem:[#allocation2 + $0x8] sm:$0xff] %v804_v27  ;;  %852 = vst [vmem:[#allocation2 + $0x20] sm:$0xff] %v820_v28  ;;  %v805_v31 = vadd.f32 %v747_v29, %v372_v25  ;;  %v821_v32 = vadd.f32 %v787_v30, %v388_v26 }
 0x159   : > { %837 = vst [vmem:[#allocation2 + $0x78] sm:$0xff] %v805_v31  ;;  %853 = vst [vmem:[#allocation2 + $0x98] sm:$0xff] %v821_v32 }
 0x15a   : > { %v858_v33 = vld [vmem:[#allocation2 + $0xb0] sm:$0xff]  ;;  %v859_v34 = vld [vmem:[#allocation2] sm:$0xff]  ;;  %v860_v35 = vld [vmem:[#allocation2 + $0xd8] sm:$0xff] }
 0x15b   : > { %v890_v36 = vmax.f32 %v858_v33, 0.0  ;;  %v891_v37 = vmax.f32 %v859_v34, 0.0  ;;  %v861_v38 = vld [vmem:[#allocation2 + $0x18] sm:$0xff]  ;;  %v892_v39 = vmax.f32 %v860_v35, 0.0  ;;  %v862_v40 = vld [vmem:[#allocation2 + $0x50] sm:$0xff]  ;;  %v863_v41 = vld [vmem:[#allocation2 + $0x68] sm:$0xff] }
 0x15c   : > { %v893_v42 = vmax.f32 %v861_v38, 0.0  ;;  %v894_v43 = vmax.f32 %v862_v40, 0.0  ;;  %v895_v44 = vmax.f32 %v863_v41, 0.0  ;;  %v864_v45 = vld [vmem:[#allocation2 + $0x30] sm:$0xff]  ;;  %v865_v46 = vld [vmem:[#allocation2 + $0x48] sm:$0xff]  ;;  %v866_v47 = vld [vmem:[#allocation2 + $0x80] sm:$0xff] }
 0x15d   : > { %v1228_v48 = vpack.c.bf16 %v891_v37, %v890_v36  ;;  %v896_v49 = vmax.f32 %v864_v45, 0.0  ;;  %v897_v50 = vmax.f32 %v865_v46, 0.0  ;;  %v867_v51 = vld [vmem:[#allocation2 + $0x88] sm:$0xff]  ;;  %v898_v52 = vmax.f32 %v866_v47, 0.0  ;;  %v869_v54 = vld [vmem:[#allocation2 + $0xb8] sm:$0xff]  ;;  %v870_v59 = vld [vmem:[#allocation2 + $0x60] sm:$0xff] }
 0x15e   : > { %v868_v53 = vld [vmem:[#allocation2 + $0xe8] sm:$0xff]  ;;  %v1229_v55 = vpack.c.bf16 %v893_v42, %v892_v39  ;;  %v1230_v56 = vpack.c.bf16 %v895_v44, %v894_v43  ;;  %v899_v57 = vmax.f32 %v867_v51, 0.0  ;;  %v871_v60 = vld [vmem:[#allocation2 + $0xf0] sm:$0xff]  ;;  %v901_v63 = vmax.f32 %v869_v54, 0.0  ;;  %v874_v3 = vld [vmem:[#allocation2 + $0x38] sm:$0xff] }
 0x15f   : > { %v900_v58 = vmax.f32 %v868_v53, 0.0  ;;  %v872_v61 = vld [vmem:[#allocation2 + $0x8] sm:$0xff]  ;;  %1018 = vst [vmem:[%s1632_s2] sm:$0xff] %v1228_v48  ;;  %v1231_v62 = vpack.c.bf16 %v897_v50, %v896_v49  ;;  %v902_v0 = vmax.f32 %v870_v59, 0.0  ;;  %v903_v1 = vmax.f32 %v871_v60, 0.0  ;;  %v875_v4 = vld [vmem:[#allocation2 + $0x58] sm:$0xff]  ;;  %v876_v9 = vld [vmem:[#allocation2 + $0x40] sm:$0xff] }
 0x160   : > { %v873_v2 = vld [vmem:[#allocation2 + $0x78] sm:$0xff]  ;;  %1019 = vst [vmem:[%s1632_s2 + $0x8] sm:$0xff] %v1229_v55  ;;  %1020 = vst [vmem:[%s1632_s2 + $0x10] sm:$0xff] %v1230_v56  ;;  %v1232_v5 = vpack.c.bf16 %v899_v57, %v898_v52  ;;  %v904_v6 = vmax.f32 %v872_v61, 0.0  ;;  %v906_v8 = vmax.f32 %v874_v3, 0.0  ;;  %v877_v10 = vld [vmem:[#allocation2 + $0xc8] sm:$0xff] }
 0x161   : > { %v905_v7 = vmax.f32 %v873_v2, 0.0  ;;  %v878_v11 = vld [vmem:[#allocation2 + $0xe0] sm:$0xff]  ;;  %1021 = vst [vmem:[%s1632_s2 + $0x18] sm:$0xff] %v1231_v62  ;;  %v1233_v12 = vpack.c.bf16 %v901_v63, %v900_v58  ;;  %v1234_v13 = vpack.c.bf16 %v903_v1, %v902_v0  ;;  %v907_v14 = vmax.f32 %v875_v4, 0.0  ;;  %v879_v16 = vld [vmem:[#allocation2 + $0x90] sm:$0xff]  ;;  %v882_v23 = vld [vmem:[#allocation2 + $0xa8] sm:$0xff] }
 0x162   : > { %v908_v15 = vmax.f32 %v876_v9, 0.0  ;;  %v880_v17 = vld [vmem:[#allocation2 + $0x70] sm:$0xff]  ;;  %v881_v18 = vld [vmem:[#allocation2 + $0xc0] sm:$0xff]  ;;  %1022 = vst [vmem:[%s1632_s2 + $0x20] sm:$0xff] %v1232_v5  ;;  %v909_v20 = vmax.f32 %v877_v10, 0.0  ;;  %v910_v21 = vmax.f32 %v878_v11, 0.0 }
 0x163   : > { %v1235_v19 = vpack.c.bf16 %v905_v7, %v904_v6  ;;  %v911_v22 = vmax.f32 %v879_v16, 0.0  ;;  %v883_v24 = vld [vmem:[#allocation2 + $0xd0] sm:$0xff]  ;;  %1023 = vst [vmem:[%s1632_s2 + $0x28] sm:$0xff] %v1233_v12  ;;  %1024 = vst [vmem:[%s1632_s2 + $0x30] sm:$0xff] %v1234_v13  ;;  %v1236_v26 = vpack.c.bf16 %v907_v14, %v906_v8  ;;  %v912_v27 = vmax.f32 %v880_v17, 0.0  ;;  %v885_v30 = vld [vmem:[#allocation2 + $0x28] sm:$0xff] }
 0x164   : > { %v884_v25 = vld [vmem:[#allocation2 + $0x10] sm:$0xff]  ;;  %v913_v28 = vmax.f32 %v881_v18, 0.0  ;;  %v914_v29 = vmax.f32 %v882_v23, 0.0  ;;  %v886_v31 = vld [vmem:[#allocation2 + $0xa0] sm:$0xff]  ;;  %v887_v32 = vld [vmem:[#allocation2 + $0xf8] sm:$0xff]  ;;  %v1237_v33 = vpack.c.bf16 %v909_v20, %v908_v15  ;;  %v915_v35 = vmax.f32 %v883_v24, 0.0 }
 0x165   : > { %1025 = vst [vmem:[%s1632_s2 + $0x38] sm:$0xff] %v1235_v19  ;;  %v1238_v34 = vpack.c.bf16 %v911_v22, %v910_v21  ;;  %v916_v36 = vmax.f32 %v884_v25, 0.0  ;;  %v888_v37 = vld [vmem:[#allocation2 + $0x20] sm:$0xff]  ;;  %v889_v38 = vld [vmem:[#allocation2 + $0x98] sm:$0xff]  ;;  %1026 = vst [vmem:[%s1632_s2 + $0x40] sm:$0xff] %v1236_v26  ;;  %v917_v40 = vmax.f32 %v885_v30, 0.0 }
 0x166   : > { %v1239_v39 = vpack.c.bf16 %v913_v28, %v912_v27  ;;  %v918_v41 = vmax.f32 %v886_v31, 0.0  ;;  %v919_v42 = vmax.f32 %v887_v32, 0.0  ;;  %1027 = vst [vmem:[%s1632_s2 + $0x48] sm:$0xff] %v1237_v33  ;;  %v1240_v43 = vpack.c.bf16 %v915_v35, %v914_v29 }
 0x167   : > { %1028 = vst [vmem:[%s1632_s2 + $0x50] sm:$0xff] %v1238_v34  ;;  %v920_v44 = vmax.f32 %v888_v37, 0.0  ;;  %v921_v45 = vmax.f32 %v889_v38, 0.0  ;;  %v1241_v46 = vpack.c.bf16 %v917_v40, %v916_v36 }
 0x168   : > { %1029 = vst [vmem:[%s1632_s2 + $0x58] sm:$0xff] %v1239_v39  ;;  %v1242_v47 = vpack.c.bf16 %v919_v42, %v918_v41  ;;  %1030 = vst [vmem:[%s1632_s2 + $0x60] sm:$0xff] %v1240_v43 }
 0x169   : > { %v1243_v48 = vpack.c.bf16 %v921_v45, %v920_v44  ;;  %1031 = vst [vmem:[%s1632_s2 + $0x68] sm:$0xff] %v1241_v46 }
 0x16a   : > { %1032 = vst [vmem:[%s1632_s2 + $0x70] sm:$0xff] %v1242_v47 }
 0x16b   : > { %1033 = vst [vmem:[%s1632_s2 + $0x78] sm:$0xff] %v1243_v48 }
 0x16c PF: > { %s12_s13 = sadd.s32 1, %s1427_s13   ;;  %s1633_s9 = smov %s1415_s10 }
 0x16d   : > { %p9_p12 = scmp.ge.s32.totalorder %s12_s13, 4   ;;  %s1634_s10 = smov %s1480_s17 }
 0x16e   : > { %s1635_s11 = smov %s1423_s12  ;;  %s1636_s12 = smov %s1638_s14 }
 0x16f   :  { %11 = sbr.rel (!%p9_p12) target bundleno = 3 (0x3), region = 112 }

// kernel: video_resnet_forward.29
= control target key start
LH: loop header
LB: loop body
LE: loop exit
PB: predicated region body
PF: predicated region fallthrough
CT: control target
= control target key end

     0   :  { %s874_s9 = smov 0   ;;  %s876_s10 = smov 0   ;;  %s988_s0 = inlined_call_operand.vmem [shape: bf16[16,6912], index: 0, kind: input, shape index: {}]   ;;  %s989_s1 = inlined_call_operand.vmem [shape: bf16[6912,256], index: 1, kind: input, shape index: {}]   ;;  %s990_s2 = inlined_call_operand.vmem [shape: bf16[16,256], index: 2, kind: output, shape index: {}]  }
   0x1   :  { %s878_s11 = smov 0   ;;  %s880_s12 = smov 0  }
   0x2   :  { %s882_s13 = smov 0  }
   0x3 LB: > { %s24_s14 = sadd.s32 1, %s852_s12  ;;  %p47_p1 = scmp.ne.s32.totalorder %s844_s10, %s840_s9  ;;  %s856_s13 = sphi %s882_s13, %s12_s13   ;;  %s852_s12 = sphi %s880_s12, %s994_s12   ;;  %s848_s11 = sphi %s878_s11, %s993_s11   ;;  %s844_s10 = sphi %s876_s10, %s992_s10   ;;  %s840_s9 = sphi %s874_s9, %s991_s9  }
   0x4   : > { %p25_p0 = scmp.ge.s32.totalorder %s24_s14, 27  ;;  %p48_p2 = scmp.eq.s32.totalorder %s856_s13, 0 }
   0x5   : > { %s40_s16 = sadd.s32 1, %s844_s10  ;;  %p671_p5 = scmp.ge.s32.totalorder %s856_s13, 27 }
   0x6   : > { %s996_s14 = smov (%p25_p0, %s24_s14), 0  ;;  %p49_p3 = por %p48_p2, %p47_p1 }
   0x7   : > { %s36_s15 = ssub.s32 %s852_s12, %s996_s14  ;;  %129 = sbr.rel (%p671_p5) target bundleno = 17 (0x11), region = 16 }
   0x8   : > { %p38_p4 = scmp.eq.s32.totalorder %s36_s15, 0 }
   0xa   : > { %s909_s17 = scalar_select %p38_p4, %s844_s10, %s40_s16  }
   0xc   : > { %132 = sbr.rel (!%p49_p3) target bundleno = 17 (0x11), region = 20  ;;  %s134_s18 = sand.u32 (%p49_p3), 1, %s844_s10  }
   0xd   : > { %s722_s19 = sshll.u32 (%p49_p3), %s852_s12, 3  ;;  %s672_s20 = sshll.u32 (%p49_p3), %s134_s18, 4 }
   0xe   : > { %s142_s23 = scalar_lea.vmem (%p49_p3), %s988_s0, %s722_s19  ;;  %s136_s24 = scalar_lea.vmem (%p49_p3), [#allocation3], %s672_s20 }
   0xf   : > { %v173_v0 = vld [vmem:[%s142_s23] sm:$0xff] (%p49_p3)  ;;  %v175_v1 = vld [vmem:[%s142_s23 + $0xd8] sm:$0xff] (%p49_p3) }
  0x10   : > { %174 = vst [vmem:[%s136_s24] sm:$0xff] (%p49_p3), %v173_v0  ;;  %176 = vst [vmem:[%s136_s24 + $0x8] sm:$0xff] (%p49_p3), %v175_v1 }
  0x11 PF: > { %p675_p6 = scmp.ge.s32.totalorder %s856_s13, 1  ;;  %p196_p7 = scmp.lt.s32.totalorder %s856_s13, 28 }
  0x13   : > { %p197_p8 = pnand %p675_p6, %p196_p7 }
  0x14   : > { %s203_s25 = sand.u32 (!%p197_p8), 1, %s840_s9   ;;  %s677_s26 = sshll.u32 (!%p197_p8), %s848_s11, 5 }
  0x15   : > { %200 = sbr.rel (%p197_p8) target bundleno = 313 (0x139), region = 62  ;;  %s921_s27 = sshll.u32 (!%p197_p8), %s203_s25, 4 }
  0x16   : > { %p243_p9 = scmp.lt.s32.totalorder (!%p197_p8), %s677_s26, 863  ;;  %s205_s4 = scalar_lea.vmem (!%p197_p8), [#allocation3], %s921_s27 }
  0x17   : > { %p680_p10 = scmp.ne.s32.totalorder (!%p197_p8), %s848_s11, 0 }
  0x1a   : > { %s998_s26 = smov (!%p243_p9, %s677_s26), 863  ;;  %268 = sbr.rel (%p680_p10) target bundleno = 34 (0x22), region = 70 }
  0x1b   : > { %s723_s28 = sshll.u32 %s998_s26, 3 }
  0x1c   : > { %s926_s3 = scalar_lea.vmem %s989_s1, %s723_s28 }
  0x1f   : > { %v858_v2 = vmov 0.0  }
  0x20   : > { %269 = vst [vmem:[#allocation2 + $0x10] sm:$0xff] %v858_v2  ;;  %270 = vst [vmem:[#allocation2] sm:$0xff] %v858_v2 }
  0x21   : > { %271 = vst [vmem:[#allocation2 + $0x18] sm:$0xff] %v858_v2  ;;  %272 = vst [vmem:[#allocation2 + $0x8] sm:$0xff] %v858_v2 }
  0x22 PF: > { %v767_v3 = vld [vmem:[%s926_s3 + $0x74] ss:$8 sps:$4 sm:$0xff]   ;;  %v769_v4 = vld [vmem:[%s926_s3 + $0x70] ss:$8 sps:$4 sm:$0xff]   ;;  %v770_v5 = vld [vmem:[%s926_s3 + $0x64] ss:$8 sps:$4 sm:$0xff]  }
  0x23   : > { %481 = vmatprep.subr.bf16.mxu0 %v767_v3  ;;  %v772_v6 = vld [vmem:[%s926_s3 + $0x60] ss:$8 sps:$4 sm:$0xff]   ;;  %v773_v7 = vld [vmem:[%s926_s3 + $0x54] ss:$8 sps:$4 sm:$0xff]   ;;  %v775_v8 = vld [vmem:[%s926_s3 + $0x50] ss:$8 sps:$4 sm:$0xff]  }
  0x24   : > { %482 = vmatpush1.bf16.msra.mxu0 %v769_v4  ;;  %v776_v9 = vld [vmem:[%s926_s3 + $0x44] ss:$8 sps:$4 sm:$0xff]   ;;  %v778_v10 = vld [vmem:[%s926_s3 + $0x40] ss:$8 sps:$4 sm:$0xff]   ;;  %v779_v11 = vld [vmem:[%s926_s3 + $0x34] ss:$8 sps:$4 sm:$0xff]  }
  0x25   : > { %483 = vmatprep.subr.bf16.mxu0 %v770_v5  ;;  %v781_v12 = vld [vmem:[%s926_s3 + $0x30] ss:$8 sps:$4 sm:$0xff]   ;;  %v782_v13 = vld [vmem:[%s926_s3 + $0x24] ss:$8 sps:$4 sm:$0xff]   ;;  %v784_v14 = vld [vmem:[%s926_s3 + $0x20] ss:$8 sps:$4 sm:$0xff]  }
  0x26   : > { %v785_v15 = vld [vmem:[%s926_s3 + $0x14] ss:$8 sps:$4 sm:$0xff]   ;;  %v787_v17 = vld [vmem:[%s926_s3 + $0x10] ss:$8 sps:$4 sm:$0xff]   ;;  %v788_v18 = vld [vmem:[%s926_s3 + $0x4] ss:$8 sps:$4 sm:$0xff]  }
  0x27   : > { %v817_v16 = vld [vmem:[%s205_s4 + $0x4] ss:$8 sps:$4 sm:$0xff]   ;;  %v790_v19 = vld [vmem:[%s926_s3] ss:$8 sps:$4 sm:$0xff]   ;;  %v793_v21 = vld [vmem:[%s926_s3 + $0xf0] ss:$8 sps:$4 sm:$0xff]  }
  0x28   : > { %484 = vmatpush1.bf16.msra.mxu0 %v772_v6  ;;  %513 = vmatprep.mubr.bf16.mxu0 %v817_v16  ;;  %v791_v20 = vld [vmem:[%s926_s3 + $0xf4] ss:$8 sps:$4 sm:$0xff]   ;;  %v794_v22 = vld [vmem:[%s926_s3 + $0xe4] ss:$8 sps:$4 sm:$0xff]   ;;  %v796_v23 = vld [vmem:[%s926_s3 + $0xe0] ss:$8 sps:$4 sm:$0xff]  }
  0x29   : > { %485 = vmatprep.subr.bf16.mxu0 %v773_v7  ;;  %v797_v24 = vld [vmem:[%s926_s3 + $0xd4] ss:$8 sps:$4 sm:$0xff]   ;;  %v799_v25 = vld [vmem:[%s926_s3 + $0xd0] ss:$8 sps:$4 sm:$0xff]   ;;  %v800_v26 = vld [vmem:[%s926_s3 + $0xc4] ss:$8 sps:$4 sm:$0xff]  }
  0x2a   : > { %v802_v27 = vld [vmem:[%s926_s3 + $0xc0] ss:$8 sps:$4 sm:$0xff]   ;;  %v803_v28 = vld [vmem:[%s926_s3 + $0xb4] ss:$8 sps:$4 sm:$0xff]   ;;  %v805_v29 = vld [vmem:[%s926_s3 + $0xb0] ss:$8 sps:$4 sm:$0xff]  }
  0x2b   : > { %v806_v30 = vld [vmem:[%s926_s3 + $0xa4] ss:$8 sps:$4 sm:$0xff]   ;;  %v808_v31 = vld [vmem:[%s926_s3 + $0xa0] ss:$8 sps:$4 sm:$0xff]   ;;  %v809_v32 = vld [vmem:[%s926_s3 + $0x94] ss:$8 sps:$4 sm:$0xff]  }
  0x2c   : > { %486 = vmatpush1.bf16.msra.mxu0 %v775_v8  ;;  %v811_v33 = vld [vmem:[%s926_s3 + $0x90] ss:$8 sps:$4 sm:$0xff]   ;;  %v812_v34 = vld [vmem:[%s926_s3 + $0x84] ss:$8 sps:$4 sm:$0xff]   ;;  %v814_v35 = vld [vmem:[%s926_s3 + $0x80] ss:$8 sps:$4 sm:$0xff]  }
  0x2d   : > { %487 = vmatprep.subr.bf16.mxu0 %v776_v9  ;;  %v815_v36 = vld [vmem:[%s205_s4] ss:$8 sps:$4 sm:$0xff]   ;;  %p715_p11 = scmp.ne.s32.totalorder %s848_s11, 26 }
  0x2e   : > { %v273_v37 = vld [vmem:[#allocation2 + $0x10] sm:$0xff]  ;;  %v274_v39 = vld [vmem:[#allocation2] sm:$0xff]  ;;  %v275_v42 = vld [vmem:[#allocation2 + $0x18] sm:$0xff] }
  0x2f   : > { %v276_v45 = vld [vmem:[#allocation2 + $0x8] sm:$0xff] }
  0x30   : > { %488 = vmatpush1.bf16.msra.mxu0 %v778_v10 }
  0x31   : > { %489 = vmatprep.subr.bf16.mxu0 %v779_v11 }
  0x34   : > { %490 = vmatpush1.bf16.msra.mxu0 %v781_v12 }
  0x35   : > { %491 = vmatprep.subr.bf16.mxu0 %v782_v13 }
  0x38   : > { %492 = vmatpush1.bf16.msra.mxu0 %v784_v14 }
  0x39   : > { %493 = vmatprep.subr.bf16.mxu0 %v785_v15 }
  0x3c   : > { %494 = vmatpush1.bf16.msra.mxu0 %v787_v17 }
  0x3d   : > { %495 = vmatprep.subr.bf16.mxu0 %v788_v18 }
  0x40   : > { %496 = vmatpush1.bf16.msra.mxu0 %v790_v19 }
  0x41   : > { %497 = vmatprep.subr.bf16.mxu0 %v791_v20 }
  0x44   : > { %498 = vmatpush2.bf16.msra.mxu0 %v793_v21 }
  0x45   : > { %499 = vmatprep.subr.bf16.mxu0 %v794_v22 }
  0x48   : > { %500 = vmatpush2.bf16.msra.mxu0 %v796_v23 }
  0x49   : > { %501 = vmatprep.subr.bf16.mxu0 %v797_v24 }
  0x4c   : > { %502 = vmatpush2.bf16.msra.mxu0 %v799_v25 }
  0x4d   : > { %503 = vmatprep.subr.bf16.mxu0 %v800_v26 }
  0x50   : > { %504 = vmatpush2.bf16.msra.mxu0 %v802_v27 }
  0x51   : > { %505 = vmatprep.subr.bf16.mxu0 %v803_v28 }
  0x54   : > { %506 = vmatpush2.bf16.msra.mxu0 %v805_v29 }
  0x55   : > { %507 = vmatprep.subr.bf16.mxu0 %v806_v30 }
  0x58   : > { %508 = vmatpush2.bf16.msra.mxu0 %v808_v31 }
  0x59   : > { %509 = vmatprep.subr.bf16.mxu0 %v809_v32 }
  0x5c   : > { %510 = vmatpush2.bf16.msra.mxu0 %v811_v33 }
  0x5d   : > { %511 = vmatprep.subr.bf16.mxu0 %v812_v34 }
  0x60   : > { %512 = vmatpush2.bf16.msra.mxu0 %v814_v35 }
  0x63   : > { %514 = vmatmul.mubr.bf16.vlgmr.msra.gmra.mxu0 %v815_v36 }
 0x123   : > { %v515_v38 = vpop.f32.mrf.mxu0 }
 0x124   : > { %v524_v40 = vadd.f32 %v515_v38, %v273_v37 }
 0x125   : > { %v517_v41 = vpop.f32.mrf.mxu0 }
 0x126   : > { %528 = vst [vmem:[#allocation2 + $0x10] sm:$0xff] %v524_v40  ;;  %v525_v43 = vadd.f32 %v517_v41, %v274_v39 }
 0x127   : > { %v519_v44 = vpop.f32.mrf.mxu0 }
 0x128   : > { %529 = vst [vmem:[#allocation2] sm:$0xff] %v525_v43  ;;  %v526_v46 = vadd.f32 %v519_v44, %v275_v42  ;;  %535 = sbr.rel (%p715_p11) target bundleno = 313 (0x139), region = 74 }
 0x129   : > { %v521_v47 = vpop.f32.mrf.mxu0 }
 0x12a   : > { %530 = vst [vmem:[#allocation2 + $0x18] sm:$0xff] %v526_v46  ;;  %v527_v48 = vadd.f32 %v521_v47, %v276_v45 }
 0x12c   : > { %531 = vst [vmem:[#allocation2 + $0x8] sm:$0xff] %v527_v48 }
 0x12d   : > { %v536_v49 = vld [vmem:[#allocation2 + $0x10] sm:$0xff] }
 0x12e   : > { %v540_v52 = vmax.f32 %v536_v49, 0.0 }
 0x12f   : > { %v537_v50 = vld [vmem:[#allocation2] sm:$0xff] }
 0x130   : > { %v541_v53 = vmax.f32 %v537_v50, 0.0 }
 0x131   : > { %v538_v51 = vld [vmem:[#allocation2 + $0x18] sm:$0xff] }
 0x132   : > { %v542_v55 = vmax.f32 %v538_v51, 0.0  ;;  %v724_v57 = vpack.c.bf16 %v541_v53, %v540_v52 }
 0x133   : > { %v539_v54 = vld [vmem:[#allocation2 + $0x8] sm:$0xff] }
 0x134   : > { %v543_v56 = vmax.f32 %v539_v54, 0.0  ;;  %556 = vst [vmem:[%s990_s2] sm:$0xff] %v724_v57 }
 0x136   : > { %v725_v58 = vpack.c.bf16 %v543_v56, %v542_v55 }
 0x138   : > { %557 = vst [vmem:[%s990_s2 + $0x8] sm:$0xff] %v725_v58 }
 0x139 PF: > { %s12_s13 = sadd.s32 1, %s856_s13   ;;  %s991_s9 = smov %s844_s10 }
 0x13a   : > { %p9_p12 = scmp.ge.s32.totalorder %s12_s13, 29   ;;  %s992_s10 = smov %s909_s17 }
 0x13b   : > { %s993_s11 = smov %s852_s12  ;;  %s994_s12 = smov %s996_s14 }
 0x13c   :  { %11 = sbr.rel (!%p9_p12) target bundleno = 3 (0x3), region = 112 }

// kernel: video_resnet_forward.27
= control target key start
LH: loop header
LB: loop body
LE: loop exit
PB: predicated region body
PF: predicated region fallthrough
CT: control target
= control target key end

     0   :  { %s1112_s9 = smov 0   ;;  %s1114_s10 = smov 0   ;;  %s1391_s0 = inlined_call_operand.vmem [shape: bf16[16,512], index: 0, kind: input, shape index: {}]   ;;  %s1392_s1 = inlined_call_operand.vmem [shape: bf16[512,1024], index: 1, kind: input, shape index: {}]   ;;  %s1393_s2 = inlined_call_operand.vmem [shape: f32[16,1024], index: 2, kind: output, shape index: {}]  }
   0x1   :  { %s1116_s11 = smov 0   ;;  %s1118_s12 = smov 0  }
   0x2   :  { %s1120_s13 = smov 0   ;;  %s1122_s14 = smov 0  }
   0x3   :  { %s1124_s15 = smov 0   ;;  %s1126_s16 = smov 0  }
   0x4   :  { %s1128_s17 = smov 0   ;;  %s1130_s18 = smov 0  }
   0x5   :  { %s1132_s19 = smov 0  }
   0x6 LB: > { %s808_s20 = sadd.s32 4294967295, %s1094_s19   ;;  %s24_s21 = sadd.s32 1, %s1086_s17  ;;  %s1094_s19 = sphi %s1132_s19, %s12_s19   ;;  %s1090_s18 = sphi %s1130_s18, %s1412_s18   ;;  %s1086_s17 = sphi %s1128_s17, %s1411_s17   ;;  %s1082_s16 = sphi %s1126_s16, %s1410_s16   ;;  %s1078_s15 = sphi %s1124_s15, %s1409_s15   ;;  %s1074_s14 = sphi %s1122_s14, %s1408_s14   ;;  %s1070_s13 = sphi %s1120_s13, %s1407_s13   ;;  %s1066_s12 = sphi %s1118_s12, %s1406_s12   ;;  %s1062_s11 = sphi %s1116_s11, %s1405_s11   ;;  %s1058_s10 = sphi %s1114_s10, %s1404_s10   ;;  %s1054_s9 = sphi %s1112_s9, %s1403_s9  }
   0x7   : > { %p25_p0 = scmp.ge.s32.totalorder %s24_s21, 2  ;;  %s27_s22 = sadd.s32 1, %s1090_s18 }
   0x8   : > { %s40_s23 = sadd.s32 1, %s1074_s14  ;;  %p47_p1 = scmp.ne.s32.totalorder %s1074_s14, %s1070_s13 }
   0x9   : > { %s1414_s21 = smov (%p25_p0, %s24_s21), 0  ;;  %s1416_s22 = smov (!%p25_p0, %s27_s22), %s1090_s18 }
   0xa   : > { %1396 = sst [smem:[#allocation6_spill]] %s1414_s21  ;;  %s36_s24 = ssub.s32 %s1086_s17, %s1414_s21 }
   0xb   : > { %p48_p2 = scmp.eq.s32.totalorder %s1094_s19, 0  ;;  %p29_p3 = scmp.ge.s32.totalorder %s1416_s22, 4 }
   0xc   : > { %p38_p4 = scmp.eq.s32.totalorder %s36_s24, 0  ;;  %s68_s26 = sadd.s32 1, %s1066_s12 }
   0xd   : > { %p1179_p5 = por %p48_p2, %p47_p1  ;;  %s1418_s22 = smov (%p29_p3, %s1416_s22), 0 }
   0xe   : > { %1398 = sst [smem:[#allocation7_spill]] %s1418_s22  ;;  %s64_s28 = ssub.s32 %s1090_s18, %s1418_s22 }
   0xf   : > { %s1187_s27 = scalar_select %p38_p4, %s1074_s14, %s40_s23  }
  0x10   : > { %p75_p6 = scmp.ne.s32.totalorder %s1066_s12, %s1062_s11  ;;  %s65_s29 = sor.u32 %s64_s28, %s36_s24 }
  0x11   : > { %p94_p7 = scmp.eq.s32.totalorder %s64_s28, 0  ;;  %p66_p8 = scmp.eq.s32.totalorder %s65_s29, 0 }
  0x12   : > { %p1193_p9 = por %p75_p6, %p48_p2  ;;  %s96_s3 = sadd.s32 1, %s1058_s10 }
  0x13   : > { %p106_p10 = scmp.ne.s32.totalorder %s1058_s10, %s1054_s9  ;;  %p107_p11 = scmp.eq.s32.totalorder %s808_s20, 7 }
  0x14   : > { %s1201_s4 = scalar_select %p66_p8, %s1066_s12, %s68_s26  }
  0x15   : > { %s1204_s5 = scalar_select %p94_p7, %s1058_s10, %s96_s3  }
  0x16   : > { %p1206_p12 = por %p107_p11, %p106_p10  ;;  %p811_p13 = scmp.ge.s32.totalorder %s1094_s19, 8 }
  0x18   : > { %129 = sbr.rel (%p811_p13) target bundleno = 73 (0x49), region = 16 }
  0x1d   : > { %132 = sbr.rel (!%p1179_p5) target bundleno = 34 (0x22), region = 20  ;;  %s134_s7 = sand.u32 (%p1179_p5), 1, %s1074_s14  }
  0x1e   : > { %s865_s8 = sshll.u32 (%p1179_p5), %s1086_s17, 3  ;;  %s812_s23 = sshll.u32 (%p1179_p5), %s134_s7, 4 }
  0x1f   : > { %s142_s28 = scalar_lea.vmem (%p1179_p5), %s1391_s0, %s865_s8  ;;  %s136_s20 = scalar_lea.vmem (%p1179_p5), [#allocation3], %s812_s23 }
  0x20   : > { %v173_v0 = vld [vmem:[%s142_s28] sm:$0xff] (%p1179_p5)  ;;  %v175_v1 = vld [vmem:[%s142_s28 + $0x10] sm:$0xff] (%p1179_p5) }
  0x21   : > { %174 = vst [vmem:[%s136_s20] sm:$0xff] (%p1179_p5), %v173_v0  ;;  %176 = vst [vmem:[%s136_s20 + $0x8] sm:$0xff] (%p1179_p5), %v175_v1 }
  0x22 PF: > { %182 = sbr.rel (!%p1193_p9) target bundleno = 73 (0x49), region = 58  ;;  %s184_s25 = sand.u32 (%p1193_p9), 1, %s1066_s12  }
  0x23   : > { %s817_s29 = sshll.u32 (%p1193_p9), %s1090_s18, 1  ;;  %s815_s3 = sshll.u32 (%p1193_p9), %s184_s25, 8 }
  0x24   : > { %s866_s7 = sshll.u32 (%p1193_p9), %s1086_s17, 8  ;;  %s1231_s30 = scalar_lea.vmem (%p1193_p9), [#allocation4], %s815_s3 }
  0x25   : > { %s190_s22 = sadd.s32 (%p1193_p9), %s866_s7, %s817_s29 }
  0x26   : > { %s819_s21 = sshll.u32 (%p1193_p9), %s190_s22, 2 }
  0x27   : > { %s1226_s26 = scalar_lea.vmem %s1392_s1, %s819_s21 }
  0x28   : > { %v283_v2 = vld [vmem:[%s1226_s26] sm:$0xff] }
  0x29   : > { %v285_v3 = vld [vmem:[%s1226_s26 + $0x20] sm:$0xff]  ;;  %284 = vst [vmem:[%s1231_s30] sm:$0xff] %v283_v2 }
  0x2a   : > { %v287_v4 = vld [vmem:[%s1226_s26 + $0x40] sm:$0xff]  ;;  %286 = vst [vmem:[%s1231_s30 + $0x8] sm:$0xff] %v285_v3 }
  0x2b   : > { %288 = vst [vmem:[%s1231_s30 + $0x10] sm:$0xff] %v287_v4  ;;  %v289_v5 = vld [vmem:[%s1226_s26 + $0x60] sm:$0xff] }
  0x2c   : > { %v291_v6 = vld [vmem:[%s1226_s26 + $0x80] sm:$0xff]  ;;  %290 = vst [vmem:[%s1231_s30 + $0x18] sm:$0xff] %v289_v5 }
  0x2d   : > { %v293_v7 = vld [vmem:[%s1226_s26 + $0xa0] sm:$0xff]  ;;  %292 = vst [vmem:[%s1231_s30 + $0x20] sm:$0xff] %v291_v6 }
  0x2e   : > { %294 = vst [vmem:[%s1231_s30 + $0x28] sm:$0xff] %v293_v7  ;;  %v295_v8 = vld [vmem:[%s1226_s26 + $0xc0] sm:$0xff] }
  0x2f   : > { %v297_v9 = vld [vmem:[%s1226_s26 + $0xe0] sm:$0xff]  ;;  %296 = vst [vmem:[%s1231_s30 + $0x30] sm:$0xff] %v295_v8 }
  0x30   : > { %v299_v10 = vld [vmem:[%s1226_s26 + $0x100] sm:$0xff]  ;;  %298 = vst [vmem:[%s1231_s30 + $0x38] sm:$0xff] %v297_v9 }
  0x31   : > { %300 = vst [vmem:[%s1231_s30 + $0x40] sm:$0xff] %v299_v10  ;;  %v301_v11 = vld [vmem:[%s1226_s26 + $0x120] sm:$0xff] }
  0x32   : > { %v303_v12 = vld [vmem:[%s1226_s26 + $0x140] sm:$0xff]  ;;  %302 = vst [vmem:[%s1231_s30 + $0x48] sm:$0xff] %v301_v11 }
  0x33   : > { %v305_v13 = vld [vmem:[%s1226_s26 + $0x160] sm:$0xff]  ;;  %304 = vst [vmem:[%s1231_s30 + $0x50] sm:$0xff] %v303_v12 }
  0x34   : > { %306 = vst [vmem:[%s1231_s30 + $0x58] sm:$0xff] %v305_v13  ;;  %v307_v14 = vld [vmem:[%s1226_s26 + $0x180] sm:$0xff] }
  0x35   : > { %v309_v15 = vld [vmem:[%s1226_s26 + $0x1a0] sm:$0xff]  ;;  %308 = vst [vmem:[%s1231_s30 + $0x60] sm:$0xff] %v307_v14 }
  0x36   : > { %v311_v16 = vld [vmem:[%s1226_s26 + $0x1c0] sm:$0xff]  ;;  %310 = vst [vmem:[%s1231_s30 + $0x68] sm:$0xff] %v309_v15 }
  0x37   : > { %312 = vst [vmem:[%s1231_s30 + $0x70] sm:$0xff] %v311_v16  ;;  %v313_v17 = vld [vmem:[%s1226_s26 + $0x1e0] sm:$0xff] }
  0x38   : > { %v315_v18 = vld [vmem:[%s1226_s26 + $0x200] sm:$0xff]  ;;  %314 = vst [vmem:[%s1231_s30 + $0x78] sm:$0xff] %v313_v17 }
  0x39   : > { %v317_v19 = vld [vmem:[%s1226_s26 + $0x220] sm:$0xff]  ;;  %316 = vst [vmem:[%s1231_s30 + $0x80] sm:$0xff] %v315_v18 }
  0x3a   : > { %318 = vst [vmem:[%s1231_s30 + $0x88] sm:$0xff] %v317_v19  ;;  %v319_v20 = vld [vmem:[%s1226_s26 + $0x240] sm:$0xff] }
  0x3b   : > { %v321_v21 = vld [vmem:[%s1226_s26 + $0x260] sm:$0xff]  ;;  %320 = vst [vmem:[%s1231_s30 + $0x90] sm:$0xff] %v319_v20 }
  0x3c   : > { %v323_v22 = vld [vmem:[%s1226_s26 + $0x280] sm:$0xff]  ;;  %322 = vst [vmem:[%s1231_s30 + $0x98] sm:$0xff] %v321_v21 }
  0x3d   : > { %324 = vst [vmem:[%s1231_s30 + $0xa0] sm:$0xff] %v323_v22  ;;  %v325_v23 = vld [vmem:[%s1226_s26 + $0x2a0] sm:$0xff] }
  0x3e   : > { %v327_v24 = vld [vmem:[%s1226_s26 + $0x2c0] sm:$0xff]  ;;  %326 = vst [vmem:[%s1231_s30 + $0xa8] sm:$0xff] %v325_v23 }
  0x3f   : > { %v329_v25 = vld [vmem:[%s1226_s26 + $0x2e0] sm:$0xff]  ;;  %328 = vst [vmem:[%s1231_s30 + $0xb0] sm:$0xff] %v327_v24 }
  0x40   : > { %330 = vst [vmem:[%s1231_s30 + $0xb8] sm:$0xff] %v329_v25  ;;  %v331_v26 = vld [vmem:[%s1226_s26 + $0x300] sm:$0xff] }
  0x41   : > { %v333_v27 = vld [vmem:[%s1226_s26 + $0x320] sm:$0xff]  ;;  %332 = vst [vmem:[%s1231_s30 + $0xc0] sm:$0xff] %v331_v26 }
  0x42   : > { %v335_v28 = vld [vmem:[%s1226_s26 + $0x340] sm:$0xff]  ;;  %334 = vst [vmem:[%s1231_s30 + $0xc8] sm:$0xff] %v333_v27 }
  0x43   : > { %336 = vst [vmem:[%s1231_s30 + $0xd0] sm:$0xff] %v335_v28  ;;  %v337_v29 = vld [vmem:[%s1226_s26 + $0x360] sm:$0xff] }
  0x44   : > { %v339_v30 = vld [vmem:[%s1226_s26 + $0x380] sm:$0xff]  ;;  %338 = vst [vmem:[%s1231_s30 + $0xd8] sm:$0xff] %v337_v29 }
  0x45   : > { %v341_v31 = vld [vmem:[%s1226_s26 + $0x3a0] sm:$0xff]  ;;  %340 = vst [vmem:[%s1231_s30 + $0xe0] sm:$0xff] %v339_v30 }
  0x46   : > { %342 = vst [vmem:[%s1231_s30 + $0xe8] sm:$0xff] %v341_v31  ;;  %v343_v32 = vld [vmem:[%s1226_s26 + $0x3c0] sm:$0xff] }
  0x47   : > { %v345_v33 = vld [vmem:[%s1226_s26 + $0x3e0] sm:$0xff]  ;;  %344 = vst [vmem:[%s1231_s30 + $0xf0] sm:$0xff] %v343_v32 }
  0x48   : > { %346 = vst [vmem:[%s1231_s30 + $0xf8] sm:$0xff] %v345_v33 }
  0x49 PF: > { %p820_p0 = scmp.ge.s32.totalorder %s1094_s19, 1  ;;  %p351_p1 = scmp.lt.s32.totalorder %s1094_s19, 9 }
  0x4b   : > { %p352_p2 = pnand %p820_p0, %p351_p1 }
  0x4c   : > { %s358_s21 = sand.u32 (!%p352_p2), 1, %s1070_s13   ;;  %s365_s22 = sand.u32 (!%p352_p2), 1, %s1062_s11  }
  0x4d   : > { %355 = sbr.rel (%p352_p2) target bundleno = 374 (0x176), region = 96  ;;  %s1298_s23 = sshll.u32 (!%p352_p2), %s358_s21, 4 }
  0x4e   : > { %s822_s28 = sshll.u32 (!%p352_p2), %s365_s22, 8  ;;  %s386_s20 = sand.u32 (!%p352_p2), 1, %s1054_s9  }
  0x4f   : > { %s823_s25 = sshll.u32 (!%p352_p2), %s386_s20, 5  ;;  %s360_s29 = scalar_lea.vmem (!%p352_p2), [#allocation3], %s1298_s23 }
  0x50   : > { %s1302_s3 = scalar_lea.vmem (!%p352_p2), [#allocation4], %s822_s28  ;;  %s1304_s7 = scalar_lea.vmem (!%p352_p2), [#allocation5], %s823_s25 }
  0x51   : > { %p824_p3 = scmp.ne.s32.totalorder (!%p352_p2), %s1078_s15, 0 }
  0x53   : > { %398 = sbr.rel (%p824_p3) target bundleno = 91 (0x5b), region = 108 }
  0x58   : > { %v1096_v34 = vmov 0.0  }
  0x59   : > { %399 = vst [vmem:[#allocation2 + $0x10] sm:$0xff] %v1096_v34  ;;  %400 = vst [vmem:[#allocation2] sm:$0xff] %v1096_v34 }
  0x5a   : > { %401 = vst [vmem:[#allocation2 + $0x18] sm:$0xff] %v1096_v34  ;;  %402 = vst [vmem:[#allocation2 + $0x8] sm:$0xff] %v1096_v34 }
  0x5b PF: > { %v957_v35 = vld [vmem:[%s1302_s3 + $0x74] ss:$8 sps:$4 sm:$0xff]   ;;  %v959_v36 = vld [vmem:[%s1302_s3 + $0x70] ss:$8 sps:$4 sm:$0xff]   ;;  %v960_v37 = vld [vmem:[%s1302_s3 + $0x64] ss:$8 sps:$4 sm:$0xff]  }
  0x5c   : > { %611 = vmatprep.subr.bf16.mxu0 %v957_v35  ;;  %v962_v38 = vld [vmem:[%s1302_s3 + $0x60] ss:$8 sps:$4 sm:$0xff]   ;;  %v963_v39 = vld [vmem:[%s1302_s3 + $0x54] ss:$8 sps:$4 sm:$0xff]   ;;  %v965_v40 = vld [vmem:[%s1302_s3 + $0x50] ss:$8 sps:$4 sm:$0xff]  }
  0x5d   : > { %612 = vmatpush1.bf16.msra.mxu0 %v959_v36  ;;  %v966_v41 = vld [vmem:[%s1302_s3 + $0x44] ss:$8 sps:$4 sm:$0xff]   ;;  %v968_v42 = vld [vmem:[%s1302_s3 + $0x40] ss:$8 sps:$4 sm:$0xff]   ;;  %v969_v43 = vld [vmem:[%s1302_s3 + $0x34] ss:$8 sps:$4 sm:$0xff]  }
  0x5e   : > { %613 = vmatprep.subr.bf16.mxu0 %v960_v37  ;;  %v971_v44 = vld [vmem:[%s1302_s3 + $0x30] ss:$8 sps:$4 sm:$0xff]   ;;  %v972_v45 = vld [vmem:[%s1302_s3 + $0x24] ss:$8 sps:$4 sm:$0xff]   ;;  %v974_v46 = vld [vmem:[%s1302_s3 + $0x20] ss:$8 sps:$4 sm:$0xff]  }
  0x5f   : > { %v975_v47 = vld [vmem:[%s1302_s3 + $0x14] ss:$8 sps:$4 sm:$0xff]   ;;  %v977_v49 = vld [vmem:[%s1302_s3 + $0x10] ss:$8 sps:$4 sm:$0xff]   ;;  %v978_v50 = vld [vmem:[%s1302_s3 + $0x4] ss:$8 sps:$4 sm:$0xff]  }
  0x60   : > { %v1007_v48 = vld [vmem:[%s360_s29 + $0x4] ss:$8 sps:$4 sm:$0xff]   ;;  %v980_v51 = vld [vmem:[%s1302_s3] ss:$8 sps:$4 sm:$0xff]   ;;  %v983_v53 = vld [vmem:[%s1302_s3 + $0xf0] ss:$8 sps:$4 sm:$0xff]  }
  0x61   : > { %614 = vmatpush1.bf16.msra.mxu0 %v962_v38  ;;  %643 = vmatprep.mubr.bf16.mxu0 %v1007_v48  ;;  %v981_v52 = vld [vmem:[%s1302_s3 + $0xf4] ss:$8 sps:$4 sm:$0xff]   ;;  %v984_v54 = vld [vmem:[%s1302_s3 + $0xe4] ss:$8 sps:$4 sm:$0xff]   ;;  %v986_v55 = vld [vmem:[%s1302_s3 + $0xe0] ss:$8 sps:$4 sm:$0xff]  }
  0x62   : > { %615 = vmatprep.subr.bf16.mxu0 %v963_v39  ;;  %v987_v56 = vld [vmem:[%s1302_s3 + $0xd4] ss:$8 sps:$4 sm:$0xff]   ;;  %v989_v57 = vld [vmem:[%s1302_s3 + $0xd0] ss:$8 sps:$4 sm:$0xff]   ;;  %v990_v58 = vld [vmem:[%s1302_s3 + $0xc4] ss:$8 sps:$4 sm:$0xff]  }
  0x63   : > { %v992_v59 = vld [vmem:[%s1302_s3 + $0xc0] ss:$8 sps:$4 sm:$0xff]   ;;  %v993_v60 = vld [vmem:[%s1302_s3 + $0xb4] ss:$8 sps:$4 sm:$0xff]   ;;  %v995_v61 = vld [vmem:[%s1302_s3 + $0xb0] ss:$8 sps:$4 sm:$0xff]  }
  0x64   : > { %v996_v62 = vld [vmem:[%s1302_s3 + $0xa4] ss:$8 sps:$4 sm:$0xff]   ;;  %v998_v63 = vld [vmem:[%s1302_s3 + $0xa0] ss:$8 sps:$4 sm:$0xff]   ;;  %v999_v0 = vld [vmem:[%s1302_s3 + $0x94] ss:$8 sps:$4 sm:$0xff]  }
  0x65   : > { %616 = vmatpush1.bf16.msra.mxu0 %v965_v40  ;;  %v1001_v1 = vld [vmem:[%s1302_s3 + $0x90] ss:$8 sps:$4 sm:$0xff]   ;;  %v1002_v2 = vld [vmem:[%s1302_s3 + $0x84] ss:$8 sps:$4 sm:$0xff]   ;;  %v1004_v3 = vld [vmem:[%s1302_s3 + $0x80] ss:$8 sps:$4 sm:$0xff]  }
  0x66   : > { %617 = vmatprep.subr.bf16.mxu0 %v966_v41  ;;  %v1005_v4 = vld [vmem:[%s360_s29] ss:$8 sps:$4 sm:$0xff]   ;;  %p859_p4 = scmp.ne.s32.totalorder %s1078_s15, 1 }
  0x67   : > { %v403_v5 = vld [vmem:[#allocation2 + $0x10] sm:$0xff]  ;;  %v404_v7 = vld [vmem:[#allocation2] sm:$0xff]  ;;  %v405_v10 = vld [vmem:[#allocation2 + $0x18] sm:$0xff] }
  0x68   : > { %v406_v13 = vld [vmem:[#allocation2 + $0x8] sm:$0xff] }
  0x69   : > { %618 = vmatpush1.bf16.msra.mxu0 %v968_v42 }
  0x6a   : > { %619 = vmatprep.subr.bf16.mxu0 %v969_v43 }
  0x6d   : > { %620 = vmatpush1.bf16.msra.mxu0 %v971_v44 }
  0x6e   : > { %621 = vmatprep.subr.bf16.mxu0 %v972_v45 }
  0x71   : > { %622 = vmatpush1.bf16.msra.mxu0 %v974_v46 }
  0x72   : > { %623 = vmatprep.subr.bf16.mxu0 %v975_v47 }
  0x75   : > { %624 = vmatpush1.bf16.msra.mxu0 %v977_v49 }
  0x76   : > { %625 = vmatprep.subr.bf16.mxu0 %v978_v50 }
  0x79   : > { %626 = vmatpush1.bf16.msra.mxu0 %v980_v51 }
  0x7a   : > { %627 = vmatprep.subr.bf16.mxu0 %v981_v52 }
  0x7d   : > { %628 = vmatpush2.bf16.msra.mxu0 %v983_v53 }
  0x7e   : > { %629 = vmatprep.subr.bf16.mxu0 %v984_v54 }
  0x81   : > { %630 = vmatpush2.bf16.msra.mxu0 %v986_v55 }
  0x82   : > { %631 = vmatprep.subr.bf16.mxu0 %v987_v56 }
  0x85   : > { %632 = vmatpush2.bf16.msra.mxu0 %v989_v57 }
  0x86   : > { %633 = vmatprep.subr.bf16.mxu0 %v990_v58 }
  0x89   : > { %634 = vmatpush2.bf16.msra.mxu0 %v992_v59 }
  0x8a   : > { %635 = vmatprep.subr.bf16.mxu0 %v993_v60 }
  0x8d   : > { %636 = vmatpush2.bf16.msra.mxu0 %v995_v61 }
  0x8e   : > { %637 = vmatprep.subr.bf16.mxu0 %v996_v62 }
  0x91   : > { %638 = vmatpush2.bf16.msra.mxu0 %v998_v63 }
  0x92   : > { %639 = vmatprep.subr.bf16.mxu0 %v999_v0 }
  0x95   : > { %640 = vmatpush2.bf16.msra.mxu0 %v1001_v1 }
  0x96   : > { %641 = vmatprep.subr.bf16.mxu0 %v1002_v2 }
  0x99   : > { %642 = vmatpush2.bf16.msra.mxu0 %v1004_v3 }
  0x9c   : > { %644 = vmatmul.mubr.bf16.vlgmr.msra.gmra.mxu0 %v1005_v4 }
 0x15c   : > { %v645_v6 = vpop.f32.mrf.mxu0 }
 0x15d   : > { %v654_v8 = vadd.f32 %v645_v6, %v403_v5 }
 0x15e   : > { %v647_v9 = vpop.f32.mrf.mxu0 }
 0x15f   : > { %658 = vst [vmem:[#allocation2 + $0x10] sm:$0xff] %v654_v8  ;;  %v655_v11 = vadd.f32 %v647_v9, %v404_v7 }
 0x160   : > { %v649_v12 = vpop.f32.mrf.mxu0 }
 0x161   : > { %659 = vst [vmem:[#allocation2] sm:$0xff] %v655_v11  ;;  %v656_v14 = vadd.f32 %v649_v12, %v405_v10  ;;  %665 = sbr.rel (%p859_p4) target bundleno = 366 (0x16e), region = 112 }
 0x162   : > { %v651_v15 = vpop.f32.mrf.mxu0 }
 0x163   : > { %660 = vst [vmem:[#allocation2 + $0x18] sm:$0xff] %v656_v14  ;;  %v657_v16 = vadd.f32 %v651_v15, %v406_v13 }
 0x165   : > { %661 = vst [vmem:[#allocation2 + $0x8] sm:$0xff] %v657_v16 }
 0x166   : > { %v666_v17 = vld [vmem:[#allocation2 + $0x10] sm:$0xff] }
 0x167   : > { %670 = vst [vmem:[%s1304_s7] sm:$0xff] %v666_v17 }
 0x168   : > { %v667_v18 = vld [vmem:[#allocation2] sm:$0xff] }
 0x169   : > { %671 = vst [vmem:[%s1304_s7 + $0x8] sm:$0xff] %v667_v18 }
 0x16a   : > { %v668_v19 = vld [vmem:[#allocation2 + $0x18] sm:$0xff] }
 0x16b   : > { %672 = vst [vmem:[%s1304_s7 + $0x10] sm:$0xff] %v668_v19 }
 0x16c   : > { %v669_v20 = vld [vmem:[#allocation2 + $0x8] sm:$0xff] }
 0x16d   : > { %673 = vst [vmem:[%s1304_s7 + $0x18] sm:$0xff] %v669_v20 }
 0x16e PF: > { %680 = sbr.rel (!%p1206_p12) target bundleno = 374 (0x176), region = 116  ;;  %s867_s9 = sshll.u32 (%p1206_p12), %s1082_s16, 4  ;;  %v699_v21 = vld [vmem:[%s1304_s7] sm:$0xff] (%p1206_p12) }
 0x16f   : > { %s686_s15 = scalar_lea.vmem (%p1206_p12), %s1393_s2, %s867_s9 }
 0x170   : > { %v701_v22 = vld [vmem:[%s1304_s7 + $0x8] sm:$0xff] (%p1206_p12)  ;;  %700 = vst [vmem:[%s686_s15] sm:$0xff] (%p1206_p12), %v699_v21 }
 0x171   : > { %702 = vst [vmem:[%s686_s15 + $0x8] sm:$0xff] (%p1206_p12), %v701_v22 }
 0x172   : > { %v703_v23 = vld [vmem:[%s1304_s7 + $0x10] sm:$0xff] (%p1206_p12) }
 0x173   : > { %704 = vst [vmem:[%s686_s15 + $0x40] sm:$0xff] %v703_v23 }
 0x174   : > { %v705_v24 = vld [vmem:[%s1304_s7 + $0x18] sm:$0xff] }
 0x175   : > { %706 = vst [vmem:[%s686_s15 + $0x48] sm:$0xff] %v705_v24 }
 0x176 PF: > { %s12_s19 = sadd.s32 1, %s1094_s19   ;;  %s1401_s6 = sld [smem:[#allocation6_spill]] }
 0x177   : > { %p9_p5 = scmp.ge.s32.totalorder %s12_s19, 10   ;;  %s1402_s24 = sld [smem:[#allocation7_spill]] }
 0x178   : > { %s1403_s9 = smov %s1058_s10  ;;  %s1404_s10 = smov %s1204_s5 }
 0x179   : > { %s1405_s11 = smov %s1066_s12  ;;  %s1406_s12 = smov %s1201_s4 }
 0x17a   : > { %s1407_s13 = smov %s1074_s14  ;;  %s1408_s14 = smov %s1187_s27 }
 0x17b   : > { %s1409_s15 = smov %s1086_s17  ;;  %s1410_s16 = smov %s1090_s18 }
 0x17c   : > { %s1411_s17 = smov %s1401_s6  ;;  %11 = sbr.rel (!%p9_p5) target bundleno = 6 (0x6), region = 178 }
 0x17d   : > { %s1412_s18 = smov %s1402_s24 }

// kernel: video_resnet_forward.32
= control target key start
LH: loop header
LB: loop body
LE: loop exit
PB: predicated region body
PF: predicated region fallthrough
CT: control target
= control target key end

     0   :  { %s1144_s9 = smov 0   ;;  %s1146_s10 = smov 0   ;;  %s1419_s0 = inlined_call_operand.vmem [shape: bf16[16,1024], index: 0, kind: input, shape index: {}]   ;;  %s1420_s1 = inlined_call_operand.vmem [shape: bf16[1024,512], index: 1, kind: input, shape index: {}]   ;;  %s1421_s2 = inlined_call_operand.vmem [shape: bf16[16,512], index: 2, kind: output, shape index: {}]  }
   0x1   :  { %s1148_s11 = smov 0   ;;  %s1150_s12 = smov 0  }
   0x2   :  { %s1152_s13 = smov 0   ;;  %s1154_s14 = smov 0  }
   0x3   :  { %s1156_s15 = smov 0   ;;  %s1158_s16 = smov 0  }
   0x4   :  { %s1160_s17 = smov 0   ;;  %s1162_s18 = smov 0  }
   0x5   :  { %s1164_s19 = smov 0  }
   0x6 LB: > { %s836_s20 = sadd.s32 4294967295, %s1126_s19   ;;  %s24_s21 = sadd.s32 1, %s1118_s17  ;;  %s1126_s19 = sphi %s1164_s19, %s12_s19   ;;  %s1122_s18 = sphi %s1162_s18, %s1440_s18   ;;  %s1118_s17 = sphi %s1160_s17, %s1439_s17   ;;  %s1114_s16 = sphi %s1158_s16, %s1438_s16   ;;  %s1110_s15 = sphi %s1156_s15, %s1437_s15   ;;  %s1106_s14 = sphi %s1154_s14, %s1436_s14   ;;  %s1102_s13 = sphi %s1152_s13, %s1435_s13   ;;  %s1098_s12 = sphi %s1150_s12, %s1434_s12   ;;  %s1094_s11 = sphi %s1148_s11, %s1433_s11   ;;  %s1090_s10 = sphi %s1146_s10, %s1432_s10   ;;  %s1086_s9 = sphi %s1144_s9, %s1431_s9  }
   0x7   : > { %p25_p0 = scmp.ge.s32.totalorder %s24_s21, 4  ;;  %s27_s22 = sadd.s32 1, %s1122_s18 }
   0x8   : > { %s40_s23 = sadd.s32 1, %s1106_s14  ;;  %p47_p1 = scmp.ne.s32.totalorder %s1106_s14, %s1102_s13 }
   0x9   : > { %s1442_s21 = smov (%p25_p0, %s24_s21), 0  ;;  %s1444_s22 = smov (!%p25_p0, %s27_s22), %s1122_s18 }
   0xa   : > { %1424 = sst [smem:[#allocation6_spill]] %s1442_s21  ;;  %s36_s24 = ssub.s32 %s1118_s17, %s1442_s21 }
   0xb   : > { %p48_p2 = scmp.eq.s32.totalorder %s1126_s19, 0  ;;  %p29_p3 = scmp.ge.s32.totalorder %s1444_s22, 2 }
   0xc   : > { %p38_p4 = scmp.eq.s32.totalorder %s36_s24, 0  ;;  %s68_s26 = sadd.s32 1, %s1098_s12 }
   0xd   : > { %p1211_p5 = por %p48_p2, %p47_p1  ;;  %s1446_s22 = smov (%p29_p3, %s1444_s22), 0 }
   0xe   : > { %1426 = sst [smem:[#allocation7_spill]] %s1446_s22  ;;  %s64_s28 = ssub.s32 %s1122_s18, %s1446_s22 }
   0xf   : > { %s1219_s27 = scalar_select %p38_p4, %s1106_s14, %s40_s23  }
  0x10   : > { %p75_p6 = scmp.ne.s32.totalorder %s1098_s12, %s1094_s11  ;;  %s65_s29 = sor.u32 %s64_s28, %s36_s24 }
  0x11   : > { %p94_p7 = scmp.eq.s32.totalorder %s64_s28, 0  ;;  %p66_p8 = scmp.eq.s32.totalorder %s65_s29, 0 }
  0x12   : > { %p1225_p9 = por %p75_p6, %p48_p2  ;;  %s96_s3 = sadd.s32 1, %s1090_s10 }
  0x13   : > { %p106_p10 = scmp.ne.s32.totalorder %s1090_s10, %s1086_s9  ;;  %p107_p11 = scmp.eq.s32.totalorder %s836_s20, 7 }
  0x14   : > { %s1233_s4 = scalar_select %p66_p8, %s1098_s12, %s68_s26  }
  0x15   : > { %s1236_s5 = scalar_select %p94_p7, %s1090_s10, %s96_s3  }
  0x16   : > { %p1238_p12 = por %p107_p11, %p106_p10  ;;  %p839_p13 = scmp.ge.s32.totalorder %s1126_s19, 8 }
  0x18   : > { %129 = sbr.rel (%p839_p13) target bundleno = 58 (0x3a), region = 16 }
  0x1d   : > { %132 = sbr.rel (!%p1211_p5) target bundleno = 35 (0x23), region = 20  ;;  %s134_s7 = sand.u32 (%p1211_p5), 1, %s1106_s14  }
  0x1e   : > { %s895_s8 = sshll.u32 (%p1211_p5), %s1118_s17, 3  ;;  %s840_s23 = sshll.u32 (%p1211_p5), %s134_s7, 4 }
  0x1f   : > { %s142_s28 = scalar_lea.vmem (%p1211_p5), %s1419_s0, %s895_s8  ;;  %s136_s20 = scalar_lea.vmem (%p1211_p5), [#allocation3], %s840_s23 }
  0x20   : > { %v173_v0 = vld [vmem:[%s142_s28] sm:$0xff] (%p1211_p5) }
  0x21   : > { %v175_v1 = vld [vmem:[%s142_s28 + $0x20] sm:$0xff] (%p1211_p5)  ;;  %174 = vst [vmem:[%s136_s20] sm:$0xff] (%p1211_p5), %v173_v0 }
  0x22   : > { %176 = vst [vmem:[%s136_s20 + $0x8] sm:$0xff] %v175_v1 }
  0x23 PF: > { %182 = sbr.rel (!%p1225_p9) target bundleno = 58 (0x3a), region = 58  ;;  %s184_s25 = sand.u32 (%p1225_p9), 1, %s1098_s12  }
  0x24   : > { %s845_s29 = sshll.u32 (%p1225_p9), %s1122_s18, 1  ;;  %s843_s3 = sshll.u32 (%p1225_p9), %s184_s25, 8 }
  0x25   : > { %s896_s7 = sshll.u32 (%p1225_p9), %s1118_s17, 7  ;;  %s1263_s30 = scalar_lea.vmem (%p1225_p9), [#allocation4], %s843_s3 }
  0x26   : > { %s190_s22 = sadd.s32 (%p1225_p9), %s896_s7, %s845_s29 }
  0x27   : > { %s847_s21 = sshll.u32 (%p1225_p9), %s190_s22, 2 }
  0x28   : > { %s1258_s26 = scalar_lea.vmem %s1420_s1, %s847_s21 }
  0x29   : > { %v283_v2 = vld [vmem:[%s1258_s26] sm:$0xff]  ;;  %v285_v3 = vld [vmem:[%s1258_s26 + $0x10] sm:$0xff] }
  0x2a   : > { %v287_v4 = vld [vmem:[%s1258_s26 + $0x20] sm:$0xff]  ;;  %284 = vst [vmem:[%s1263_s30] sm:$0xff] %v283_v2  ;;  %286 = vst [vmem:[%s1263_s30 + $0x8] sm:$0xff] %v285_v3  ;;  %v289_v5 = vld [vmem:[%s1258_s26 + $0x30] sm:$0xff] }
  0x2b   : > { %288 = vst [vmem:[%s1263_s30 + $0x10] sm:$0xff] %v287_v4  ;;  %v291_v6 = vld [vmem:[%s1258_s26 + $0x40] sm:$0xff]  ;;  %v293_v7 = vld [vmem:[%s1258_s26 + $0x50] sm:$0xff]  ;;  %290 = vst [vmem:[%s1263_s30 + $0x18] sm:$0xff] %v289_v5 }
  0x2c   : > { %292 = vst [vmem:[%s1263_s30 + $0x20] sm:$0xff] %v291_v6  ;;  %294 = vst [vmem:[%s1263_s30 + $0x28] sm:$0xff] %v293_v7  ;;  %v295_v8 = vld [vmem:[%s1258_s26 + $0x60] sm:$0xff]  ;;  %v297_v9 = vld [vmem:[%s1258_s26 + $0x70] sm:$0xff] }
  0x2d   : > { %v299_v10 = vld [vmem:[%s1258_s26 + $0x80] sm:$0xff]  ;;  %296 = vst [vmem:[%s1263_s30 + $0x30] sm:$0xff] %v295_v8  ;;  %298 = vst [vmem:[%s1263_s30 + $0x38] sm:$0xff] %v297_v9  ;;  %v301_v11 = vld [vmem:[%s1258_s26 + $0x90] sm:$0xff] }
  0x2e   : > { %300 = vst [vmem:[%s1263_s30 + $0x40] sm:$0xff] %v299_v10  ;;  %v303_v12 = vld [vmem:[%s1258_s26 + $0xa0] sm:$0xff]  ;;  %v305_v13 = vld [vmem:[%s1258_s26 + $0xb0] sm:$0xff]  ;;  %302 = vst [vmem:[%s1263_s30 + $0x48] sm:$0xff] %v301_v11 }
  0x2f   : > { %304 = vst [vmem:[%s1263_s30 + $0x50] sm:$0xff] %v303_v12  ;;  %306 = vst [vmem:[%s1263_s30 + $0x58] sm:$0xff] %v305_v13  ;;  %v307_v14 = vld [vmem:[%s1258_s26 + $0xc0] sm:$0xff]  ;;  %v309_v15 = vld [vmem:[%s1258_s26 + $0xd0] sm:$0xff] }
  0x30   : > { %v311_v16 = vld [vmem:[%s1258_s26 + $0xe0] sm:$0xff]  ;;  %308 = vst [vmem:[%s1263_s30 + $0x60] sm:$0xff] %v307_v14  ;;  %310 = vst [vmem:[%s1263_s30 + $0x68] sm:$0xff] %v309_v15  ;;  %v313_v17 = vld [vmem:[%s1258_s26 + $0xf0] sm:$0xff] }
  0x31   : > { %312 = vst [vmem:[%s1263_s30 + $0x70] sm:$0xff] %v311_v16  ;;  %v315_v18 = vld [vmem:[%s1258_s26 + $0x100] sm:$0xff]  ;;  %v317_v19 = vld [vmem:[%s1258_s26 + $0x110] sm:$0xff]  ;;  %314 = vst [vmem:[%s1263_s30 + $0x78] sm:$0xff] %v313_v17 }
  0x32   : > { %316 = vst [vmem:[%s1263_s30 + $0x80] sm:$0xff] %v315_v18  ;;  %318 = vst [vmem:[%s1263_s30 + $0x88] sm:$0xff] %v317_v19  ;;  %v319_v20 = vld [vmem:[%s1258_s26 + $0x120] sm:$0xff]  ;;  %v321_v21 = vld [vmem:[%s1258_s26 + $0x130] sm:$0xff] }
  0x33   : > { %v323_v22 = vld [vmem:[%s1258_s26 + $0x140] sm:$0xff]  ;;  %320 = vst [vmem:[%s1263_s30 + $0x90] sm:$0xff] %v319_v20  ;;  %322 = vst [vmem:[%s1263_s30 + $0x98] sm:$0xff] %v321_v21  ;;  %v325_v23 = vld [vmem:[%s1258_s26 + $0x150] sm:$0xff] }
  0x34   : > { %324 = vst [vmem:[%s1263_s30 + $0xa0] sm:$0xff] %v323_v22  ;;  %v327_v24 = vld [vmem:[%s1258_s26 + $0x160] sm:$0xff]  ;;  %v329_v25 = vld [vmem:[%s1258_s26 + $0x170] sm:$0xff]  ;;  %326 = vst [vmem:[%s1263_s30 + $0xa8] sm:$0xff] %v325_v23 }
  0x35   : > { %328 = vst [vmem:[%s1263_s30 + $0xb0] sm:$0xff] %v327_v24  ;;  %330 = vst [vmem:[%s1263_s30 + $0xb8] sm:$0xff] %v329_v25  ;;  %v331_v26 = vld [vmem:[%s1258_s26 + $0x180] sm:$0xff]  ;;  %v333_v27 = vld [vmem:[%s1258_s26 + $0x190] sm:$0xff] }
  0x36   : > { %v335_v28 = vld [vmem:[%s1258_s26 + $0x1a0] sm:$0xff]  ;;  %332 = vst [vmem:[%s1263_s30 + $0xc0] sm:$0xff] %v331_v26  ;;  %334 = vst [vmem:[%s1263_s30 + $0xc8] sm:$0xff] %v333_v27  ;;  %v337_v29 = vld [vmem:[%s1258_s26 + $0x1b0] sm:$0xff] }
  0x37   : > { %336 = vst [vmem:[%s1263_s30 + $0xd0] sm:$0xff] %v335_v28  ;;  %v339_v30 = vld [vmem:[%s1258_s26 + $0x1c0] sm:$0xff]  ;;  %v341_v31 = vld [vmem:[%s1258_s26 + $0x1d0] sm:$0xff]  ;;  %338 = vst [vmem:[%s1263_s30 + $0xd8] sm:$0xff] %v337_v29 }
  0x38   : > { %340 = vst [vmem:[%s1263_s30 + $0xe0] sm:$0xff] %v339_v30  ;;  %342 = vst [vmem:[%s1263_s30 + $0xe8] sm:$0xff] %v341_v31  ;;  %v343_v32 = vld [vmem:[%s1258_s26 + $0x1e0] sm:$0xff]  ;;  %v345_v33 = vld [vmem:[%s1258_s26 + $0x1f0] sm:$0xff] }
  0x39   : > { %344 = vst [vmem:[%s1263_s30 + $0xf0] sm:$0xff] %v343_v32  ;;  %346 = vst [vmem:[%s1263_s30 + $0xf8] sm:$0xff] %v345_v33 }
  0x3a PF: > { %p848_p0 = scmp.ge.s32.totalorder %s1126_s19, 1  ;;  %p351_p1 = scmp.lt.s32.totalorder %s1126_s19, 9 }
  0x3c   : > { %p352_p2 = pnand %p848_p0, %p351_p1 }
  0x3d   : > { %s358_s21 = sand.u32 (!%p352_p2), 1, %s1102_s13   ;;  %s365_s22 = sand.u32 (!%p352_p2), 1, %s1094_s11  }
  0x3e   : > { %355 = sbr.rel (%p352_p2) target bundleno = 363 (0x16b), region = 96  ;;  %s1330_s23 = sshll.u32 (!%p352_p2), %s358_s21, 4 }
  0x3f   : > { %s850_s28 = sshll.u32 (!%p352_p2), %s365_s22, 8  ;;  %s386_s20 = sand.u32 (!%p352_p2), 1, %s1086_s9  }
  0x40   : > { %s851_s25 = sshll.u32 (!%p352_p2), %s386_s20, 4  ;;  %s360_s29 = scalar_lea.vmem (!%p352_p2), [#allocation3], %s1330_s23 }
  0x41   : > { %s1334_s3 = scalar_lea.vmem (!%p352_p2), [#allocation4], %s850_s28  ;;  %s1336_s7 = scalar_lea.vmem (!%p352_p2), [#allocation5], %s851_s25 }
  0x42   : > { %p852_p3 = scmp.ne.s32.totalorder (!%p352_p2), %s1110_s15, 0 }
  0x44   : > { %398 = sbr.rel (%p852_p3) target bundleno = 76 (0x4c), region = 108 }
  0x49   : > { %v1128_v34 = vmov 0.0  }
  0x4a   : > { %399 = vst [vmem:[#allocation2 + $0x10] sm:$0xff] %v1128_v34  ;;  %400 = vst [vmem:[#allocation2] sm:$0xff] %v1128_v34 }
  0x4b   : > { %401 = vst [vmem:[#allocation2 + $0x18] sm:$0xff] %v1128_v34  ;;  %402 = vst [vmem:[#allocation2 + $0x8] sm:$0xff] %v1128_v34 }
  0x4c PF: > { %v989_v35 = vld [vmem:[%s1334_s3 + $0x74] ss:$8 sps:$4 sm:$0xff]   ;;  %v991_v36 = vld [vmem:[%s1334_s3 + $0x70] ss:$8 sps:$4 sm:$0xff]   ;;  %v992_v37 = vld [vmem:[%s1334_s3 + $0x64] ss:$8 sps:$4 sm:$0xff]  }
  0x4d   : > { %611 = vmatprep.subr.bf16.mxu0 %v989_v35  ;;  %v994_v38 = vld [vmem:[%s1334_s3 + $0x60] ss:$8 sps:$4 sm:$0xff]   ;;  %v995_v39 = vld [vmem:[%s1334_s3 + $0x54] ss:$8 sps:$4 sm:$0xff]   ;;  %v997_v40 = vld [vmem:[%s1334_s3 + $0x50] ss:$8 sps:$4 sm:$0xff]  }
  0x4e   : > { %612 = vmatpush1.bf16.msra.mxu0 %v991_v36  ;;  %v998_v41 = vld [vmem:[%s1334_s3 + $0x44] ss:$8 sps:$4 sm:$0xff]   ;;  %v1000_v42 = vld [vmem:[%s1334_s3 + $0x40] ss:$8 sps:$4 sm:$0xff]   ;;  %v1001_v43 = vld [vmem:[%s1334_s3 + $0x34] ss:$8 sps:$4 sm:$0xff]  }
  0x4f   : > { %613 = vmatprep.subr.bf16.mxu0 %v992_v37  ;;  %v1003_v44 = vld [vmem:[%s1334_s3 + $0x30] ss:$8 sps:$4 sm:$0xff]   ;;  %v1004_v45 = vld [vmem:[%s1334_s3 + $0x24] ss:$8 sps:$4 sm:$0xff]   ;;  %v1006_v46 = vld [vmem:[%s1334_s3 + $0x20] ss:$8 sps:$4 sm:$0xff]  }
  0x50   : > { %v1007_v47 = vld [vmem:[%s1334_s3 + $0x14] ss:$8 sps:$4 sm:$0xff]   ;;  %v1009_v49 = vld [vmem:[%s1334_s3 + $0x10] ss:$8 sps:$4 sm:$0xff]   ;;  %v1010_v50 = vld [vmem:[%s1334_s3 + $0x4] ss:$8 sps:$4 sm:$0xff]  }
  0x51   : > { %v1039_v48 = vld [vmem:[%s360_s29 + $0x4] ss:$8 sps:$4 sm:$0xff]   ;;  %v1012_v51 = vld [vmem:[%s1334_s3] ss:$8 sps:$4 sm:$0xff]   ;;  %v1015_v53 = vld [vmem:[%s1334_s3 + $0xf0] ss:$8 sps:$4 sm:$0xff]  }
  0x52   : > { %614 = vmatpush1.bf16.msra.mxu0 %v994_v38  ;;  %643 = vmatprep.mubr.bf16.mxu0 %v1039_v48  ;;  %v1013_v52 = vld [vmem:[%s1334_s3 + $0xf4] ss:$8 sps:$4 sm:$0xff]   ;;  %v1016_v54 = vld [vmem:[%s1334_s3 + $0xe4] ss:$8 sps:$4 sm:$0xff]   ;;  %v1018_v55 = vld [vmem:[%s1334_s3 + $0xe0] ss:$8 sps:$4 sm:$0xff]  }
  0x53   : > { %615 = vmatprep.subr.bf16.mxu0 %v995_v39  ;;  %v1019_v56 = vld [vmem:[%s1334_s3 + $0xd4] ss:$8 sps:$4 sm:$0xff]   ;;  %v1021_v57 = vld [vmem:[%s1334_s3 + $0xd0] ss:$8 sps:$4 sm:$0xff]   ;;  %v1022_v58 = vld [vmem:[%s1334_s3 + $0xc4] ss:$8 sps:$4 sm:$0xff]  }
  0x54   : > { %v1024_v59 = vld [vmem:[%s1334_s3 + $0xc0] ss:$8 sps:$4 sm:$0xff]   ;;  %v1025_v60 = vld [vmem:[%s1334_s3 + $0xb4] ss:$8 sps:$4 sm:$0xff]   ;;  %v1027_v61 = vld [vmem:[%s1334_s3 + $0xb0] ss:$8 sps:$4 sm:$0xff]  }
  0x55   : > { %v1028_v62 = vld [vmem:[%s1334_s3 + $0xa4] ss:$8 sps:$4 sm:$0xff]   ;;  %v1030_v63 = vld [vmem:[%s1334_s3 + $0xa0] ss:$8 sps:$4 sm:$0xff]   ;;  %v1031_v0 = vld [vmem:[%s1334_s3 + $0x94] ss:$8 sps:$4 sm:$0xff]  }
  0x56   : > { %616 = vmatpush1.bf16.msra.mxu0 %v997_v40  ;;  %v1033_v1 = vld [vmem:[%s1334_s3 + $0x90] ss:$8 sps:$4 sm:$0xff]   ;;  %v1034_v2 = vld [vmem:[%s1334_s3 + $0x84] ss:$8 sps:$4 sm:$0xff]   ;;  %v1036_v3 = vld [vmem:[%s1334_s3 + $0x80] ss:$8 sps:$4 sm:$0xff]  }
  0x57   : > { %617 = vmatprep.subr.bf16.mxu0 %v998_v41  ;;  %v1037_v4 = vld [vmem:[%s360_s29] ss:$8 sps:$4 sm:$0xff]   ;;  %p887_p4 = scmp.ne.s32.totalorder %s1110_s15, 3 }
  0x58   : > { %v403_v5 = vld [vmem:[#allocation2 + $0x10] sm:$0xff]  ;;  %v404_v7 = vld [vmem:[#allocation2] sm:$0xff]  ;;  %v405_v10 = vld [vmem:[#allocation2 + $0x18] sm:$0xff] }
  0x59   : > { %v406_v13 = vld [vmem:[#allocation2 + $0x8] sm:$0xff] }
  0x5a   : > { %618 = vmatpush1.bf16.msra.mxu0 %v1000_v42 }
  0x5b   : > { %619 = vmatprep.subr.bf16.mxu0 %v1001_v43 }
  0x5e   : > { %620 = vmatpush1.bf16.msra.mxu0 %v1003_v44 }
  0x5f   : > { %621 = vmatprep.subr.bf16.mxu0 %v1004_v45 }
  0x62   : > { %622 = vmatpush1.bf16.msra.mxu0 %v1006_v46 }
  0x63   : > { %623 = vmatprep.subr.bf16.mxu0 %v1007_v47 }
  0x66   : > { %624 = vmatpush1.bf16.msra.mxu0 %v1009_v49 }
  0x67   : > { %625 = vmatprep.subr.bf16.mxu0 %v1010_v50 }
  0x6a   : > { %626 = vmatpush1.bf16.msra.mxu0 %v1012_v51 }
  0x6b   : > { %627 = vmatprep.subr.bf16.mxu0 %v1013_v52 }
  0x6e   : > { %628 = vmatpush2.bf16.msra.mxu0 %v1015_v53 }
  0x6f   : > { %629 = vmatprep.subr.bf16.mxu0 %v1016_v54 }
  0x72   : > { %630 = vmatpush2.bf16.msra.mxu0 %v1018_v55 }
  0x73   : > { %631 = vmatprep.subr.bf16.mxu0 %v1019_v56 }
  0x76   : > { %632 = vmatpush2.bf16.msra.mxu0 %v1021_v57 }
  0x77   : > { %633 = vmatprep.subr.bf16.mxu0 %v1022_v58 }
  0x7a   : > { %634 = vmatpush2.bf16.msra.mxu0 %v1024_v59 }
  0x7b   : > { %635 = vmatprep.subr.bf16.mxu0 %v1025_v60 }
  0x7e   : > { %636 = vmatpush2.bf16.msra.mxu0 %v1027_v61 }
  0x7f   : > { %637 = vmatprep.subr.bf16.mxu0 %v1028_v62 }
  0x82   : > { %638 = vmatpush2.bf16.msra.mxu0 %v1030_v63 }
  0x83   : > { %639 = vmatprep.subr.bf16.mxu0 %v1031_v0 }
  0x86   : > { %640 = vmatpush2.bf16.msra.mxu0 %v1033_v1 }
  0x87   : > { %641 = vmatprep.subr.bf16.mxu0 %v1034_v2 }
  0x8a   : > { %642 = vmatpush2.bf16.msra.mxu0 %v1036_v3 }
  0x8d   : > { %644 = vmatmul.mubr.bf16.vlgmr.msra.gmra.mxu0 %v1037_v4 }
 0x14d   : > { %v645_v6 = vpop.f32.mrf.mxu0 }
 0x14e   : > { %v654_v8 = vadd.f32 %v645_v6, %v403_v5 }
 0x14f   : > { %v647_v9 = vpop.f32.mrf.mxu0 }
 0x150   : > { %658 = vst [vmem:[#allocation2 + $0x10] sm:$0xff] %v654_v8  ;;  %v655_v11 = vadd.f32 %v647_v9, %v404_v7 }
 0x151   : > { %v649_v12 = vpop.f32.mrf.mxu0 }
 0x152   : > { %659 = vst [vmem:[#allocation2] sm:$0xff] %v655_v11  ;;  %v656_v14 = vadd.f32 %v649_v12, %v405_v10  ;;  %665 = sbr.rel (%p887_p4) target bundleno = 355 (0x163), region = 112 }
 0x153   : > { %v651_v15 = vpop.f32.mrf.mxu0 }
 0x154   : > { %660 = vst [vmem:[#allocation2 + $0x18] sm:$0xff] %v656_v14  ;;  %v657_v16 = vadd.f32 %v651_v15, %v406_v13 }
 0x156   : > { %661 = vst [vmem:[#allocation2 + $0x8] sm:$0xff] %v657_v16 }
 0x157   : > { %v666_v17 = vld [vmem:[#allocation2 + $0x10] sm:$0xff] }
 0x158   : > { %v670_v20 = vmax.f32 %v666_v17, 0.0 }
 0x159   : > { %v667_v18 = vld [vmem:[#allocation2] sm:$0xff] }
 0x15a   : > { %v671_v21 = vmax.f32 %v667_v18, 0.0 }
 0x15b   : > { %v668_v19 = vld [vmem:[#allocation2 + $0x18] sm:$0xff] }
 0x15c   : > { %v672_v23 = vmax.f32 %v668_v19, 0.0  ;;  %v897_v25 = vpack.c.bf16 %v671_v21, %v670_v20 }
 0x15d   : > { %v669_v22 = vld [vmem:[#allocation2 + $0x8] sm:$0xff] }
 0x15e   : > { %v673_v24 = vmax.f32 %v669_v22, 0.0  ;;  %686 = vst [vmem:[%s1336_s7] sm:$0xff] %v897_v25 }
 0x160   : > { %v898_v26 = vpack.c.bf16 %v673_v24, %v672_v23 }
 0x162   : > { %687 = vst [vmem:[%s1336_s7 + $0x8] sm:$0xff] %v898_v26 }
 0x163 PF: > { %694 = sbr.rel (!%p1238_p12) target bundleno = 363 (0x16b), region = 116  ;;  %s899_s9 = sshll.u32 (%p1238_p12), %s1114_s16, 3 }
 0x164   : > { %s700_s15 = scalar_lea.vmem (%p1238_p12), %s1421_s2, %s899_s9 }
 0x165   : > { %v731_v27 = vld [vmem:[%s1336_s7] sm:$0xff] (%p1238_p12) }
 0x166   : > { %732 = vst [vmem:[%s700_s15] sm:$0xff] (%p1238_p12), %v731_v27 }
 0x169   : > { %v733_v28 = vld [vmem:[%s1336_s7 + $0x8] sm:$0xff] }
 0x16a   : > { %734 = vst [vmem:[%s700_s15 + $0x10] sm:$0xff] %v733_v28 }
 0x16b PF: > { %s12_s19 = sadd.s32 1, %s1126_s19   ;;  %s1429_s6 = sld [smem:[#allocation6_spill]] }
 0x16c   : > { %p9_p5 = scmp.ge.s32.totalorder %s12_s19, 10   ;;  %s1430_s24 = sld [smem:[#allocation7_spill]] }
 0x16d   : > { %s1431_s9 = smov %s1090_s10  ;;  %s1432_s10 = smov %s1236_s5 }
 0x16e   : > { %s1433_s11 = smov %s1098_s12  ;;  %s1434_s12 = smov %s1233_s4 }
 0x16f   : > { %s1435_s13 = smov %s1106_s14  ;;  %s1436_s14 = smov %s1219_s27 }
 0x170   : > { %s1437_s15 = smov %s1118_s17  ;;  %s1438_s16 = smov %s1122_s18 }
 0x171   : > { %s1439_s17 = smov %s1429_s6  ;;  %11 = sbr.rel (!%p9_p5) target bundleno = 6 (0x6), region = 193 }
 0x172   : > { %s1440_s18 = smov %s1430_s24 }

// kernel: video_resnet_forward.30
= control target key start
LH: loop header
LB: loop body
LE: loop exit
PB: predicated region body
PF: predicated region fallthrough
CT: control target
= control target key end

     0   :  { %s1127_s12 = smov 0   ;;  %s1129_s13 = smov 0   ;;  %s1325_s0 = inlined_call_operand.vmem [shape: bf16[16,256], index: 0, kind: input, shape index: {}]   ;;  %s1326_s1 = inlined_call_operand.vmem [shape: bf16[256,1024], index: 1, kind: input, shape index: {}]   ;;  %s1327_s2 = inlined_call_operand.vmem [shape: f32[16,1024], index: 2, kind: input, shape index: {}]   ;;  %s1328_s3 = inlined_call_operand.vmem [shape: bf16[16,1024], index: 3, kind: output, shape index: {}]  }
   0x1   :  { %s1131_s14 = smov 0   ;;  %s1133_s15 = smov 0  }
   0x2   :  { %s1135_s16 = smov 0  }
   0x3 LB: > { %s28_s17 = sadd.s32 1, %s1101_s15  ;;  %s915_s18 = sadd.s32 4294967295, %s1105_s16   ;;  %s1105_s16 = sphi %s1135_s16, %s13_s16   ;;  %s1101_s15 = sphi %s1133_s15, %s1334_s15   ;;  %s1097_s14 = sphi %s1131_s14, %s1333_s14   ;;  %s1093_s13 = sphi %s1129_s13, %s1332_s13   ;;  %s1089_s12 = sphi %s1127_s12, %s1331_s12  }
   0x4   : > { %p30_p0 = scmp.ge.s32.totalorder %s28_s17, 4  ;;  %p76_p1 = scmp.ne.s32.totalorder %s1093_s13, %s1089_s12 }
   0x5   : > { %p77_p2 = scmp.eq.s32.totalorder %s1105_s16, 0  ;;  %p136_p4 = scmp.eq.s32.totalorder %s915_s18, 3 }
   0x6   : > { %s1336_s17 = smov (%p30_p0, %s28_s17), 0  ;;  %s69_s21 = sadd.s32 1, %s1093_s13 }
   0x7   : > { %p1159_p3 = por %p77_p2, %p76_p1  ;;  %s65_s20 = ssub.s32 %s1101_s15, %s1336_s17 }
   0x8   : > { %p67_p5 = scmp.eq.s32.totalorder %s65_s20, 0  ;;  %p1166_p6 = por %p136_p4, %p76_p1 }
   0x9   : > { %p919_p7 = scmp.ge.s32.totalorder %s1105_s16, 4 }
   0xa   : > { %s1171_s23 = scalar_select %p67_p5, %s1093_s13, %s69_s21  }
   0xb   : > { %173 = sbr.rel (%p919_p7) target bundleno = 58 (0x3a), region = 20 }
  0x10   : > { %176 = sbr.rel (!%p1159_p3) target bundleno = 52 (0x34), region = 24  ;;  %s178_s24 = sand.u32 (%p1159_p3), 1, %s1093_s13  }
  0x11   : > { %s971_s25 = sshll.u32 (%p1159_p3), %s1101_s15, 3  ;;  %s920_s26 = sshll.u32 (%p1159_p3), %s178_s24, 8 }
  0x12   : > { %s1181_s29 = scalar_lea.vmem (%p1159_p3), %s1326_s1, %s971_s25  ;;  %s1186_s30 = scalar_lea.vmem (%p1159_p3), [#allocation3], %s920_s26 }
  0x13   : > { %v277_v0 = vld [vmem:[%s1181_s29] sm:$0xff] (%p1159_p3) }
  0x14   : > { %v279_v1 = vld [vmem:[%s1181_s29 + $0x20] sm:$0xff] (%p1159_p3)  ;;  %278 = vst [vmem:[%s1186_s30] sm:$0xff] (%p1159_p3), %v277_v0 }
  0x15   : > { %v281_v2 = vld [vmem:[%s1181_s29 + $0x40] sm:$0xff]  ;;  %280 = vst [vmem:[%s1186_s30 + $0x8] sm:$0xff] %v279_v1 }
  0x16   : > { %282 = vst [vmem:[%s1186_s30 + $0x10] sm:$0xff] %v281_v2  ;;  %v283_v3 = vld [vmem:[%s1181_s29 + $0x60] sm:$0xff] }
  0x17   : > { %v285_v4 = vld [vmem:[%s1181_s29 + $0x80] sm:$0xff]  ;;  %284 = vst [vmem:[%s1186_s30 + $0x18] sm:$0xff] %v283_v3 }
  0x18   : > { %v287_v5 = vld [vmem:[%s1181_s29 + $0xa0] sm:$0xff]  ;;  %286 = vst [vmem:[%s1186_s30 + $0x20] sm:$0xff] %v285_v4 }
  0x19   : > { %288 = vst [vmem:[%s1186_s30 + $0x28] sm:$0xff] %v287_v5  ;;  %v289_v6 = vld [vmem:[%s1181_s29 + $0xc0] sm:$0xff] }
  0x1a   : > { %v291_v7 = vld [vmem:[%s1181_s29 + $0xe0] sm:$0xff]  ;;  %290 = vst [vmem:[%s1186_s30 + $0x30] sm:$0xff] %v289_v6 }
  0x1b   : > { %v293_v8 = vld [vmem:[%s1181_s29 + $0x100] sm:$0xff]  ;;  %292 = vst [vmem:[%s1186_s30 + $0x38] sm:$0xff] %v291_v7 }
  0x1c   : > { %294 = vst [vmem:[%s1186_s30 + $0x40] sm:$0xff] %v293_v8  ;;  %v295_v9 = vld [vmem:[%s1181_s29 + $0x120] sm:$0xff] }
  0x1d   : > { %v297_v10 = vld [vmem:[%s1181_s29 + $0x140] sm:$0xff]  ;;  %296 = vst [vmem:[%s1186_s30 + $0x48] sm:$0xff] %v295_v9 }
  0x1e   : > { %v299_v11 = vld [vmem:[%s1181_s29 + $0x160] sm:$0xff]  ;;  %298 = vst [vmem:[%s1186_s30 + $0x50] sm:$0xff] %v297_v10 }
  0x1f   : > { %300 = vst [vmem:[%s1186_s30 + $0x58] sm:$0xff] %v299_v11  ;;  %v301_v12 = vld [vmem:[%s1181_s29 + $0x180] sm:$0xff] }
  0x20   : > { %v303_v13 = vld [vmem:[%s1181_s29 + $0x1a0] sm:$0xff]  ;;  %302 = vst [vmem:[%s1186_s30 + $0x60] sm:$0xff] %v301_v12 }
  0x21   : > { %v305_v14 = vld [vmem:[%s1181_s29 + $0x1c0] sm:$0xff]  ;;  %304 = vst [vmem:[%s1186_s30 + $0x68] sm:$0xff] %v303_v13 }
  0x22   : > { %306 = vst [vmem:[%s1186_s30 + $0x70] sm:$0xff] %v305_v14  ;;  %v307_v15 = vld [vmem:[%s1181_s29 + $0x1e0] sm:$0xff] }
  0x23   : > { %v309_v16 = vld [vmem:[%s1181_s29 + $0x200] sm:$0xff]  ;;  %308 = vst [vmem:[%s1186_s30 + $0x78] sm:$0xff] %v307_v15 }
  0x24   : > { %v311_v17 = vld [vmem:[%s1181_s29 + $0x220] sm:$0xff]  ;;  %310 = vst [vmem:[%s1186_s30 + $0x80] sm:$0xff] %v309_v16 }
  0x25   : > { %312 = vst [vmem:[%s1186_s30 + $0x88] sm:$0xff] %v311_v17  ;;  %v313_v18 = vld [vmem:[%s1181_s29 + $0x240] sm:$0xff] }
  0x26   : > { %v315_v19 = vld [vmem:[%s1181_s29 + $0x260] sm:$0xff]  ;;  %314 = vst [vmem:[%s1186_s30 + $0x90] sm:$0xff] %v313_v18 }
  0x27   : > { %v317_v20 = vld [vmem:[%s1181_s29 + $0x280] sm:$0xff]  ;;  %316 = vst [vmem:[%s1186_s30 + $0x98] sm:$0xff] %v315_v19 }
  0x28   : > { %318 = vst [vmem:[%s1186_s30 + $0xa0] sm:$0xff] %v317_v20  ;;  %v319_v21 = vld [vmem:[%s1181_s29 + $0x2a0] sm:$0xff] }
  0x29   : > { %v321_v22 = vld [vmem:[%s1181_s29 + $0x2c0] sm:$0xff]  ;;  %320 = vst [vmem:[%s1186_s30 + $0xa8] sm:$0xff] %v319_v21 }
  0x2a   : > { %v323_v23 = vld [vmem:[%s1181_s29 + $0x2e0] sm:$0xff]  ;;  %322 = vst [vmem:[%s1186_s30 + $0xb0] sm:$0xff] %v321_v22 }
  0x2b   : > { %324 = vst [vmem:[%s1186_s30 + $0xb8] sm:$0xff] %v323_v23  ;;  %v325_v24 = vld [vmem:[%s1181_s29 + $0x300] sm:$0xff] }
  0x2c   : > { %v327_v25 = vld [vmem:[%s1181_s29 + $0x320] sm:$0xff]  ;;  %326 = vst [vmem:[%s1186_s30 + $0xc0] sm:$0xff] %v325_v24 }
  0x2d   : > { %v329_v26 = vld [vmem:[%s1181_s29 + $0x340] sm:$0xff]  ;;  %328 = vst [vmem:[%s1186_s30 + $0xc8] sm:$0xff] %v327_v25 }
  0x2e   : > { %330 = vst [vmem:[%s1186_s30 + $0xd0] sm:$0xff] %v329_v26  ;;  %v331_v27 = vld [vmem:[%s1181_s29 + $0x360] sm:$0xff] }
  0x2f   : > { %v333_v28 = vld [vmem:[%s1181_s29 + $0x380] sm:$0xff]  ;;  %332 = vst [vmem:[%s1186_s30 + $0xd8] sm:$0xff] %v331_v27 }
  0x30   : > { %v335_v29 = vld [vmem:[%s1181_s29 + $0x3a0] sm:$0xff]  ;;  %334 = vst [vmem:[%s1186_s30 + $0xe0] sm:$0xff] %v333_v28 }
  0x31   : > { %336 = vst [vmem:[%s1186_s30 + $0xe8] sm:$0xff] %v335_v29  ;;  %v337_v30 = vld [vmem:[%s1181_s29 + $0x3c0] sm:$0xff] }
  0x32   : > { %v339_v31 = vld [vmem:[%s1181_s29 + $0x3e0] sm:$0xff]  ;;  %338 = vst [vmem:[%s1186_s30 + $0xf0] sm:$0xff] %v337_v30 }
  0x33   : > { %340 = vst [vmem:[%s1186_s30 + $0xf8] sm:$0xff] %v339_v31 }
  0x34 PF: > { %346 = sbr.rel (!%p1159_p3) target bundleno = 58 (0x3a), region = 62  ;;  %s348_s4 = sand.u32 (%p1159_p3), 1, %s1093_s13  }
  0x35   : > { %s972_s5 = sshll.u32 (%p1159_p3), %s1101_s15, 4  ;;  %s923_s6 = sshll.u32 (%p1159_p3), %s348_s4, 5 }
  0x36   : > { %s356_s9 = scalar_lea.vmem (%p1159_p3), %s1327_s2, %s972_s5  ;;  %s350_s10 = scalar_lea.vmem (%p1159_p3), [#allocation4], %s923_s6 }
  0x37   : > { %v369_v32 = vld [vmem:[%s356_s9] sm:$0xff] (%p1159_p3)  ;;  %v371_v33 = vld [vmem:[%s356_s9 + $0x8] sm:$0xff] (%p1159_p3) }
  0x38   : > { %v373_v34 = vld [vmem:[%s356_s9 + $0x40] sm:$0xff] (%p1159_p3)  ;;  %370 = vst [vmem:[%s350_s10] sm:$0xff] (%p1159_p3), %v369_v32  ;;  %372 = vst [vmem:[%s350_s10 + $0x8] sm:$0xff] (%p1159_p3), %v371_v33  ;;  %v375_v35 = vld [vmem:[%s356_s9 + $0x48] sm:$0xff] (%p1159_p3) }
  0x39   : > { %374 = vst [vmem:[%s350_s10 + $0x10] sm:$0xff] %v373_v34  ;;  %376 = vst [vmem:[%s350_s10 + $0x18] sm:$0xff] %v375_v35 }
  0x3a PF: > { %p926_p8 = scmp.ge.s32.totalorder %s1105_s16, 1  ;;  %p381_p9 = scmp.lt.s32.totalorder %s1105_s16, 5 }
  0x3c   : > { %p382_p10 = pnand %p926_p8, %p381_p9 }
  0x3d   : > { %s1259_s11 = sand.u32 (!%p382_p10), 1, %s1089_s12  }
  0x3e   : > { %385 = sbr.rel (%p382_p10) target bundleno = 346 (0x15a), region = 85  ;;  %s927_s18 = sshll.u32 (!%p382_p10), %s1259_s11, 8 }
  0x3f   : > { %s1265_s21 = scalar_lea.vmem (!%p382_p10), [#allocation3], %s927_s18  ;;  %s928_s25 = sshll.u32 (!%p382_p10), %s1259_s11, 5 }
  0x40   : > { %s397_s26 = scalar_lea.vmem (!%p382_p10), [#allocation4], %s928_s25  ;;  %s929_s27 = sshll.u32 (!%p382_p10), %s1259_s11, 4 }
  0x41   : > { %s430_s28 = scalar_lea.vmem (!%p382_p10), [#allocation5], %s929_s27 }
  0x43   : > { %v1066_v36 = vld [vmem:[%s1325_s0 + $0x4] ss:$8 sps:$4 sm:$0xff]   ;;  %v1016_v37 = vld [vmem:[%s1265_s21 + $0x74] ss:$8 sps:$4 sm:$0xff]   ;;  %v1018_v38 = vld [vmem:[%s1265_s21 + $0x70] ss:$8 sps:$4 sm:$0xff]  }
  0x44   : > { %697 = vmatprep.mubr.bf16.mxu0 %v1066_v36  ;;  %665 = vmatprep.subr.bf16.mxu0 %v1016_v37  ;;  %v1019_v39 = vld [vmem:[%s1265_s21 + $0x64] ss:$8 sps:$4 sm:$0xff]   ;;  %v1021_v40 = vld [vmem:[%s1265_s21 + $0x60] ss:$8 sps:$4 sm:$0xff]   ;;  %v1022_v41 = vld [vmem:[%s1265_s21 + $0x54] ss:$8 sps:$4 sm:$0xff]  }
  0x45   : > { %666 = vmatpush1.bf16.msra.mxu0 %v1018_v38  ;;  %v1024_v42 = vld [vmem:[%s1265_s21 + $0x50] ss:$8 sps:$4 sm:$0xff]   ;;  %v1025_v43 = vld [vmem:[%s1265_s21 + $0x44] ss:$8 sps:$4 sm:$0xff]   ;;  %v1027_v44 = vld [vmem:[%s1265_s21 + $0x40] ss:$8 sps:$4 sm:$0xff]  }
  0x46   : > { %667 = vmatprep.subr.bf16.mxu0 %v1019_v39  ;;  %v1028_v45 = vld [vmem:[%s1265_s21 + $0x34] ss:$8 sps:$4 sm:$0xff]   ;;  %v1030_v46 = vld [vmem:[%s1265_s21 + $0x30] ss:$8 sps:$4 sm:$0xff]   ;;  %v1031_v47 = vld [vmem:[%s1265_s21 + $0x24] ss:$8 sps:$4 sm:$0xff]  }
  0x47   : > { %v1033_v48 = vld [vmem:[%s1265_s21 + $0x20] ss:$8 sps:$4 sm:$0xff]   ;;  %v1034_v49 = vld [vmem:[%s1265_s21 + $0x14] ss:$8 sps:$4 sm:$0xff]   ;;  %v1036_v50 = vld [vmem:[%s1265_s21 + $0x10] ss:$8 sps:$4 sm:$0xff]  }
  0x48   : > { %v1037_v51 = vld [vmem:[%s1265_s21 + $0x4] ss:$8 sps:$4 sm:$0xff]   ;;  %v1039_v52 = vld [vmem:[%s1265_s21] ss:$8 sps:$4 sm:$0xff]   ;;  %v1040_v53 = vld [vmem:[%s1265_s21 + $0xf4] ss:$8 sps:$4 sm:$0xff]  }
  0x49   : > { %668 = vmatpush1.bf16.msra.mxu0 %v1021_v40  ;;  %v1042_v54 = vld [vmem:[%s1265_s21 + $0xf0] ss:$8 sps:$4 sm:$0xff]   ;;  %v1043_v55 = vld [vmem:[%s1265_s21 + $0xe4] ss:$8 sps:$4 sm:$0xff]   ;;  %v1045_v56 = vld [vmem:[%s1265_s21 + $0xe0] ss:$8 sps:$4 sm:$0xff]  }
  0x4a   : > { %669 = vmatprep.subr.bf16.mxu0 %v1022_v41  ;;  %v1046_v57 = vld [vmem:[%s1265_s21 + $0xd4] ss:$8 sps:$4 sm:$0xff]   ;;  %v1048_v58 = vld [vmem:[%s1265_s21 + $0xd0] ss:$8 sps:$4 sm:$0xff]   ;;  %v1049_v59 = vld [vmem:[%s1265_s21 + $0xc4] ss:$8 sps:$4 sm:$0xff]  }
  0x4b   : > { %v1051_v60 = vld [vmem:[%s1265_s21 + $0xc0] ss:$8 sps:$4 sm:$0xff]   ;;  %v1052_v61 = vld [vmem:[%s1265_s21 + $0xb4] ss:$8 sps:$4 sm:$0xff]   ;;  %v1054_v62 = vld [vmem:[%s1265_s21 + $0xb0] ss:$8 sps:$4 sm:$0xff]  }
  0x4c   : > { %v1055_v63 = vld [vmem:[%s1265_s21 + $0xa4] ss:$8 sps:$4 sm:$0xff]   ;;  %v1057_v0 = vld [vmem:[%s1265_s21 + $0xa0] ss:$8 sps:$4 sm:$0xff]   ;;  %v1058_v1 = vld [vmem:[%s1265_s21 + $0x94] ss:$8 sps:$4 sm:$0xff]  }
  0x4d   : > { %670 = vmatpush1.bf16.msra.mxu0 %v1024_v42  ;;  %v1060_v2 = vld [vmem:[%s1265_s21 + $0x90] ss:$8 sps:$4 sm:$0xff]   ;;  %v1061_v3 = vld [vmem:[%s1265_s21 + $0x84] ss:$8 sps:$4 sm:$0xff]   ;;  %v1063_v4 = vld [vmem:[%s1265_s21 + $0x80] ss:$8 sps:$4 sm:$0xff]  }
  0x4e   : > { %671 = vmatprep.subr.bf16.mxu0 %v1025_v43  ;;  %v1064_v5 = vld [vmem:[%s1325_s0] ss:$8 sps:$4 sm:$0xff]   ;;  %v725_v11 = vld [vmem:[%s397_s26 + $0x10] sm:$0xff]  ;;  %v726_v14 = vld [vmem:[%s397_s26 + $0x18] sm:$0xff]  ;;  %s975_s29 = sshll.u32 (%p1166_p6), %s1097_s14, 3 }
  0x4f   : > { %v723_v6 = vld [vmem:[%s397_s26] sm:$0xff]  ;;  %v724_v8 = vld [vmem:[%s397_s26 + $0x8] sm:$0xff]  ;;  %s761_s5 = scalar_lea.vmem (%p1166_p6), %s1328_s3, %s975_s29 }
  0x51   : > { %672 = vmatpush1.bf16.msra.mxu0 %v1027_v44 }
  0x52   : > { %673 = vmatprep.subr.bf16.mxu0 %v1028_v45 }
  0x55   : > { %674 = vmatpush1.bf16.msra.mxu0 %v1030_v46 }
  0x56   : > { %675 = vmatprep.subr.bf16.mxu0 %v1031_v47 }
  0x59   : > { %676 = vmatpush1.bf16.msra.mxu0 %v1033_v48 }
  0x5a   : > { %677 = vmatprep.subr.bf16.mxu0 %v1034_v49 }
  0x5d   : > { %678 = vmatpush1.bf16.msra.mxu0 %v1036_v50 }
  0x5e   : > { %679 = vmatprep.subr.bf16.mxu0 %v1037_v51 }
  0x61   : > { %680 = vmatpush1.bf16.msra.mxu0 %v1039_v52 }
  0x62   : > { %681 = vmatprep.subr.bf16.mxu0 %v1040_v53 }
  0x65   : > { %682 = vmatpush2.bf16.msra.mxu0 %v1042_v54 }
  0x66   : > { %683 = vmatprep.subr.bf16.mxu0 %v1043_v55 }
  0x69   : > { %684 = vmatpush2.bf16.msra.mxu0 %v1045_v56 }
  0x6a   : > { %685 = vmatprep.subr.bf16.mxu0 %v1046_v57 }
  0x6d   : > { %686 = vmatpush2.bf16.msra.mxu0 %v1048_v58 }
  0x6e   : > { %687 = vmatprep.subr.bf16.mxu0 %v1049_v59 }
  0x71   : > { %688 = vmatpush2.bf16.msra.mxu0 %v1051_v60 }
  0x72   : > { %689 = vmatprep.subr.bf16.mxu0 %v1052_v61 }
  0x75   : > { %690 = vmatpush2.bf16.msra.mxu0 %v1054_v62 }
  0x76   : > { %691 = vmatprep.subr.bf16.mxu0 %v1055_v63 }
  0x79   : > { %692 = vmatpush2.bf16.msra.mxu0 %v1057_v0 }
  0x7a   : > { %693 = vmatprep.subr.bf16.mxu0 %v1058_v1 }
  0x7d   : > { %694 = vmatpush2.bf16.msra.mxu0 %v1060_v2 }
  0x7e   : > { %695 = vmatprep.subr.bf16.mxu0 %v1061_v3 }
  0x81   : > { %696 = vmatpush2.bf16.msra.mxu0 %v1063_v4 }
  0x84   : > { %698 = vmatmul.mubr.bf16.vlgmr.msra.gmra.mxu0 %v1064_v5 }
 0x144   : > { %v699_v7 = vpop.f32.mrf.mxu0 }
 0x145   : > { %v727_v9 = vadd.f32 %v723_v6, %v699_v7 }
 0x146   : > { %v701_v10 = vpop.f32.mrf.mxu0 }
 0x147   : > { %v728_v12 = vadd.f32 %v724_v8, %v701_v10  ;;  %v731_v15 = vmax.f32 %v727_v9, 0.0 }
 0x148   : > { %v703_v13 = vpop.f32.mrf.mxu0 }
 0x149   : > { %v732_v16 = vmax.f32 %v728_v12, 0.0  ;;  %v729_v17 = vadd.f32 %v725_v11, %v703_v13 }
 0x14a   : > { %v705_v18 = vpop.f32.mrf.mxu0 }
 0x14b   : > { %v973_v19 = vpack.c.bf16 %v732_v16, %v731_v15  ;;  %v730_v20 = vadd.f32 %v726_v14, %v705_v18  ;;  %v733_v21 = vmax.f32 %v729_v17, 0.0 }
 0x14d   : > { %747 = vst [vmem:[%s430_s28] sm:$0xff] %v973_v19  ;;  %v734_v22 = vmax.f32 %v730_v20, 0.0  ;;  %755 = sbr.rel (!%p1166_p6) target bundleno = 346 (0x15a), region = 105 }
 0x14f   : > { %v974_v23 = vpack.c.bf16 %v734_v22, %v733_v21 }
 0x151   : > { %748 = vst [vmem:[%s430_s28 + $0x8] sm:$0xff] %v974_v23 }
 0x154   : > { %v792_v24 = vld [vmem:[%s430_s28] sm:$0xff] }
 0x155   : > { %793 = vst [vmem:[%s761_s5] sm:$0xff] %v792_v24 }
 0x158   : > { %v794_v25 = vld [vmem:[%s430_s28 + $0x8] sm:$0xff] }
 0x159   : > { %795 = vst [vmem:[%s761_s5 + $0x20] sm:$0xff] %v794_v25 }
 0x15a PF: > { %s13_s16 = sadd.s32 1, %s1105_s16   ;;  %s1331_s12 = smov %s1093_s13 }
 0x15b   : > { %p10_p11 = scmp.ge.s32.totalorder %s13_s16, 6   ;;  %s1332_s13 = smov %s1171_s23 }
 0x15c   : > { %s1333_s14 = smov %s1101_s15  ;;  %s1334_s15 = smov %s1336_s17 }
 0x15d   :  { %12 = sbr.rel (!%p10_p11) target bundleno = 3 (0x3), region = 185 }

// kernel: video_resnet_forward.33
= control target key start
LH: loop header
LB: loop body
LE: loop exit
PB: predicated region body
PF: predicated region fallthrough
CT: control target
= control target key end

     0   :  { %s1144_s9 = smov 0   ;;  %s1146_s10 = smov 0   ;;  %s1419_s0 = inlined_call_operand.vmem [shape: bf16[16,13824], index: 0, kind: input, shape index: {}]   ;;  %s1420_s1 = inlined_call_operand.vmem [shape: bf16[13824,512], index: 1, kind: input, shape index: {}]   ;;  %s1421_s2 = inlined_call_operand.vmem [shape: bf16[16,512], index: 2, kind: output, shape index: {}]  }
   0x1   :  { %s1148_s11 = smov 0   ;;  %s1150_s12 = smov 0  }
   0x2   :  { %s1152_s13 = smov 0   ;;  %s1154_s14 = smov 0  }
   0x3   :  { %s1156_s15 = smov 0   ;;  %s1158_s16 = smov 0  }
   0x4   :  { %s1160_s17 = smov 0   ;;  %s1162_s18 = smov 0  }
   0x5   :  { %s1164_s19 = smov 0  }
   0x6 LB: > { %s836_s20 = sadd.s32 4294967295, %s1126_s19   ;;  %s24_s21 = sadd.s32 1, %s1118_s17  ;;  %s1126_s19 = sphi %s1164_s19, %s12_s19   ;;  %s1122_s18 = sphi %s1162_s18, %s1440_s18   ;;  %s1118_s17 = sphi %s1160_s17, %s1439_s17   ;;  %s1114_s16 = sphi %s1158_s16, %s1438_s16   ;;  %s1110_s15 = sphi %s1156_s15, %s1437_s15   ;;  %s1106_s14 = sphi %s1154_s14, %s1436_s14   ;;  %s1102_s13 = sphi %s1152_s13, %s1435_s13   ;;  %s1098_s12 = sphi %s1150_s12, %s1434_s12   ;;  %s1094_s11 = sphi %s1148_s11, %s1433_s11   ;;  %s1090_s10 = sphi %s1146_s10, %s1432_s10   ;;  %s1086_s9 = sphi %s1144_s9, %s1431_s9  }
   0x7   : > { %p25_p0 = scmp.ge.s32.totalorder %s24_s21, 54  ;;  %s27_s22 = sadd.s32 1, %s1122_s18 }
   0x8   : > { %s40_s23 = sadd.s32 1, %s1106_s14  ;;  %p47_p1 = scmp.ne.s32.totalorder %s1106_s14, %s1102_s13 }
   0x9   : > { %s1442_s21 = smov (%p25_p0, %s24_s21), 0  ;;  %s1444_s22 = smov (!%p25_p0, %s27_s22), %s1122_s18 }
   0xa   : > { %1424 = sst [smem:[#allocation6_spill]] %s1442_s21  ;;  %s36_s24 = ssub.s32 %s1118_s17, %s1442_s21 }
   0xb   : > { %p48_p2 = scmp.eq.s32.totalorder %s1126_s19, 0  ;;  %p29_p3 = scmp.ge.s32.totalorder %s1444_s22, 2 }
   0xc   : > { %p38_p4 = scmp.eq.s32.totalorder %s36_s24, 0  ;;  %s68_s26 = sadd.s32 1, %s1098_s12 }
   0xd   : > { %p1211_p5 = por %p48_p2, %p47_p1  ;;  %s1446_s22 = smov (%p29_p3, %s1444_s22), 0 }
   0xe   : > { %1426 = sst [smem:[#allocation7_spill]] %s1446_s22  ;;  %s64_s28 = ssub.s32 %s1122_s18, %s1446_s22 }
   0xf   : > { %s1219_s27 = scalar_select %p38_p4, %s1106_s14, %s40_s23  }
  0x10   : > { %p75_p6 = scmp.ne.s32.totalorder %s1098_s12, %s1094_s11  ;;  %s65_s29 = sor.u32 %s64_s28, %s36_s24 }
  0x11   : > { %p94_p7 = scmp.eq.s32.totalorder %s64_s28, 0  ;;  %p66_p8 = scmp.eq.s32.totalorder %s65_s29, 0 }
  0x12   : > { %p1225_p9 = por %p75_p6, %p48_p2  ;;  %s96_s3 = sadd.s32 1, %s1090_s10 }
  0x13   : > { %p106_p10 = scmp.ne.s32.totalorder %s1090_s10, %s1086_s9  ;;  %p107_p11 = scmp.eq.s32.totalorder %s836_s20, 107 }
  0x14   : > { %s1233_s4 = scalar_select %p66_p8, %s1098_s12, %s68_s26  }
  0x15   : > { %s1236_s5 = scalar_select %p94_p7, %s1090_s10, %s96_s3  }
  0x16   : > { %p1238_p12 = por %p107_p11, %p106_p10  ;;  %p839_p13 = scmp.ge.s32.totalorder %s1126_s19, 108 }
  0x18   : > { %129 = sbr.rel (%p839_p13) target bundleno = 57 (0x39), region = 16 }
  0x1d   : > { %132 = sbr.rel (!%p1211_p5) target bundleno = 34 (0x22), region = 20  ;;  %s134_s7 = sand.u32 (%p1211_p5), 1, %s1106_s14  }
  0x1e   : > { %s895_s8 = sshll.u32 (%p1211_p5), %s1118_s17, 3  ;;  %s840_s23 = sshll.u32 (%p1211_p5), %s134_s7, 4 }
  0x1f   : > { %s142_s28 = scalar_lea.vmem (%p1211_p5), %s1419_s0, %s895_s8  ;;  %s136_s20 = scalar_lea.vmem (%p1211_p5), [#allocation3], %s840_s23 }
  0x20   : > { %v173_v0 = vld [vmem:[%s142_s28] sm:$0xff] (%p1211_p5)  ;;  %v175_v1 = vld [vmem:[%s142_s28 + $0x1b0] sm:$0xff] (%p1211_p5) }
  0x21   : > { %174 = vst [vmem:[%s136_s20] sm:$0xff] (%p1211_p5), %v173_v0  ;;  %176 = vst [vmem:[%s136_s20 + $0x8] sm:$0xff] (%p1211_p5), %v175_v1 }
  0x22 PF: > { %182 = sbr.rel (!%p1225_p9) target bundleno = 57 (0x39), region = 58  ;;  %s184_s25 = sand.u32 (%p1225_p9), 1, %s1098_s12  }
  0x23   : > { %s845_s29 = sshll.u32 (%p1225_p9), %s1122_s18, 1  ;;  %s843_s3 = sshll.u32 (%p1225_p9), %s184_s25, 8 }
  0x24   : > { %s896_s7 = sshll.u32 (%p1225_p9), %s1118_s17, 7  ;;  %s1263_s30 = scalar_lea.vmem (%p1225_p9), [#allocation4], %s843_s3 }
  0x25   : > { %s190_s22 = sadd.s32 (%p1225_p9), %s896_s7, %s845_s29 }
  0x26   : > { %s847_s21 = sshll.u32 (%p1225_p9), %s190_s22, 2 }
  0x27   : > { %s1258_s26 = scalar_lea.vmem %s1420_s1, %s847_s21 }
  0x28   : > { %v283_v2 = vld [vmem:[%s1258_s26] sm:$0xff]  ;;  %v285_v3 = vld [vmem:[%s1258_s26 + $0x10] sm:$0xff] }
  0x29   : > { %v287_v4 = vld [vmem:[%s1258_s26 + $0x20] sm:$0xff]  ;;  %284 = vst [vmem:[%s1263_s30] sm:$0xff] %v283_v2  ;;  %286 = vst [vmem:[%s1263_s30 + $0x8] sm:$0xff] %v285_v3  ;;  %v289_v5 = vld [vmem:[%s1258_s26 + $0x30] sm:$0xff] }
  0x2a   : > { %288 = vst [vmem:[%s1263_s30 + $0x10] sm:$0xff] %v287_v4  ;;  %v291_v6 = vld [vmem:[%s1258_s26 + $0x40] sm:$0xff]  ;;  %v293_v7 = vld [vmem:[%s1258_s26 + $0x50] sm:$0xff]  ;;  %290 = vst [vmem:[%s1263_s30 + $0x18] sm:$0xff] %v289_v5 }
  0x2b   : > { %292 = vst [vmem:[%s1263_s30 + $0x20] sm:$0xff] %v291_v6  ;;  %294 = vst [vmem:[%s1263_s30 + $0x28] sm:$0xff] %v293_v7  ;;  %v295_v8 = vld [vmem:[%s1258_s26 + $0x60] sm:$0xff]  ;;  %v297_v9 = vld [vmem:[%s1258_s26 + $0x70] sm:$0xff] }
  0x2c   : > { %v299_v10 = vld [vmem:[%s1258_s26 + $0x80] sm:$0xff]  ;;  %296 = vst [vmem:[%s1263_s30 + $0x30] sm:$0xff] %v295_v8  ;;  %298 = vst [vmem:[%s1263_s30 + $0x38] sm:$0xff] %v297_v9  ;;  %v301_v11 = vld [vmem:[%s1258_s26 + $0x90] sm:$0xff] }
  0x2d   : > { %300 = vst [vmem:[%s1263_s30 + $0x40] sm:$0xff] %v299_v10  ;;  %v303_v12 = vld [vmem:[%s1258_s26 + $0xa0] sm:$0xff]  ;;  %v305_v13 = vld [vmem:[%s1258_s26 + $0xb0] sm:$0xff]  ;;  %302 = vst [vmem:[%s1263_s30 + $0x48] sm:$0xff] %v301_v11 }
  0x2e   : > { %304 = vst [vmem:[%s1263_s30 + $0x50] sm:$0xff] %v303_v12  ;;  %306 = vst [vmem:[%s1263_s30 + $0x58] sm:$0xff] %v305_v13  ;;  %v307_v14 = vld [vmem:[%s1258_s26 + $0xc0] sm:$0xff]  ;;  %v309_v15 = vld [vmem:[%s1258_s26 + $0xd0] sm:$0xff] }
  0x2f   : > { %v311_v16 = vld [vmem:[%s1258_s26 + $0xe0] sm:$0xff]  ;;  %308 = vst [vmem:[%s1263_s30 + $0x60] sm:$0xff] %v307_v14  ;;  %310 = vst [vmem:[%s1263_s30 + $0x68] sm:$0xff] %v309_v15  ;;  %v313_v17 = vld [vmem:[%s1258_s26 + $0xf0] sm:$0xff] }
  0x30   : > { %312 = vst [vmem:[%s1263_s30 + $0x70] sm:$0xff] %v311_v16  ;;  %v315_v18 = vld [vmem:[%s1258_s26 + $0x100] sm:$0xff]  ;;  %v317_v19 = vld [vmem:[%s1258_s26 + $0x110] sm:$0xff]  ;;  %314 = vst [vmem:[%s1263_s30 + $0x78] sm:$0xff] %v313_v17 }
  0x31   : > { %316 = vst [vmem:[%s1263_s30 + $0x80] sm:$0xff] %v315_v18  ;;  %318 = vst [vmem:[%s1263_s30 + $0x88] sm:$0xff] %v317_v19  ;;  %v319_v20 = vld [vmem:[%s1258_s26 + $0x120] sm:$0xff]  ;;  %v321_v21 = vld [vmem:[%s1258_s26 + $0x130] sm:$0xff] }
  0x32   : > { %v323_v22 = vld [vmem:[%s1258_s26 + $0x140] sm:$0xff]  ;;  %320 = vst [vmem:[%s1263_s30 + $0x90] sm:$0xff] %v319_v20  ;;  %322 = vst [vmem:[%s1263_s30 + $0x98] sm:$0xff] %v321_v21  ;;  %v325_v23 = vld [vmem:[%s1258_s26 + $0x150] sm:$0xff] }
  0x33   : > { %324 = vst [vmem:[%s1263_s30 + $0xa0] sm:$0xff] %v323_v22  ;;  %v327_v24 = vld [vmem:[%s1258_s26 + $0x160] sm:$0xff]  ;;  %v329_v25 = vld [vmem:[%s1258_s26 + $0x170] sm:$0xff]  ;;  %326 = vst [vmem:[%s1263_s30 + $0xa8] sm:$0xff] %v325_v23 }
  0x34   : > { %328 = vst [vmem:[%s1263_s30 + $0xb0] sm:$0xff] %v327_v24  ;;  %330 = vst [vmem:[%s1263_s30 + $0xb8] sm:$0xff] %v329_v25  ;;  %v331_v26 = vld [vmem:[%s1258_s26 + $0x180] sm:$0xff]  ;;  %v333_v27 = vld [vmem:[%s1258_s26 + $0x190] sm:$0xff] }
  0x35   : > { %v335_v28 = vld [vmem:[%s1258_s26 + $0x1a0] sm:$0xff]  ;;  %332 = vst [vmem:[%s1263_s30 + $0xc0] sm:$0xff] %v331_v26  ;;  %334 = vst [vmem:[%s1263_s30 + $0xc8] sm:$0xff] %v333_v27  ;;  %v337_v29 = vld [vmem:[%s1258_s26 + $0x1b0] sm:$0xff] }
  0x36   : > { %336 = vst [vmem:[%s1263_s30 + $0xd0] sm:$0xff] %v335_v28  ;;  %v339_v30 = vld [vmem:[%s1258_s26 + $0x1c0] sm:$0xff]  ;;  %v341_v31 = vld [vmem:[%s1258_s26 + $0x1d0] sm:$0xff]  ;;  %338 = vst [vmem:[%s1263_s30 + $0xd8] sm:$0xff] %v337_v29 }
  0x37   : > { %340 = vst [vmem:[%s1263_s30 + $0xe0] sm:$0xff] %v339_v30  ;;  %342 = vst [vmem:[%s1263_s30 + $0xe8] sm:$0xff] %v341_v31  ;;  %v343_v32 = vld [vmem:[%s1258_s26 + $0x1e0] sm:$0xff]  ;;  %v345_v33 = vld [vmem:[%s1258_s26 + $0x1f0] sm:$0xff] }
  0x38   : > { %344 = vst [vmem:[%s1263_s30 + $0xf0] sm:$0xff] %v343_v32  ;;  %346 = vst [vmem:[%s1263_s30 + $0xf8] sm:$0xff] %v345_v33 }
  0x39 PF: > { %p848_p0 = scmp.ge.s32.totalorder %s1126_s19, 1  ;;  %p351_p1 = scmp.lt.s32.totalorder %s1126_s19, 109 }
  0x3b   : > { %p352_p2 = pnand %p848_p0, %p351_p1 }
  0x3c   : > { %s358_s21 = sand.u32 (!%p352_p2), 1, %s1102_s13   ;;  %s365_s22 = sand.u32 (!%p352_p2), 1, %s1094_s11  }
  0x3d   : > { %355 = sbr.rel (%p352_p2) target bundleno = 362 (0x16a), region = 96  ;;  %s1330_s23 = sshll.u32 (!%p352_p2), %s358_s21, 4 }
  0x3e   : > { %s850_s28 = sshll.u32 (!%p352_p2), %s365_s22, 8  ;;  %s386_s20 = sand.u32 (!%p352_p2), 1, %s1086_s9  }
  0x3f   : > { %s851_s25 = sshll.u32 (!%p352_p2), %s386_s20, 4  ;;  %s360_s29 = scalar_lea.vmem (!%p352_p2), [#allocation3], %s1330_s23 }
  0x40   : > { %s1334_s3 = scalar_lea.vmem (!%p352_p2), [#allocation4], %s850_s28  ;;  %s1336_s7 = scalar_lea.vmem (!%p352_p2), [#allocation5], %s851_s25 }
  0x41   : > { %p852_p3 = scmp.ne.s32.totalorder (!%p352_p2), %s1110_s15, 0 }
  0x43   : > { %398 = sbr.rel (%p852_p3) target bundleno = 75 (0x4b), region = 108 }
  0x48   : > { %v1128_v34 = vmov 0.0  }
  0x49   : > { %399 = vst [vmem:[#allocation2 + $0x10] sm:$0xff] %v1128_v34  ;;  %400 = vst [vmem:[#allocation2] sm:$0xff] %v1128_v34 }
  0x4a   : > { %401 = vst [vmem:[#allocation2 + $0x18] sm:$0xff] %v1128_v34  ;;  %402 = vst [vmem:[#allocation2 + $0x8] sm:$0xff] %v1128_v34 }
  0x4b PF: > { %v989_v35 = vld [vmem:[%s1334_s3 + $0x74] ss:$8 sps:$4 sm:$0xff]   ;;  %v991_v36 = vld [vmem:[%s1334_s3 + $0x70] ss:$8 sps:$4 sm:$0xff]   ;;  %v992_v37 = vld [vmem:[%s1334_s3 + $0x64] ss:$8 sps:$4 sm:$0xff]  }
  0x4c   : > { %611 = vmatprep.subr.bf16.mxu0 %v989_v35  ;;  %v994_v38 = vld [vmem:[%s1334_s3 + $0x60] ss:$8 sps:$4 sm:$0xff]   ;;  %v995_v39 = vld [vmem:[%s1334_s3 + $0x54] ss:$8 sps:$4 sm:$0xff]   ;;  %v997_v40 = vld [vmem:[%s1334_s3 + $0x50] ss:$8 sps:$4 sm:$0xff]  }
  0x4d   : > { %612 = vmatpush1.bf16.msra.mxu0 %v991_v36  ;;  %v998_v41 = vld [vmem:[%s1334_s3 + $0x44] ss:$8 sps:$4 sm:$0xff]   ;;  %v1000_v42 = vld [vmem:[%s1334_s3 + $0x40] ss:$8 sps:$4 sm:$0xff]   ;;  %v1001_v43 = vld [vmem:[%s1334_s3 + $0x34] ss:$8 sps:$4 sm:$0xff]  }
  0x4e   : > { %613 = vmatprep.subr.bf16.mxu0 %v992_v37  ;;  %v1003_v44 = vld [vmem:[%s1334_s3 + $0x30] ss:$8 sps:$4 sm:$0xff]   ;;  %v1004_v45 = vld [vmem:[%s1334_s3 + $0x24] ss:$8 sps:$4 sm:$0xff]   ;;  %v1006_v46 = vld [vmem:[%s1334_s3 + $0x20] ss:$8 sps:$4 sm:$0xff]  }
  0x4f   : > { %v1007_v47 = vld [vmem:[%s1334_s3 + $0x14] ss:$8 sps:$4 sm:$0xff]   ;;  %v1009_v49 = vld [vmem:[%s1334_s3 + $0x10] ss:$8 sps:$4 sm:$0xff]   ;;  %v1010_v50 = vld [vmem:[%s1334_s3 + $0x4] ss:$8 sps:$4 sm:$0xff]  }
  0x50   : > { %v1039_v48 = vld [vmem:[%s360_s29 + $0x4] ss:$8 sps:$4 sm:$0xff]   ;;  %v1012_v51 = vld [vmem:[%s1334_s3] ss:$8 sps:$4 sm:$0xff]   ;;  %v1015_v53 = vld [vmem:[%s1334_s3 + $0xf0] ss:$8 sps:$4 sm:$0xff]  }
  0x51   : > { %614 = vmatpush1.bf16.msra.mxu0 %v994_v38  ;;  %643 = vmatprep.mubr.bf16.mxu0 %v1039_v48  ;;  %v1013_v52 = vld [vmem:[%s1334_s3 + $0xf4] ss:$8 sps:$4 sm:$0xff]   ;;  %v1016_v54 = vld [vmem:[%s1334_s3 + $0xe4] ss:$8 sps:$4 sm:$0xff]   ;;  %v1018_v55 = vld [vmem:[%s1334_s3 + $0xe0] ss:$8 sps:$4 sm:$0xff]  }
  0x52   : > { %615 = vmatprep.subr.bf16.mxu0 %v995_v39  ;;  %v1019_v56 = vld [vmem:[%s1334_s3 + $0xd4] ss:$8 sps:$4 sm:$0xff]   ;;  %v1021_v57 = vld [vmem:[%s1334_s3 + $0xd0] ss:$8 sps:$4 sm:$0xff]   ;;  %v1022_v58 = vld [vmem:[%s1334_s3 + $0xc4] ss:$8 sps:$4 sm:$0xff]  }
  0x53   : > { %v1024_v59 = vld [vmem:[%s1334_s3 + $0xc0] ss:$8 sps:$4 sm:$0xff]   ;;  %v1025_v60 = vld [vmem:[%s1334_s3 + $0xb4] ss:$8 sps:$4 sm:$0xff]   ;;  %v1027_v61 = vld [vmem:[%s1334_s3 + $0xb0] ss:$8 sps:$4 sm:$0xff]  }
  0x54   : > { %v1028_v62 = vld [vmem:[%s1334_s3 + $0xa4] ss:$8 sps:$4 sm:$0xff]   ;;  %v1030_v63 = vld [vmem:[%s1334_s3 + $0xa0] ss:$8 sps:$4 sm:$0xff]   ;;  %v1031_v0 = vld [vmem:[%s1334_s3 + $0x94] ss:$8 sps:$4 sm:$0xff]  }
  0x55   : > { %616 = vmatpush1.bf16.msra.mxu0 %v997_v40  ;;  %v1033_v1 = vld [vmem:[%s1334_s3 + $0x90] ss:$8 sps:$4 sm:$0xff]   ;;  %v1034_v2 = vld [vmem:[%s1334_s3 + $0x84] ss:$8 sps:$4 sm:$0xff]   ;;  %v1036_v3 = vld [vmem:[%s1334_s3 + $0x80] ss:$8 sps:$4 sm:$0xff]  }
  0x56   : > { %617 = vmatprep.subr.bf16.mxu0 %v998_v41  ;;  %v1037_v4 = vld [vmem:[%s360_s29] ss:$8 sps:$4 sm:$0xff]   ;;  %p887_p4 = scmp.ne.s32.totalorder %s1110_s15, 53 }
  0x57   : > { %v403_v5 = vld [vmem:[#allocation2 + $0x10] sm:$0xff]  ;;  %v404_v7 = vld [vmem:[#allocation2] sm:$0xff]  ;;  %v405_v10 = vld [vmem:[#allocation2 + $0x18] sm:$0xff] }
  0x58   : > { %v406_v13 = vld [vmem:[#allocation2 + $0x8] sm:$0xff] }
  0x59   : > { %618 = vmatpush1.bf16.msra.mxu0 %v1000_v42 }
  0x5a   : > { %619 = vmatprep.subr.bf16.mxu0 %v1001_v43 }
  0x5d   : > { %620 = vmatpush1.bf16.msra.mxu0 %v1003_v44 }
  0x5e   : > { %621 = vmatprep.subr.bf16.mxu0 %v1004_v45 }
  0x61   : > { %622 = vmatpush1.bf16.msra.mxu0 %v1006_v46 }
  0x62   : > { %623 = vmatprep.subr.bf16.mxu0 %v1007_v47 }
  0x65   : > { %624 = vmatpush1.bf16.msra.mxu0 %v1009_v49 }
  0x66   : > { %625 = vmatprep.subr.bf16.mxu0 %v1010_v50 }
  0x69   : > { %626 = vmatpush1.bf16.msra.mxu0 %v1012_v51 }
  0x6a   : > { %627 = vmatprep.subr.bf16.mxu0 %v1013_v52 }
  0x6d   : > { %628 = vmatpush2.bf16.msra.mxu0 %v1015_v53 }
  0x6e   : > { %629 = vmatprep.subr.bf16.mxu0 %v1016_v54 }
  0x71   : > { %630 = vmatpush2.bf16.msra.mxu0 %v1018_v55 }
  0x72   : > { %631 = vmatprep.subr.bf16.mxu0 %v1019_v56 }
  0x75   : > { %632 = vmatpush2.bf16.msra.mxu0 %v1021_v57 }
  0x76   : > { %633 = vmatprep.subr.bf16.mxu0 %v1022_v58 }
  0x79   : > { %634 = vmatpush2.bf16.msra.mxu0 %v1024_v59 }
  0x7a   : > { %635 = vmatprep.subr.bf16.mxu0 %v1025_v60 }
  0x7d   : > { %636 = vmatpush2.bf16.msra.mxu0 %v1027_v61 }
  0x7e   : > { %637 = vmatprep.subr.bf16.mxu0 %v1028_v62 }
  0x81   : > { %638 = vmatpush2.bf16.msra.mxu0 %v1030_v63 }
  0x82   : > { %639 = vmatprep.subr.bf16.mxu0 %v1031_v0 }
  0x85   : > { %640 = vmatpush2.bf16.msra.mxu0 %v1033_v1 }
  0x86   : > { %641 = vmatprep.subr.bf16.mxu0 %v1034_v2 }
  0x89   : > { %642 = vmatpush2.bf16.msra.mxu0 %v1036_v3 }
  0x8c   : > { %644 = vmatmul.mubr.bf16.vlgmr.msra.gmra.mxu0 %v1037_v4 }
 0x14c   : > { %v645_v6 = vpop.f32.mrf.mxu0 }
 0x14d   : > { %v654_v8 = vadd.f32 %v645_v6, %v403_v5 }
 0x14e   : > { %v647_v9 = vpop.f32.mrf.mxu0 }
 0x14f   : > { %658 = vst [vmem:[#allocation2 + $0x10] sm:$0xff] %v654_v8  ;;  %v655_v11 = vadd.f32 %v647_v9, %v404_v7 }
 0x150   : > { %v649_v12 = vpop.f32.mrf.mxu0 }
 0x151   : > { %659 = vst [vmem:[#allocation2] sm:$0xff] %v655_v11  ;;  %v656_v14 = vadd.f32 %v649_v12, %v405_v10  ;;  %665 = sbr.rel (%p887_p4) target bundleno = 354 (0x162), region = 112 }
 0x152   : > { %v651_v15 = vpop.f32.mrf.mxu0 }
 0x153   : > { %660 = vst [vmem:[#allocation2 + $0x18] sm:$0xff] %v656_v14  ;;  %v657_v16 = vadd.f32 %v651_v15, %v406_v13 }
 0x155   : > { %661 = vst [vmem:[#allocation2 + $0x8] sm:$0xff] %v657_v16 }
 0x156   : > { %v666_v17 = vld [vmem:[#allocation2 + $0x10] sm:$0xff] }
 0x157   : > { %v670_v20 = vmax.f32 %v666_v17, 0.0 }
 0x158   : > { %v667_v18 = vld [vmem:[#allocation2] sm:$0xff] }
 0x159   : > { %v671_v21 = vmax.f32 %v667_v18, 0.0 }
 0x15a   : > { %v668_v19 = vld [vmem:[#allocation2 + $0x18] sm:$0xff] }
 0x15b   : > { %v672_v23 = vmax.f32 %v668_v19, 0.0  ;;  %v897_v25 = vpack.c.bf16 %v671_v21, %v670_v20 }
 0x15c   : > { %v669_v22 = vld [vmem:[#allocation2 + $0x8] sm:$0xff] }
 0x15d   : > { %v673_v24 = vmax.f32 %v669_v22, 0.0  ;;  %686 = vst [vmem:[%s1336_s7] sm:$0xff] %v897_v25 }
 0x15f   : > { %v898_v26 = vpack.c.bf16 %v673_v24, %v672_v23 }
 0x161   : > { %687 = vst [vmem:[%s1336_s7 + $0x8] sm:$0xff] %v898_v26 }
 0x162 PF: > { %694 = sbr.rel (!%p1238_p12) target bundleno = 362 (0x16a), region = 116  ;;  %s899_s9 = sshll.u32 (%p1238_p12), %s1114_s16, 3 }
 0x163   : > { %s700_s15 = scalar_lea.vmem (%p1238_p12), %s1421_s2, %s899_s9 }
 0x164   : > { %v731_v27 = vld [vmem:[%s1336_s7] sm:$0xff] (%p1238_p12) }
 0x165   : > { %732 = vst [vmem:[%s700_s15] sm:$0xff] (%p1238_p12), %v731_v27 }
 0x168   : > { %v733_v28 = vld [vmem:[%s1336_s7 + $0x8] sm:$0xff] }
 0x169   : > { %734 = vst [vmem:[%s700_s15 + $0x10] sm:$0xff] %v733_v28 }
 0x16a PF: > { %s12_s19 = sadd.s32 1, %s1126_s19   ;;  %s1429_s6 = sld [smem:[#allocation6_spill]] }
 0x16b   : > { %p9_p5 = scmp.ge.s32.totalorder %s12_s19, 110   ;;  %s1430_s24 = sld [smem:[#allocation7_spill]] }
 0x16c   : > { %s1431_s9 = smov %s1090_s10  ;;  %s1432_s10 = smov %s1236_s5 }
 0x16d   : > { %s1433_s11 = smov %s1098_s12  ;;  %s1434_s12 = smov %s1233_s4 }
 0x16e   : > { %s1435_s13 = smov %s1106_s14  ;;  %s1436_s14 = smov %s1219_s27 }
 0x16f   : > { %s1437_s15 = smov %s1118_s17  ;;  %s1438_s16 = smov %s1122_s18 }
 0x170   : > { %s1439_s17 = smov %s1429_s6  ;;  %11 = sbr.rel (!%p9_p5) target bundleno = 6 (0x6), region = 193 }
 0x171   : > { %s1440_s18 = smov %s1430_s24 }

// kernel: video_resnet_forward.34
= control target key start
LH: loop header
LB: loop body
LE: loop exit
PB: predicated region body
PF: predicated region fallthrough
CT: control target
= control target key end

     0   :  { %s1263_s12 = smov 0   ;;  %s1265_s13 = smov 0   ;;  %s1561_s0 = inlined_call_operand.vmem [shape: bf16[16,512], index: 0, kind: input, shape index: {}]   ;;  %s1562_s1 = inlined_call_operand.vmem [shape: bf16[512,2048], index: 1, kind: input, shape index: {}]   ;;  %s1563_s2 = inlined_call_operand.vmem [shape: f32[16,2048], index: 2, kind: input, shape index: {}]   ;;  %s1564_s3 = inlined_call_operand.vmem [shape: bf16[16,2048], index: 3, kind: output, shape index: {}]  }
   0x1   :  { %s1267_s14 = smov 0   ;;  %s1269_s15 = smov 0  }
   0x2   :  { %s1271_s16 = smov 0   ;;  %s1273_s17 = smov 0  }
   0x3   :  { %s1275_s18 = smov 0   ;;  %s1277_s19 = smov 0  }
   0x4   :  { %s1279_s20 = smov 0   ;;  %s1281_s21 = smov 0  }
   0x5   :  { %s1283_s22 = smov 0  }
   0x6 LB: > { %1568 = sst [smem:[#allocation7_spill]] %s1220_s17  ;;  %s945_s23 = sadd.s32 4294967295, %s1240_s22   ;;  %s1240_s22 = sphi %s1283_s22, %s13_s22   ;;  %s1236_s21 = sphi %s1281_s21, %s1587_s21   ;;  %s1232_s20 = sphi %s1279_s20, %s1586_s20   ;;  %s1228_s19 = sphi %s1277_s19, %s1585_s19   ;;  %s1224_s18 = sphi %s1275_s18, %s1584_s18   ;;  %s1220_s17 = sphi %s1273_s17, %s1577_s17   ;;  %s1216_s16 = sphi %s1271_s16, %s1576_s16   ;;  %s1212_s15 = sphi %s1269_s15, %s1583_s15   ;;  %s1208_s14 = sphi %s1267_s14, %s1582_s14   ;;  %s1204_s13 = sphi %s1265_s13, %s1581_s13   ;;  %s1200_s12 = sphi %s1263_s12, %s1580_s12  }
   0x7   : > { %s25_s24 = sadd.s32 1, %s1232_s20  ;;  %s28_s25 = sadd.s32 1, %s1236_s21 }
   0x8   : > { %p26_p0 = scmp.ge.s32.totalorder %s25_s24, 2  ;;  %s41_s26 = sadd.s32 1, %s1220_s17 }
   0x9   : > { %p48_p1 = scmp.ne.s32.totalorder %s1220_s17, %s1216_s16  ;;  %p49_p2 = scmp.eq.s32.totalorder %s1240_s22, 0 }
   0xa   : > { %s1589_s24 = smov (%p26_p0, %s25_s24), 0  ;;  %s1591_s25 = smov (!%p26_p0, %s28_s25), %s1236_s21 }
   0xb   : > { %1569 = sst [smem:[#allocation8_spill]] %s1589_s24  ;;  %s37_s27 = ssub.s32 %s1232_s20, %s1589_s24 }
   0xc   : > { %p30_p3 = scmp.ge.s32.totalorder %s1591_s25, 8  ;;  %p39_p4 = scmp.eq.s32.totalorder %s37_s27, 0 }
   0xd   : > { %p1332_p5 = por %p49_p2, %p48_p1  ;;  %s69_s29 = sadd.s32 1, %s1212_s15 }
   0xe   : > { %s1593_s25 = smov (%p30_p3, %s1591_s25), 0  ;;  %p76_p6 = scmp.ne.s32.totalorder %s1212_s15, %s1208_s14 }
   0xf   : > { %1571 = sst [smem:[#allocation9_spill]] %s1593_s25  ;;  %s65_s4 = ssub.s32 %s1236_s21, %s1593_s25 }
  0x10   : > { %s1340_s30 = scalar_select %p39_p4, %s1220_s17, %s41_s26  }
  0x11   : > { %s66_s5 = sor.u32 %s65_s4, %s37_s27  ;;  %p95_p7 = scmp.eq.s32.totalorder %s65_s4, 0 }
  0x12   : > { %1572 = sst [smem:[#allocation10_spill]] %s1340_s30  ;;  %p67_p8 = scmp.eq.s32.totalorder %s66_s5, 0 }
  0x13   : > { %p1348_p9 = por %p76_p6, %p49_p2  ;;  %s97_s7 = sadd.s32 1, %s1204_s13 }
  0x14   : > { %p104_p10 = scmp.ne.s32.totalorder %s1204_s13, %s1200_s12  ;;  %p136_p12 = scmp.eq.s32.totalorder %s945_s23, 15 }
  0x15   : > { %s1356_s8 = scalar_select %p67_p8, %s1212_s15, %s69_s29  }
  0x16   : > { %s1359_s9 = scalar_select %p95_p7, %s1204_s13, %s97_s7  }
  0x17   : > { %p1363_p11 = por %p104_p10, %p49_p2  ;;  %p1367_p13 = por %p136_p12, %p104_p10 }
  0x18   : > { %p948_p0 = scmp.ge.s32.totalorder %s1240_s22, 16 }
  0x1a   : > { %158 = sbr.rel (%p948_p0) target bundleno = 81 (0x51), region = 16 }
  0x1f   : > { %161 = sbr.rel (!%p1332_p5) target bundleno = 36 (0x24), region = 20  ;;  %s163_s26 = sand.u32 (%p1332_p5), 1, %s1220_s17  }
  0x20   : > { %s1008_s27 = sshll.u32 (%p1332_p5), %s1232_s20, 3  ;;  %s949_s29 = sshll.u32 (%p1332_p5), %s163_s26, 4 }
  0x21   : > { %s171_s7 = scalar_lea.vmem (%p1332_p5), %s1561_s0, %s1008_s27  ;;  %s165_s23 = scalar_lea.vmem (%p1332_p5), [#allocation3], %s949_s29 }
  0x22   : > { %v202_v0 = vld [vmem:[%s171_s7] sm:$0xff] (%p1332_p5)  ;;  %v204_v1 = vld [vmem:[%s171_s7 + $0x10] sm:$0xff] (%p1332_p5) }
  0x23   : > { %203 = vst [vmem:[%s165_s23] sm:$0xff] (%p1332_p5), %v202_v0  ;;  %205 = vst [vmem:[%s165_s23 + $0x8] sm:$0xff] (%p1332_p5), %v204_v1 }
  0x24 PF: > { %211 = sbr.rel (!%p1348_p9) target bundleno = 75 (0x4b), region = 58  ;;  %s213_s28 = sand.u32 (%p1348_p9), 1, %s1212_s15  }
  0x25   : > { %s954_s25 = sshll.u32 (%p1348_p9), %s1236_s21, 1  ;;  %s952_s24 = sshll.u32 (%p1348_p9), %s213_s28, 8 }
  0x26   : > { %s1009_s26 = sshll.u32 (%p1348_p9), %s1232_s20, 9  ;;  %s1392_s6 = scalar_lea.vmem (%p1348_p9), [#allocation4], %s952_s24 }
  0x27   : > { %s219_s30 = sadd.s32 (%p1348_p9), %s1009_s26, %s954_s25 }
  0x28   : > { %s956_s17 = sshll.u32 (%p1348_p9), %s219_s30, 2 }
  0x29   : > { %s1387_s5 = scalar_lea.vmem %s1562_s1, %s956_s17 }
  0x2a   : > { %v312_v2 = vld [vmem:[%s1387_s5] sm:$0xff] }
  0x2b   : > { %v314_v3 = vld [vmem:[%s1387_s5 + $0x40] sm:$0xff]  ;;  %313 = vst [vmem:[%s1392_s6] sm:$0xff] %v312_v2 }
  0x2c   : > { %v316_v4 = vld [vmem:[%s1387_s5 + $0x80] sm:$0xff]  ;;  %315 = vst [vmem:[%s1392_s6 + $0x8] sm:$0xff] %v314_v3 }
  0x2d   : > { %317 = vst [vmem:[%s1392_s6 + $0x10] sm:$0xff] %v316_v4  ;;  %v318_v5 = vld [vmem:[%s1387_s5 + $0xc0] sm:$0xff] }
  0x2e   : > { %v320_v6 = vld [vmem:[%s1387_s5 + $0x100] sm:$0xff]  ;;  %319 = vst [vmem:[%s1392_s6 + $0x18] sm:$0xff] %v318_v5 }
  0x2f   : > { %v322_v7 = vld [vmem:[%s1387_s5 + $0x140] sm:$0xff]  ;;  %321 = vst [vmem:[%s1392_s6 + $0x20] sm:$0xff] %v320_v6 }
  0x30   : > { %323 = vst [vmem:[%s1392_s6 + $0x28] sm:$0xff] %v322_v7  ;;  %v324_v8 = vld [vmem:[%s1387_s5 + $0x180] sm:$0xff] }
  0x31   : > { %v326_v9 = vld [vmem:[%s1387_s5 + $0x1c0] sm:$0xff]  ;;  %325 = vst [vmem:[%s1392_s6 + $0x30] sm:$0xff] %v324_v8 }
  0x32   : > { %v328_v10 = vld [vmem:[%s1387_s5 + $0x200] sm:$0xff]  ;;  %327 = vst [vmem:[%s1392_s6 + $0x38] sm:$0xff] %v326_v9 }
  0x33   : > { %329 = vst [vmem:[%s1392_s6 + $0x40] sm:$0xff] %v328_v10  ;;  %v330_v11 = vld [vmem:[%s1387_s5 + $0x240] sm:$0xff] }
  0x34   : > { %v332_v12 = vld [vmem:[%s1387_s5 + $0x280] sm:$0xff]  ;;  %331 = vst [vmem:[%s1392_s6 + $0x48] sm:$0xff] %v330_v11 }
  0x35   : > { %v334_v13 = vld [vmem:[%s1387_s5 + $0x2c0] sm:$0xff]  ;;  %333 = vst [vmem:[%s1392_s6 + $0x50] sm:$0xff] %v332_v12 }
  0x36   : > { %335 = vst [vmem:[%s1392_s6 + $0x58] sm:$0xff] %v334_v13  ;;  %v336_v14 = vld [vmem:[%s1387_s5 + $0x300] sm:$0xff] }
  0x37   : > { %v338_v15 = vld [vmem:[%s1387_s5 + $0x340] sm:$0xff]  ;;  %337 = vst [vmem:[%s1392_s6 + $0x60] sm:$0xff] %v336_v14 }
  0x38   : > { %v340_v16 = vld [vmem:[%s1387_s5 + $0x380] sm:$0xff]  ;;  %339 = vst [vmem:[%s1392_s6 + $0x68] sm:$0xff] %v338_v15 }
  0x39   : > { %341 = vst [vmem:[%s1392_s6 + $0x70] sm:$0xff] %v340_v16  ;;  %v342_v17 = vld [vmem:[%s1387_s5 + $0x3c0] sm:$0xff] }
  0x3a   : > { %v344_v18 = vld [vmem:[%s1387_s5 + $0x400] sm:$0xff]  ;;  %343 = vst [vmem:[%s1392_s6 + $0x78] sm:$0xff] %v342_v17 }
  0x3b   : > { %v346_v19 = vld [vmem:[%s1387_s5 + $0x440] sm:$0xff]  ;;  %345 = vst [vmem:[%s1392_s6 + $0x80] sm:$0xff] %v344_v18 }
  0x3c   : > { %347 = vst [vmem:[%s1392_s6 + $0x88] sm:$0xff] %v346_v19  ;;  %v348_v20 = vld [vmem:[%s1387_s5 + $0x480] sm:$0xff] }
  0x3d   : > { %v350_v21 = vld [vmem:[%s1387_s5 + $0x4c0] sm:$0xff]  ;;  %349 = vst [vmem:[%s1392_s6 + $0x90] sm:$0xff] %v348_v20 }
  0x3e   : > { %v352_v22 = vld [vmem:[%s1387_s5 + $0x500] sm:$0xff]  ;;  %351 = vst [vmem:[%s1392_s6 + $0x98] sm:$0xff] %v350_v21 }
  0x3f   : > { %353 = vst [vmem:[%s1392_s6 + $0xa0] sm:$0xff] %v352_v22  ;;  %v354_v23 = vld [vmem:[%s1387_s5 + $0x540] sm:$0xff] }
  0x40   : > { %v356_v24 = vld [vmem:[%s1387_s5 + $0x580] sm:$0xff]  ;;  %355 = vst [vmem:[%s1392_s6 + $0xa8] sm:$0xff] %v354_v23 }
  0x41   : > { %v358_v25 = vld [vmem:[%s1387_s5 + $0x5c0] sm:$0xff]  ;;  %357 = vst [vmem:[%s1392_s6 + $0xb0] sm:$0xff] %v356_v24 }
  0x42   : > { %359 = vst [vmem:[%s1392_s6 + $0xb8] sm:$0xff] %v358_v25  ;;  %v360_v26 = vld [vmem:[%s1387_s5 + $0x600] sm:$0xff] }
  0x43   : > { %v362_v27 = vld [vmem:[%s1387_s5 + $0x640] sm:$0xff]  ;;  %361 = vst [vmem:[%s1392_s6 + $0xc0] sm:$0xff] %v360_v26 }
  0x44   : > { %v364_v28 = vld [vmem:[%s1387_s5 + $0x680] sm:$0xff]  ;;  %363 = vst [vmem:[%s1392_s6 + $0xc8] sm:$0xff] %v362_v27 }
  0x45   : > { %365 = vst [vmem:[%s1392_s6 + $0xd0] sm:$0xff] %v364_v28  ;;  %v366_v29 = vld [vmem:[%s1387_s5 + $0x6c0] sm:$0xff] }
  0x46   : > { %v368_v30 = vld [vmem:[%s1387_s5 + $0x700] sm:$0xff]  ;;  %367 = vst [vmem:[%s1392_s6 + $0xd8] sm:$0xff] %v366_v29 }
  0x47   : > { %v370_v31 = vld [vmem:[%s1387_s5 + $0x740] sm:$0xff]  ;;  %369 = vst [vmem:[%s1392_s6 + $0xe0] sm:$0xff] %v368_v30 }
  0x48   : > { %371 = vst [vmem:[%s1392_s6 + $0xe8] sm:$0xff] %v370_v31  ;;  %v372_v32 = vld [vmem:[%s1387_s5 + $0x780] sm:$0xff] }
  0x49   : > { %v374_v33 = vld [vmem:[%s1387_s5 + $0x7c0] sm:$0xff]  ;;  %373 = vst [vmem:[%s1392_s6 + $0xf0] sm:$0xff] %v372_v32 }
  0x4a   : > { %375 = vst [vmem:[%s1392_s6 + $0xf8] sm:$0xff] %v374_v33 }
  0x4b PF: > { %381 = sbr.rel (!%p1363_p11) target bundleno = 81 (0x51), region = 96  ;;  %s383_s17 = sand.u32 (%p1363_p11), 1, %s1204_s13  }
  0x4c   : > { %s1010_s24 = sshll.u32 (%p1363_p11), %s1236_s21, 4  ;;  %s957_s25 = sshll.u32 (%p1363_p11), %s383_s17, 5 }
  0x4d   : > { %s391_s7 = scalar_lea.vmem (%p1363_p11), %s1563_s2, %s1010_s24  ;;  %s385_s23 = scalar_lea.vmem (%p1363_p11), [#allocation5], %s957_s25 }
  0x4e   : > { %v404_v34 = vld [vmem:[%s391_s7] sm:$0xff] (%p1363_p11)  ;;  %v406_v35 = vld [vmem:[%s391_s7 + $0x8] sm:$0xff] (%p1363_p11) }
  0x4f   : > { %v408_v36 = vld [vmem:[%s391_s7 + $0x80] sm:$0xff] (%p1363_p11)  ;;  %405 = vst [vmem:[%s385_s23] sm:$0xff] (%p1363_p11), %v404_v34  ;;  %407 = vst [vmem:[%s385_s23 + $0x8] sm:$0xff] (%p1363_p11), %v406_v35  ;;  %v410_v37 = vld [vmem:[%s391_s7 + $0x88] sm:$0xff] (%p1363_p11) }
  0x50   : > { %409 = vst [vmem:[%s385_s23 + $0x10] sm:$0xff] %v408_v36  ;;  %411 = vst [vmem:[%s385_s23 + $0x18] sm:$0xff] %v410_v37 }
  0x51 PF: > { %p960_p1 = scmp.ge.s32.totalorder %s1240_s22, 1  ;;  %p416_p2 = scmp.lt.s32.totalorder %s1240_s22, 17 }
  0x53   : > { %p417_p3 = pnand %p960_p1, %p416_p2 }
  0x54   : > { %s423_s10 = sand.u32 (!%p417_p3), 1, %s1216_s16   ;;  %s430_s28 = sand.u32 (!%p417_p3), 1, %s1208_s14  }
  0x55   : > { %420 = sbr.rel (%p417_p3) target bundleno = 389 (0x185), region = 119  ;;  %s1466_s26 = sshll.u32 (!%p417_p3), %s423_s10, 4 }
  0x56   : > { %s962_s4 = sshll.u32 (!%p417_p3), %s430_s28, 8  ;;  %s437_s27 = sand.u32 (!%p417_p3), 1, %s1200_s12  }
  0x57   : > { %s963_s5 = sshll.u32 (!%p417_p3), %s437_s27, 5  ;;  %s964_s6 = sshll.u32 (!%p417_p3), %s437_s27, 4 }
  0x58   : > { %s425_s17 = scalar_lea.vmem (!%p417_p3), [#allocation3], %s1466_s26  ;;  %s1470_s24 = scalar_lea.vmem (!%p417_p3), [#allocation4], %s962_s4 }
  0x59   : > { %s1472_s25 = scalar_lea.vmem (!%p417_p3), [#allocation5], %s963_s5  ;;  %s1474_s30 = scalar_lea.vmem (!%p417_p3), [#allocation6], %s964_s6 }
  0x5a   : > { %p965_p4 = scmp.ne.s32.totalorder %s1224_s18, 0 }
  0x5c   : > { %478 = sbr.rel (%p965_p4) target bundleno = 100 (0x64), region = 135 }
  0x61   : > { %v1242_v38 = vmov 0.0  }
  0x62   : > { %479 = vst [vmem:[#allocation2 + $0x10] sm:$0xff] %v1242_v38  ;;  %480 = vst [vmem:[#allocation2] sm:$0xff] %v1242_v38 }
  0x63   : > { %481 = vst [vmem:[#allocation2 + $0x18] sm:$0xff] %v1242_v38  ;;  %482 = vst [vmem:[#allocation2 + $0x8] sm:$0xff] %v1242_v38 }
  0x64 PF: > { %v1103_v39 = vld [vmem:[%s1470_s24 + $0x74] ss:$8 sps:$4 sm:$0xff]   ;;  %v1105_v40 = vld [vmem:[%s1470_s24 + $0x70] ss:$8 sps:$4 sm:$0xff]   ;;  %v1106_v41 = vld [vmem:[%s1470_s24 + $0x64] ss:$8 sps:$4 sm:$0xff]  }
  0x65   : > { %691 = vmatprep.subr.bf16.mxu0 %v1103_v39  ;;  %v1108_v42 = vld [vmem:[%s1470_s24 + $0x60] ss:$8 sps:$4 sm:$0xff]   ;;  %v1109_v43 = vld [vmem:[%s1470_s24 + $0x54] ss:$8 sps:$4 sm:$0xff]   ;;  %v1111_v44 = vld [vmem:[%s1470_s24 + $0x50] ss:$8 sps:$4 sm:$0xff]  }
  0x66   : > { %692 = vmatpush1.bf16.msra.mxu0 %v1105_v40  ;;  %v1112_v45 = vld [vmem:[%s1470_s24 + $0x44] ss:$8 sps:$4 sm:$0xff]   ;;  %v1114_v46 = vld [vmem:[%s1470_s24 + $0x40] ss:$8 sps:$4 sm:$0xff]   ;;  %v1115_v47 = vld [vmem:[%s1470_s24 + $0x34] ss:$8 sps:$4 sm:$0xff]  }
  0x67   : > { %693 = vmatprep.subr.bf16.mxu0 %v1106_v41  ;;  %v1117_v48 = vld [vmem:[%s1470_s24 + $0x30] ss:$8 sps:$4 sm:$0xff]   ;;  %v1118_v49 = vld [vmem:[%s1470_s24 + $0x24] ss:$8 sps:$4 sm:$0xff]   ;;  %v1120_v50 = vld [vmem:[%s1470_s24 + $0x20] ss:$8 sps:$4 sm:$0xff]  }
  0x68   : > { %v1121_v51 = vld [vmem:[%s1470_s24 + $0x14] ss:$8 sps:$4 sm:$0xff]   ;;  %v1123_v53 = vld [vmem:[%s1470_s24 + $0x10] ss:$8 sps:$4 sm:$0xff]   ;;  %v1124_v54 = vld [vmem:[%s1470_s24 + $0x4] ss:$8 sps:$4 sm:$0xff]  }
  0x69   : > { %v1153_v52 = vld [vmem:[%s425_s17 + $0x4] ss:$8 sps:$4 sm:$0xff]   ;;  %v1126_v55 = vld [vmem:[%s1470_s24] ss:$8 sps:$4 sm:$0xff]   ;;  %v1129_v57 = vld [vmem:[%s1470_s24 + $0xf0] ss:$8 sps:$4 sm:$0xff]  }
  0x6a   : > { %694 = vmatpush1.bf16.msra.mxu0 %v1108_v42  ;;  %723 = vmatprep.mubr.bf16.mxu0 %v1153_v52  ;;  %v1127_v56 = vld [vmem:[%s1470_s24 + $0xf4] ss:$8 sps:$4 sm:$0xff]   ;;  %v1130_v58 = vld [vmem:[%s1470_s24 + $0xe4] ss:$8 sps:$4 sm:$0xff]   ;;  %v1132_v59 = vld [vmem:[%s1470_s24 + $0xe0] ss:$8 sps:$4 sm:$0xff]  }
  0x6b   : > { %695 = vmatprep.subr.bf16.mxu0 %v1109_v43  ;;  %v1133_v60 = vld [vmem:[%s1470_s24 + $0xd4] ss:$8 sps:$4 sm:$0xff]   ;;  %v1135_v61 = vld [vmem:[%s1470_s24 + $0xd0] ss:$8 sps:$4 sm:$0xff]   ;;  %v1136_v62 = vld [vmem:[%s1470_s24 + $0xc4] ss:$8 sps:$4 sm:$0xff]  }
  0x6c   : > { %v1138_v63 = vld [vmem:[%s1470_s24 + $0xc0] ss:$8 sps:$4 sm:$0xff]   ;;  %v1139_v0 = vld [vmem:[%s1470_s24 + $0xb4] ss:$8 sps:$4 sm:$0xff]   ;;  %v1141_v1 = vld [vmem:[%s1470_s24 + $0xb0] ss:$8 sps:$4 sm:$0xff]  }
  0x6d   : > { %v1142_v2 = vld [vmem:[%s1470_s24 + $0xa4] ss:$8 sps:$4 sm:$0xff]   ;;  %v1144_v3 = vld [vmem:[%s1470_s24 + $0xa0] ss:$8 sps:$4 sm:$0xff]   ;;  %v1145_v4 = vld [vmem:[%s1470_s24 + $0x94] ss:$8 sps:$4 sm:$0xff]  }
  0x6e   : > { %696 = vmatpush1.bf16.msra.mxu0 %v1111_v44  ;;  %v1147_v5 = vld [vmem:[%s1470_s24 + $0x90] ss:$8 sps:$4 sm:$0xff]   ;;  %v1148_v6 = vld [vmem:[%s1470_s24 + $0x84] ss:$8 sps:$4 sm:$0xff]   ;;  %v1150_v7 = vld [vmem:[%s1470_s24 + $0x80] ss:$8 sps:$4 sm:$0xff]  }
  0x6f   : > { %697 = vmatprep.subr.bf16.mxu0 %v1112_v45  ;;  %v1151_v8 = vld [vmem:[%s425_s17] ss:$8 sps:$4 sm:$0xff]   ;;  %p1000_p5 = scmp.ne.s32.totalorder %s1224_s18, 1 }
  0x70   : > { %v483_v9 = vld [vmem:[#allocation2 + $0x10] sm:$0xff]  ;;  %v484_v11 = vld [vmem:[#allocation2] sm:$0xff]  ;;  %v485_v14 = vld [vmem:[#allocation2 + $0x18] sm:$0xff] }
  0x71   : > { %v486_v17 = vld [vmem:[#allocation2 + $0x8] sm:$0xff] }
  0x72   : > { %698 = vmatpush1.bf16.msra.mxu0 %v1114_v46 }
  0x73   : > { %699 = vmatprep.subr.bf16.mxu0 %v1115_v47 }
  0x76   : > { %700 = vmatpush1.bf16.msra.mxu0 %v1117_v48 }
  0x77   : > { %701 = vmatprep.subr.bf16.mxu0 %v1118_v49 }
  0x7a   : > { %702 = vmatpush1.bf16.msra.mxu0 %v1120_v50 }
  0x7b   : > { %703 = vmatprep.subr.bf16.mxu0 %v1121_v51 }
  0x7e   : > { %704 = vmatpush1.bf16.msra.mxu0 %v1123_v53 }
  0x7f   : > { %705 = vmatprep.subr.bf16.mxu0 %v1124_v54 }
  0x82   : > { %706 = vmatpush1.bf16.msra.mxu0 %v1126_v55 }
  0x83   : > { %707 = vmatprep.subr.bf16.mxu0 %v1127_v56 }
  0x86   : > { %708 = vmatpush2.bf16.msra.mxu0 %v1129_v57 }
  0x87   : > { %709 = vmatprep.subr.bf16.mxu0 %v1130_v58 }
  0x8a   : > { %710 = vmatpush2.bf16.msra.mxu0 %v1132_v59 }
  0x8b   : > { %711 = vmatprep.subr.bf16.mxu0 %v1133_v60 }
  0x8e   : > { %712 = vmatpush2.bf16.msra.mxu0 %v1135_v61 }
  0x8f   : > { %713 = vmatprep.subr.bf16.mxu0 %v1136_v62 }
  0x92   : > { %714 = vmatpush2.bf16.msra.mxu0 %v1138_v63 }
  0x93   : > { %715 = vmatprep.subr.bf16.mxu0 %v1139_v0 }
  0x96   : > { %716 = vmatpush2.bf16.msra.mxu0 %v1141_v1 }
  0x97   : > { %717 = vmatprep.subr.bf16.mxu0 %v1142_v2 }
  0x9a   : > { %718 = vmatpush2.bf16.msra.mxu0 %v1144_v3 }
  0x9b   : > { %719 = vmatprep.subr.bf16.mxu0 %v1145_v4 }
  0x9e   : > { %720 = vmatpush2.bf16.msra.mxu0 %v1147_v5 }
  0x9f   : > { %721 = vmatprep.subr.bf16.mxu0 %v1148_v6 }
  0xa2   : > { %722 = vmatpush2.bf16.msra.mxu0 %v1150_v7 }
  0xa5   : > { %724 = vmatmul.mubr.bf16.vlgmr.msra.gmra.mxu0 %v1151_v8 }
 0x165   : > { %v725_v10 = vpop.f32.mrf.mxu0 }
 0x166   : > { %v734_v12 = vadd.f32 %v725_v10, %v483_v9 }
 0x167   : > { %v727_v13 = vpop.f32.mrf.mxu0 }
 0x168   : > { %738 = vst [vmem:[#allocation2 + $0x10] sm:$0xff] %v734_v12  ;;  %v735_v15 = vadd.f32 %v727_v13, %v484_v11 }
 0x169   : > { %v729_v16 = vpop.f32.mrf.mxu0 }
 0x16a   : > { %739 = vst [vmem:[#allocation2] sm:$0xff] %v735_v15  ;;  %v736_v18 = vadd.f32 %v729_v16, %v485_v14  ;;  %745 = sbr.rel (%p1000_p5) target bundleno = 381 (0x17d), region = 139 }
 0x16b   : > { %v731_v19 = vpop.f32.mrf.mxu0 }
 0x16c   : > { %740 = vst [vmem:[#allocation2 + $0x18] sm:$0xff] %v736_v18  ;;  %v737_v20 = vadd.f32 %v731_v19, %v486_v17 }
 0x16e   : > { %741 = vst [vmem:[#allocation2 + $0x8] sm:$0xff] %v737_v20 }
 0x16f   : > { %v746_v21 = vld [vmem:[#allocation2 + $0x10] sm:$0xff]  ;;  %v750_v23 = vld [vmem:[%s1472_s25] sm:$0xff]  ;;  %v751_v24 = vld [vmem:[%s1472_s25 + $0x8] sm:$0xff] }
 0x170   : > { %v754_v25 = vadd.f32 %v750_v23, %v746_v21  ;;  %v752_v29 = vld [vmem:[%s1472_s25 + $0x10] sm:$0xff]  ;;  %v753_v30 = vld [vmem:[%s1472_s25 + $0x18] sm:$0xff] }
 0x171   : > { %v747_v22 = vld [vmem:[#allocation2] sm:$0xff] }
 0x172   : > { %v755_v28 = vadd.f32 %v751_v24, %v747_v22  ;;  %v758_v31 = vmax.f32 %v754_v25, 0.0 }
 0x173   : > { %v748_v26 = vld [vmem:[#allocation2 + $0x18] sm:$0xff] }
 0x174   : > { %v756_v32 = vadd.f32 %v752_v29, %v748_v26  ;;  %v759_v34 = vmax.f32 %v755_v28, 0.0 }
 0x175   : > { %v749_v27 = vld [vmem:[#allocation2 + $0x8] sm:$0xff] }
 0x176   : > { %v757_v33 = vadd.f32 %v753_v30, %v749_v27  ;;  %v760_v35 = vmax.f32 %v756_v32, 0.0  ;;  %v1011_v37 = vpack.c.bf16 %v759_v34, %v758_v31 }
 0x178   : > { %v761_v36 = vmax.f32 %v757_v33, 0.0  ;;  %774 = vst [vmem:[%s1474_s30] sm:$0xff] %v1011_v37 }
 0x17a   : > { %v1012_v38 = vpack.c.bf16 %v761_v36, %v760_v35 }
 0x17c   : > { %775 = vst [vmem:[%s1474_s30 + $0x8] sm:$0xff] %v1012_v38 }
 0x17d PF: > { %782 = sbr.rel (!%p1367_p13) target bundleno = 389 (0x185), region = 143  ;;  %s1013_s12 = sshll.u32 (%p1367_p13), %s1228_s19, 3 }
 0x17e   : > { %s788_s18 = scalar_lea.vmem (%p1367_p13), %s1564_s3, %s1013_s12 }
 0x17f   : > { %v819_v39 = vld [vmem:[%s1474_s30] sm:$0xff] (%p1367_p13) }
 0x180   : > { %820 = vst [vmem:[%s788_s18] sm:$0xff] (%p1367_p13), %v819_v39 }
 0x183   : > { %v821_v40 = vld [vmem:[%s1474_s30 + $0x8] sm:$0xff] }
 0x184   : > { %822 = vst [vmem:[%s788_s18 + $0x40] sm:$0xff] %v821_v40 }
 0x185 PF: > { %s13_s22 = sadd.s32 1, %s1240_s22   ;;  %s1576_s16 = sld [smem:[#allocation7_spill]] }
 0x186   : > { %p10_p6 = scmp.ge.s32.totalorder %s13_s22, 18   ;;  %s1577_s17 = sld [smem:[#allocation10_spill]] }
 0x187   : > { %s1578_s11 = sld [smem:[#allocation8_spill]]  ;;  %s1580_s12 = smov %s1204_s13 }
 0x188   : > { %s1579_s29 = sld [smem:[#allocation9_spill]]  ;;  %s1581_s13 = smov %s1359_s9 }
 0x189   : > { %s1582_s14 = smov %s1212_s15  ;;  %s1583_s15 = smov %s1356_s8 }
 0x18a   : > { %s1584_s18 = smov %s1232_s20  ;;  %s1585_s19 = smov %s1236_s21 }
 0x18b   :  { %12 = sbr.rel (!%p10_p6) target bundleno = 6 (0x6), region = 228 }
 0x18d   : > { %s1586_s20 = smov %s1578_s11 }
 0x18e   : > { %s1587_s21 = smov %s1579_s29 }

// kernel: video_resnet_forward.31
= control target key start
LH: loop header
LB: loop body
LE: loop exit
PB: predicated region body
PF: predicated region fallthrough
CT: control target
= control target key end

     0   :  { %s1112_s9 = smov 0   ;;  %s1114_s10 = smov 0   ;;  %s1391_s0 = inlined_call_operand.vmem [shape: bf16[16,1024], index: 0, kind: input, shape index: {}]   ;;  %s1392_s1 = inlined_call_operand.vmem [shape: bf16[1024,2048], index: 1, kind: input, shape index: {}]   ;;  %s1393_s2 = inlined_call_operand.vmem [shape: f32[16,2048], index: 2, kind: output, shape index: {}]  }
   0x1   :  { %s1116_s11 = smov 0   ;;  %s1118_s12 = smov 0  }
   0x2   :  { %s1120_s13 = smov 0   ;;  %s1122_s14 = smov 0  }
   0x3   :  { %s1124_s15 = smov 0   ;;  %s1126_s16 = smov 0  }
   0x4   :  { %s1128_s17 = smov 0   ;;  %s1130_s18 = smov 0  }
   0x5   :  { %s1132_s19 = smov 0  }
   0x6 LB: > { %s808_s20 = sadd.s32 4294967295, %s1094_s19   ;;  %s24_s21 = sadd.s32 1, %s1086_s17  ;;  %s1094_s19 = sphi %s1132_s19, %s12_s19   ;;  %s1090_s18 = sphi %s1130_s18, %s1412_s18   ;;  %s1086_s17 = sphi %s1128_s17, %s1411_s17   ;;  %s1082_s16 = sphi %s1126_s16, %s1410_s16   ;;  %s1078_s15 = sphi %s1124_s15, %s1409_s15   ;;  %s1074_s14 = sphi %s1122_s14, %s1408_s14   ;;  %s1070_s13 = sphi %s1120_s13, %s1407_s13   ;;  %s1066_s12 = sphi %s1118_s12, %s1406_s12   ;;  %s1062_s11 = sphi %s1116_s11, %s1405_s11   ;;  %s1058_s10 = sphi %s1114_s10, %s1404_s10   ;;  %s1054_s9 = sphi %s1112_s9, %s1403_s9  }
   0x7   : > { %p25_p0 = scmp.ge.s32.totalorder %s24_s21, 4  ;;  %s27_s22 = sadd.s32 1, %s1090_s18 }
   0x8   : > { %s40_s23 = sadd.s32 1, %s1074_s14  ;;  %p47_p1 = scmp.ne.s32.totalorder %s1074_s14, %s1070_s13 }
   0x9   : > { %s1414_s21 = smov (%p25_p0, %s24_s21), 0  ;;  %s1416_s22 = smov (!%p25_p0, %s27_s22), %s1090_s18 }
   0xa   : > { %1396 = sst [smem:[#allocation6_spill]] %s1414_s21  ;;  %s36_s24 = ssub.s32 %s1086_s17, %s1414_s21 }
   0xb   : > { %p48_p2 = scmp.eq.s32.totalorder %s1094_s19, 0  ;;  %p29_p3 = scmp.ge.s32.totalorder %s1416_s22, 8 }
   0xc   : > { %p38_p4 = scmp.eq.s32.totalorder %s36_s24, 0  ;;  %s68_s26 = sadd.s32 1, %s1066_s12 }
   0xd   : > { %p1179_p5 = por %p48_p2, %p47_p1  ;;  %s1418_s22 = smov (%p29_p3, %s1416_s22), 0 }
   0xe   : > { %1398 = sst [smem:[#allocation7_spill]] %s1418_s22  ;;  %s64_s28 = ssub.s32 %s1090_s18, %s1418_s22 }
   0xf   : > { %s1187_s27 = scalar_select %p38_p4, %s1074_s14, %s40_s23  }
  0x10   : > { %p75_p6 = scmp.ne.s32.totalorder %s1066_s12, %s1062_s11  ;;  %s65_s29 = sor.u32 %s64_s28, %s36_s24 }
  0x11   : > { %p94_p7 = scmp.eq.s32.totalorder %s64_s28, 0  ;;  %p66_p8 = scmp.eq.s32.totalorder %s65_s29, 0 }
  0x12   : > { %p1193_p9 = por %p75_p6, %p48_p2  ;;  %s96_s3 = sadd.s32 1, %s1058_s10 }
  0x13   : > { %p106_p10 = scmp.ne.s32.totalorder %s1058_s10, %s1054_s9  ;;  %p107_p11 = scmp.eq.s32.totalorder %s808_s20, 31 }
  0x14   : > { %s1201_s4 = scalar_select %p66_p8, %s1066_s12, %s68_s26  }
  0x15   : > { %s1204_s5 = scalar_select %p94_p7, %s1058_s10, %s96_s3  }
  0x16   : > { %p1206_p12 = por %p107_p11, %p106_p10  ;;  %p811_p13 = scmp.ge.s32.totalorder %s1094_s19, 32 }
  0x18   : > { %129 = sbr.rel (%p811_p13) target bundleno = 74 (0x4a), region = 16 }
  0x1d   : > { %132 = sbr.rel (!%p1179_p5) target bundleno = 35 (0x23), region = 20  ;;  %s134_s7 = sand.u32 (%p1179_p5), 1, %s1074_s14  }
  0x1e   : > { %s865_s8 = sshll.u32 (%p1179_p5), %s1086_s17, 3  ;;  %s812_s23 = sshll.u32 (%p1179_p5), %s134_s7, 4 }
  0x1f   : > { %s142_s28 = scalar_lea.vmem (%p1179_p5), %s1391_s0, %s865_s8  ;;  %s136_s20 = scalar_lea.vmem (%p1179_p5), [#allocation3], %s812_s23 }
  0x20   : > { %v173_v0 = vld [vmem:[%s142_s28] sm:$0xff] (%p1179_p5) }
  0x21   : > { %v175_v1 = vld [vmem:[%s142_s28 + $0x20] sm:$0xff] (%p1179_p5)  ;;  %174 = vst [vmem:[%s136_s20] sm:$0xff] (%p1179_p5), %v173_v0 }
  0x22   : > { %176 = vst [vmem:[%s136_s20 + $0x8] sm:$0xff] %v175_v1 }
  0x23 PF: > { %182 = sbr.rel (!%p1193_p9) target bundleno = 74 (0x4a), region = 58  ;;  %s184_s25 = sand.u32 (%p1193_p9), 1, %s1066_s12  }
  0x24   : > { %s817_s29 = sshll.u32 (%p1193_p9), %s1090_s18, 1  ;;  %s815_s3 = sshll.u32 (%p1193_p9), %s184_s25, 8 }
  0x25   : > { %s866_s7 = sshll.u32 (%p1193_p9), %s1086_s17, 9  ;;  %s1231_s30 = scalar_lea.vmem (%p1193_p9), [#allocation4], %s815_s3 }
  0x26   : > { %s190_s22 = sadd.s32 (%p1193_p9), %s866_s7, %s817_s29 }
  0x27   : > { %s819_s21 = sshll.u32 (%p1193_p9), %s190_s22, 2 }
  0x28   : > { %s1226_s26 = scalar_lea.vmem %s1392_s1, %s819_s21 }
  0x29   : > { %v283_v2 = vld [vmem:[%s1226_s26] sm:$0xff] }
  0x2a   : > { %v285_v3 = vld [vmem:[%s1226_s26 + $0x40] sm:$0xff]  ;;  %284 = vst [vmem:[%s1231_s30] sm:$0xff] %v283_v2 }
  0x2b   : > { %v287_v4 = vld [vmem:[%s1226_s26 + $0x80] sm:$0xff]  ;;  %286 = vst [vmem:[%s1231_s30 + $0x8] sm:$0xff] %v285_v3 }
  0x2c   : > { %288 = vst [vmem:[%s1231_s30 + $0x10] sm:$0xff] %v287_v4  ;;  %v289_v5 = vld [vmem:[%s1226_s26 + $0xc0] sm:$0xff] }
  0x2d   : > { %v291_v6 = vld [vmem:[%s1226_s26 + $0x100] sm:$0xff]  ;;  %290 = vst [vmem:[%s1231_s30 + $0x18] sm:$0xff] %v289_v5 }
  0x2e   : > { %v293_v7 = vld [vmem:[%s1226_s26 + $0x140] sm:$0xff]  ;;  %292 = vst [vmem:[%s1231_s30 + $0x20] sm:$0xff] %v291_v6 }
  0x2f   : > { %294 = vst [vmem:[%s1231_s30 + $0x28] sm:$0xff] %v293_v7  ;;  %v295_v8 = vld [vmem:[%s1226_s26 + $0x180] sm:$0xff] }
  0x30   : > { %v297_v9 = vld [vmem:[%s1226_s26 + $0x1c0] sm:$0xff]  ;;  %296 = vst [vmem:[%s1231_s30 + $0x30] sm:$0xff] %v295_v8 }
  0x31   : > { %v299_v10 = vld [vmem:[%s1226_s26 + $0x200] sm:$0xff]  ;;  %298 = vst [vmem:[%s1231_s30 + $0x38] sm:$0xff] %v297_v9 }
  0x32   : > { %300 = vst [vmem:[%s1231_s30 + $0x40] sm:$0xff] %v299_v10  ;;  %v301_v11 = vld [vmem:[%s1226_s26 + $0x240] sm:$0xff] }
  0x33   : > { %v303_v12 = vld [vmem:[%s1226_s26 + $0x280] sm:$0xff]  ;;  %302 = vst [vmem:[%s1231_s30 + $0x48] sm:$0xff] %v301_v11 }
  0x34   : > { %v305_v13 = vld [vmem:[%s1226_s26 + $0x2c0] sm:$0xff]  ;;  %304 = vst [vmem:[%s1231_s30 + $0x50] sm:$0xff] %v303_v12 }
  0x35   : > { %306 = vst [vmem:[%s1231_s30 + $0x58] sm:$0xff] %v305_v13  ;;  %v307_v14 = vld [vmem:[%s1226_s26 + $0x300] sm:$0xff] }
  0x36   : > { %v309_v15 = vld [vmem:[%s1226_s26 + $0x340] sm:$0xff]  ;;  %308 = vst [vmem:[%s1231_s30 + $0x60] sm:$0xff] %v307_v14 }
  0x37   : > { %v311_v16 = vld [vmem:[%s1226_s26 + $0x380] sm:$0xff]  ;;  %310 = vst [vmem:[%s1231_s30 + $0x68] sm:$0xff] %v309_v15 }
  0x38   : > { %312 = vst [vmem:[%s1231_s30 + $0x70] sm:$0xff] %v311_v16  ;;  %v313_v17 = vld [vmem:[%s1226_s26 + $0x3c0] sm:$0xff] }
  0x39   : > { %v315_v18 = vld [vmem:[%s1226_s26 + $0x400] sm:$0xff]  ;;  %314 = vst [vmem:[%s1231_s30 + $0x78] sm:$0xff] %v313_v17 }
  0x3a   : > { %v317_v19 = vld [vmem:[%s1226_s26 + $0x440] sm:$0xff]  ;;  %316 = vst [vmem:[%s1231_s30 + $0x80] sm:$0xff] %v315_v18 }
  0x3b   : > { %318 = vst [vmem:[%s1231_s30 + $0x88] sm:$0xff] %v317_v19  ;;  %v319_v20 = vld [vmem:[%s1226_s26 + $0x480] sm:$0xff] }
  0x3c   : > { %v321_v21 = vld [vmem:[%s1226_s26 + $0x4c0] sm:$0xff]  ;;  %320 = vst [vmem:[%s1231_s30 + $0x90] sm:$0xff] %v319_v20 }
  0x3d   : > { %v323_v22 = vld [vmem:[%s1226_s26 + $0x500] sm:$0xff]  ;;  %322 = vst [vmem:[%s1231_s30 + $0x98] sm:$0xff] %v321_v21 }
  0x3e   : > { %324 = vst [vmem:[%s1231_s30 + $0xa0] sm:$0xff] %v323_v22  ;;  %v325_v23 = vld [vmem:[%s1226_s26 + $0x540] sm:$0xff] }
  0x3f   : > { %v327_v24 = vld [vmem:[%s1226_s26 + $0x580] sm:$0xff]  ;;  %326 = vst [vmem:[%s1231_s30 + $0xa8] sm:$0xff] %v325_v23 }
  0x40   : > { %v329_v25 = vld [vmem:[%s1226_s26 + $0x5c0] sm:$0xff]  ;;  %328 = vst [vmem:[%s1231_s30 + $0xb0] sm:$0xff] %v327_v24 }
  0x41   : > { %330 = vst [vmem:[%s1231_s30 + $0xb8] sm:$0xff] %v329_v25  ;;  %v331_v26 = vld [vmem:[%s1226_s26 + $0x600] sm:$0xff] }
  0x42   : > { %v333_v27 = vld [vmem:[%s1226_s26 + $0x640] sm:$0xff]  ;;  %332 = vst [vmem:[%s1231_s30 + $0xc0] sm:$0xff] %v331_v26 }
  0x43   : > { %v335_v28 = vld [vmem:[%s1226_s26 + $0x680] sm:$0xff]  ;;  %334 = vst [vmem:[%s1231_s30 + $0xc8] sm:$0xff] %v333_v27 }
  0x44   : > { %336 = vst [vmem:[%s1231_s30 + $0xd0] sm:$0xff] %v335_v28  ;;  %v337_v29 = vld [vmem:[%s1226_s26 + $0x6c0] sm:$0xff] }
  0x45   : > { %v339_v30 = vld [vmem:[%s1226_s26 + $0x700] sm:$0xff]  ;;  %338 = vst [vmem:[%s1231_s30 + $0xd8] sm:$0xff] %v337_v29 }
  0x46   : > { %v341_v31 = vld [vmem:[%s1226_s26 + $0x740] sm:$0xff]  ;;  %340 = vst [vmem:[%s1231_s30 + $0xe0] sm:$0xff] %v339_v30 }
  0x47   : > { %342 = vst [vmem:[%s1231_s30 + $0xe8] sm:$0xff] %v341_v31  ;;  %v343_v32 = vld [vmem:[%s1226_s26 + $0x780] sm:$0xff] }
  0x48   : > { %v345_v33 = vld [vmem:[%s1226_s26 + $0x7c0] sm:$0xff]  ;;  %344 = vst [vmem:[%s1231_s30 + $0xf0] sm:$0xff] %v343_v32 }
  0x49   : > { %346 = vst [vmem:[%s1231_s30 + $0xf8] sm:$0xff] %v345_v33 }
  0x4a PF: > { %p820_p0 = scmp.ge.s32.totalorder %s1094_s19, 1  ;;  %p351_p1 = scmp.lt.s32.totalorder %s1094_s19, 33 }
  0x4c   : > { %p352_p2 = pnand %p820_p0, %p351_p1 }
  0x4d   : > { %s358_s21 = sand.u32 (!%p352_p2), 1, %s1070_s13   ;;  %s365_s22 = sand.u32 (!%p352_p2), 1, %s1062_s11  }
  0x4e   : > { %355 = sbr.rel (%p352_p2) target bundleno = 375 (0x177), region = 96  ;;  %s1298_s23 = sshll.u32 (!%p352_p2), %s358_s21, 4 }
  0x4f   : > { %s822_s28 = sshll.u32 (!%p352_p2), %s365_s22, 8  ;;  %s386_s20 = sand.u32 (!%p352_p2), 1, %s1054_s9  }
  0x50   : > { %s823_s25 = sshll.u32 (!%p352_p2), %s386_s20, 5  ;;  %s360_s29 = scalar_lea.vmem (!%p352_p2), [#allocation3], %s1298_s23 }
  0x51   : > { %s1302_s3 = scalar_lea.vmem (!%p352_p2), [#allocation4], %s822_s28  ;;  %s1304_s7 = scalar_lea.vmem (!%p352_p2), [#allocation5], %s823_s25 }
  0x52   : > { %p824_p3 = scmp.ne.s32.totalorder (!%p352_p2), %s1078_s15, 0 }
  0x54   : > { %398 = sbr.rel (%p824_p3) target bundleno = 92 (0x5c), region = 108 }
  0x59   : > { %v1096_v34 = vmov 0.0  }
  0x5a   : > { %399 = vst [vmem:[#allocation2 + $0x10] sm:$0xff] %v1096_v34  ;;  %400 = vst [vmem:[#allocation2] sm:$0xff] %v1096_v34 }
  0x5b   : > { %401 = vst [vmem:[#allocation2 + $0x18] sm:$0xff] %v1096_v34  ;;  %402 = vst [vmem:[#allocation2 + $0x8] sm:$0xff] %v1096_v34 }
  0x5c PF: > { %v957_v35 = vld [vmem:[%s1302_s3 + $0x74] ss:$8 sps:$4 sm:$0xff]   ;;  %v959_v36 = vld [vmem:[%s1302_s3 + $0x70] ss:$8 sps:$4 sm:$0xff]   ;;  %v960_v37 = vld [vmem:[%s1302_s3 + $0x64] ss:$8 sps:$4 sm:$0xff]  }
  0x5d   : > { %611 = vmatprep.subr.bf16.mxu0 %v957_v35  ;;  %v962_v38 = vld [vmem:[%s1302_s3 + $0x60] ss:$8 sps:$4 sm:$0xff]   ;;  %v963_v39 = vld [vmem:[%s1302_s3 + $0x54] ss:$8 sps:$4 sm:$0xff]   ;;  %v965_v40 = vld [vmem:[%s1302_s3 + $0x50] ss:$8 sps:$4 sm:$0xff]  }
  0x5e   : > { %612 = vmatpush1.bf16.msra.mxu0 %v959_v36  ;;  %v966_v41 = vld [vmem:[%s1302_s3 + $0x44] ss:$8 sps:$4 sm:$0xff]   ;;  %v968_v42 = vld [vmem:[%s1302_s3 + $0x40] ss:$8 sps:$4 sm:$0xff]   ;;  %v969_v43 = vld [vmem:[%s1302_s3 + $0x34] ss:$8 sps:$4 sm:$0xff]  }
  0x5f   : > { %613 = vmatprep.subr.bf16.mxu0 %v960_v37  ;;  %v971_v44 = vld [vmem:[%s1302_s3 + $0x30] ss:$8 sps:$4 sm:$0xff]   ;;  %v972_v45 = vld [vmem:[%s1302_s3 + $0x24] ss:$8 sps:$4 sm:$0xff]   ;;  %v974_v46 = vld [vmem:[%s1302_s3 + $0x20] ss:$8 sps:$4 sm:$0xff]  }
  0x60   : > { %v975_v47 = vld [vmem:[%s1302_s3 + $0x14] ss:$8 sps:$4 sm:$0xff]   ;;  %v977_v49 = vld [vmem:[%s1302_s3 + $0x10] ss:$8 sps:$4 sm:$0xff]   ;;  %v978_v50 = vld [vmem:[%s1302_s3 + $0x4] ss:$8 sps:$4 sm:$0xff]  }
  0x61   : > { %v1007_v48 = vld [vmem:[%s360_s29 + $0x4] ss:$8 sps:$4 sm:$0xff]   ;;  %v980_v51 = vld [vmem:[%s1302_s3] ss:$8 sps:$4 sm:$0xff]   ;;  %v983_v53 = vld [vmem:[%s1302_s3 + $0xf0] ss:$8 sps:$4 sm:$0xff]  }
  0x62   : > { %614 = vmatpush1.bf16.msra.mxu0 %v962_v38  ;;  %643 = vmatprep.mubr.bf16.mxu0 %v1007_v48  ;;  %v981_v52 = vld [vmem:[%s1302_s3 + $0xf4] ss:$8 sps:$4 sm:$0xff]   ;;  %v984_v54 = vld [vmem:[%s1302_s3 + $0xe4] ss:$8 sps:$4 sm:$0xff]   ;;  %v986_v55 = vld [vmem:[%s1302_s3 + $0xe0] ss:$8 sps:$4 sm:$0xff]  }
  0x63   : > { %615 = vmatprep.subr.bf16.mxu0 %v963_v39  ;;  %v987_v56 = vld [vmem:[%s1302_s3 + $0xd4] ss:$8 sps:$4 sm:$0xff]   ;;  %v989_v57 = vld [vmem:[%s1302_s3 + $0xd0] ss:$8 sps:$4 sm:$0xff]   ;;  %v990_v58 = vld [vmem:[%s1302_s3 + $0xc4] ss:$8 sps:$4 sm:$0xff]  }
  0x64   : > { %v992_v59 = vld [vmem:[%s1302_s3 + $0xc0] ss:$8 sps:$4 sm:$0xff]   ;;  %v993_v60 = vld [vmem:[%s1302_s3 + $0xb4] ss:$8 sps:$4 sm:$0xff]   ;;  %v995_v61 = vld [vmem:[%s1302_s3 + $0xb0] ss:$8 sps:$4 sm:$0xff]  }
  0x65   : > { %v996_v62 = vld [vmem:[%s1302_s3 + $0xa4] ss:$8 sps:$4 sm:$0xff]   ;;  %v998_v63 = vld [vmem:[%s1302_s3 + $0xa0] ss:$8 sps:$4 sm:$0xff]   ;;  %v999_v0 = vld [vmem:[%s1302_s3 + $0x94] ss:$8 sps:$4 sm:$0xff]  }
  0x66   : > { %616 = vmatpush1.bf16.msra.mxu0 %v965_v40  ;;  %v1001_v1 = vld [vmem:[%s1302_s3 + $0x90] ss:$8 sps:$4 sm:$0xff]   ;;  %v1002_v2 = vld [vmem:[%s1302_s3 + $0x84] ss:$8 sps:$4 sm:$0xff]   ;;  %v1004_v3 = vld [vmem:[%s1302_s3 + $0x80] ss:$8 sps:$4 sm:$0xff]  }
  0x67   : > { %617 = vmatprep.subr.bf16.mxu0 %v966_v41  ;;  %v1005_v4 = vld [vmem:[%s360_s29] ss:$8 sps:$4 sm:$0xff]   ;;  %p859_p4 = scmp.ne.s32.totalorder %s1078_s15, 3 }
  0x68   : > { %v403_v5 = vld [vmem:[#allocation2 + $0x10] sm:$0xff]  ;;  %v404_v7 = vld [vmem:[#allocation2] sm:$0xff]  ;;  %v405_v10 = vld [vmem:[#allocation2 + $0x18] sm:$0xff] }
  0x69   : > { %v406_v13 = vld [vmem:[#allocation2 + $0x8] sm:$0xff] }
  0x6a   : > { %618 = vmatpush1.bf16.msra.mxu0 %v968_v42 }
  0x6b   : > { %619 = vmatprep.subr.bf16.mxu0 %v969_v43 }
  0x6e   : > { %620 = vmatpush1.bf16.msra.mxu0 %v971_v44 }
  0x6f   : > { %621 = vmatprep.subr.bf16.mxu0 %v972_v45 }
  0x72   : > { %622 = vmatpush1.bf16.msra.mxu0 %v974_v46 }
  0x73   : > { %623 = vmatprep.subr.bf16.mxu0 %v975_v47 }
  0x76   : > { %624 = vmatpush1.bf16.msra.mxu0 %v977_v49 }
  0x77   : > { %625 = vmatprep.subr.bf16.mxu0 %v978_v50 }
  0x7a   : > { %626 = vmatpush1.bf16.msra.mxu0 %v980_v51 }
  0x7b   : > { %627 = vmatprep.subr.bf16.mxu0 %v981_v52 }
  0x7e   : > { %628 = vmatpush2.bf16.msra.mxu0 %v983_v53 }
  0x7f   : > { %629 = vmatprep.subr.bf16.mxu0 %v984_v54 }
  0x82   : > { %630 = vmatpush2.bf16.msra.mxu0 %v986_v55 }
  0x83   : > { %631 = vmatprep.subr.bf16.mxu0 %v987_v56 }
  0x86   : > { %632 = vmatpush2.bf16.msra.mxu0 %v989_v57 }
  0x87   : > { %633 = vmatprep.subr.bf16.mxu0 %v990_v58 }
  0x8a   : > { %634 = vmatpush2.bf16.msra.mxu0 %v992_v59 }
  0x8b   : > { %635 = vmatprep.subr.bf16.mxu0 %v993_v60 }
  0x8e   : > { %636 = vmatpush2.bf16.msra.mxu0 %v995_v61 }
  0x8f   : > { %637 = vmatprep.subr.bf16.mxu0 %v996_v62 }
  0x92   : > { %638 = vmatpush2.bf16.msra.mxu0 %v998_v63 }
  0x93   : > { %639 = vmatprep.subr.bf16.mxu0 %v999_v0 }
  0x96   : > { %640 = vmatpush2.bf16.msra.mxu0 %v1001_v1 }
  0x97   : > { %641 = vmatprep.subr.bf16.mxu0 %v1002_v2 }
  0x9a   : > { %642 = vmatpush2.bf16.msra.mxu0 %v1004_v3 }
  0x9d   : > { %644 = vmatmul.mubr.bf16.vlgmr.msra.gmra.mxu0 %v1005_v4 }
 0x15d   : > { %v645_v6 = vpop.f32.mrf.mxu0 }
 0x15e   : > { %v654_v8 = vadd.f32 %v645_v6, %v403_v5 }
 0x15f   : > { %v647_v9 = vpop.f32.mrf.mxu0 }
 0x160   : > { %658 = vst [vmem:[#allocation2 + $0x10] sm:$0xff] %v654_v8  ;;  %v655_v11 = vadd.f32 %v647_v9, %v404_v7 }
 0x161   : > { %v649_v12 = vpop.f32.mrf.mxu0 }
 0x162   : > { %659 = vst [vmem:[#allocation2] sm:$0xff] %v655_v11  ;;  %v656_v14 = vadd.f32 %v649_v12, %v405_v10  ;;  %665 = sbr.rel (%p859_p4) target bundleno = 367 (0x16f), region = 112 }
 0x163   : > { %v651_v15 = vpop.f32.mrf.mxu0 }
 0x164   : > { %660 = vst [vmem:[#allocation2 + $0x18] sm:$0xff] %v656_v14  ;;  %v657_v16 = vadd.f32 %v651_v15, %v406_v13 }
 0x166   : > { %661 = vst [vmem:[#allocation2 + $0x8] sm:$0xff] %v657_v16 }
 0x167   : > { %v666_v17 = vld [vmem:[#allocation2 + $0x10] sm:$0xff] }
 0x168   : > { %670 = vst [vmem:[%s1304_s7] sm:$0xff] %v666_v17 }
 0x169   : > { %v667_v18 = vld [vmem:[#allocation2] sm:$0xff] }
 0x16a   : > { %671 = vst [vmem:[%s1304_s7 + $0x8] sm:$0xff] %v667_v18 }
 0x16b   : > { %v668_v19 = vld [vmem:[#allocation2 + $0x18] sm:$0xff] }
 0x16c   : > { %672 = vst [vmem:[%s1304_s7 + $0x10] sm:$0xff] %v668_v19 }
 0x16d   : > { %v669_v20 = vld [vmem:[#allocation2 + $0x8] sm:$0xff] }
 0x16e   : > { %673 = vst [vmem:[%s1304_s7 + $0x18] sm:$0xff] %v669_v20 }
 0x16f PF: > { %680 = sbr.rel (!%p1206_p12) target bundleno = 375 (0x177), region = 116  ;;  %s867_s9 = sshll.u32 (%p1206_p12), %s1082_s16, 4  ;;  %v699_v21 = vld [vmem:[%s1304_s7] sm:$0xff] (%p1206_p12) }
 0x170   : > { %s686_s15 = scalar_lea.vmem (%p1206_p12), %s1393_s2, %s867_s9 }
 0x171   : > { %v701_v22 = vld [vmem:[%s1304_s7 + $0x8] sm:$0xff] (%p1206_p12)  ;;  %700 = vst [vmem:[%s686_s15] sm:$0xff] (%p1206_p12), %v699_v21 }
 0x172   : > { %702 = vst [vmem:[%s686_s15 + $0x8] sm:$0xff] (%p1206_p12), %v701_v22 }
 0x173   : > { %v703_v23 = vld [vmem:[%s1304_s7 + $0x10] sm:$0xff] (%p1206_p12) }
 0x174   : > { %704 = vst [vmem:[%s686_s15 + $0x80] sm:$0xff] %v703_v23 }
 0x175   : > { %v705_v24 = vld [vmem:[%s1304_s7 + $0x18] sm:$0xff] }
 0x176   : > { %706 = vst [vmem:[%s686_s15 + $0x88] sm:$0xff] %v705_v24 }
 0x177 PF: > { %s12_s19 = sadd.s32 1, %s1094_s19   ;;  %s1401_s6 = sld [smem:[#allocation6_spill]] }
 0x178   : > { %p9_p5 = scmp.ge.s32.totalorder %s12_s19, 34   ;;  %s1402_s24 = sld [smem:[#allocation7_spill]] }
 0x179   : > { %s1403_s9 = smov %s1058_s10  ;;  %s1404_s10 = smov %s1204_s5 }
 0x17a   : > { %s1405_s11 = smov %s1066_s12  ;;  %s1406_s12 = smov %s1201_s4 }
 0x17b   : > { %s1407_s13 = smov %s1074_s14  ;;  %s1408_s14 = smov %s1187_s27 }
 0x17c   : > { %s1409_s15 = smov %s1086_s17  ;;  %s1410_s16 = smov %s1090_s18 }
 0x17d   : > { %s1411_s17 = smov %s1401_s6  ;;  %11 = sbr.rel (!%p9_p5) target bundleno = 6 (0x6), region = 178 }
 0x17e   : > { %s1412_s18 = smov %s1402_s24 }

// kernel: video_resnet_forward.35
= control target key start
LH: loop header
LB: loop body
LE: loop exit
PB: predicated region body
PF: predicated region fallthrough
CT: control target
= control target key end

     0   :  { %s795_s12 = smov 0   ;;  %s797_s13 = smov 0   ;;  %s896_s0 = inlined_call_operand.vmem [shape: bf16[16,2048], index: 0, kind: input, shape index: {}]   ;;  %s897_s1 = inlined_call_operand.vmem [shape: bf16[2048,128], index: 1, kind: input, shape index: {}]   ;;  %s898_s2 = inlined_call_operand.vmem [shape: f32[1,128], index: 2, kind: input, shape index: {}]   ;;  %s899_s3 = inlined_call_operand.vmem [shape: f32[16,128], index: 3, kind: output, shape index: {}]  }
   0x1   :  { %s799_s14 = smov 0   ;;  %s801_s15 = smov 0  }
   0x2   :  { %s803_s16 = smov 0  }
   0x3 LB: > { %s25_s17 = sadd.s32 1, %s768_s15  ;;  %p48_p1 = scmp.ne.s32.totalorder %s760_s13, %s756_s12  ;;  %s772_s16 = sphi %s803_s16, %s13_s16   ;;  %s768_s15 = sphi %s801_s15, %s903_s15   ;;  %s764_s14 = sphi %s799_s14, %s902_s14   ;;  %s760_s13 = sphi %s797_s13, %s901_s13   ;;  %s756_s12 = sphi %s795_s12, %s900_s12  }
   0x4   : > { %p26_p0 = scmp.ge.s32.totalorder %s25_s17, 8  ;;  %p49_p2 = scmp.eq.s32.totalorder %s772_s16, 0 }
   0x5   : > { %s41_s19 = sadd.s32 1, %s760_s13  ;;  %p618_p5 = scmp.ge.s32.totalorder %s772_s16, 8 }
   0x6   : > { %s905_s17 = smov (%p26_p0, %s25_s17), 0  ;;  %p50_p3 = por %p49_p2, %p48_p1 }
   0x7   : > { %s37_s18 = ssub.s32 %s768_s15, %s905_s17  ;;  %162 = sbr.rel (%p618_p5) target bundleno = 18 (0x12), region = 20 }
   0x8   : > { %p39_p4 = scmp.eq.s32.totalorder %s37_s18, 0 }
   0xa   : > { %s830_s20 = scalar_select %p39_p4, %s760_s13, %s41_s19  }
   0xc   : > { %165 = sbr.rel (!%p50_p3) target bundleno = 18 (0x12), region = 24  ;;  %s167_s21 = sand.u32 (%p50_p3), 1, %s760_s13  }
   0xd   : > { %s651_s22 = sshll.u32 (%p50_p3), %s768_s15, 3  ;;  %s619_s23 = sshll.u32 (%p50_p3), %s167_s21, 4 }
   0xe   : > { %s175_s26 = scalar_lea.vmem (%p50_p3), %s896_s0, %s651_s22  ;;  %s169_s27 = scalar_lea.vmem (%p50_p3), [#allocation3], %s619_s23 }
   0xf   : > { %v206_v0 = vld [vmem:[%s175_s26] sm:$0xff] (%p50_p3) }
  0x10   : > { %v208_v1 = vld [vmem:[%s175_s26 + $0x40] sm:$0xff] (%p50_p3)  ;;  %207 = vst [vmem:[%s169_s27] sm:$0xff] (%p50_p3), %v206_v0 }
  0x11   : > { %209 = vst [vmem:[%s169_s27 + $0x8] sm:$0xff] %v208_v1 }
  0x12 PF: > { %p622_p6 = scmp.ge.s32.totalorder %s772_s16, 1  ;;  %p226_p7 = scmp.lt.s32.totalorder %s772_s16, 9 }
  0x14   : > { %p227_p8 = pnand %p622_p6, %p226_p7 }
  0x15   : > { %s233_s28 = sand.u32 (!%p227_p8), 1, %s756_s12   ;;  %s624_s29 = sshll.u32 (!%p227_p8), %s764_s14, 5 }
  0x16   : > { %230 = sbr.rel (%p227_p8) target bundleno = 281 (0x119), region = 66  ;;  %s842_s30 = sshll.u32 (!%p227_p8), %s233_s28, 4 }
  0x17   : > { %p273_p9 = scmp.lt.s32.totalorder (!%p227_p8), %s624_s29, 255  ;;  %s235_s8 = scalar_lea.vmem (!%p227_p8), [#allocation3], %s842_s30 }
  0x18   : > { %p626_p10 = scmp.ne.s32.totalorder (!%p227_p8), %s764_s14, 0 }
  0x1b   : > { %s907_s29 = smov (!%p273_p9, %s624_s29), 255  ;;  %297 = sbr.rel (%p626_p10) target bundleno = 34 (0x22), region = 74 }
  0x1c   : > { %s625_s4 = sshll.u32 %s907_s29, 2 }
  0x1d   : > { %s847_s7 = scalar_lea.vmem %s897_s1, %s625_s4 }
  0x20   : > { %v774_v2 = vmov 0.0  }
  0x21   : > { %298 = vst [vmem:[#allocation2] sm:$0xff] %v774_v2  ;;  %299 = vst [vmem:[#allocation2 + $0x8] sm:$0xff] %v774_v2 }
  0x22 PF: > { %v715_v3 = vld [vmem:[%s847_s7 + $0x78] sm:$0xff]   ;;  %v717_v5 = vld [vmem:[%s847_s7 + $0x70] sm:$0xff]   ;;  %v719_v7 = vld [vmem:[%s847_s7 + $0x68] sm:$0xff]   ;;  %p645_p11 = scmp.ne.s32.totalorder %s764_s14, 7 }
  0x23   : > { %v716_v4 = vld [vmem:[%s847_s7 + $0x38] sm:$0xff]   ;;  %652 = vmatprep.subr.bf16.mxu0 %v715_v3  ;;  %v718_v6 = vld [vmem:[%s847_s7 + $0x30] sm:$0xff]   ;;  %v720_v8 = vld [vmem:[%s847_s7 + $0x28] sm:$0xff]  }
  0x24   : > { %653 = vmatpush3.bf16.msra.mxu0 %v716_v4  ;;  %v721_v9 = vld [vmem:[%s847_s7 + $0x60] sm:$0xff]   ;;  %v723_v11 = vld [vmem:[%s847_s7 + $0x58] sm:$0xff]   ;;  %v725_v13 = vld [vmem:[%s847_s7 + $0x50] sm:$0xff]  }
  0x25   : > { %654 = vmatprep.subr.bf16.mxu0 %v717_v5  ;;  %v722_v10 = vld [vmem:[%s847_s7 + $0x20] sm:$0xff]   ;;  %v724_v12 = vld [vmem:[%s847_s7 + $0x18] sm:$0xff]   ;;  %v726_v15 = vld [vmem:[%s847_s7 + $0x10] sm:$0xff]  }
  0x26   : > { %v733_v14 = vld [vmem:[%s235_s8 + $0x4] ss:$8 sps:$4 sm:$0xff]   ;;  %v731_v20 = vld [vmem:[%s235_s8] ss:$8 sps:$4 sm:$0xff]  }
  0x27   : > { %474 = vmatprep.mubr.bf16.mxu0 %v733_v14  ;;  %v727_v16 = vld [vmem:[%s847_s7 + $0x48] sm:$0xff]   ;;  %v729_v18 = vld [vmem:[%s847_s7 + $0x40] sm:$0xff]  }
  0x28   : > { %655 = vmatpush3.bf16.msra.mxu0 %v718_v6  ;;  %v728_v17 = vld [vmem:[%s847_s7 + $0x8] sm:$0xff]   ;;  %v730_v19 = vld [vmem:[%s847_s7] sm:$0xff]  }
  0x29   : > { %656 = vmatprep.subr.bf16.mxu0 %v719_v7  ;;  %v300_v22 = vld [vmem:[#allocation2] sm:$0xff]  ;;  %v301_v27 = vld [vmem:[#allocation2 + $0x8] sm:$0xff] }
  0x2c   : > { %657 = vmatpush3.bf16.msra.mxu0 %v720_v8 }
  0x2d   : > { %658 = vmatprep.subr.bf16.mxu0 %v721_v9 }
  0x30   : > { %659 = vmatpush3.bf16.msra.mxu0 %v722_v10 }
  0x31   : > { %660 = vmatprep.subr.bf16.mxu0 %v723_v11 }
  0x34   : > { %661 = vmatpush3.bf16.msra.mxu0 %v724_v12 }
  0x35   : > { %662 = vmatprep.subr.bf16.mxu0 %v725_v13 }
  0x38   : > { %663 = vmatpush3.bf16.msra.mxu0 %v726_v15 }
  0x39   : > { %664 = vmatprep.subr.bf16.mxu0 %v727_v16 }
  0x3c   : > { %665 = vmatpush3.bf16.msra.mxu0 %v728_v17 }
  0x3d   : > { %666 = vmatprep.subr.bf16.mxu0 %v729_v18 }
  0x40   : > { %667 = vmatpush3.bf16.msra.mxu0 %v730_v19 }
  0x43   : > { %475 = vmatmul.mubr.bf16.vlgmr.msra.gmra.mxu0 %v731_v20 }
 0x103   : > { %v668_v21 = vpop.f32.mrf.mxu0 }
 0x105   : > { %v669_v23 = vpop.f32.mrf.mxu0 }
 0x106   : > { %v670_v24 = vadd.f32 %v669_v23, %v668_v21 }
 0x107   : > { %v671_v25 = vpop.f32.mrf.mxu0 }
 0x108   : > { %v483_v26 = vadd.f32 %v670_v24, %v300_v22 }
 0x109   : > { %v672_v28 = vpop.f32.mrf.mxu0 }
 0x10a   : > { %485 = vst [vmem:[#allocation2] sm:$0xff] %v483_v26  ;;  %v673_v29 = vadd.f32 %v672_v28, %v671_v25  ;;  %490 = sbr.rel (%p645_p11) target bundleno = 281 (0x119), region = 78 }
 0x10c   : > { %v484_v30 = vadd.f32 %v673_v29, %v301_v27 }
 0x10e   : > { %486 = vst [vmem:[#allocation2 + $0x8] sm:$0xff] %v484_v30 }
 0x10f   : > { %v646_v32 = vld [vmem:[%s898_s2] ss:$0 sm:$0xff] }
 0x111   : > { %v491_v31 = vld [vmem:[#allocation2] sm:$0xff] }
 0x112   : > { %v500_v34 = vadd.f32 %v646_v32, %v491_v31 }
 0x114   : > { %502 = vst [vmem:[%s899_s3] sm:$0xff] %v500_v34 }
 0x115   : > { %v492_v33 = vld [vmem:[#allocation2 + $0x8] sm:$0xff] }
 0x116   : > { %v501_v35 = vadd.f32 %v646_v32, %v492_v33 }
 0x118   : > { %503 = vst [vmem:[%s899_s3 + $0x8] sm:$0xff] %v501_v35 }
 0x119 PF: > { %s13_s16 = sadd.s32 1, %s772_s16   ;;  %s900_s12 = smov %s760_s13 }
 0x11a   : > { %p10_p12 = scmp.ge.s32.totalorder %s13_s16, 10   ;;  %s901_s13 = smov %s830_s20 }
 0x11b   : > { %s902_s14 = smov %s768_s15  ;;  %s903_s15 = smov %s905_s17 }
 0x11c   :  { %12 = sbr.rel (!%p10_p12) target bundleno = 3 (0x3), region = 119 }

</bundles_post_ra>
